<compile_context>
chip_gen: v6e
topology: v6e:2x2x1
jax: 0.10.0
libtpu: 0.0.40
codegen_flags: <defaults>
</compile_context>

<pallas_src>
import numpy as np

import jax
import jax.numpy as jnp
from jax import lax
from jax.experimental import pallas as pl
from jax.experimental.pallas import tpu as pltpu

LANES = 128          # per-sample lane slot width
N_BLOCKS = 6         # block1..block6 in the torch module
LRELU_SLOPE = 0.2


# ----------------------------- kernel ---------------------------------------


def _make_kernel(seq_len, b_tile, hidden, c_in_p):
    """Whole-network fused kernel; one grid step = b_tile samples."""
    btot = b_tile * LANES

    # Static set of "valid length" values that need a post-conv dead-lane mask
    # (only conv outputs that feed another conv, and only when n < 128).
    mask_ns = set()
    nn = seq_len
    if nn < LANES:
        mask_ns.add(nn)                      # after `first`
    for _ in range(N_BLOCKS):
        if nn < LANES:
            mask_ns.add(nn)                  # after conv #1 of each block
        nn //= 2

    def kernel(x_ref, wf_ref, bf_ref, wc_ref, bc_ref, wl_ref, bl_ref,
               sel_ref, o_ref):
        # ---- hoisted lane-position iota + all masks (emitted exactly once) --
        lane_h = (lax.broadcasted_iota(jnp.int32, (hidden, btot), 1)
                  & (LANES - 1))                               # lane % 128
        keep = {m: (lane_h < m) for m in sorted(mask_ns)}      # dead-lane masks

        keep_prev_h = keep_next_h = keep_prev_c = keep_next_c = None
        if seq_len == LANES:
            # slot-boundary masks ('same' padding) -- only full-length layers.
            keep_prev_h = lane_h != 0
            keep_next_h = lane_h != (LANES - 1)
            if c_in_p == hidden:
                keep_prev_c, keep_next_c = keep_prev_h, keep_next_h
            else:
                lane_c = (lax.broadcasted_iota(jnp.int32, (c_in_p, btot), 1)
                          & (LANES - 1))
                keep_prev_c = lane_c != 0
                keep_next_c = lane_c != (LANES - 1)

        def conv3(v, wp, wm, wn, bias, *, n, leaky, mask_out,
                  keep_prev=None, keep_next=None):
            # v: (Cin, btot) f32, each 128-lane slot holds one sample with
            # lanes >= n zero.  wp/wm/wn: (Cout, Cin) bf16 taps for in[t-1],
            # in[t], in[t+1].  Three accumulating MXU matmuls (no im2col).
            prev = pltpu.roll(v, shift=1, axis=1)           # in[t-1]
            nxt = pltpu.roll(v, shift=btot - 1, axis=1)     # in[t+1]
            if n == LANES:
                # full-length layer: zero the lanes that wrapped across slots.
                prev = jnp.where(keep_prev, prev, 0.0)
                nxt = jnp.where(keep_next, nxt, 0.0)
            y = jnp.dot(wp, prev.astype(jnp.bfloat16),
                        preferred_element_type=jnp.float32)
            y += jnp.dot(wm, v.astype(jnp.bfloat16),
                         preferred_element_type=jnp.float32)
            y += jnp.dot(wn, nxt.astype(jnp.bfloat16),
                         preferred_element_type=jnp.float32)
            y = y + bias                                     # (Cout, 1), f32
            if leaky:
                y = jnp.maximum(y, LRELU_SLOPE * y)          # LeakyReLU(0.2)
            if mask_out and n < LANES:
                y = jnp.where(keep[n], y, 0.0)               # restore invariant
            return y

        # ---- `first` conv (no activation in the torch module) --------------
        n = seq_len
        act = conv3(x_ref[0], wf_ref[0], wf_ref[1], wf_ref[2], bf_ref[...],
                    n=n, leaky=False, mask_out=True,
                    keep_prev=keep_prev_c, keep_next=keep_next_c)

        # ---- block1..block6 -------------------------------------------------
        for blk in range(N_BLOCKS):
            i1, i2 = 2 * blk, 2 * blk + 1
            act = conv3(act, wc_ref[3 * i1], wc_ref[3 * i1 + 1],
                        wc_ref[3 * i1 + 2], bc_ref[i1],
                        n=n, leaky=True, mask_out=True,
                        keep_prev=keep_prev_h, keep_next=keep_next_h)
            act = conv3(act, wc_ref[3 * i2], wc_ref[3 * i2 + 1],
                        wc_ref[3 * i2 + 2], bc_ref[i2],
                        n=n, leaky=True, mask_out=False,      # pool ignores dead lanes
                        keep_prev=keep_prev_h, keep_next=keep_next_h)
            # AvgPool1d(3, stride=2, pad=1, count_include_pad=True) as ONE MXU
            # matmul with a precomputed block-diagonal 0/1 selection matrix
            # (it also zeroes the dead output lanes of every slot).
            act = jnp.dot(act.astype(jnp.bfloat16), sel_ref[blk],
                          preferred_element_type=jnp.float32) * (1.0 / 3.0)
            n //= 2

        # ---- flatten -> Linear(H*L//64, 1) -> Sigmoid, per lane slot --------
        # torch.flatten of (H, l_f) is channel-major == this (H, l_f) layout;
        # wl is (H, 128) zero-padded beyond l_f.
        wl = wl_ref[...]
        bl = bl_ref[...]
        rows = []
        for s in range(b_tile):
            seg = act[:, s * LANES:(s + 1) * LANES] * wl              # (H, 128)
            logit = jnp.sum(jnp.sum(seg, axis=1, keepdims=True),
                            axis=0, keepdims=True)                    # (1, 1)
            logit = logit + bl
            score = 1.0 / (1.0 + jnp.exp(-logit))                     # Sigmoid
            rows.append(jnp.broadcast_to(score, (1, LANES)))
        o_ref[0] = jnp.concatenate(rows, axis=0).astype(o_ref.dtype)  # (b_tile,128)

    return kernel


# ----------------------------- host-side helpers -----------------------------


def _pick_b_tile(batch, max_tile=4):
    """>= 2 grid steps (both v7x TCs busy) while widening matmul N toward 256+."""
    if batch <= 1:
        return 1
    return max(1, min(max_tile, batch // 2))


def _build_pool_sels(b_tile, seq_len):
    """(N_BLOCKS, b_tile*128, b_tile*128) bf16 block-diagonal pool matrices."""
    i = np.arange(LANES)[:, None]
    j = np.arange(LANES)[None, :]
    sels = []
    n = seq_len
    for _ in range(N_BLOCKS):
        m = n // 2
        local = ((np.abs(i - 2 * j) <= 1) & (j < m)).astype(np.float32)
        sels.append(np.kron(np.eye(b_tile, dtype=np.float32), local))
        n = m
    return jnp.asarray(np.stack(sels, axis=0), dtype=jnp.bfloat16)


# ----------------------------- wrapper ---------------------------------------


def eeg_discriminator_forward(x, params, *, b_tile=None):
    """x: (B, in_features, sequence_len) float32 -> (B, 1) float32."""
    B, c_in, L = x.shape
    H = params["b_first"].shape[0]
    n_convs = params["w_convs"].shape[0]
    assert n_convs == 2 * N_BLOCKS
    assert L <= LANES and L % 64 == 0, "kernel supports sequence_len in {64, 128}"
    l_f = L // (2 ** N_BLOCKS)
    c_in_p = ((c_in + 7) // 8) * 8            # pad channels to a sublane multiple

    if b_tile is None:
        b_tile = _pick_b_tile(B)
    btot = b_tile * LANES
    grid_b = -(-B // b_tile)                  # ceil(B / b_tile)
    b_pad = grid_b * b_tile

    # ---- pack the input: one 128-lane slot per sample, b_tile samples / step
    x_p = jnp.pad(x, ((0, b_pad - B), (0, c_in_p - c_in), (0, LANES - L)))
    x_packed = (x_p.reshape(grid_b, b_tile, c_in_p, LANES)
                .transpose(0, 2, 1, 3)
                .reshape(grid_b, c_in_p, btot))

    # ---- weights: per-tap (Cout, Cin) slices, bf16 only at the MXU boundary
    wf = jnp.pad(params["w_first"],
                 ((0, 0), (0, 0), (0, c_in_p - c_in))).astype(jnp.bfloat16)
    wc = params["w_convs"].reshape(3 * n_convs, H, H).astype(jnp.bfloat16)
    bf_ = params["b_first"]                                   # (H, 1)  f32
    bc = params["b_convs"]                                    # (12, H, 1) f32
    wl = jnp.pad(params["w_last"], ((0, 0), (0, LANES - l_f)))  # (H, 128) f32
    bl = params["b_last"]                                     # (1, 1)  f32
    sel = _build_pool_sels(b_tile, L)                         # (6, btot, btot) bf16

    out = pl.pallas_call(
        _make_kernel(L, b_tile, H, c_in_p),
        out_shape=jax.ShapeDtypeStruct((grid_b, b_tile, LANES), jnp.float32),
        grid=(grid_b,),
        in_specs=[
            pl.BlockSpec((1, c_in_p, btot), lambda g: (g, 0, 0)),
            pl.BlockSpec((3, H, c_in_p), lambda g: (0, 0, 0)),
            pl.BlockSpec((H, 1), lambda g: (0, 0)),
            pl.BlockSpec((3 * n_convs, H, H), lambda g: (0, 0, 0)),
            pl.BlockSpec((n_convs, H, 1), lambda g: (0, 0, 0)),
            pl.BlockSpec((H, LANES), lambda g: (0, 0)),
            pl.BlockSpec((1, 1), lambda g: (0, 0)),
            pl.BlockSpec((N_BLOCKS, btot, btot), lambda g: (0, 0, 0)),
        ],
        out_specs=pl.BlockSpec((1, b_tile, LANES), lambda g: (g, 0, 0)),
        compiler_params=pltpu.CompilerParams(
            dimension_semantics=("parallel",),
            vmem_limit_bytes=32 * 1024 * 1024),
    )(x_packed, wf, bf_, wc, bc, wl, bl, sel)

    return out.reshape(b_pad, LANES)[:B, :1]                  # (B, 1), like torch


# ----------------------------- parameters ------------------------------------


def init_params(key, *, sequence_len, in_features, hidden_dim):
    """Random parameters.

    Conv weights are stored per-tap as (K=3, Cout, Cin) -- i.e. torch's
    (Cout, Cin, K) weight permuted (2, 0, 1); tap 0/1/2 multiplies in[t-1] /
    in[t] / in[t+1].  The Linear(H*L//64, 1) weight is stored as (H, L//64),
    matching torch.flatten's channel-major order.
    """
    n_convs = 2 * N_BLOCKS
    l_f = sequence_len // (2 ** N_BLOCKS)
    ks = jax.random.split(key, 6)

    def normal(k, shape, scale=0.1):
        return scale * jax.random.normal(k, shape, jnp.float32)

    return {
        "w_first": normal(ks[0], (3, hidden_dim, in_features)),
        "b_first": normal(ks[1], (hidden_dim, 1), 0.05),
        "w_convs": normal(ks[2], (n_convs, 3, hidden_dim, hidden_dim)),
        "b_convs": normal(ks[3], (n_convs, hidden_dim, 1), 0.05),
        "w_last": normal(ks[4], (hidden_dim, l_f)),
        "b_last": normal(ks[5], (1, 1), 0.05),
    }


# ----------------------------- pure-JAX reference ----------------------------


def reference_forward(x, params):
    """f32 reference matching the PyTorch module (for a loose-tolerance check)."""
    def conv3(v, w3, b):
        Lc = v.shape[-1]
        vp = jnp.pad(v, ((0, 0), (0, 0), (1, 1)))
        y = (jnp.einsum('oc,bct->bot', w3[0], vp[:, :, 0:Lc]) +
             jnp.einsum('oc,bct->bot', w3[1], vp[:, :, 1:Lc + 1]) +
             jnp.einsum('oc,bct->bot', w3[2], vp[:, :, 2:Lc + 2]))
        return y + b[None]

    def pool(v):
        Lc = v.shape[-1]
        vp = jnp.pad(v, ((0, 0), (0, 0), (1, 1)))
        idx = 2 * jnp.arange(Lc // 2)
        return (vp[:, :, idx] + vp[:, :, idx + 1] + vp[:, :, idx + 2]) / 3.0

    lrelu = lambda v: jnp.maximum(v, LRELU_SLOPE * v)
    act = conv3(x, params["w_first"], params["b_first"])
    for blk in range(N_BLOCKS):
        act = lrelu(conv3(act, params["w_convs"][2 * blk],
                          params["b_convs"][2 * blk]))
        act = lrelu(conv3(act, params["w_convs"][2 * blk + 1],
                          params["b_convs"][2 * blk + 1]))
        act = pool(act)
    flat = act.reshape(act.shape[0], -1)
    logit = flat @ params["w_last"].reshape(-1, 1) + params["b_last"]
    return jax.nn.sigmoid(logit)


# ----------------------------- demo ------------------------------------------


if __name__ == "__main__":
    SEQ_LEN, IN_FEATURES, HIDDEN_DIM, BATCH = 128, 4, 32, 8
    key = jax.random.PRNGKey(0)
    pkey, xkey = jax.random.split(key)
    params = init_params(pkey, sequence_len=SEQ_LEN, in_features=IN_FEATURES,
                         hidden_dim=HIDDEN_DIM)
    x = jax.random.normal(xkey, (BATCH, IN_FEATURES, SEQ_LEN), jnp.float32)

    out = jax.jit(eeg_discriminator_forward)(x, params)
    out = jax.block_until_ready(out)

    assert out.shape == (BATCH, 1), out.shape
    assert bool(jnp.all(jnp.isfinite(out)))
    assert bool(jnp.all((out >= 0.0) & (out <= 1.0)))

    ref = reference_forward(x, params)
    err = float(jnp.max(jnp.abs(out - ref)))
    assert err < 5e-2, f"max abs error vs f32 reference: {err}"
    print("KERNEL_OK")
</pallas_src>

<mosaic_0001>
module attributes {stable_mosaic.version = 11 : i64} {
  func.func @kernel(%arg0: i32, %arg1: memref<1x8x512xf32, #tpu.memory_space<vmem>>, %arg2: memref<3x32x8xbf16, #tpu.memory_space<vmem>>, %arg3: memref<32x1xf32, #tpu.memory_space<vmem>>, %arg4: memref<36x32x32xbf16, #tpu.memory_space<vmem>>, %arg5: memref<12x32x1xf32, #tpu.memory_space<vmem>>, %arg6: memref<32x128xf32, #tpu.memory_space<vmem>>, %arg7: memref<1x1xf32, #tpu.memory_space<vmem>>, %arg8: memref<6x512x512xbf16, #tpu.memory_space<vmem>>, %arg9: memref<1x4x128xf32, #tpu.memory_space<vmem>>) attributes {dimension_semantics = [#tpu.dimension_semantics<parallel>], iteration_bounds = array<i64: 2>, scalar_prefetch = 0 : i64, scratch_operands = 0 : i64, tpu.core_type = #tpu.core_type<tc>, window_params = [{transform_indices = @transform_0, window_bounds = array<i64: 1, 8, 512>}, {pipeline_mode = #tpu.pipeline_mode<synchronous>, transform_indices = @transform_1, window_bounds = array<i64: 3, 32, 8>}, {pipeline_mode = #tpu.pipeline_mode<synchronous>, transform_indices = @transform_2, window_bounds = array<i64: 32, 1>}, {pipeline_mode = #tpu.pipeline_mode<synchronous>, transform_indices = @transform_3, window_bounds = array<i64: 36, 32, 32>}, {pipeline_mode = #tpu.pipeline_mode<synchronous>, transform_indices = @transform_4, window_bounds = array<i64: 12, 32, 1>}, {pipeline_mode = #tpu.pipeline_mode<synchronous>, transform_indices = @transform_5, window_bounds = array<i64: 32, 128>}, {pipeline_mode = #tpu.pipeline_mode<synchronous>, transform_indices = @transform_6, window_bounds = array<i64: 1, 1>}, {pipeline_mode = #tpu.pipeline_mode<synchronous>, transform_indices = @transform_7, window_bounds = array<i64: 6, 512, 512>}, {transform_indices = @transform_8, window_bounds = array<i64: 1, 4, 128>}]} {
    %0 = tpu.iota {dimensions = array<i32: 1>} : vector<32x512xi32>
    %c127_i32 = arith.constant 127 : i32
    %1 = vector.broadcast %c127_i32 : i32 to vector<32x512xi32>
    %2 = arith.andi %0, %1 : vector<32x512xi32>
    %c4_i32 = arith.constant 4 : i32
    %3 = vector.broadcast %c4_i32 : i32 to vector<32x512xi32>
    %4 = arith.cmpi slt, %2, %3 : vector<32x512xi32>
    %c8_i32 = arith.constant 8 : i32
    %5 = vector.broadcast %c8_i32 : i32 to vector<32x512xi32>
    %6 = arith.cmpi slt, %2, %5 : vector<32x512xi32>
    %c16_i32 = arith.constant 16 : i32
    %7 = vector.broadcast %c16_i32 : i32 to vector<32x512xi32>
    %8 = arith.cmpi slt, %2, %7 : vector<32x512xi32>
    %c32_i32 = arith.constant 32 : i32
    %9 = vector.broadcast %c32_i32 : i32 to vector<32x512xi32>
    %10 = arith.cmpi slt, %2, %9 : vector<32x512xi32>
    %c64_i32 = arith.constant 64 : i32
    %11 = vector.broadcast %c64_i32 : i32 to vector<32x512xi32>
    %12 = arith.cmpi slt, %2, %11 : vector<32x512xi32>
    %c0_i32 = arith.constant 0 : i32
    %13 = vector.broadcast %c0_i32 : i32 to vector<32x512xi32>
    %14 = arith.cmpi ne, %2, %13 : vector<32x512xi32>
    %c127_i32_0 = arith.constant 127 : i32
    %15 = vector.broadcast %c127_i32_0 : i32 to vector<32x512xi32>
    %16 = arith.cmpi ne, %2, %15 : vector<32x512xi32>
    %17 = tpu.iota {dimensions = array<i32: 1>} : vector<8x512xi32>
    %c127_i32_1 = arith.constant 127 : i32
    %18 = vector.broadcast %c127_i32_1 : i32 to vector<8x512xi32>
    %19 = arith.andi %17, %18 : vector<8x512xi32>
    %c0_i32_2 = arith.constant 0 : i32
    %20 = vector.broadcast %c0_i32_2 : i32 to vector<8x512xi32>
    %21 = arith.cmpi ne, %19, %20 : vector<8x512xi32>
    %c127_i32_3 = arith.constant 127 : i32
    %22 = vector.broadcast %c127_i32_3 : i32 to vector<8x512xi32>
    %23 = arith.cmpi ne, %19, %22 : vector<8x512xi32>
    %c0 = arith.constant 0 : index
    %c0_4 = arith.constant 0 : index
    %c0_5 = arith.constant 0 : index
    %24 = vector.load %arg1[%c0, %c0_4, %c0_5] : memref<1x8x512xf32, #tpu.memory_space<vmem>>, vector<1x8x512xf32>
    %25 = vector.shape_cast %24 : vector<1x8x512xf32> to vector<8x512xf32>
    %c0_6 = arith.constant 0 : index
    %c0_7 = arith.constant 0 : index
    %c0_8 = arith.constant 0 : index
    %26 = vector.load %arg2[%c0_6, %c0_7, %c0_8] : memref<3x32x8xbf16, #tpu.memory_space<vmem>>, vector<1x32x8xbf16>
    %27 = vector.shape_cast %26 : vector<1x32x8xbf16> to vector<32x8xbf16>
    %c1 = arith.constant 1 : index
    %c0_9 = arith.constant 0 : index
    %c0_10 = arith.constant 0 : index
    %28 = vector.load %arg2[%c1, %c0_9, %c0_10] : memref<3x32x8xbf16, #tpu.memory_space<vmem>>, vector<1x32x8xbf16>
    %29 = vector.shape_cast %28 : vector<1x32x8xbf16> to vector<32x8xbf16>
    %c2 = arith.constant 2 : index
    %c0_11 = arith.constant 0 : index
    %c0_12 = arith.constant 0 : index
    %30 = vector.load %arg2[%c2, %c0_11, %c0_12] : memref<3x32x8xbf16, #tpu.memory_space<vmem>>, vector<1x32x8xbf16>
    %31 = vector.shape_cast %30 : vector<1x32x8xbf16> to vector<32x8xbf16>
    %c0_13 = arith.constant 0 : index
    %c0_14 = arith.constant 0 : index
    %32 = vector.load %arg3[%c0_13, %c0_14] : memref<32x1xf32, #tpu.memory_space<vmem>>, vector<32x1xf32>
    %c1_i32 = arith.constant 1 : i32
    %33 = tpu.dynamic_rotate %25 by %c1_i32 dim 1 : vector<8x512xf32>, i32 -> vector<8x512xf32>
    %c511_i32 = arith.constant 511 : i32
    %34 = tpu.dynamic_rotate %25 by %c511_i32 dim 1 : vector<8x512xf32>, i32 -> vector<8x512xf32>
    %cst = arith.constant 0.000000e+00 : f32
    %35 = vector.broadcast %cst : f32 to vector<8x512xf32>
    %36 = arith.select %21, %33, %35 : vector<8x512xi1>, vector<8x512xf32>
    %cst_15 = arith.constant 0.000000e+00 : f32
    %37 = vector.broadcast %cst_15 : f32 to vector<8x512xf32>
    %38 = arith.select %23, %34, %37 : vector<8x512xi1>, vector<8x512xf32>
    %39 = arith.truncf %36 : vector<8x512xf32> to vector<8x512xbf16>
    %cst_16 = arith.constant dense<0.000000e+00> : vector<32x512xf32>
    %40 = tpu.matmul %27, %39, %cst_16 {dimension_numbers = #tpu.dot_dimension_numbers<[1], [0], [0], [1], [0, 0, 1, 1], [], []>} : vector<32x8xbf16>, vector<8x512xbf16>, vector<32x512xf32> -> vector<32x512xf32>
    %41 = arith.truncf %25 : vector<8x512xf32> to vector<8x512xbf16>
    %cst_17 = arith.constant dense<0.000000e+00> : vector<32x512xf32>
    %42 = tpu.matmul %29, %41, %cst_17 {dimension_numbers = #tpu.dot_dimension_numbers<[1], [0], [0], [1], [0, 0, 1, 1], [], []>} : vector<32x8xbf16>, vector<8x512xbf16>, vector<32x512xf32> -> vector<32x512xf32>
    %43 = arith.addf %40, %42 : vector<32x512xf32>
    %44 = arith.truncf %38 : vector<8x512xf32> to vector<8x512xbf16>
    %cst_18 = arith.constant dense<0.000000e+00> : vector<32x512xf32>
    %45 = tpu.matmul %31, %44, %cst_18 {dimension_numbers = #tpu.dot_dimension_numbers<[1], [0], [0], [1], [0, 0, 1, 1], [], []>} : vector<32x8xbf16>, vector<8x512xbf16>, vector<32x512xf32> -> vector<32x512xf32>
    %46 = arith.addf %43, %45 : vector<32x512xf32>
    %47 = vector.broadcast %32 : vector<32x1xf32> to vector<32x512xf32>
    %48 = arith.addf %46, %47 : vector<32x512xf32>
    %c0_19 = arith.constant 0 : index
    %c0_20 = arith.constant 0 : index
    %c0_21 = arith.constant 0 : index
    %49 = vector.load %arg4[%c0_19, %c0_20, %c0_21] : memref<36x32x32xbf16, #tpu.memory_space<vmem>>, vector<1x32x32xbf16>
    %50 = vector.shape_cast %49 : vector<1x32x32xbf16> to vector<32x32xbf16>
    %c1_22 = arith.constant 1 : index
    %c0_23 = arith.constant 0 : index
    %c0_24 = arith.constant 0 : index
    %51 = vector.load %arg4[%c1_22, %c0_23, %c0_24] : memref<36x32x32xbf16, #tpu.memory_space<vmem>>, vector<1x32x32xbf16>
    %52 = vector.shape_cast %51 : vector<1x32x32xbf16> to vector<32x32xbf16>
    %c2_25 = arith.constant 2 : index
    %c0_26 = arith.constant 0 : index
    %c0_27 = arith.constant 0 : index
    %53 = vector.load %arg4[%c2_25, %c0_26, %c0_27] : memref<36x32x32xbf16, #tpu.memory_space<vmem>>, vector<1x32x32xbf16>
    %54 = vector.shape_cast %53 : vector<1x32x32xbf16> to vector<32x32xbf16>
    %c0_28 = arith.constant 0 : index
    %c0_29 = arith.constant 0 : index
    %c0_30 = arith.constant 0 : index
    %55 = vector.load %arg5[%c0_28, %c0_29, %c0_30] : memref<12x32x1xf32, #tpu.memory_space<vmem>>, vector<1x32x1xf32>
    %56 = vector.shape_cast %55 : vector<1x32x1xf32> to vector<32x1xf32>
    %c1_i32_31 = arith.constant 1 : i32
    %57 = tpu.dynamic_rotate %48 by %c1_i32_31 dim 1 : vector<32x512xf32>, i32 -> vector<32x512xf32>
    %c511_i32_32 = arith.constant 511 : i32
    %58 = tpu.dynamic_rotate %48 by %c511_i32_32 dim 1 : vector<32x512xf32>, i32 -> vector<32x512xf32>
    %cst_33 = arith.constant 0.000000e+00 : f32
    %59 = vector.broadcast %cst_33 : f32 to vector<32x512xf32>
    %60 = arith.select %14, %57, %59 : vector<32x512xi1>, vector<32x512xf32>
    %cst_34 = arith.constant 0.000000e+00 : f32
    %61 = vector.broadcast %cst_34 : f32 to vector<32x512xf32>
    %62 = arith.select %16, %58, %61 : vector<32x512xi1>, vector<32x512xf32>
    %63 = arith.truncf %60 : vector<32x512xf32> to vector<32x512xbf16>
    %cst_35 = arith.constant dense<0.000000e+00> : vector<32x512xf32>
    %64 = tpu.matmul %50, %63, %cst_35 {dimension_numbers = #tpu.dot_dimension_numbers<[1], [0], [0], [1], [0, 0, 1, 1], [], []>} : vector<32x32xbf16>, vector<32x512xbf16>, vector<32x512xf32> -> vector<32x512xf32>
    %65 = arith.truncf %48 : vector<32x512xf32> to vector<32x512xbf16>
    %cst_36 = arith.constant dense<0.000000e+00> : vector<32x512xf32>
    %66 = tpu.matmul %52, %65, %cst_36 {dimension_numbers = #tpu.dot_dimension_numbers<[1], [0], [0], [1], [0, 0, 1, 1], [], []>} : vector<32x32xbf16>, vector<32x512xbf16>, vector<32x512xf32> -> vector<32x512xf32>
    %67 = arith.addf %64, %66 : vector<32x512xf32>
    %68 = arith.truncf %62 : vector<32x512xf32> to vector<32x512xbf16>
    %cst_37 = arith.constant dense<0.000000e+00> : vector<32x512xf32>
    %69 = tpu.matmul %54, %68, %cst_37 {dimension_numbers = #tpu.dot_dimension_numbers<[1], [0], [0], [1], [0, 0, 1, 1], [], []>} : vector<32x32xbf16>, vector<32x512xbf16>, vector<32x512xf32> -> vector<32x512xf32>
    %70 = arith.addf %67, %69 : vector<32x512xf32>
    %71 = vector.broadcast %56 : vector<32x1xf32> to vector<32x512xf32>
    %72 = arith.addf %70, %71 : vector<32x512xf32>
    %cst_38 = arith.constant 2.000000e-01 : f32
    %73 = vector.broadcast %cst_38 : f32 to vector<32x512xf32>
    %74 = arith.mulf %73, %72 : vector<32x512xf32>
    %75 = arith.maximumf %72, %74 : vector<32x512xf32>
    %c3 = arith.constant 3 : index
    %c0_39 = arith.constant 0 : index
    %c0_40 = arith.constant 0 : index
    %76 = vector.load %arg4[%c3, %c0_39, %c0_40] : memref<36x32x32xbf16, #tpu.memory_space<vmem>>, vector<1x32x32xbf16>
    %77 = vector.shape_cast %76 : vector<1x32x32xbf16> to vector<32x32xbf16>
    %c4 = arith.constant 4 : index
    %c0_41 = arith.constant 0 : index
    %c0_42 = arith.constant 0 : index
    %78 = vector.load %arg4[%c4, %c0_41, %c0_42] : memref<36x32x32xbf16, #tpu.memory_space<vmem>>, vector<1x32x32xbf16>
    %79 = vector.shape_cast %78 : vector<1x32x32xbf16> to vector<32x32xbf16>
    %c5 = arith.constant 5 : index
    %c0_43 = arith.constant 0 : index
    %c0_44 = arith.constant 0 : index
    %80 = vector.load %arg4[%c5, %c0_43, %c0_44] : memref<36x32x32xbf16, #tpu.memory_space<vmem>>, vector<1x32x32xbf16>
    %81 = vector.shape_cast %80 : vector<1x32x32xbf16> to vector<32x32xbf16>
    %c1_45 = arith.constant 1 : index
    %c0_46 = arith.constant 0 : index
    %c0_47 = arith.constant 0 : index
    %82 = vector.load %arg5[%c1_45, %c0_46, %c0_47] : memref<12x32x1xf32, #tpu.memory_space<vmem>>, vector<1x32x1xf32>
    %83 = vector.shape_cast %82 : vector<1x32x1xf32> to vector<32x1xf32>
    %c1_i32_48 = arith.constant 1 : i32
    %84 = tpu.dynamic_rotate %75 by %c1_i32_48 dim 1 : vector<32x512xf32>, i32 -> vector<32x512xf32>
    %c511_i32_49 = arith.constant 511 : i32
    %85 = tpu.dynamic_rotate %75 by %c511_i32_49 dim 1 : vector<32x512xf32>, i32 -> vector<32x512xf32>
    %cst_50 = arith.constant 0.000000e+00 : f32
    %86 = vector.broadcast %cst_50 : f32 to vector<32x512xf32>
    %87 = arith.select %14, %84, %86 : vector<32x512xi1>, vector<32x512xf32>
    %cst_51 = arith.constant 0.000000e+00 : f32
    %88 = vector.broadcast %cst_51 : f32 to vector<32x512xf32>
    %89 = arith.select %16, %85, %88 : vector<32x512xi1>, vector<32x512xf32>
    %90 = arith.truncf %87 : vector<32x512xf32> to vector<32x512xbf16>
    %cst_52 = arith.constant dense<0.000000e+00> : vector<32x512xf32>
    %91 = tpu.matmul %77, %90, %cst_52 {dimension_numbers = #tpu.dot_dimension_numbers<[1], [0], [0], [1], [0, 0, 1, 1], [], []>} : vector<32x32xbf16>, vector<32x512xbf16>, vector<32x512xf32> -> vector<32x512xf32>
    %92 = arith.truncf %75 : vector<32x512xf32> to vector<32x512xbf16>
    %cst_53 = arith.constant dense<0.000000e+00> : vector<32x512xf32>
    %93 = tpu.matmul %79, %92, %cst_53 {dimension_numbers = #tpu.dot_dimension_numbers<[1], [0], [0], [1], [0, 0, 1, 1], [], []>} : vector<32x32xbf16>, vector<32x512xbf16>, vector<32x512xf32> -> vector<32x512xf32>
    %94 = arith.addf %91, %93 : vector<32x512xf32>
    %95 = arith.truncf %89 : vector<32x512xf32> to vector<32x512xbf16>
    %cst_54 = arith.constant dense<0.000000e+00> : vector<32x512xf32>
    %96 = tpu.matmul %81, %95, %cst_54 {dimension_numbers = #tpu.dot_dimension_numbers<[1], [0], [0], [1], [0, 0, 1, 1], [], []>} : vector<32x32xbf16>, vector<32x512xbf16>, vector<32x512xf32> -> vector<32x512xf32>
    %97 = arith.addf %94, %96 : vector<32x512xf32>
    %98 = vector.broadcast %83 : vector<32x1xf32> to vector<32x512xf32>
    %99 = arith.addf %97, %98 : vector<32x512xf32>
    %cst_55 = arith.constant 2.000000e-01 : f32
    %100 = vector.broadcast %cst_55 : f32 to vector<32x512xf32>
    %101 = arith.mulf %100, %99 : vector<32x512xf32>
    %102 = arith.maximumf %99, %101 : vector<32x512xf32>
    %103 = arith.truncf %102 : vector<32x512xf32> to vector<32x512xbf16>
    %c0_56 = arith.constant 0 : index
    %c0_57 = arith.constant 0 : index
    %c0_58 = arith.constant 0 : index
    %104 = vector.load %arg8[%c0_56, %c0_57, %c0_58] : memref<6x512x512xbf16, #tpu.memory_space<vmem>>, vector<1x512x512xbf16>
    %105 = vector.shape_cast %104 : vector<1x512x512xbf16> to vector<512x512xbf16>
    %cst_59 = arith.constant dense<0.000000e+00> : vector<32x512xf32>
    %106 = tpu.matmul %103, %105, %cst_59 {dimension_numbers = #tpu.dot_dimension_numbers<[1], [0], [0], [1], [0, 0, 1, 1], [], []>} : vector<32x512xbf16>, vector<512x512xbf16>, vector<32x512xf32> -> vector<32x512xf32>
    %cst_60 = arith.constant 0.333333343 : f32
    %107 = vector.broadcast %cst_60 : f32 to vector<32x512xf32>
    %108 = arith.mulf %106, %107 : vector<32x512xf32>
    %c6 = arith.constant 6 : index
    %c0_61 = arith.constant 0 : index
    %c0_62 = arith.constant 0 : index
    %109 = vector.load %arg4[%c6, %c0_61, %c0_62] : memref<36x32x32xbf16, #tpu.memory_space<vmem>>, vector<1x32x32xbf16>
    %110 = vector.shape_cast %109 : vector<1x32x32xbf16> to vector<32x32xbf16>
    %c7 = arith.constant 7 : index
    %c0_63 = arith.constant 0 : index
    %c0_64 = arith.constant 0 : index
    %111 = vector.load %arg4[%c7, %c0_63, %c0_64] : memref<36x32x32xbf16, #tpu.memory_space<vmem>>, vector<1x32x32xbf16>
    %112 = vector.shape_cast %111 : vector<1x32x32xbf16> to vector<32x32xbf16>
    %c8 = arith.constant 8 : index
    %c0_65 = arith.constant 0 : index
    %c0_66 = arith.constant 0 : index
    %113 = vector.load %arg4[%c8, %c0_65, %c0_66] : memref<36x32x32xbf16, #tpu.memory_space<vmem>>, vector<1x32x32xbf16>
    %114 = vector.shape_cast %113 : vector<1x32x32xbf16> to vector<32x32xbf16>
    %c2_67 = arith.constant 2 : index
    %c0_68 = arith.constant 0 : index
    %c0_69 = arith.constant 0 : index
    %115 = vector.load %arg5[%c2_67, %c0_68, %c0_69] : memref<12x32x1xf32, #tpu.memory_space<vmem>>, vector<1x32x1xf32>
    %116 = vector.shape_cast %115 : vector<1x32x1xf32> to vector<32x1xf32>
    %c1_i32_70 = arith.constant 1 : i32
    %117 = tpu.dynamic_rotate %108 by %c1_i32_70 dim 1 : vector<32x512xf32>, i32 -> vector<32x512xf32>
    %c511_i32_71 = arith.constant 511 : i32
    %118 = tpu.dynamic_rotate %108 by %c511_i32_71 dim 1 : vector<32x512xf32>, i32 -> vector<32x512xf32>
    %119 = arith.truncf %117 : vector<32x512xf32> to vector<32x512xbf16>
    %cst_72 = arith.constant dense<0.000000e+00> : vector<32x512xf32>
    %120 = tpu.matmul %110, %119, %cst_72 {dimension_numbers = #tpu.dot_dimension_numbers<[1], [0], [0], [1], [0, 0, 1, 1], [], []>} : vector<32x32xbf16>, vector<32x512xbf16>, vector<32x512xf32> -> vector<32x512xf32>
    %121 = arith.truncf %108 : vector<32x512xf32> to vector<32x512xbf16>
    %cst_73 = arith.constant dense<0.000000e+00> : vector<32x512xf32>
    %122 = tpu.matmul %112, %121, %cst_73 {dimension_numbers = #tpu.dot_dimension_numbers<[1], [0], [0], [1], [0, 0, 1, 1], [], []>} : vector<32x32xbf16>, vector<32x512xbf16>, vector<32x512xf32> -> vector<32x512xf32>
    %123 = arith.addf %120, %122 : vector<32x512xf32>
    %124 = arith.truncf %118 : vector<32x512xf32> to vector<32x512xbf16>
    %cst_74 = arith.constant dense<0.000000e+00> : vector<32x512xf32>
    %125 = tpu.matmul %114, %124, %cst_74 {dimension_numbers = #tpu.dot_dimension_numbers<[1], [0], [0], [1], [0, 0, 1, 1], [], []>} : vector<32x32xbf16>, vector<32x512xbf16>, vector<32x512xf32> -> vector<32x512xf32>
    %126 = arith.addf %123, %125 : vector<32x512xf32>
    %127 = vector.broadcast %116 : vector<32x1xf32> to vector<32x512xf32>
    %128 = arith.addf %126, %127 : vector<32x512xf32>
    %cst_75 = arith.constant 2.000000e-01 : f32
    %129 = vector.broadcast %cst_75 : f32 to vector<32x512xf32>
    %130 = arith.mulf %129, %128 : vector<32x512xf32>
    %131 = arith.maximumf %128, %130 : vector<32x512xf32>
    %cst_76 = arith.constant 0.000000e+00 : f32
    %132 = vector.broadcast %cst_76 : f32 to vector<32x512xf32>
    %133 = arith.select %12, %131, %132 : vector<32x512xi1>, vector<32x512xf32>
    %c9 = arith.constant 9 : index
    %c0_77 = arith.constant 0 : index
    %c0_78 = arith.constant 0 : index
    %134 = vector.load %arg4[%c9, %c0_77, %c0_78] : memref<36x32x32xbf16, #tpu.memory_space<vmem>>, vector<1x32x32xbf16>
    %135 = vector.shape_cast %134 : vector<1x32x32xbf16> to vector<32x32xbf16>
    %c10 = arith.constant 10 : index
    %c0_79 = arith.constant 0 : index
    %c0_80 = arith.constant 0 : index
    %136 = vector.load %arg4[%c10, %c0_79, %c0_80] : memref<36x32x32xbf16, #tpu.memory_space<vmem>>, vector<1x32x32xbf16>
    %137 = vector.shape_cast %136 : vector<1x32x32xbf16> to vector<32x32xbf16>
    %c11 = arith.constant 11 : index
    %c0_81 = arith.constant 0 : index
    %c0_82 = arith.constant 0 : index
    %138 = vector.load %arg4[%c11, %c0_81, %c0_82] : memref<36x32x32xbf16, #tpu.memory_space<vmem>>, vector<1x32x32xbf16>
    %139 = vector.shape_cast %138 : vector<1x32x32xbf16> to vector<32x32xbf16>
    %c3_83 = arith.constant 3 : index
    %c0_84 = arith.constant 0 : index
    %c0_85 = arith.constant 0 : index
    %140 = vector.load %arg5[%c3_83, %c0_84, %c0_85] : memref<12x32x1xf32, #tpu.memory_space<vmem>>, vector<1x32x1xf32>
    %141 = vector.shape_cast %140 : vector<1x32x1xf32> to vector<32x1xf32>
    %c1_i32_86 = arith.constant 1 : i32
    %142 = tpu.dynamic_rotate %133 by %c1_i32_86 dim 1 : vector<32x512xf32>, i32 -> vector<32x512xf32>
    %c511_i32_87 = arith.constant 511 : i32
    %143 = tpu.dynamic_rotate %133 by %c511_i32_87 dim 1 : vector<32x512xf32>, i32 -> vector<32x512xf32>
    %144 = arith.truncf %142 : vector<32x512xf32> to vector<32x512xbf16>
    %cst_88 = arith.constant dense<0.000000e+00> : vector<32x512xf32>
    %145 = tpu.matmul %135, %144, %cst_88 {dimension_numbers = #tpu.dot_dimension_numbers<[1], [0], [0], [1], [0, 0, 1, 1], [], []>} : vector<32x32xbf16>, vector<32x512xbf16>, vector<32x512xf32> -> vector<32x512xf32>
    %146 = arith.truncf %133 : vector<32x512xf32> to vector<32x512xbf16>
    %cst_89 = arith.constant dense<0.000000e+00> : vector<32x512xf32>
    %147 = tpu.matmul %137, %146, %cst_89 {dimension_numbers = #tpu.dot_dimension_numbers<[1], [0], [0], [1], [0, 0, 1, 1], [], []>} : vector<32x32xbf16>, vector<32x512xbf16>, vector<32x512xf32> -> vector<32x512xf32>
    %148 = arith.addf %145, %147 : vector<32x512xf32>
    %149 = arith.truncf %143 : vector<32x512xf32> to vector<32x512xbf16>
    %cst_90 = arith.constant dense<0.000000e+00> : vector<32x512xf32>
    %150 = tpu.matmul %139, %149, %cst_90 {dimension_numbers = #tpu.dot_dimension_numbers<[1], [0], [0], [1], [0, 0, 1, 1], [], []>} : vector<32x32xbf16>, vector<32x512xbf16>, vector<32x512xf32> -> vector<32x512xf32>
    %151 = arith.addf %148, %150 : vector<32x512xf32>
    %152 = vector.broadcast %141 : vector<32x1xf32> to vector<32x512xf32>
    %153 = arith.addf %151, %152 : vector<32x512xf32>
    %cst_91 = arith.constant 2.000000e-01 : f32
    %154 = vector.broadcast %cst_91 : f32 to vector<32x512xf32>
    %155 = arith.mulf %154, %153 : vector<32x512xf32>
    %156 = arith.maximumf %153, %155 : vector<32x512xf32>
    %157 = arith.truncf %156 : vector<32x512xf32> to vector<32x512xbf16>
    %c1_92 = arith.constant 1 : index
    %c0_93 = arith.constant 0 : index
    %c0_94 = arith.constant 0 : index
    %158 = vector.load %arg8[%c1_92, %c0_93, %c0_94] : memref<6x512x512xbf16, #tpu.memory_space<vmem>>, vector<1x512x512xbf16>
    %159 = vector.shape_cast %158 : vector<1x512x512xbf16> to vector<512x512xbf16>
    %cst_95 = arith.constant dense<0.000000e+00> : vector<32x512xf32>
    %160 = tpu.matmul %157, %159, %cst_95 {dimension_numbers = #tpu.dot_dimension_numbers<[1], [0], [0], [1], [0, 0, 1, 1], [], []>} : vector<32x512xbf16>, vector<512x512xbf16>, vector<32x512xf32> -> vector<32x512xf32>
    %cst_96 = arith.constant 0.333333343 : f32
    %161 = vector.broadcast %cst_96 : f32 to vector<32x512xf32>
    %162 = arith.mulf %160, %161 : vector<32x512xf32>
    %c12 = arith.constant 12 : index
    %c0_97 = arith.constant 0 : index
    %c0_98 = arith.constant 0 : index
    %163 = vector.load %arg4[%c12, %c0_97, %c0_98] : memref<36x32x32xbf16, #tpu.memory_space<vmem>>, vector<1x32x32xbf16>
    %164 = vector.shape_cast %163 : vector<1x32x32xbf16> to vector<32x32xbf16>
    %c13 = arith.constant 13 : index
    %c0_99 = arith.constant 0 : index
    %c0_100 = arith.constant 0 : index
    %165 = vector.load %arg4[%c13, %c0_99, %c0_100] : memref<36x32x32xbf16, #tpu.memory_space<vmem>>, vector<1x32x32xbf16>
    %166 = vector.shape_cast %165 : vector<1x32x32xbf16> to vector<32x32xbf16>
    %c14 = arith.constant 14 : index
    %c0_101 = arith.constant 0 : index
    %c0_102 = arith.constant 0 : index
    %167 = vector.load %arg4[%c14, %c0_101, %c0_102] : memref<36x32x32xbf16, #tpu.memory_space<vmem>>, vector<1x32x32xbf16>
    %168 = vector.shape_cast %167 : vector<1x32x32xbf16> to vector<32x32xbf16>
    %c4_103 = arith.constant 4 : index
    %c0_104 = arith.constant 0 : index
    %c0_105 = arith.constant 0 : index
    %169 = vector.load %arg5[%c4_103, %c0_104, %c0_105] : memref<12x32x1xf32, #tpu.memory_space<vmem>>, vector<1x32x1xf32>
    %170 = vector.shape_cast %169 : vector<1x32x1xf32> to vector<32x1xf32>
    %c1_i32_106 = arith.constant 1 : i32
    %171 = tpu.dynamic_rotate %162 by %c1_i32_106 dim 1 : vector<32x512xf32>, i32 -> vector<32x512xf32>
    %c511_i32_107 = arith.constant 511 : i32
    %172 = tpu.dynamic_rotate %162 by %c511_i32_107 dim 1 : vector<32x512xf32>, i32 -> vector<32x512xf32>
    %173 = arith.truncf %171 : vector<32x512xf32> to vector<32x512xbf16>
    %cst_108 = arith.constant dense<0.000000e+00> : vector<32x512xf32>
    %174 = tpu.matmul %164, %173, %cst_108 {dimension_numbers = #tpu.dot_dimension_numbers<[1], [0], [0], [1], [0, 0, 1, 1], [], []>} : vector<32x32xbf16>, vector<32x512xbf16>, vector<32x512xf32> -> vector<32x512xf32>
    %175 = arith.truncf %162 : vector<32x512xf32> to vector<32x512xbf16>
    %cst_109 = arith.constant dense<0.000000e+00> : vector<32x512xf32>
    %176 = tpu.matmul %166, %175, %cst_109 {dimension_numbers = #tpu.dot_dimension_numbers<[1], [0], [0], [1], [0, 0, 1, 1], [], []>} : vector<32x32xbf16>, vector<32x512xbf16>, vector<32x512xf32> -> vector<32x512xf32>
    %177 = arith.addf %174, %176 : vector<32x512xf32>
    %178 = arith.truncf %172 : vector<32x512xf32> to vector<32x512xbf16>
    %cst_110 = arith.constant dense<0.000000e+00> : vector<32x512xf32>
    %179 = tpu.matmul %168, %178, %cst_110 {dimension_numbers = #tpu.dot_dimension_numbers<[1], [0], [0], [1], [0, 0, 1, 1], [], []>} : vector<32x32xbf16>, vector<32x512xbf16>, vector<32x512xf32> -> vector<32x512xf32>
    %180 = arith.addf %177, %179 : vector<32x512xf32>
    %181 = vector.broadcast %170 : vector<32x1xf32> to vector<32x512xf32>
    %182 = arith.addf %180, %181 : vector<32x512xf32>
    %cst_111 = arith.constant 2.000000e-01 : f32
    %183 = vector.broadcast %cst_111 : f32 to vector<32x512xf32>
    %184 = arith.mulf %183, %182 : vector<32x512xf32>
    %185 = arith.maximumf %182, %184 : vector<32x512xf32>
    %cst_112 = arith.constant 0.000000e+00 : f32
    %186 = vector.broadcast %cst_112 : f32 to vector<32x512xf32>
    %187 = arith.select %10, %185, %186 : vector<32x512xi1>, vector<32x512xf32>
    %c15 = arith.constant 15 : index
    %c0_113 = arith.constant 0 : index
    %c0_114 = arith.constant 0 : index
    %188 = vector.load %arg4[%c15, %c0_113, %c0_114] : memref<36x32x32xbf16, #tpu.memory_space<vmem>>, vector<1x32x32xbf16>
    %189 = vector.shape_cast %188 : vector<1x32x32xbf16> to vector<32x32xbf16>
    %c16 = arith.constant 16 : index
    %c0_115 = arith.constant 0 : index
    %c0_116 = arith.constant 0 : index
    %190 = vector.load %arg4[%c16, %c0_115, %c0_116] : memref<36x32x32xbf16, #tpu.memory_space<vmem>>, vector<1x32x32xbf16>
    %191 = vector.shape_cast %190 : vector<1x32x32xbf16> to vector<32x32xbf16>
    %c17 = arith.constant 17 : index
    %c0_117 = arith.constant 0 : index
    %c0_118 = arith.constant 0 : index
    %192 = vector.load %arg4[%c17, %c0_117, %c0_118] : memref<36x32x32xbf16, #tpu.memory_space<vmem>>, vector<1x32x32xbf16>
    %193 = vector.shape_cast %192 : vector<1x32x32xbf16> to vector<32x32xbf16>
    %c5_119 = arith.constant 5 : index
    %c0_120 = arith.constant 0 : index
    %c0_121 = arith.constant 0 : index
    %194 = vector.load %arg5[%c5_119, %c0_120, %c0_121] : memref<12x32x1xf32, #tpu.memory_space<vmem>>, vector<1x32x1xf32>
    %195 = vector.shape_cast %194 : vector<1x32x1xf32> to vector<32x1xf32>
    %c1_i32_122 = arith.constant 1 : i32
    %196 = tpu.dynamic_rotate %187 by %c1_i32_122 dim 1 : vector<32x512xf32>, i32 -> vector<32x512xf32>
    %c511_i32_123 = arith.constant 511 : i32
    %197 = tpu.dynamic_rotate %187 by %c511_i32_123 dim 1 : vector<32x512xf32>, i32 -> vector<32x512xf32>
    %198 = arith.truncf %196 : vector<32x512xf32> to vector<32x512xbf16>
    %cst_124 = arith.constant dense<0.000000e+00> : vector<32x512xf32>
    %199 = tpu.matmul %189, %198, %cst_124 {dimension_numbers = #tpu.dot_dimension_numbers<[1], [0], [0], [1], [0, 0, 1, 1], [], []>} : vector<32x32xbf16>, vector<32x512xbf16>, vector<32x512xf32> -> vector<32x512xf32>
    %200 = arith.truncf %187 : vector<32x512xf32> to vector<32x512xbf16>
    %cst_125 = arith.constant dense<0.000000e+00> : vector<32x512xf32>
    %201 = tpu.matmul %191, %200, %cst_125 {dimension_numbers = #tpu.dot_dimension_numbers<[1], [0], [0], [1], [0, 0, 1, 1], [], []>} : vector<32x32xbf16>, vector<32x512xbf16>, vector<32x512xf32> -> vector<32x512xf32>
    %202 = arith.addf %199, %201 : vector<32x512xf32>
    %203 = arith.truncf %197 : vector<32x512xf32> to vector<32x512xbf16>
    %cst_126 = arith.constant dense<0.000000e+00> : vector<32x512xf32>
    %204 = tpu.matmul %193, %203, %cst_126 {dimension_numbers = #tpu.dot_dimension_numbers<[1], [0], [0], [1], [0, 0, 1, 1], [], []>} : vector<32x32xbf16>, vector<32x512xbf16>, vector<32x512xf32> -> vector<32x512xf32>
    %205 = arith.addf %202, %204 : vector<32x512xf32>
    %206 = vector.broadcast %195 : vector<32x1xf32> to vector<32x512xf32>
    %207 = arith.addf %205, %206 : vector<32x512xf32>
    %cst_127 = arith.constant 2.000000e-01 : f32
    %208 = vector.broadcast %cst_127 : f32 to vector<32x512xf32>
    %209 = arith.mulf %208, %207 : vector<32x512xf32>
    %210 = arith.maximumf %207, %209 : vector<32x512xf32>
    %211 = arith.truncf %210 : vector<32x512xf32> to vector<32x512xbf16>
    %c2_128 = arith.constant 2 : index
    %c0_129 = arith.constant 0 : index
    %c0_130 = arith.constant 0 : index
    %212 = vector.load %arg8[%c2_128, %c0_129, %c0_130] : memref<6x512x512xbf16, #tpu.memory_space<vmem>>, vector<1x512x512xbf16>
    %213 = vector.shape_cast %212 : vector<1x512x512xbf16> to vector<512x512xbf16>
    %cst_131 = arith.constant dense<0.000000e+00> : vector<32x512xf32>
    %214 = tpu.matmul %211, %213, %cst_131 {dimension_numbers = #tpu.dot_dimension_numbers<[1], [0], [0], [1], [0, 0, 1, 1], [], []>} : vector<32x512xbf16>, vector<512x512xbf16>, vector<32x512xf32> -> vector<32x512xf32>
    %cst_132 = arith.constant 0.333333343 : f32
    %215 = vector.broadcast %cst_132 : f32 to vector<32x512xf32>
    %216 = arith.mulf %214, %215 : vector<32x512xf32>
    %c18 = arith.constant 18 : index
    %c0_133 = arith.constant 0 : index
    %c0_134 = arith.constant 0 : index
    %217 = vector.load %arg4[%c18, %c0_133, %c0_134] : memref<36x32x32xbf16, #tpu.memory_space<vmem>>, vector<1x32x32xbf16>
    %218 = vector.shape_cast %217 : vector<1x32x32xbf16> to vector<32x32xbf16>
    %c19 = arith.constant 19 : index
    %c0_135 = arith.constant 0 : index
    %c0_136 = arith.constant 0 : index
    %219 = vector.load %arg4[%c19, %c0_135, %c0_136] : memref<36x32x32xbf16, #tpu.memory_space<vmem>>, vector<1x32x32xbf16>
    %220 = vector.shape_cast %219 : vector<1x32x32xbf16> to vector<32x32xbf16>
    %c20 = arith.constant 20 : index
    %c0_137 = arith.constant 0 : index
    %c0_138 = arith.constant 0 : index
    %221 = vector.load %arg4[%c20, %c0_137, %c0_138] : memref<36x32x32xbf16, #tpu.memory_space<vmem>>, vector<1x32x32xbf16>
    %222 = vector.shape_cast %221 : vector<1x32x32xbf16> to vector<32x32xbf16>
    %c6_139 = arith.constant 6 : index
    %c0_140 = arith.constant 0 : index
    %c0_141 = arith.constant 0 : index
    %223 = vector.load %arg5[%c6_139, %c0_140, %c0_141] : memref<12x32x1xf32, #tpu.memory_space<vmem>>, vector<1x32x1xf32>
    %224 = vector.shape_cast %223 : vector<1x32x1xf32> to vector<32x1xf32>
    %c1_i32_142 = arith.constant 1 : i32
    %225 = tpu.dynamic_rotate %216 by %c1_i32_142 dim 1 : vector<32x512xf32>, i32 -> vector<32x512xf32>
    %c511_i32_143 = arith.constant 511 : i32
    %226 = tpu.dynamic_rotate %216 by %c511_i32_143 dim 1 : vector<32x512xf32>, i32 -> vector<32x512xf32>
    %227 = arith.truncf %225 : vector<32x512xf32> to vector<32x512xbf16>
    %cst_144 = arith.constant dense<0.000000e+00> : vector<32x512xf32>
    %228 = tpu.matmul %218, %227, %cst_144 {dimension_numbers = #tpu.dot_dimension_numbers<[1], [0], [0], [1], [0, 0, 1, 1], [], []>} : vector<32x32xbf16>, vector<32x512xbf16>, vector<32x512xf32> -> vector<32x512xf32>
    %229 = arith.truncf %216 : vector<32x512xf32> to vector<32x512xbf16>
    %cst_145 = arith.constant dense<0.000000e+00> : vector<32x512xf32>
    %230 = tpu.matmul %220, %229, %cst_145 {dimension_numbers = #tpu.dot_dimension_numbers<[1], [0], [0], [1], [0, 0, 1, 1], [], []>} : vector<32x32xbf16>, vector<32x512xbf16>, vector<32x512xf32> -> vector<32x512xf32>
    %231 = arith.addf %228, %230 : vector<32x512xf32>
    %232 = arith.truncf %226 : vector<32x512xf32> to vector<32x512xbf16>
    %cst_146 = arith.constant dense<0.000000e+00> : vector<32x512xf32>
    %233 = tpu.matmul %222, %232, %cst_146 {dimension_numbers = #tpu.dot_dimension_numbers<[1], [0], [0], [1], [0, 0, 1, 1], [], []>} : vector<32x32xbf16>, vector<32x512xbf16>, vector<32x512xf32> -> vector<32x512xf32>
    %234 = arith.addf %231, %233 : vector<32x512xf32>
    %235 = vector.broadcast %224 : vector<32x1xf32> to vector<32x512xf32>
    %236 = arith.addf %234, %235 : vector<32x512xf32>
    %cst_147 = arith.constant 2.000000e-01 : f32
    %237 = vector.broadcast %cst_147 : f32 to vector<32x512xf32>
    %238 = arith.mulf %237, %236 : vector<32x512xf32>
    %239 = arith.maximumf %236, %238 : vector<32x512xf32>
    %cst_148 = arith.constant 0.000000e+00 : f32
    %240 = vector.broadcast %cst_148 : f32 to vector<32x512xf32>
    %241 = arith.select %8, %239, %240 : vector<32x512xi1>, vector<32x512xf32>
    %c21 = arith.constant 21 : index
    %c0_149 = arith.constant 0 : index
    %c0_150 = arith.constant 0 : index
    %242 = vector.load %arg4[%c21, %c0_149, %c0_150] : memref<36x32x32xbf16, #tpu.memory_space<vmem>>, vector<1x32x32xbf16>
    %243 = vector.shape_cast %242 : vector<1x32x32xbf16> to vector<32x32xbf16>
    %c22 = arith.constant 22 : index
    %c0_151 = arith.constant 0 : index
    %c0_152 = arith.constant 0 : index
    %244 = vector.load %arg4[%c22, %c0_151, %c0_152] : memref<36x32x32xbf16, #tpu.memory_space<vmem>>, vector<1x32x32xbf16>
    %245 = vector.shape_cast %244 : vector<1x32x32xbf16> to vector<32x32xbf16>
    %c23 = arith.constant 23 : index
    %c0_153 = arith.constant 0 : index
    %c0_154 = arith.constant 0 : index
    %246 = vector.load %arg4[%c23, %c0_153, %c0_154] : memref<36x32x32xbf16, #tpu.memory_space<vmem>>, vector<1x32x32xbf16>
    %247 = vector.shape_cast %246 : vector<1x32x32xbf16> to vector<32x32xbf16>
    %c7_155 = arith.constant 7 : index
    %c0_156 = arith.constant 0 : index
    %c0_157 = arith.constant 0 : index
    %248 = vector.load %arg5[%c7_155, %c0_156, %c0_157] : memref<12x32x1xf32, #tpu.memory_space<vmem>>, vector<1x32x1xf32>
    %249 = vector.shape_cast %248 : vector<1x32x1xf32> to vector<32x1xf32>
    %c1_i32_158 = arith.constant 1 : i32
    %250 = tpu.dynamic_rotate %241 by %c1_i32_158 dim 1 : vector<32x512xf32>, i32 -> vector<32x512xf32>
    %c511_i32_159 = arith.constant 511 : i32
    %251 = tpu.dynamic_rotate %241 by %c511_i32_159 dim 1 : vector<32x512xf32>, i32 -> vector<32x512xf32>
    %252 = arith.truncf %250 : vector<32x512xf32> to vector<32x512xbf16>
    %cst_160 = arith.constant dense<0.000000e+00> : vector<32x512xf32>
    %253 = tpu.matmul %243, %252, %cst_160 {dimension_numbers = #tpu.dot_dimension_numbers<[1], [0], [0], [1], [0, 0, 1, 1], [], []>} : vector<32x32xbf16>, vector<32x512xbf16>, vector<32x512xf32> -> vector<32x512xf32>
    %254 = arith.truncf %241 : vector<32x512xf32> to vector<32x512xbf16>
    %cst_161 = arith.constant dense<0.000000e+00> : vector<32x512xf32>
    %255 = tpu.matmul %245, %254, %cst_161 {dimension_numbers = #tpu.dot_dimension_numbers<[1], [0], [0], [1], [0, 0, 1, 1], [], []>} : vector<32x32xbf16>, vector<32x512xbf16>, vector<32x512xf32> -> vector<32x512xf32>
    %256 = arith.addf %253, %255 : vector<32x512xf32>
    %257 = arith.truncf %251 : vector<32x512xf32> to vector<32x512xbf16>
    %cst_162 = arith.constant dense<0.000000e+00> : vector<32x512xf32>
    %258 = tpu.matmul %247, %257, %cst_162 {dimension_numbers = #tpu.dot_dimension_numbers<[1], [0], [0], [1], [0, 0, 1, 1], [], []>} : vector<32x32xbf16>, vector<32x512xbf16>, vector<32x512xf32> -> vector<32x512xf32>
    %259 = arith.addf %256, %258 : vector<32x512xf32>
    %260 = vector.broadcast %249 : vector<32x1xf32> to vector<32x512xf32>
    %261 = arith.addf %259, %260 : vector<32x512xf32>
    %cst_163 = arith.constant 2.000000e-01 : f32
    %262 = vector.broadcast %cst_163 : f32 to vector<32x512xf32>
    %263 = arith.mulf %262, %261 : vector<32x512xf32>
    %264 = arith.maximumf %261, %263 : vector<32x512xf32>
    %265 = arith.truncf %264 : vector<32x512xf32> to vector<32x512xbf16>
    %c3_164 = arith.constant 3 : index
    %c0_165 = arith.constant 0 : index
    %c0_166 = arith.constant 0 : index
    %266 = vector.load %arg8[%c3_164, %c0_165, %c0_166] : memref<6x512x512xbf16, #tpu.memory_space<vmem>>, vector<1x512x512xbf16>
    %267 = vector.shape_cast %266 : vector<1x512x512xbf16> to vector<512x512xbf16>
    %cst_167 = arith.constant dense<0.000000e+00> : vector<32x512xf32>
    %268 = tpu.matmul %265, %267, %cst_167 {dimension_numbers = #tpu.dot_dimension_numbers<[1], [0], [0], [1], [0, 0, 1, 1], [], []>} : vector<32x512xbf16>, vector<512x512xbf16>, vector<32x512xf32> -> vector<32x512xf32>
    %cst_168 = arith.constant 0.333333343 : f32
    %269 = vector.broadcast %cst_168 : f32 to vector<32x512xf32>
    %270 = arith.mulf %268, %269 : vector<32x512xf32>
    %c24 = arith.constant 24 : index
    %c0_169 = arith.constant 0 : index
    %c0_170 = arith.constant 0 : index
    %271 = vector.load %arg4[%c24, %c0_169, %c0_170] : memref<36x32x32xbf16, #tpu.memory_space<vmem>>, vector<1x32x32xbf16>
    %272 = vector.shape_cast %271 : vector<1x32x32xbf16> to vector<32x32xbf16>
    %c25 = arith.constant 25 : index
    %c0_171 = arith.constant 0 : index
    %c0_172 = arith.constant 0 : index
    %273 = vector.load %arg4[%c25, %c0_171, %c0_172] : memref<36x32x32xbf16, #tpu.memory_space<vmem>>, vector<1x32x32xbf16>
    %274 = vector.shape_cast %273 : vector<1x32x32xbf16> to vector<32x32xbf16>
    %c26 = arith.constant 26 : index
    %c0_173 = arith.constant 0 : index
    %c0_174 = arith.constant 0 : index
    %275 = vector.load %arg4[%c26, %c0_173, %c0_174] : memref<36x32x32xbf16, #tpu.memory_space<vmem>>, vector<1x32x32xbf16>
    %276 = vector.shape_cast %275 : vector<1x32x32xbf16> to vector<32x32xbf16>
    %c8_175 = arith.constant 8 : index
    %c0_176 = arith.constant 0 : index
    %c0_177 = arith.constant 0 : index
    %277 = vector.load %arg5[%c8_175, %c0_176, %c0_177] : memref<12x32x1xf32, #tpu.memory_space<vmem>>, vector<1x32x1xf32>
    %278 = vector.shape_cast %277 : vector<1x32x1xf32> to vector<32x1xf32>
    %c1_i32_178 = arith.constant 1 : i32
    %279 = tpu.dynamic_rotate %270 by %c1_i32_178 dim 1 : vector<32x512xf32>, i32 -> vector<32x512xf32>
    %c511_i32_179 = arith.constant 511 : i32
    %280 = tpu.dynamic_rotate %270 by %c511_i32_179 dim 1 : vector<32x512xf32>, i32 -> vector<32x512xf32>
    %281 = arith.truncf %279 : vector<32x512xf32> to vector<32x512xbf16>
    %cst_180 = arith.constant dense<0.000000e+00> : vector<32x512xf32>
    %282 = tpu.matmul %272, %281, %cst_180 {dimension_numbers = #tpu.dot_dimension_numbers<[1], [0], [0], [1], [0, 0, 1, 1], [], []>} : vector<32x32xbf16>, vector<32x512xbf16>, vector<32x512xf32> -> vector<32x512xf32>
    %283 = arith.truncf %270 : vector<32x512xf32> to vector<32x512xbf16>
    %cst_181 = arith.constant dense<0.000000e+00> : vector<32x512xf32>
    %284 = tpu.matmul %274, %283, %cst_181 {dimension_numbers = #tpu.dot_dimension_numbers<[1], [0], [0], [1], [0, 0, 1, 1], [], []>} : vector<32x32xbf16>, vector<32x512xbf16>, vector<32x512xf32> -> vector<32x512xf32>
    %285 = arith.addf %282, %284 : vector<32x512xf32>
    %286 = arith.truncf %280 : vector<32x512xf32> to vector<32x512xbf16>
    %cst_182 = arith.constant dense<0.000000e+00> : vector<32x512xf32>
    %287 = tpu.matmul %276, %286, %cst_182 {dimension_numbers = #tpu.dot_dimension_numbers<[1], [0], [0], [1], [0, 0, 1, 1], [], []>} : vector<32x32xbf16>, vector<32x512xbf16>, vector<32x512xf32> -> vector<32x512xf32>
    %288 = arith.addf %285, %287 : vector<32x512xf32>
    %289 = vector.broadcast %278 : vector<32x1xf32> to vector<32x512xf32>
    %290 = arith.addf %288, %289 : vector<32x512xf32>
    %cst_183 = arith.constant 2.000000e-01 : f32
    %291 = vector.broadcast %cst_183 : f32 to vector<32x512xf32>
    %292 = arith.mulf %291, %290 : vector<32x512xf32>
    %293 = arith.maximumf %290, %292 : vector<32x512xf32>
    %cst_184 = arith.constant 0.000000e+00 : f32
    %294 = vector.broadcast %cst_184 : f32 to vector<32x512xf32>
    %295 = arith.select %6, %293, %294 : vector<32x512xi1>, vector<32x512xf32>
    %c27 = arith.constant 27 : index
    %c0_185 = arith.constant 0 : index
    %c0_186 = arith.constant 0 : index
    %296 = vector.load %arg4[%c27, %c0_185, %c0_186] : memref<36x32x32xbf16, #tpu.memory_space<vmem>>, vector<1x32x32xbf16>
    %297 = vector.shape_cast %296 : vector<1x32x32xbf16> to vector<32x32xbf16>
    %c28 = arith.constant 28 : index
    %c0_187 = arith.constant 0 : index
    %c0_188 = arith.constant 0 : index
    %298 = vector.load %arg4[%c28, %c0_187, %c0_188] : memref<36x32x32xbf16, #tpu.memory_space<vmem>>, vector<1x32x32xbf16>
    %299 = vector.shape_cast %298 : vector<1x32x32xbf16> to vector<32x32xbf16>
    %c29 = arith.constant 29 : index
    %c0_189 = arith.constant 0 : index
    %c0_190 = arith.constant 0 : index
    %300 = vector.load %arg4[%c29, %c0_189, %c0_190] : memref<36x32x32xbf16, #tpu.memory_space<vmem>>, vector<1x32x32xbf16>
    %301 = vector.shape_cast %300 : vector<1x32x32xbf16> to vector<32x32xbf16>
    %c9_191 = arith.constant 9 : index
    %c0_192 = arith.constant 0 : index
    %c0_193 = arith.constant 0 : index
    %302 = vector.load %arg5[%c9_191, %c0_192, %c0_193] : memref<12x32x1xf32, #tpu.memory_space<vmem>>, vector<1x32x1xf32>
    %303 = vector.shape_cast %302 : vector<1x32x1xf32> to vector<32x1xf32>
    %c1_i32_194 = arith.constant 1 : i32
    %304 = tpu.dynamic_rotate %295 by %c1_i32_194 dim 1 : vector<32x512xf32>, i32 -> vector<32x512xf32>
    %c511_i32_195 = arith.constant 511 : i32
    %305 = tpu.dynamic_rotate %295 by %c511_i32_195 dim 1 : vector<32x512xf32>, i32 -> vector<32x512xf32>
    %306 = arith.truncf %304 : vector<32x512xf32> to vector<32x512xbf16>
    %cst_196 = arith.constant dense<0.000000e+00> : vector<32x512xf32>
    %307 = tpu.matmul %297, %306, %cst_196 {dimension_numbers = #tpu.dot_dimension_numbers<[1], [0], [0], [1], [0, 0, 1, 1], [], []>} : vector<32x32xbf16>, vector<32x512xbf16>, vector<32x512xf32> -> vector<32x512xf32>
    %308 = arith.truncf %295 : vector<32x512xf32> to vector<32x512xbf16>
    %cst_197 = arith.constant dense<0.000000e+00> : vector<32x512xf32>
    %309 = tpu.matmul %299, %308, %cst_197 {dimension_numbers = #tpu.dot_dimension_numbers<[1], [0], [0], [1], [0, 0, 1, 1], [], []>} : vector<32x32xbf16>, vector<32x512xbf16>, vector<32x512xf32> -> vector<32x512xf32>
    %310 = arith.addf %307, %309 : vector<32x512xf32>
    %311 = arith.truncf %305 : vector<32x512xf32> to vector<32x512xbf16>
    %cst_198 = arith.constant dense<0.000000e+00> : vector<32x512xf32>
    %312 = tpu.matmul %301, %311, %cst_198 {dimension_numbers = #tpu.dot_dimension_numbers<[1], [0], [0], [1], [0, 0, 1, 1], [], []>} : vector<32x32xbf16>, vector<32x512xbf16>, vector<32x512xf32> -> vector<32x512xf32>
    %313 = arith.addf %310, %312 : vector<32x512xf32>
    %314 = vector.broadcast %303 : vector<32x1xf32> to vector<32x512xf32>
    %315 = arith.addf %313, %314 : vector<32x512xf32>
    %cst_199 = arith.constant 2.000000e-01 : f32
    %316 = vector.broadcast %cst_199 : f32 to vector<32x512xf32>
    %317 = arith.mulf %316, %315 : vector<32x512xf32>
    %318 = arith.maximumf %315, %317 : vector<32x512xf32>
    %319 = arith.truncf %318 : vector<32x512xf32> to vector<32x512xbf16>
    %c4_200 = arith.constant 4 : index
    %c0_201 = arith.constant 0 : index
    %c0_202 = arith.constant 0 : index
    %320 = vector.load %arg8[%c4_200, %c0_201, %c0_202] : memref<6x512x512xbf16, #tpu.memory_space<vmem>>, vector<1x512x512xbf16>
    %321 = vector.shape_cast %320 : vector<1x512x512xbf16> to vector<512x512xbf16>
    %cst_203 = arith.constant dense<0.000000e+00> : vector<32x512xf32>
    %322 = tpu.matmul %319, %321, %cst_203 {dimension_numbers = #tpu.dot_dimension_numbers<[1], [0], [0], [1], [0, 0, 1, 1], [], []>} : vector<32x512xbf16>, vector<512x512xbf16>, vector<32x512xf32> -> vector<32x512xf32>
    %cst_204 = arith.constant 0.333333343 : f32
    %323 = vector.broadcast %cst_204 : f32 to vector<32x512xf32>
    %324 = arith.mulf %322, %323 : vector<32x512xf32>
    %c30 = arith.constant 30 : index
    %c0_205 = arith.constant 0 : index
    %c0_206 = arith.constant 0 : index
    %325 = vector.load %arg4[%c30, %c0_205, %c0_206] : memref<36x32x32xbf16, #tpu.memory_space<vmem>>, vector<1x32x32xbf16>
    %326 = vector.shape_cast %325 : vector<1x32x32xbf16> to vector<32x32xbf16>
    %c31 = arith.constant 31 : index
    %c0_207 = arith.constant 0 : index
    %c0_208 = arith.constant 0 : index
    %327 = vector.load %arg4[%c31, %c0_207, %c0_208] : memref<36x32x32xbf16, #tpu.memory_space<vmem>>, vector<1x32x32xbf16>
    %328 = vector.shape_cast %327 : vector<1x32x32xbf16> to vector<32x32xbf16>
    %c32 = arith.constant 32 : index
    %c0_209 = arith.constant 0 : index
    %c0_210 = arith.constant 0 : index
    %329 = vector.load %arg4[%c32, %c0_209, %c0_210] : memref<36x32x32xbf16, #tpu.memory_space<vmem>>, vector<1x32x32xbf16>
    %330 = vector.shape_cast %329 : vector<1x32x32xbf16> to vector<32x32xbf16>
    %c10_211 = arith.constant 10 : index
    %c0_212 = arith.constant 0 : index
    %c0_213 = arith.constant 0 : index
    %331 = vector.load %arg5[%c10_211, %c0_212, %c0_213] : memref<12x32x1xf32, #tpu.memory_space<vmem>>, vector<1x32x1xf32>
    %332 = vector.shape_cast %331 : vector<1x32x1xf32> to vector<32x1xf32>
    %c1_i32_214 = arith.constant 1 : i32
    %333 = tpu.dynamic_rotate %324 by %c1_i32_214 dim 1 : vector<32x512xf32>, i32 -> vector<32x512xf32>
    %c511_i32_215 = arith.constant 511 : i32
    %334 = tpu.dynamic_rotate %324 by %c511_i32_215 dim 1 : vector<32x512xf32>, i32 -> vector<32x512xf32>
    %335 = arith.truncf %333 : vector<32x512xf32> to vector<32x512xbf16>
    %cst_216 = arith.constant dense<0.000000e+00> : vector<32x512xf32>
    %336 = tpu.matmul %326, %335, %cst_216 {dimension_numbers = #tpu.dot_dimension_numbers<[1], [0], [0], [1], [0, 0, 1, 1], [], []>} : vector<32x32xbf16>, vector<32x512xbf16>, vector<32x512xf32> -> vector<32x512xf32>
    %337 = arith.truncf %324 : vector<32x512xf32> to vector<32x512xbf16>
    %cst_217 = arith.constant dense<0.000000e+00> : vector<32x512xf32>
    %338 = tpu.matmul %328, %337, %cst_217 {dimension_numbers = #tpu.dot_dimension_numbers<[1], [0], [0], [1], [0, 0, 1, 1], [], []>} : vector<32x32xbf16>, vector<32x512xbf16>, vector<32x512xf32> -> vector<32x512xf32>
    %339 = arith.addf %336, %338 : vector<32x512xf32>
    %340 = arith.truncf %334 : vector<32x512xf32> to vector<32x512xbf16>
    %cst_218 = arith.constant dense<0.000000e+00> : vector<32x512xf32>
    %341 = tpu.matmul %330, %340, %cst_218 {dimension_numbers = #tpu.dot_dimension_numbers<[1], [0], [0], [1], [0, 0, 1, 1], [], []>} : vector<32x32xbf16>, vector<32x512xbf16>, vector<32x512xf32> -> vector<32x512xf32>
    %342 = arith.addf %339, %341 : vector<32x512xf32>
    %343 = vector.broadcast %332 : vector<32x1xf32> to vector<32x512xf32>
    %344 = arith.addf %342, %343 : vector<32x512xf32>
    %cst_219 = arith.constant 2.000000e-01 : f32
    %345 = vector.broadcast %cst_219 : f32 to vector<32x512xf32>
    %346 = arith.mulf %345, %344 : vector<32x512xf32>
    %347 = arith.maximumf %344, %346 : vector<32x512xf32>
    %cst_220 = arith.constant 0.000000e+00 : f32
    %348 = vector.broadcast %cst_220 : f32 to vector<32x512xf32>
    %349 = arith.select %4, %347, %348 : vector<32x512xi1>, vector<32x512xf32>
    %c33 = arith.constant 33 : index
    %c0_221 = arith.constant 0 : index
    %c0_222 = arith.constant 0 : index
    %350 = vector.load %arg4[%c33, %c0_221, %c0_222] : memref<36x32x32xbf16, #tpu.memory_space<vmem>>, vector<1x32x32xbf16>
    %351 = vector.shape_cast %350 : vector<1x32x32xbf16> to vector<32x32xbf16>
    %c34 = arith.constant 34 : index
    %c0_223 = arith.constant 0 : index
    %c0_224 = arith.constant 0 : index
    %352 = vector.load %arg4[%c34, %c0_223, %c0_224] : memref<36x32x32xbf16, #tpu.memory_space<vmem>>, vector<1x32x32xbf16>
    %353 = vector.shape_cast %352 : vector<1x32x32xbf16> to vector<32x32xbf16>
    %c35 = arith.constant 35 : index
    %c0_225 = arith.constant 0 : index
    %c0_226 = arith.constant 0 : index
    %354 = vector.load %arg4[%c35, %c0_225, %c0_226] : memref<36x32x32xbf16, #tpu.memory_space<vmem>>, vector<1x32x32xbf16>
    %355 = vector.shape_cast %354 : vector<1x32x32xbf16> to vector<32x32xbf16>
    %c11_227 = arith.constant 11 : index
    %c0_228 = arith.constant 0 : index
    %c0_229 = arith.constant 0 : index
    %356 = vector.load %arg5[%c11_227, %c0_228, %c0_229] : memref<12x32x1xf32, #tpu.memory_space<vmem>>, vector<1x32x1xf32>
    %357 = vector.shape_cast %356 : vector<1x32x1xf32> to vector<32x1xf32>
    %c1_i32_230 = arith.constant 1 : i32
    %358 = tpu.dynamic_rotate %349 by %c1_i32_230 dim 1 : vector<32x512xf32>, i32 -> vector<32x512xf32>
    %c511_i32_231 = arith.constant 511 : i32
    %359 = tpu.dynamic_rotate %349 by %c511_i32_231 dim 1 : vector<32x512xf32>, i32 -> vector<32x512xf32>
    %360 = arith.truncf %358 : vector<32x512xf32> to vector<32x512xbf16>
    %cst_232 = arith.constant dense<0.000000e+00> : vector<32x512xf32>
    %361 = tpu.matmul %351, %360, %cst_232 {dimension_numbers = #tpu.dot_dimension_numbers<[1], [0], [0], [1], [0, 0, 1, 1], [], []>} : vector<32x32xbf16>, vector<32x512xbf16>, vector<32x512xf32> -> vector<32x512xf32>
    %362 = arith.truncf %349 : vector<32x512xf32> to vector<32x512xbf16>
    %cst_233 = arith.constant dense<0.000000e+00> : vector<32x512xf32>
    %363 = tpu.matmul %353, %362, %cst_233 {dimension_numbers = #tpu.dot_dimension_numbers<[1], [0], [0], [1], [0, 0, 1, 1], [], []>} : vector<32x32xbf16>, vector<32x512xbf16>, vector<32x512xf32> -> vector<32x512xf32>
    %364 = arith.addf %361, %363 : vector<32x512xf32>
    %365 = arith.truncf %359 : vector<32x512xf32> to vector<32x512xbf16>
    %cst_234 = arith.constant dense<0.000000e+00> : vector<32x512xf32>
    %366 = tpu.matmul %355, %365, %cst_234 {dimension_numbers = #tpu.dot_dimension_numbers<[1], [0], [0], [1], [0, 0, 1, 1], [], []>} : vector<32x32xbf16>, vector<32x512xbf16>, vector<32x512xf32> -> vector<32x512xf32>
    %367 = arith.addf %364, %366 : vector<32x512xf32>
    %368 = vector.broadcast %357 : vector<32x1xf32> to vector<32x512xf32>
    %369 = arith.addf %367, %368 : vector<32x512xf32>
    %cst_235 = arith.constant 2.000000e-01 : f32
    %370 = vector.broadcast %cst_235 : f32 to vector<32x512xf32>
    %371 = arith.mulf %370, %369 : vector<32x512xf32>
    %372 = arith.maximumf %369, %371 : vector<32x512xf32>
    %373 = arith.truncf %372 : vector<32x512xf32> to vector<32x512xbf16>
    %c5_236 = arith.constant 5 : index
    %c0_237 = arith.constant 0 : index
    %c0_238 = arith.constant 0 : index
    %374 = vector.load %arg8[%c5_236, %c0_237, %c0_238] : memref<6x512x512xbf16, #tpu.memory_space<vmem>>, vector<1x512x512xbf16>
    %375 = vector.shape_cast %374 : vector<1x512x512xbf16> to vector<512x512xbf16>
    %cst_239 = arith.constant dense<0.000000e+00> : vector<32x512xf32>
    %376 = tpu.matmul %373, %375, %cst_239 {dimension_numbers = #tpu.dot_dimension_numbers<[1], [0], [0], [1], [0, 0, 1, 1], [], []>} : vector<32x512xbf16>, vector<512x512xbf16>, vector<32x512xf32> -> vector<32x512xf32>
    %cst_240 = arith.constant 0.333333343 : f32
    %377 = vector.broadcast %cst_240 : f32 to vector<32x512xf32>
    %378 = arith.mulf %376, %377 : vector<32x512xf32>
    %c0_241 = arith.constant 0 : index
    %c0_242 = arith.constant 0 : index
    %379 = vector.load %arg6[%c0_241, %c0_242] : memref<32x128xf32, #tpu.memory_space<vmem>>, vector<32x128xf32>
    %c0_243 = arith.constant 0 : index
    %c0_244 = arith.constant 0 : index
    %380 = vector.load %arg7[%c0_243, %c0_244] : memref<1x1xf32, #tpu.memory_space<vmem>>, vector<1x1xf32>
    %381 = vector.extract_strided_slice %378 {offsets = [0, 0], sizes = [32, 128], strides = [1, 1]} : vector<32x512xf32> to vector<32x128xf32>
    %382 = arith.mulf %381, %379 : vector<32x128xf32>
    %cst_245 = arith.constant dense<0.000000e+00> : vector<32xf32>
    %383 = vector.multi_reduction <add>, %382, %cst_245 [1] : vector<32x128xf32> to vector<32xf32>
    %384 = vector.shape_cast %383 : vector<32xf32> to vector<32x1xf32>
    %cst_246 = arith.constant dense<0.000000e+00> : vector<1xf32>
    %385 = vector.multi_reduction <add>, %384, %cst_246 [0] : vector<32x1xf32> to vector<1xf32>
    %386 = vector.shape_cast %385 : vector<1xf32> to vector<1x1xf32>
    %387 = arith.addf %386, %380 : vector<1x1xf32>
    %cst_247 = arith.constant 0.000000e+00 : f32
    %388 = vector.broadcast %cst_247 : f32 to vector<1x1xf32>
    %389 = arith.subf %388, %387 : vector<1x1xf32>
    %390 = math.exp %389 : vector<1x1xf32>
    %cst_248 = arith.constant 1.000000e+00 : f32
    %391 = vector.broadcast %cst_248 : f32 to vector<1x1xf32>
    %392 = arith.addf %391, %390 : vector<1x1xf32>
    %cst_249 = arith.constant 1.000000e+00 : f32
    %393 = vector.broadcast %cst_249 : f32 to vector<1x1xf32>
    %394 = arith.divf %393, %392 : vector<1x1xf32>
    %395 = vector.shape_cast %394 : vector<1x1xf32> to vector<1x1xf32>
    %396 = vector.broadcast %395 : vector<1x1xf32> to vector<1x128xf32>
    %397 = vector.extract_strided_slice %378 {offsets = [0, 128], sizes = [32, 128], strides = [1, 1]} : vector<32x512xf32> to vector<32x128xf32>
    %398 = arith.mulf %397, %379 : vector<32x128xf32>
    %cst_250 = arith.constant dense<0.000000e+00> : vector<32xf32>
    %399 = vector.multi_reduction <add>, %398, %cst_250 [1] : vector<32x128xf32> to vector<32xf32>
    %400 = vector.shape_cast %399 : vector<32xf32> to vector<32x1xf32>
    %cst_251 = arith.constant dense<0.000000e+00> : vector<1xf32>
    %401 = vector.multi_reduction <add>, %400, %cst_251 [0] : vector<32x1xf32> to vector<1xf32>
    %402 = vector.shape_cast %401 : vector<1xf32> to vector<1x1xf32>
    %403 = arith.addf %402, %380 : vector<1x1xf32>
    %cst_252 = arith.constant 0.000000e+00 : f32
    %404 = vector.broadcast %cst_252 : f32 to vector<1x1xf32>
    %405 = arith.subf %404, %403 : vector<1x1xf32>
    %406 = math.exp %405 : vector<1x1xf32>
    %cst_253 = arith.constant 1.000000e+00 : f32
    %407 = vector.broadcast %cst_253 : f32 to vector<1x1xf32>
    %408 = arith.addf %407, %406 : vector<1x1xf32>
    %cst_254 = arith.constant 1.000000e+00 : f32
    %409 = vector.broadcast %cst_254 : f32 to vector<1x1xf32>
    %410 = arith.divf %409, %408 : vector<1x1xf32>
    %411 = vector.shape_cast %410 : vector<1x1xf32> to vector<1x1xf32>
    %412 = vector.broadcast %411 : vector<1x1xf32> to vector<1x128xf32>
    %413 = vector.extract_strided_slice %378 {offsets = [0, 256], sizes = [32, 128], strides = [1, 1]} : vector<32x512xf32> to vector<32x128xf32>
    %414 = arith.mulf %413, %379 : vector<32x128xf32>
    %cst_255 = arith.constant dense<0.000000e+00> : vector<32xf32>
    %415 = vector.multi_reduction <add>, %414, %cst_255 [1] : vector<32x128xf32> to vector<32xf32>
    %416 = vector.shape_cast %415 : vector<32xf32> to vector<32x1xf32>
    %cst_256 = arith.constant dense<0.000000e+00> : vector<1xf32>
    %417 = vector.multi_reduction <add>, %416, %cst_256 [0] : vector<32x1xf32> to vector<1xf32>
    %418 = vector.shape_cast %417 : vector<1xf32> to vector<1x1xf32>
    %419 = arith.addf %418, %380 : vector<1x1xf32>
    %cst_257 = arith.constant 0.000000e+00 : f32
    %420 = vector.broadcast %cst_257 : f32 to vector<1x1xf32>
    %421 = arith.subf %420, %419 : vector<1x1xf32>
    %422 = math.exp %421 : vector<1x1xf32>
    %cst_258 = arith.constant 1.000000e+00 : f32
    %423 = vector.broadcast %cst_258 : f32 to vector<1x1xf32>
    %424 = arith.addf %423, %422 : vector<1x1xf32>
    %cst_259 = arith.constant 1.000000e+00 : f32
    %425 = vector.broadcast %cst_259 : f32 to vector<1x1xf32>
    %426 = arith.divf %425, %424 : vector<1x1xf32>
    %427 = vector.shape_cast %426 : vector<1x1xf32> to vector<1x1xf32>
    %428 = vector.broadcast %427 : vector<1x1xf32> to vector<1x128xf32>
    %429 = vector.extract_strided_slice %378 {offsets = [0, 384], sizes = [32, 128], strides = [1, 1]} : vector<32x512xf32> to vector<32x128xf32>
    %430 = arith.mulf %429, %379 : vector<32x128xf32>
    %cst_260 = arith.constant dense<0.000000e+00> : vector<32xf32>
    %431 = vector.multi_reduction <add>, %430, %cst_260 [1] : vector<32x128xf32> to vector<32xf32>
    %432 = vector.shape_cast %431 : vector<32xf32> to vector<32x1xf32>
    %cst_261 = arith.constant dense<0.000000e+00> : vector<1xf32>
    %433 = vector.multi_reduction <add>, %432, %cst_261 [0] : vector<32x1xf32> to vector<1xf32>
    %434 = vector.shape_cast %433 : vector<1xf32> to vector<1x1xf32>
    %435 = arith.addf %434, %380 : vector<1x1xf32>
    %cst_262 = arith.constant 0.000000e+00 : f32
    %436 = vector.broadcast %cst_262 : f32 to vector<1x1xf32>
    %437 = arith.subf %436, %435 : vector<1x1xf32>
    %438 = math.exp %437 : vector<1x1xf32>
    %cst_263 = arith.constant 1.000000e+00 : f32
    %439 = vector.broadcast %cst_263 : f32 to vector<1x1xf32>
    %440 = arith.addf %439, %438 : vector<1x1xf32>
    %cst_264 = arith.constant 1.000000e+00 : f32
    %441 = vector.broadcast %cst_264 : f32 to vector<1x1xf32>
    %442 = arith.divf %441, %440 : vector<1x1xf32>
    %443 = vector.shape_cast %442 : vector<1x1xf32> to vector<1x1xf32>
    %444 = vector.broadcast %443 : vector<1x1xf32> to vector<1x128xf32>
    %445 = tpu.concatenate %396, %412, %428, %444 in 0 : vector<1x128xf32>, vector<1x128xf32>, vector<1x128xf32>, vector<1x128xf32> -> vector<4x128xf32>
    %c0_265 = arith.constant 0 : index
    %c0_266 = arith.constant 0 : index
    %c0_267 = arith.constant 0 : index
    %446 = vector.load %arg9[%c0_265, %c0_266, %c0_267] : memref<1x4x128xf32, #tpu.memory_space<vmem>>, vector<1x4x128xf32>
    %447 = vector.shape_cast %446 : vector<1x4x128xf32> to vector<4x128xf32>
    %448 = vector.shape_cast %445 : vector<4x128xf32> to vector<1x4x128xf32>
    tpu.vector_store %arg9[%c0_265, %c0_266, %c0_267], %448 {strides = array<i32>} : memref<1x4x128xf32, #tpu.memory_space<vmem>>, vector<1x4x128xf32>,
    return
  }
  func.func @transform_0(%arg0: i32) -> (i32, i32, i32) {
    %c0_i32 = arith.constant 0 : i32
    %c0_i32_0 = arith.constant 0 : i32
    %c0_i32_1 = arith.constant 0 : i32
    return %arg0, %c0_i32, %c0_i32_0 : i32, i32, i32
  }
  func.func @transform_1(%arg0: i32) -> (i32, i32, i32) {
    %c0_i32 = arith.constant 0 : i32
    %c0_i32_0 = arith.constant 0 : i32
    %c0_i32_1 = arith.constant 0 : i32
    %c0_i32_2 = arith.constant 0 : i32
    return %c0_i32, %c0_i32_0, %c0_i32_1 : i32, i32, i32
  }
  func.func @transform_2(%arg0: i32) -> (i32, i32) {
    %c0_i32 = arith.constant 0 : i32
    %c0_i32_0 = arith.constant 0 : i32
    %c0_i32_1 = arith.constant 0 : i32
    return %c0_i32, %c0_i32_0 : i32, i32
  }
  func.func @transform_3(%arg0: i32) -> (i32, i32, i32) {
    %c0_i32 = arith.constant 0 : i32
    %c0_i32_0 = arith.constant 0 : i32
    %c0_i32_1 = arith.constant 0 : i32
    %c0_i32_2 = arith.constant 0 : i32
    return %c0_i32, %c0_i32_0, %c0_i32_1 : i32, i32, i32
  }
  func.func @transform_4(%arg0: i32) -> (i32, i32, i32) {
    %c0_i32 = arith.constant 0 : i32
    %c0_i32_0 = arith.constant 0 : i32
    %c0_i32_1 = arith.constant 0 : i32
    %c0_i32_2 = arith.constant 0 : i32
    return %c0_i32, %c0_i32_0, %c0_i32_1 : i32, i32, i32
  }
  func.func @transform_5(%arg0: i32) -> (i32, i32) {
    %c0_i32 = arith.constant 0 : i32
    %c0_i32_0 = arith.constant 0 : i32
    %c0_i32_1 = arith.constant 0 : i32
    return %c0_i32, %c0_i32_0 : i32, i32
  }
  func.func @transform_6(%arg0: i32) -> (i32, i32) {
    %c0_i32 = arith.constant 0 : i32
    %c0_i32_0 = arith.constant 0 : i32
    %c0_i32_1 = arith.constant 0 : i32
    return %c0_i32, %c0_i32_0 : i32, i32
  }
  func.func @transform_7(%arg0: i32) -> (i32, i32, i32) {
    %c0_i32 = arith.constant 0 : i32
    %c0_i32_0 = arith.constant 0 : i32
    %c0_i32_1 = arith.constant 0 : i32
    %c0_i32_2 = arith.constant 0 : i32
    return %c0_i32, %c0_i32_0, %c0_i32_1 : i32, i32, i32
  }
  func.func @transform_8(%arg0: i32) -> (i32, i32, i32) {
    %c0_i32 = arith.constant 0 : i32
    %c0_i32_0 = arith.constant 0 : i32
    %c0_i32_1 = arith.constant 0 : i32
    return %arg0, %c0_i32, %c0_i32_0 : i32, i32, i32
  }
}

</mosaic_0001>

<bundles_post_ra>
// kernel: eeg_discriminator_forward.1
= control target key start
LH: loop header
LB: loop body
LE: loop exit
PB: predicated region body
PF: predicated region fallthrough
CT: control target
= control target key end

     0   :  { %s21117_s0 = inlined_call_operand.vmem [shape: f32[2,8,512], index: 0, kind: input, shape index: {}]   ;;  %s21118_s1 = inlined_call_operand.vmem [shape: bf16[3,32,8], index: 1, kind: input, shape index: {}]   ;;  %s21119_s2 = inlined_call_operand.vmem [shape: f32[32,1], index: 2, kind: input, shape index: {}]   ;;  %s21120_s3 = inlined_call_operand.vmem [shape: bf16[36,32,32], index: 3, kind: input, shape index: {}]   ;;  %s21121_s4 = inlined_call_operand.vmem [shape: f32[12,32,1], index: 4, kind: input, shape index: {}]   ;;  %s21122_s5 = inlined_call_operand.vmem [shape: f32[32,128], index: 5, kind: input, shape index: {}]   ;;  %s21123_s6 = inlined_call_operand.<no memory space> [shape: f32[1,1], index: 6, kind: input, shape index: {}]   ;;  %s21124_s7 = inlined_call_operand.hbm [shape: bf16[6,512,512], index: 7, kind: input, shape index: {}]   ;;  %s21125_s8 = inlined_call_operand.vmem [shape: f32[2,4,128], index: 8, kind: output, shape index: {}]  }
   0x1   :  { %v13_v0 = vstv %s21123_s6 }
   0x2   :  { %14 = vst [vmem:[#allocation2] sm:$0x1] %v13_v0 }
   0x3   :  { %15 = vsyncpa [#allocation4], 0  ;;  %s18133_s29 = smov 0  }
   0x4 LB: > { %s18139_s30 = sadd.s32 4294967295, %s18077_s29   ;;  %p14362_p0 = scmp.ge.s32.totalorder %s18077_s29, 1  ;;  %s18077_s29 = sphi %s18133_s29, %s21_s29  }
   0x5   : > { %p225_p1 = scmp.lt.s32.totalorder %s18077_s29, 3  ;;  %s18079_s9 = smov [#allocation3]  }
   0x6   : > { %s255_s6 = sshll.u32 %s18079_s9, 4  ;;  %p15797_p3 = scmp.eq.s32.totalorder %s18139_s30, 0  ;;  %s256_s6 = int_to_ptr.vmem [resolvable:$true] %s255_s6 }
   0x7   : > { %p18143_p2 = pnand %p14362_p0, %p225_p1  ;;  %s18052_s11 = scalar_lea.vmem %s256_s6, 98304 }
   0x8   : > { %p18053_p7 = scmp.ne.s32.totalorder %s256_s6, %s18052_s11  ;;  %p18060_p10 = scmp.lt.s32.totalorder %s256_s6, %s256_s6 }
   0x9   : > { %p15793_p4 = pneg %p18143_p2  ;;  %p18061_p11 = scmp.lt.s32.totalorder %s18052_s11, %s18052_s11 }
   0xb   : > { %p15794_p5 = pnand %p15797_p3, %p15793_p4  ;;  %p18062_p12 = por %p18061_p11, %p18060_p10 }
   0xd   : > { %p18043_p6 = pneg %p15794_p5 }
   0xf   : > { %p18055_p8 = pnand %p18053_p7, %p18043_p6 }
  0x11   : > { %p18056_p9 = pneg %p18055_p8 }
  0x13   : > { %p18063_p13 = pnand %p18062_p12, %p18056_p9 }
  0x15   : > { %18066 = shalt.err (!%p18063_p13)
}
  0x16   : > { %s18080_s12 = smov 256   ;;  %s18081_s13 = smov 16  }
  0x17   : > { %15796 = dma.hbm_to_vmem [thread:$0]  (!%p15794_p5), %s21124_s7, 98304, %s256_s6, [#allocation4], %s18080_s12, %s18080_s12, %s18081_s13  }
  0x18   : > { %279 = sbr.rel (%p18143_p2) target bundleno = 6709 (0x1a35), region = 52 }
  0x1d   : > { %18072 = dma.done.wait (%p15797_p3), [#allocation4], 98304  }
  0x1e   : > { %18074 = vsyncadd (%p15797_p3), [#allocation4], 4294868992  ;;  %p312_p0 = scmp.lt.s32.totalorder %s18139_s30, 1  ;;  %v21127_v1 = vmov 0   ;;  %vm440_vm0 = vcmask 1043456   ;;  %s18083_s20 = smov 1   ;;  %v21126_v20 = vlaneseq }
  0x1f   : > { %485 = vmatprep.mubr.bf16.mxu0 %v21127_v1  ;;  %538 = vmatprep.mubr.bf16.mxu1 %v21127_v1  ;;  %s18084_s21 = smov 127   ;;  %v16795_v13 = vld [vmem:[%s21118_s1 + $0x10] sm:$0xff]   ;;  %vm433_vm1 = vcmask 64512   ;;  %v16796_v15 = vld [vmem:[%s21118_s1 + $0x18] sm:$0xff]   ;;  %v377_v17 = vld [vmem:[%s21119_s2] sm:$0xff]  ;;  %vm1055_vm12 = vcmask 261120  }
  0x20   : > { %s21201_s30 = smov (!%p312_p0, %s18139_s30), 1  ;;  %15834 = vset.pattern.permute.xlu1 %v21127_v1  ;;  %15833 = vset.pattern.permute.xlu0 %v21127_v1  ;;  %v380_v16 = vld [vmem:[%s21119_s2 + $0x18] sm:$0xff]  ;;  %v379_v18 = vld [vmem:[%s21119_s2 + $0x10] sm:$0xff]  ;;  %v378_v19 = vld [vmem:[%s21119_s2 + $0x8] sm:$0xff]  ;;  %v18208_v21 = vand.u32 127, %v21126_v20 }
  0x21   : > { %s15788_s16 = sshll.u32 %s21201_s30, 5  ;;  %v16797_v56 = vld [vmem:[%s21118_s1] sm:$0xff]  }
  0x22   : > { %s316_s19 = scalar_lea.vmem %s21117_s0, %s15788_s16  ;;  %v324_v22 = vadd.s32 128, %v18208_v21  ;;  %v326_v23 = vadd.s32 384, %v18208_v21  ;;  %v325_v25 = vadd.s32 256, %v18208_v21  ;;  %vm389_vm2 = vcmp.lt.s32.totalorder %v18208_v21, 1 }
  0x23   : > { %v359_v2 = vld [vmem:[%s316_s19] sm:$0xff]  ;;  %v360_v3 = vld [vmem:[%s316_s19 + $0x8] sm:$0xff]  ;;  %v361_v4 = vld [vmem:[%s316_s19 + $0x10] sm:$0xff]  ;;  %vm402_vm3 = vcmp.lt.s32.totalorder %v18208_v21, 127  ;;  %vm351_vm5 = vcmp.ne.s32.totalorder %v18208_v21, 0  ;;  %vm355_vm7 = vcmp.ne.s32.totalorder %v18208_v21, 127 }
  0x24   : > { %v15813_v5 = vpack.i.bf16 %v360_v3, %v359_v2  ;;  %v362_v6 = vld [vmem:[%s316_s19 + $0x18] sm:$0xff]  ;;  %v420_v7 = vpack.c.bf16 %v360_v3, %v360_v3  ;;  %v419_v8 = vpack.c.bf16 %v359_v2, %v359_v2  ;;  %v421_v10 = vpack.c.bf16 %v361_v4, %v361_v4  ;;  %vm18415_vm14 = vmpackc.low %vm351_vm5, %vm351_vm5  ;;  %s14369_s19 = sshll.u32 %s21201_s30, 2 }
  0x25   : > { %v422_v9 = vpack.c.bf16 %v362_v6, %v362_v6  ;;  %v15818_v11 = vpack.i.bf16 %v362_v6, %v361_v4  ;;  %v18212_v24 = vand.u32 127, %v324_v22  ;;  %v18217_v26 = vand.u32 127, %v326_v23  ;;  %v16798_v6 = vld [vmem:[%s21118_s1 + $0x8] sm:$0xff]   ;;  %s320_s24 = scalar_lea.vmem %s21125_s8, %s14369_s19 }
  0x26   : > { %15814 = vrot.lane.b32.xlu0 %v15813_v5, %s18083_s20  ;;  %15824 = vrot.lane.b32.xlu1 %v15813_v5, %s18084_s21  ;;  %v442_v12 = vsel %vm440_vm0, %v419_v8, 0  ;;  %v448_v14 = vsel %vm440_vm0, %v421_v10, 0  ;;  %v18220_v27 = vand.u32 127, %v325_v25  ;;  %v16800_v8 = vld [vmem:[%s21118_s1 + $0x28] sm:$0xff]  }
  0x27   : > { %14380 = vmatprep.subr.msk.bf16.mxu0 %vm440_vm0, %v420_v7  ;;  %14383 = vmatprep.subr.msk.bf16.mxu1 %vm440_vm0, %v422_v9  ;;  %21136 = vst [vmem:[#allocation6_spill] sm:$0xff] %v18212_v24  ;;  %21137 = vst [vmem:[#allocation7_spill] sm:$0xff] %v18217_v26  ;;  %vm352_vm4 = vcmp.ne.s32.totalorder %v18212_v24, 0  ;;  %vm354_vm6 = vcmp.ne.s32.totalorder %v18217_v26, 0  ;;  %vm356_vm9 = vcmp.ne.s32.totalorder %v18212_v24, 127  ;;  %vm358_vm10 = vcmp.ne.s32.totalorder %v18217_v26, 127 }
  0x28   : > { %468 = vmatpush1.bf16.msra.mxu0 %v442_v12  ;;  %521 = vmatpush1.bf16.msra.mxu1 %v448_v14  ;;  %21138 = vst [vmem:[#allocation8_spill] sm:$0xff] %v18220_v27  ;;  %vm353_vm8 = vcmp.ne.s32.totalorder %v18220_v27, 0  ;;  %vm357_vm11 = vcmp.ne.s32.totalorder %v18220_v27, 127  ;;  %v16799_v7 = vld [vmem:[%s21118_s1 + $0x20] sm:$0xff]   ;;  %vm18398_vm13 = vmpackc.low %vm352_vm4, %vm352_vm4 }
  0x29   : > { %vm18430_vm15 = vmpackc.low %vm354_vm6, %vm354_vm6 }
  0x2a   : > { %15819 = vrot.lane.b32.xlu0 %v15818_v11, %s18083_s20  ;;  %15829 = vrot.lane.b32.xlu1 %v15818_v11, %s18084_s21 }
  0x2b   : > { %14381 = vmatmul.mubr.msk.bf16.vlgmr.msra.gmra.mxu0 %vm433_vm1, %v16795_v13  ;;  %14384 = vmatmul.mubr.msk.bf16.vlgmr.msra.gmra.mxu1 %vm433_vm1, %v16795_v13 }
  0x2c   : > { %495 = vmatprep.mubr.bf16.mxu0 %v21127_v1  ;;  %548 = vmatprep.mubr.bf16.mxu1 %v21127_v1 }
  0x2e   : > { %864 = vperm.xlu1 %15834, %v380_v16   ;;  %859 = vperm.xlu0 %15833, %v379_v18  }
  0x32   : > { %849 = vperm.xlu1 %15834, %v377_v17   ;;  %854 = vperm.xlu0 %15833, %v378_v19  }
  0x33   : > { %14382 = vmatmul.mubr.msk.bf16.gmra.mxu0 %vm433_vm1, %v16796_v15  ;;  %14385 = vmatmul.mubr.msk.bf16.gmra.mxu1 %vm433_vm1, %v16796_v15 }
  0x34   : > { %619 = vmatprep.mubr.bf16.mxu0 %v21127_v1  ;;  %672 = vmatprep.mubr.bf16.mxu1 %v21127_v1 }
  0x98   : > { %v15815_v28 = vpop.permute.xlu0 %15814  ;;  %v15825_v29 = vpop.permute.xlu1 %15824 }
  0x99   : > { %v15817_v30 = vunpack.i.h.bf16 %v15815_v28  ;;  %v15816_v31 = vunpack.i.l.bf16 %v15815_v28  ;;  %v15827_v32 = vunpack.i.h.bf16 %v15825_v29  ;;  %v15826_v33 = vunpack.i.l.bf16 %v15825_v29 }
  0x9b   : > { %v392_v34 = vsel %vm389_vm2, %v15816_v31, %v15817_v30  ;;  %v405_v35 = vsel %vm402_vm3, %v15826_v33, %v15827_v32 }
  0x9c   : > { %v15820_v36 = vpop.permute.xlu0 %15819  ;;  %v408_v37 = vsel %vm352_vm4, %v392_v34, 0.0  ;;  %v15830_v38 = vpop.permute.xlu1 %15829  ;;  %v411_v44 = vsel %vm355_vm7, %v405_v35, 0.0  ;;  %vm18490_vm4 = vmpackc.low %vm355_vm7, %vm355_vm7  ;;  %vm347_vm7 = vcmp.lt.s32.totalorder %v18208_v21, 64 }
  0x9d   : > { %v15822_v39 = vunpack.i.h.bf16 %v15820_v36  ;;  %v15821_v40 = vunpack.i.l.bf16 %v15820_v36  ;;  %v416_v41 = vpack.c.bf16 %v408_v37, %v408_v37  ;;  %v15832_v42 = vunpack.i.h.bf16 %v15830_v38 }
  0x9e   : > { %v15831_v43 = vunpack.i.l.bf16 %v15830_v38  ;;  %v693_v60 = vpack.c.bf16 %v411_v44, %v411_v44 }
  0x9f   : > { %v390_v45 = vsel %vm389_vm2, %v15821_v40, %v15822_v39  ;;  %14388 = vmatprep.subr.msk.bf16.mxu0 %vm440_vm0, %v416_v41  ;;  %v393_v46 = vsel %vm389_vm2, %v15822_v39, %v15816_v31  ;;  %v391_v47 = vsel %vm389_vm2, %v15817_v30, %v15821_v40  ;;  %v406_v48 = vsel %vm402_vm3, %v15832_v42, %v15826_v33 }
  0xa0   : > { %v410_v49 = vsel %vm354_vm6, %v390_v45, 0.0  ;;  %v407_v50 = vsel %vm351_vm5, %v393_v46, 0.0  ;;  %v409_v51 = vsel %vm353_vm8, %v391_v47, 0.0  ;;  %v404_v52 = vsel %vm402_vm3, %v15827_v32, %v15831_v43  ;;  %vm18514_vm5 = vmpackc.low %vm358_vm10, %vm358_vm10 }
  0xa1   : > { %v418_v53 = vpack.c.bf16 %v410_v49, %v410_v49  ;;  %v415_v54 = vpack.c.bf16 %v407_v50, %v407_v50  ;;  %v417_v55 = vpack.c.bf16 %v409_v51, %v409_v51  ;;  %v412_v57 = vsel %vm356_vm9, %v404_v52, 0.0  ;;  %vm18530_vm6 = vmpackc.low %vm357_vm11, %vm357_vm11 }
  0xa2   : > { %v694_v58 = vpack.c.bf16 %v412_v57, %v412_v57  ;;  %v414_v59 = vsel %vm358_vm10, %v406_v48, 0.0  ;;  %v403_v61 = vsel %vm402_vm3, %v15831_v43, %v15832_v42  ;;  %v714_v4 = vsel %vm440_vm0, %v693_v60, 0 }
  0xa3   : > { %14391 = vmatprep.subr.msk.bf16.mxu1 %vm440_vm0, %v418_v53  ;;  %v576_v62 = vsel %vm440_vm0, %v415_v54, 0  ;;  %v582_v63 = vsel %vm440_vm0, %v417_v55, 0  ;;  %v696_v0 = vpack.c.bf16 %v414_v59, %v414_v59  ;;  %v413_v2 = vsel %vm357_vm11, %v403_v61, 0.0  ;;  %vm19018_vm11 = vmpackc.low %vm347_vm7, %vm347_vm7 }
  0xa4   : > { %602 = vmatpush1.bf16.msra.mxu0 %v576_v62  ;;  %655 = vmatpush1.bf16.msra.mxu1 %v582_v63  ;;  %v695_v3 = vpack.c.bf16 %v413_v2, %v413_v2 }
  0xa5   : > { %14396 = vmatprep.subr.msk.bf16.mxu0 %vm440_vm0, %v694_v58  ;;  %14399 = vmatprep.subr.msk.bf16.mxu1 %vm440_vm0, %v696_v0 }
  0xa6   : > { %v720_v5 = vsel %vm440_vm0, %v695_v3, 0  ;;  %vm18437_vm0 = vmpackc.low %vm353_vm8, %vm353_vm8 }
  0xa7   : > { %14389 = vmatmul.mubr.msk.bf16.vlgmr.msra.gmra.mxu0 %vm433_vm1, %v16797_v56  ;;  %14392 = vmatmul.mubr.msk.bf16.vlgmr.msra.gmra.mxu1 %vm433_vm1, %v16797_v56 }
  0xa8   : > { %629 = vmatprep.mubr.bf16.mxu0 %v21127_v1  ;;  %682 = vmatprep.mubr.bf16.mxu1 %v21127_v1 }
  0xa9   : > { %740 = vmatpush1.bf16.msra.mxu0 %v714_v4  ;;  %793 = vmatpush1.bf16.msra.mxu1 %v720_v5  ;;  %v18303_v44 = vpop.permute.xlu0 %859  ;;  %v18305_v47 = vpop.permute.xlu1 %864 }
  0xad   : > { %v18309_v54 = vpop.permute.xlu0 %854  ;;  %v18311_v60 = vpop.permute.xlu1 %849 }
  0xaf   : > { %14390 = vmatmul.mubr.msk.bf16.gmra.mxu0 %vm433_vm1, %v16798_v6  ;;  %14393 = vmatmul.mubr.msk.bf16.gmra.mxu1 %vm433_vm1, %v16798_v6 }
  0xb0   : > { %757 = vmatprep.mubr.bf16.mxu0 %v21127_v1  ;;  %810 = vmatprep.mubr.bf16.mxu1 %v21127_v1 }
  0xb7   : > { %14397 = vmatmul.mubr.msk.bf16.vlgmr.msra.gmra.mxu0 %vm433_vm1, %v16799_v7  ;;  %14400 = vmatmul.mubr.msk.bf16.vlgmr.msra.gmra.mxu1 %vm433_vm1, %v16799_v7 }
  0xb8   : > { %767 = vmatprep.mubr.bf16.mxu0 %v21127_v1  ;;  %820 = vmatprep.mubr.bf16.mxu1 %v21127_v1 }
  0xbf   : > { %14398 = vmatmul.mubr.msk.bf16.gmra.mxu0 %vm433_vm1, %v16800_v8  ;;  %14401 = vmatmul.mubr.msk.bf16.gmra.mxu1 %vm433_vm1, %v16800_v8  ;;  %vm18483_vm1 = vmpackc.low %vm356_vm9, %vm356_vm9 }
  0xc0   : > { %1094 = vmatprep.mubr.bf16.mxu0 %v21127_v1  ;;  %1147 = vmatprep.mubr.bf16.mxu1 %v21127_v1 }
  0xeb   : > { %v487_v9 = vpop.f32.mrf.mxu0  ;;  %v18297_v10 = vpop.f32.mrf.mxu1 }
  0xed   : > { %v489_v11 = vpop.f32.mrf.mxu0  ;;  %v18299_v12 = vpop.f32.mrf.mxu1 }
  0xef   : > { %v491_v13 = vpop.f32.mrf.mxu0  ;;  %v18301_v14 = vpop.f32.mrf.mxu1 }
  0xf1   : > { %v493_v15 = vpop.f32.mrf.mxu0  ;;  %v546_v16 = vpop.f32.mrf.mxu1 }
  0xf3   : > { %v497_v17 = vpop.f32.mrf.mxu0  ;;  %v550_v18 = vpop.f32.mrf.mxu1 }
  0xf5   : > { %v499_v19 = vpop.f32.mrf.mxu0  ;;  %v552_v22 = vpop.f32.mrf.mxu1 }
  0xf7   : > { %v501_v23 = vpop.f32.mrf.mxu0  ;;  %v554_v25 = vpop.f32.mrf.mxu1 }
  0xf9   : > { %v503_v28 = vpop.f32.mrf.mxu0  ;;  %v556_v29 = vpop.f32.mrf.mxu1 }
 0x167   : > { %v621_v30 = vpop.f32.mrf.mxu0  ;;  %v674_v31 = vpop.f32.mrf.mxu1 }
 0x168   : > { %v622_v50 = vadd.f32 %v621_v30, %v487_v9 }
 0x169   : > { %v623_v32 = vpop.f32.mrf.mxu0  ;;  %v676_v33 = vpop.f32.mrf.mxu1 }
 0x16a   : > { %v624_v55 = vadd.f32 %v623_v32, %v489_v11 }
 0x16b   : > { %v625_v34 = vpop.f32.mrf.mxu0  ;;  %v678_v35 = vpop.f32.mrf.mxu1 }
 0x16c   : > { %v626_v53 = vadd.f32 %v625_v34, %v491_v13 }
 0x16d   : > { %v627_v36 = vpop.f32.mrf.mxu0  ;;  %v680_v37 = vpop.f32.mrf.mxu1 }
 0x16e   : > { %v628_v59 = vadd.f32 %v627_v36, %v493_v15  ;;  %v681_v7 = vadd.f32 %v680_v37, %v546_v16 }
 0x16f   : > { %v631_v38 = vpop.f32.mrf.mxu0  ;;  %v684_v39 = vpop.f32.mrf.mxu1 }
 0x170   : > { %v632_v9 = vadd.f32 %v631_v38, %v497_v17  ;;  %v685_v34 = vadd.f32 %v684_v39, %v550_v18  ;;  %v677_v18 = vadd.f32 %v676_v33, %v18299_v12 }
 0x171   : > { %v633_v40 = vpop.f32.mrf.mxu0  ;;  %v686_v41 = vpop.f32.mrf.mxu1 }
 0x172   : > { %v634_v11 = vadd.f32 %v633_v40, %v499_v19  ;;  %v687_v36 = vadd.f32 %v686_v41, %v552_v22  ;;  %v679_v22 = vadd.f32 %v678_v35, %v18301_v14 }
 0x173   : > { %v635_v42 = vpop.f32.mrf.mxu0  ;;  %v688_v43 = vpop.f32.mrf.mxu1 }
 0x175   : > { %v637_v45 = vpop.f32.mrf.mxu0  ;;  %v690_v46 = vpop.f32.mrf.mxu1 }
 0x176   : > { %v691_v37 = vadd.f32 %v690_v46, %v556_v29 }
 0x177   : > { %v759_v48 = vpop.f32.mrf.mxu0  ;;  %v18307_v49 = vpop.f32.mrf.mxu1 }
 0x178   : > { %v831_v56 = vadd.f32 %v759_v48, %v622_v50  ;;  %v636_v48 = vadd.f32 %v635_v42, %v501_v23  ;;  %v689_v50 = vadd.f32 %v688_v43, %v554_v25 }
 0x179   : > { %v761_v51 = vpop.f32.mrf.mxu0  ;;  %v814_v52 = vpop.f32.mrf.mxu1 }
 0x17a   : > { %v832_v62 = vadd.f32 %v761_v51, %v624_v55  ;;  %v18317_v6 = vadd.f32 %v18311_v60, %v831_v56  ;;  %v638_v51 = vadd.f32 %v637_v45, %v503_v28  ;;  %v834_v43 = vadd.f32 %v814_v52, %v677_v18 }
 0x17b   : > { %v763_v57 = vpop.f32.mrf.mxu0  ;;  %v816_v58 = vpop.f32.mrf.mxu1 }
 0x17c   : > { %v835_v61 = vadd.f32 %v763_v57, %v626_v53  ;;  %v868_v13 = vadd.f32 %v18311_v60, %v832_v62  ;;  %v675_v57 = vadd.f32 %v674_v31, %v18297_v10  ;;  %v837_v45 = vadd.f32 %v816_v58, %v679_v22 }
 0x17d   : > { %v765_v63 = vpop.f32.mrf.mxu0  ;;  %v818_v0 = vpop.f32.mrf.mxu1 }
 0x17e   : > { %v836_v2 = vadd.f32 %v765_v63, %v628_v59  ;;  %v18314_v3 = vadd.f32 %v18309_v54, %v835_v61  ;;  %v838_v23 = vadd.f32 %v818_v0, %v681_v7  ;;  %v833_v35 = vadd.f32 %v18307_v49, %v675_v57 }
 0x17f   : > { %v769_v4 = vpop.f32.mrf.mxu0  ;;  %v822_v5 = vpop.f32.mrf.mxu1  ;;  %v870_v0 = vadd.f32 %v18311_v60, %v834_v43 }
 0x180   : > { %v872_v8 = vadd.f32 %v18309_v54, %v836_v2  ;;  %v18323_v32 = vpack.i.bf16 %v18314_v3, %v18317_v6  ;;  %v839_v53 = vadd.f32 %v769_v4, %v632_v9  ;;  %v841_v39 = vadd.f32 %v822_v5, %v685_v34 }
 0x181   : > { %v771_v15 = vpop.f32.mrf.mxu0  ;;  %v824_v30 = vpop.f32.mrf.mxu1  ;;  %v874_v59 = vadd.f32 %v18309_v54, %v838_v23  ;;  %v873_v4 = vadd.f32 %v18309_v54, %v837_v45  ;;  %v1037_v54 = vpack.c.bf16 %v18314_v3, %v18317_v6  ;;  %v16802_v3 = vld [vmem:[%s21120_s3 + $0x18] sm:$0xff]   ;;  %v899_v6 = vld [vmem:[%s21121_s4 + $0x10] sm:$0xff] }
 0x182   : > { %v840_v55 = vadd.f32 %v771_v15, %v634_v11  ;;  %15836 = vrot.lane.b32.xlu1 %v18323_v32, %s18083_s20  ;;  %v18327_v19 = vpack.i.bf16 %v872_v8, %v868_v13  ;;  %v842_v38 = vadd.f32 %v824_v30, %v687_v36  ;;  %v875_v46 = vadd.f32 %v18303_v44, %v839_v53  ;;  %v900_v15 = vld [vmem:[%s21121_s4 + $0x18] sm:$0xff]  ;;  %v897_v30 = vld [vmem:[%s21121_s4] sm:$0xff] }
 0x183   : > { %v773_v16 = vpop.f32.mrf.mxu0  ;;  %v826_v17 = vpop.f32.mrf.mxu1  ;;  %v877_v52 = vadd.f32 %v18303_v44, %v841_v39  ;;  %v1040_v49 = vpack.c.bf16 %v874_v59, %v870_v0 }
 0x184   : > { %v843_v40 = vadd.f32 %v773_v16, %v636_v48  ;;  %v845_v56 = vadd.f32 %v826_v17, %v689_v50  ;;  %15841 = vrot.lane.b32.xlu0 %v18327_v19, %s18083_s20  ;;  %v876_v10 = vadd.f32 %v18303_v44, %v840_v55  ;;  %v878_v12 = vadd.f32 %v18303_v44, %v842_v38 }
 0x185   : > { %v775_v25 = vpop.f32.mrf.mxu0  ;;  %v828_v28 = vpop.f32.mrf.mxu1  ;;  %v869_v44 = vadd.f32 %v18311_v60, %v833_v35  ;;  %v15870_v60 = vpack.i.bf16 %v874_v59, %v870_v0 }
 0x186   : > { %v879_v41 = vadd.f32 %v18305_v47, %v843_v40  ;;  %v844_v42 = vadd.f32 %v775_v25, %v638_v51  ;;  %v846_v29 = vadd.f32 %v828_v28, %v691_v37  ;;  %v881_v14 = vadd.f32 %v18305_v47, %v845_v56 }
 0x187   : > { %v1039_v11 = vpack.c.bf16 %v873_v4, %v869_v44 }
 0x188   : > { %v880_v31 = vadd.f32 %v18305_v47, %v844_v42  ;;  %v882_v33 = vadd.f32 %v18305_v47, %v846_v29  ;;  %v15845_v61 = vpack.i.bf16 %v879_v41, %v875_v46  ;;  %v1041_v2 = vpack.c.bf16 %v879_v41, %v875_v46 }
 0x189   : > { %v1043_v5 = vpack.c.bf16 %v881_v14, %v877_v52  ;;  %v1038_v47 = vpack.c.bf16 %v872_v8, %v868_v13  ;;  %v15850_v7 = vpack.i.bf16 %v881_v14, %v877_v52  ;;  %v16801_v8 = vld [vmem:[%s21120_s3 + $0x10] sm:$0xff]   ;;  %v15855_v13 = vpack.i.bf16 %v873_v4, %v869_v44 }
 0x18a   : > { %v1042_v58 = vpack.c.bf16 %v880_v31, %v876_v10  ;;  %v1044_v62 = vpack.c.bf16 %v882_v33, %v878_v12  ;;  %v15860_v63 = vpack.i.bf16 %v880_v31, %v876_v10  ;;  %15846 = vrot.lane.b32.xlu1 %v15845_v61, %s18083_s20  ;;  %v15865_v9 = vpack.i.bf16 %v882_v33, %v878_v12 }
 0x18c   : > { %1074 = vmatprep.subr.bf16.mxu0 %v1042_v58  ;;  %1127 = vmatprep.subr.bf16.mxu1 %v1044_v62 }
 0x18d   : > { %15861 = vrot.lane.b32.xlu0 %v15860_v63, %s18083_s20  ;;  %1075 = vmatpush1.bf16.msra.mxu0 %v1041_v2 }
 0x18e   : > { %1128 = vmatpush1.bf16.msra.mxu1 %v1043_v5  ;;  %1076 = vmatprep.subr.bf16.mxu0 %v1038_v47 }
 0x18f   : > { %1129 = vmatprep.subr.bf16.mxu1 %v1040_v49  ;;  %15851 = vrot.lane.b32.xlu1 %v15850_v7, %s18083_s20 }
 0x191   : > { %15866 = vrot.lane.b32.xlu0 %v15865_v9, %s18083_s20  ;;  %1077 = vmatpush1.bf16.msra.mxu0 %v1037_v54 }
 0x192   : > { %1130 = vmatpush1.bf16.msra.mxu1 %v1039_v11 }
 0x193   : > { %15856 = vrot.lane.b32.xlu1 %v15855_v13, %s18083_s20 }
 0x194   : > { %14412 = vmatmul.mubr.msk.bf16.vlgmr.msra.gmra.mxu0 %vm1055_vm12, %v16801_v8 }
 0x195   : > { %15871 = vrot.lane.b32.xlu0 %v15870_v60, %s18083_s20  ;;  %14414 = vmatmul.mubr.msk.bf16.vlgmr.msra.gmra.mxu1 %vm1055_vm12, %v16801_v8 }
 0x196   : > { %1104 = vmatprep.mubr.bf16.mxu0 %v21127_v1  ;;  %1157 = vmatprep.mubr.bf16.mxu1 %v21127_v1 }
 0x197   : > { %15876 = vrot.lane.b32.xlu1 %v15845_v61, %s18084_s21 }
 0x199   : > { %15891 = vrot.lane.b32.xlu0 %v18327_v19, %s18084_s21 }
 0x19b   : > { %15881 = vrot.lane.b32.xlu1 %v15850_v7, %s18084_s21 }
 0x19c   : > { %14413 = vmatmul.mubr.msk.bf16.gmra.mxu0 %vm1055_vm12, %v16802_v3 }
 0x19d   : > { %15901 = vrot.lane.b32.xlu0 %v15860_v63, %s18084_s21  ;;  %14415 = vmatmul.mubr.msk.bf16.gmra.mxu1 %vm1055_vm12, %v16802_v3 }
 0x19e   : > { %1216 = vmatprep.mubr.bf16.mxu0 %v21127_v1  ;;  %1269 = vmatprep.mubr.bf16.mxu1 %v21127_v1 }
 0x19f   : > { %15886 = vrot.lane.b32.xlu1 %v18323_v32, %s18084_s21  ;;  %v898_v32 = vld [vmem:[%s21121_s4 + $0x8] sm:$0xff] }
 0x1a1   : > { %15906 = vrot.lane.b32.xlu0 %v15865_v9, %s18084_s21 }
 0x1a3   : > { %15896 = vrot.lane.b32.xlu1 %v15855_v13, %s18084_s21 }
 0x1a5   : > { %15911 = vrot.lane.b32.xlu0 %v15870_v60, %s18084_s21 }
 0x1a7   : > { %1448 = vperm.xlu1 %15834, %v899_v6  }
 0x1a9   : > { %1453 = vperm.xlu0 %15833, %v900_v15   ;;  %v16803_v15 = vld [vmem:[%s21120_s3] sm:$0xff]  }
 0x1ab   : > { %1438 = vperm.xlu1 %15834, %v897_v30  }
 0x1ad   : > { %1443 = vperm.xlu0 %15833, %v898_v32  }
 0x1f4   : > { %v15837_v34 = vpop.permute.xlu1 %15836 }
 0x1f5   : > { %v15839_v22 = vunpack.i.h.bf16 %v15837_v34  ;;  %v15838_v23 = vunpack.i.l.bf16 %v15837_v34 }
 0x1f6   : > { %v15842_v36 = vpop.permute.xlu0 %15841 }
 0x1f7   : > { %v15844_v17 = vunpack.i.h.bf16 %v15842_v36  ;;  %v15843_v19 = vunpack.i.l.bf16 %v15842_v36 }
 0x1f9   : > { %v941_v42 = vsel %vm389_vm2, %v15838_v23, %v15843_v19  ;;  %v942_v29 = vsel %vm389_vm2, %v15839_v22, %v15844_v17 }
 0x1fa   : > { %v14425_v2 = vpack.c.bf16 %v942_v29, %v941_v42 }
 0x1fc   : > { %v15847_v48 = vpop.permute.xlu1 %15846 }
 0x1fd   : > { %v15849_v51 = vunpack.i.h.bf16 %v15847_v48  ;;  %v15848_v53 = vunpack.i.l.bf16 %v15847_v48 }
 0x1ff   : > { %v15862_v50 = vpop.permute.xlu0 %15861 }
 0x200   : > { %v15864_v55 = vunpack.i.h.bf16 %v15862_v50  ;;  %v15863_v16 = vunpack.i.l.bf16 %v15862_v50 }
 0x201   : > { %v15852_v37 = vpop.permute.xlu1 %15851 }
 0x202   : > { %v943_v38 = vsel %vm389_vm2, %v15848_v53, %v15863_v16  ;;  %v944_v40 = vsel %vm389_vm2, %v15849_v51, %v15864_v55  ;;  %v15854_v56 = vunpack.i.h.bf16 %v15852_v37  ;;  %v15853_v57 = vunpack.i.l.bf16 %v15852_v37  ;;  %v16824_v37 = vld [vmem:[#allocation3 + $0x2c4] ss:$16 sps:$4 sm:$0xff]  }
 0x203   : > { %v15867_v25 = vpop.permute.xlu0 %15866  ;;  %v14419_v28 = vpack.c.bf16 %v944_v40, %v943_v38 }
 0x204   : > { %v15869_v39 = vunpack.i.h.bf16 %v15867_v25  ;;  %v15868_v41 = vunpack.i.l.bf16 %v15867_v25  ;;  %v940_v43 = vsel %vm389_vm2, %v15864_v55, %v15854_v56  ;;  %v939_v45 = vsel %vm389_vm2, %v15863_v16, %v15853_v57 }
 0x205   : > { %v15857_v46 = vpop.permute.xlu1 %15856  ;;  %14420 = vmatprep.subr.msk.bf16.mxu0 %vm18398_vm13, %v14419_v28  ;;  %v14436_v5 = vpack.c.bf16 %v940_v43, %v939_v45 }
 0x206   : > { %v935_v12 = vsel %vm389_vm2, %v15853_v57, %v15868_v41  ;;  %v936_v14 = vsel %vm389_vm2, %v15854_v56, %v15869_v39  ;;  %v947_v31 = vsel %vm389_vm2, %v15868_v41, %v15848_v53  ;;  %v948_v33 = vsel %vm389_vm2, %v15869_v39, %v15849_v51  ;;  %v16804_v41 = vld [vmem:[%s21120_s3 + $0x8] sm:$0xff]  }
 0x207   : > { %v14422_v59 = vpack.c.bf16 %v948_v33, %v947_v31  ;;  %v15859_v61 = vunpack.i.h.bf16 %v15857_v46  ;;  %v15858_v52 = vunpack.i.l.bf16 %v15857_v46  ;;  %v15872_v58 = vpop.permute.xlu0 %15871  ;;  %v14433_v62 = vpack.c.bf16 %v936_v14, %v935_v12  ;;  %v16827_v57 = vld [vmem:[#allocation3 + $0xa4] ss:$16 sps:$4 sm:$0xff]  }
 0x208   : > { %v15874_v63 = vunpack.i.h.bf16 %v15872_v58  ;;  %v15873_v0 = vunpack.i.l.bf16 %v15872_v58  ;;  %v16819_v58 = vld [vmem:[#allocation3 + $0xc0] ss:$16 sps:$4 sm:$0xff]  }
 0x209   : > { %v938_v47 = vsel %vm389_vm2, %v15844_v17, %v15859_v61  ;;  %v15877_v49 = vpop.permute.xlu1 %15876  ;;  %14423 = vmatpush1.bf16.msk.msra.mxu0 %vm18415_vm14, %v14422_v59  ;;  %14434 = vmatprep.subr.msk.bf16.mxu1 %vm18430_vm15, %v14433_v62  ;;  %v937_v7 = vsel %vm389_vm2, %v15843_v19, %v15858_v52 }
 0x20a   : > { %v933_v44 = vsel %vm389_vm2, %v15858_v52, %v15873_v0  ;;  %v934_v9 = vsel %vm389_vm2, %v15859_v61, %v15874_v63  ;;  %v945_v54 = vsel %vm389_vm2, %v15873_v0, %v15838_v23  ;;  %14426 = vmatprep.subr.msk.bf16.mxu0 %vm18398_vm13, %v14425_v2  ;;  %v946_v11 = vsel %vm389_vm2, %v15874_v63, %v15839_v22 }
 0x20b   : > { %14437 = vmatpush1.bf16.msk.msra.mxu1 %vm18437_vm0, %v14436_v5  ;;  %v15892_v8 = vpop.permute.xlu0 %15891  ;;  %v14439_v13 = vpack.c.bf16 %v934_v9, %v933_v44  ;;  %v14428_v60 = vpack.c.bf16 %v946_v11, %v945_v54  ;;  %v14442_v3 = vpack.c.bf16 %v938_v47, %v937_v7  ;;  %v15879_v30 = vunpack.i.h.bf16 %v15877_v49  ;;  %v16812_v47 = vld [vmem:[%s21120_s3 + $0x58] sm:$0xff]  }
 0x20c   : > { %v15878_v32 = vunpack.i.l.bf16 %v15877_v49  ;;  %v15894_v42 = vunpack.i.h.bf16 %v15892_v8  ;;  %v15893_v46 = vunpack.i.l.bf16 %v15892_v8 }
 0x20d   : > { %v15882_v6 = vpop.permute.xlu1 %15881  ;;  %14440 = vmatprep.subr.msk.bf16.mxu1 %vm18430_vm15, %v14439_v13  ;;  %14429 = vmatpush1.bf16.msk.msra.mxu0 %vm18415_vm14, %v14428_v60  ;;  %v16805_v60 = vld [vmem:[%s21120_s3 + $0x20] sm:$0xff]  }
 0x20e   : > { %v15884_v36 = vunpack.i.h.bf16 %v15882_v6  ;;  %v15883_v48 = vunpack.i.l.bf16 %v15882_v6 }
 0x20f   : > { %14443 = vmatpush1.bf16.msk.msra.mxu1 %vm18437_vm0, %v14442_v3  ;;  %v15902_v34 = vpop.permute.xlu0 %15901  ;;  %v16806_v3 = vld [vmem:[%s21120_s3 + $0x28] sm:$0xff]  }
 0x210   : > { %v15904_v50 = vunpack.i.h.bf16 %v15902_v34  ;;  %v15903_v51 = vunpack.i.l.bf16 %v15902_v34  ;;  %14430 = vmatmul.mubr.msk.bf16.vlgmr.msra.gmra.mxu0 %vm1055_vm12, %v16803_v15 }
 0x211   : > { %v15887_v53 = vpop.permute.xlu1 %15886  ;;  %1226 = vmatprep.mubr.bf16.mxu0 %v21127_v1 }
 0x212   : > { %v987_v55 = vsel %vm402_vm3, %v15903_v51, %v15883_v48  ;;  %v988_v16 = vsel %vm402_vm3, %v15904_v50, %v15884_v36  ;;  %v991_v17 = vsel %vm402_vm3, %v15878_v32, %v15903_v51  ;;  %v992_v19 = vsel %vm402_vm3, %v15879_v30, %v15904_v50  ;;  %14444 = vmatmul.mubr.msk.bf16.vlgmr.msra.gmra.mxu1 %vm1055_vm12, %v16803_v15 }
 0x213   : > { %v14452_v38 = vpack.c.bf16 %v992_v19, %v991_v17  ;;  %v15907_v40 = vpop.permute.xlu0 %15906  ;;  %v14449_v56 = vpack.c.bf16 %v988_v16, %v987_v55  ;;  %1279 = vmatprep.mubr.bf16.mxu1 %v21127_v1  ;;  %v15889_v25 = vunpack.i.h.bf16 %v15887_v53  ;;  %v15888_v28 = vunpack.i.l.bf16 %v15887_v53 }
 0x214   : > { %v15909_v22 = vunpack.i.h.bf16 %v15907_v40  ;;  %v15908_v23 = vunpack.i.l.bf16 %v15907_v40 }
 0x215   : > { %v15897_v39 = vpop.permute.xlu1 %15896  ;;  %14450 = vmatprep.subr.msk.bf16.mxu0 %vm18483_vm1, %v14449_v56  ;;  %v990_v63 = vsel %vm402_vm3, %v15889_v25, %v15894_v42  ;;  %v989_v0 = vsel %vm402_vm3, %v15888_v28, %v15893_v46 }
 0x216   : > { %v983_v29 = vsel %vm402_vm3, %v15883_v48, %v15908_v23  ;;  %v984_v43 = vsel %vm402_vm3, %v15884_v36, %v15909_v22  ;;  %v995_v45 = vsel %vm402_vm3, %v15908_v23, %v15878_v32  ;;  %14453 = vmatpush1.bf16.msk.msra.mxu0 %vm18490_vm4, %v14452_v38  ;;  %v996_v12 = vsel %vm402_vm3, %v15909_v22, %v15879_v30 }
 0x217   : > { %v15899_v14 = vunpack.i.h.bf16 %v15897_v39  ;;  %v15898_v31 = vunpack.i.l.bf16 %v15897_v39  ;;  %v15912_v33 = vpop.permute.xlu0 %15911  ;;  %v14466_v59 = vpack.c.bf16 %v984_v43, %v983_v29  ;;  %v14463_v62 = vpack.c.bf16 %v996_v12, %v995_v45 }
 0x218   : > { %v15914_v61 = vunpack.i.h.bf16 %v15912_v33  ;;  %v15913_v52 = vunpack.i.l.bf16 %v15912_v33  ;;  %14431 = vmatmul.mubr.msk.bf16.gmra.mxu0 %vm1055_vm12, %v16804_v41  ;;  %v14458_v8 = vpack.c.bf16 %v990_v63, %v989_v0 }
 0x219   : > { %v986_v2 = vsel %vm402_vm3, %v15894_v42, %v15899_v14  ;;  %v985_v5 = vsel %vm402_vm3, %v15893_v46, %v15898_v31  ;;  %14464 = vmatprep.subr.msk.bf16.mxu1 %vm18514_vm5, %v14463_v62  ;;  %1346 = vmatprep.mubr.bf16.mxu0 %v21127_v1 }
 0x21a   : > { %v981_v49 = vsel %vm402_vm3, %v15898_v31, %v15913_v52  ;;  %v982_v7 = vsel %vm402_vm3, %v15899_v14, %v15914_v61  ;;  %v993_v44 = vsel %vm402_vm3, %v15913_v52, %v15888_v28  ;;  %v994_v9 = vsel %vm402_vm3, %v15914_v61, %v15889_v25  ;;  %14445 = vmatmul.mubr.msk.bf16.gmra.mxu1 %vm1055_vm12, %v16804_v41 }
 0x21b   : > { %v14455_v54 = vpack.c.bf16 %v986_v2, %v985_v5  ;;  %v14469_v11 = vpack.c.bf16 %v994_v9, %v993_v44  ;;  %v14472_v13 = vpack.c.bf16 %v982_v7, %v981_v49  ;;  %14467 = vmatpush1.bf16.msk.msra.mxu1 %vm18530_vm6, %v14466_v59  ;;  %1399 = vmatprep.mubr.bf16.mxu1 %v21127_v1 }
 0x21d   : > { %14456 = vmatprep.subr.msk.bf16.mxu0 %vm18483_vm1, %v14455_v54  ;;  %14470 = vmatprep.subr.msk.bf16.mxu1 %vm18514_vm5, %v14469_v11 }
 0x21e   : > { %14459 = vmatpush1.bf16.msk.msra.mxu0 %vm18490_vm4, %v14458_v8 }
 0x21f   : > { %14473 = vmatpush1.bf16.msk.msra.mxu1 %vm18530_vm6, %v14472_v13 }
 0x221   : > { %14460 = vmatmul.mubr.msk.bf16.vlgmr.msra.gmra.mxu0 %vm1055_vm12, %v16805_v60 }
 0x222   : > { %1356 = vmatprep.mubr.bf16.mxu0 %v21127_v1  ;;  %14474 = vmatmul.mubr.msk.bf16.vlgmr.msra.gmra.mxu1 %vm1055_vm12, %v16805_v60  ;;  %v18573_v14 = vpop.permute.xlu1 %1448 }
 0x223   : > { %1409 = vmatprep.mubr.bf16.mxu1 %v21127_v1 }
 0x224   : > { %v18575_v62 = vpop.permute.xlu0 %1453 }
 0x226   : > { %v1439_v49 = vpop.permute.xlu1 %1438 }
 0x228   : > { %v1444_v27 = vpop.permute.xlu0 %1443 }
 0x229   : > { %14461 = vmatmul.mubr.msk.bf16.gmra.mxu0 %vm1055_vm12, %v16806_v3 }
 0x22a   : > { %1716 = vmatprep.mubr.bf16.mxu0 %v21127_v1  ;;  %14475 = vmatmul.mubr.msk.bf16.gmra.mxu1 %vm1055_vm12, %v16806_v3 }
 0x22b   : > { %1769 = vmatprep.mubr.bf16.mxu1 %v21127_v1 }
 0x254   : > { %v1096_v6 = vpop.f32.mrf.mxu0 }
 0x255   : > { %v1149_v15 = vpop.f32.mrf.mxu1 }
 0x256   : > { %v1098_v30 = vpop.f32.mrf.mxu0 }
 0x257   : > { %v1151_v32 = vpop.f32.mrf.mxu1 }
 0x258   : > { %v1100_v34 = vpop.f32.mrf.mxu0 }
 0x259   : > { %v1153_v36 = vpop.f32.mrf.mxu1 }
 0x25a   : > { %v1102_v48 = vpop.f32.mrf.mxu0 }
 0x25b   : > { %v1155_v50 = vpop.f32.mrf.mxu1 }
 0x25c   : > { %v1106_v51 = vpop.f32.mrf.mxu0 }
 0x25d   : > { %v1159_v53 = vpop.f32.mrf.mxu1 }
 0x25e   : > { %v1108_v55 = vpop.f32.mrf.mxu0 }
 0x25f   : > { %v1161_v16 = vpop.f32.mrf.mxu1 }
 0x260   : > { %v1110_v17 = vpop.f32.mrf.mxu0 }
 0x261   : > { %v1163_v19 = vpop.f32.mrf.mxu1 }
 0x262   : > { %v1112_v38 = vpop.f32.mrf.mxu0 }
 0x263   : > { %v18571_v40 = vpop.f32.mrf.mxu1 }
 0x2d0   : > { %v1218_v56 = vpop.f32.mrf.mxu0 }
 0x2d1   : > { %v1219_v59 = vadd.f32 %v1218_v56, %v1096_v6 }
 0x2d2   : > { %v1271_v22 = vpop.f32.mrf.mxu1  ;;  %v1220_v23 = vpop.f32.mrf.mxu0 }
 0x2d3   : > { %v1221_v63 = vadd.f32 %v1220_v23, %v1098_v30  ;;  %v1272_v11 = vadd.f32 %v1271_v22, %v1149_v15 }
 0x2d4   : > { %v1273_v25 = vpop.f32.mrf.mxu1  ;;  %v1222_v28 = vpop.f32.mrf.mxu0 }
 0x2d5   : > { %v1223_v44 = vadd.f32 %v1222_v28, %v1100_v34  ;;  %v1274_v8 = vadd.f32 %v1273_v25, %v1151_v32 }
 0x2d6   : > { %v1275_v39 = vpop.f32.mrf.mxu1  ;;  %v1224_v41 = vpop.f32.mrf.mxu0 }
 0x2d7   : > { %v1276_v60 = vadd.f32 %v1275_v39, %v1153_v36  ;;  %v1225_v3 = vadd.f32 %v1224_v41, %v1102_v48 }
 0x2d8   : > { %v1277_v42 = vpop.f32.mrf.mxu1  ;;  %v1228_v29 = vpop.f32.mrf.mxu0 }
 0x2d9   : > { %v1278_v20 = vadd.f32 %v1277_v42, %v1155_v50  ;;  %v1229_v26 = vadd.f32 %v1228_v29, %v1106_v51 }
 0x2da   : > { %v1281_v43 = vpop.f32.mrf.mxu1  ;;  %v1230_v45 = vpop.f32.mrf.mxu0 }
 0x2db   : > { %v1282_v30 = vadd.f32 %v1281_v43, %v1159_v53  ;;  %v1231_v23 = vadd.f32 %v1230_v45, %v1108_v55 }
 0x2dc   : > { %v1283_v46 = vpop.f32.mrf.mxu1  ;;  %v1232_v12 = vpop.f32.mrf.mxu0 }
 0x2dd   : > { %v1233_v15 = vadd.f32 %v1232_v12, %v1110_v17 }
 0x2de   : > { %v1285_v31 = vpop.f32.mrf.mxu1  ;;  %v1234_v33 = vpop.f32.mrf.mxu0 }
 0x2df   : > { %v1286_v32 = vadd.f32 %v1285_v31, %v1163_v19  ;;  %v1235_v51 = vadd.f32 %v1234_v33, %v1112_v38 }
 0x2e0   : > { %v1287_v61 = vpop.f32.mrf.mxu1 }
 0x2e1   : > { %v1348_v52 = vpop.f32.mrf.mxu0 }
 0x2e2   : > { %v1420_v0 = vadd.f32 %v1348_v52, %v1219_v59  ;;  %v1401_v2 = vpop.f32.mrf.mxu1  ;;  %v1284_v52 = vadd.f32 %v1283_v46, %v1161_v16  ;;  %v1288_v16 = vadd.f32 %v1287_v61, %v18571_v40 }
 0x2e3   : > { %v1350_v5 = vpop.f32.mrf.mxu0  ;;  %v1422_v24 = vadd.f32 %v1401_v2, %v1272_v11 }
 0x2e4   : > { %v1421_v7 = vadd.f32 %v1350_v5, %v1221_v63  ;;  %v1403_v9 = vpop.f32.mrf.mxu1  ;;  %v1456_v13 = vadd.f32 %v1439_v49, %v1420_v0 }
 0x2e5   : > { %v1352_v54 = vpop.f32.mrf.mxu0  ;;  %v1423_v48 = vadd.f32 %v1403_v9, %v1274_v8  ;;  %v18578_v43 = vadd.f32 %v1439_v49, %v1422_v24 }
 0x2e6   : > { %v1424_v6 = vadd.f32 %v1352_v54, %v1223_v44  ;;  %v1405_v56 = vpop.f32.mrf.mxu1  ;;  %v1457_v59 = vadd.f32 %v1439_v49, %v1421_v7  ;;  %v1472_v22 = vmul.f32 0.2, %v1456_v13 }
 0x2e7   : > { %v1354_v1 = vpop.f32.mrf.mxu0  ;;  %v1459_v38 = vadd.f32 %v1439_v49, %v1423_v48 }
 0x2e8   : > { %v1460_v63 = vadd.f32 %v1444_v27, %v1424_v6  ;;  %v1425_v34 = vadd.f32 %v1354_v1, %v1225_v3  ;;  %v1407_v28 = vpop.f32.mrf.mxu1  ;;  %v1473_v53 = vmul.f32 0.2, %v1457_v59  ;;  %v18582_v31 = vmax.f32 %v1456_v13, %v1472_v22 }
 0x2e9   : > { %v1358_v5 = vpop.f32.mrf.mxu0  ;;  %v1427_v36 = vadd.f32 %v1407_v28, %v1278_v20  ;;  %v1426_v20 = vadd.f32 %v1405_v56, %v1276_v60 }
 0x2ea   : > { %v1476_v50 = vmul.f32 0.2, %v1460_v63  ;;  %v1461_v25 = vadd.f32 %v1444_v27, %v1425_v34  ;;  %v1428_v39 = vadd.f32 %v1358_v5, %v1229_v26  ;;  %v1411_v41 = vpop.f32.mrf.mxu1  ;;  %v1489_v24 = vmax.f32 %v1457_v59, %v1473_v53 }
 0x2eb   : > { %v1360_v42 = vpop.f32.mrf.mxu0  ;;  %v1430_v55 = vadd.f32 %v1411_v41, %v1282_v30  ;;  %v1463_v46 = vadd.f32 %v1444_v27, %v1427_v36  ;;  %v1462_v13 = vadd.f32 %v1444_v27, %v1426_v20 }
 0x2ec   : > { %v1429_v29 = vadd.f32 %v1360_v42, %v1231_v23  ;;  %v1477_v1 = vmul.f32 0.2, %v1461_v25  ;;  %v1464_v17 = vadd.f32 %v18573_v14, %v1428_v39  ;;  %v1413_v19 = vpop.f32.mrf.mxu1  ;;  %v18584_v33 = vmax.f32 %v1460_v63, %v1476_v50 }
 0x2ed   : > { %v1362_v45 = vpop.f32.mrf.mxu0  ;;  %v1431_v26 = vadd.f32 %v1413_v19, %v1284_v52  ;;  %v1466_v7 = vadd.f32 %v18573_v14, %v1430_v55  ;;  %v1479_v3 = vmul.f32 0.2, %v1463_v46  ;;  %v1478_v22 = vmul.f32 0.2, %v1462_v13 }
 0x2ee   : > { %v1465_v12 = vadd.f32 %v18573_v14, %v1429_v29  ;;  %v1432_v0 = vadd.f32 %v1362_v45, %v1233_v15  ;;  %v1415_v2 = vpop.f32.mrf.mxu1  ;;  %v1493_v61 = vmax.f32 %v1461_v25, %v1477_v1  ;;  %v1480_v9 = vmul.f32 0.2, %v1464_v17 }
 0x2ef   : > { %v1364_v40 = vpop.f32.mrf.mxu0  ;;  %v1467_v44 = vadd.f32 %v18573_v14, %v1431_v26  ;;  %v1434_v11 = vadd.f32 %v1415_v2, %v1286_v32  ;;  %v18593_v59 = vpack.i.bf16 %v18584_v33, %v18582_v31  ;;  %v1482_v14 = vmul.f32 0.2, %v1466_v7 }
 0x2f0   : > { %v1468_v54 = vadd.f32 %v18575_v62, %v1432_v0  ;;  %v1433_v8 = vadd.f32 %v1364_v40, %v1235_v51  ;;  %v1417_v60 = vpop.f32.mrf.mxu1  ;;  %v1481_v49 = vmul.f32 0.2, %v1465_v12  ;;  %v15920_v34 = vpack.i.bf16 %v1493_v61, %v1489_v24  ;;  %v16807_v40 = vld [vmem:[%s21120_s3 + $0x40] sm:$0xff]  }
 0x2f1   : > { %v1435_v6 = vadd.f32 %v1417_v60, %v1288_v16  ;;  %v1470_v30 = vadd.f32 %v18575_v62, %v1434_v11  ;;  %v1483_v52 = vmul.f32 0.2, %v1467_v44  ;;  %v1496_v28 = vmax.f32 %v1464_v17, %v1480_v9  ;;  %15916 = vrot.lane.b32.xlu1 %v18593_v59, %s18083_s20  ;;  %v14491_v9 = vld [vmem:[%s21121_s4 + $0x38] sm:$0xff] }
 0x2f2   : > { %v1484_v56 = vmul.f32 0.2, %v1468_v54  ;;  %v1469_v23 = vadd.f32 %v18575_v62, %v1433_v8  ;;  %v1475_v32 = vmul.f32 0.2, %v1459_v38  ;;  %15921 = vrot.lane.b32.xlu0 %v15920_v34, %s18083_s20  ;;  %v1497_v48 = vmax.f32 %v1465_v12, %v1481_v49 }
 0x2f3   : > { %v1471_v63 = vadd.f32 %v18575_v62, %v1435_v6  ;;  %v1486_v27 = vmul.f32 0.2, %v1470_v30  ;;  %v1495_v41 = vmax.f32 %v1463_v46, %v1479_v3  ;;  %v1499_v42 = vmax.f32 %v1467_v44, %v1483_v52  ;;  %v14490_v44 = vld [vmem:[%s21121_s4 + $0x30] sm:$0xff] }
 0x2f4   : > { %v1500_v5 = vmax.f32 %v1468_v54, %v1484_v56  ;;  %v1485_v15 = vmul.f32 0.2, %v1469_v23  ;;  %v1474_v51 = vmul.f32 0.2, %v18578_v43  ;;  %v1498_v53 = vmax.f32 %v1466_v7, %v1482_v14  ;;  %v14489_v7 = vld [vmem:[%s21121_s4 + $0x28] sm:$0xff] }
 0x2f5   : > { %v1487_v36 = vmul.f32 0.2, %v1471_v63  ;;  %v1502_v50 = vmax.f32 %v1470_v30, %v1486_v27  ;;  %v1491_v16 = vmax.f32 %v1459_v38, %v1475_v32  ;;  %v1494_v19 = vmax.f32 %v1462_v13, %v1478_v22 }
 0x2f6   : > { %v1501_v25 = vmax.f32 %v1469_v23, %v1485_v15  ;;  %v15925_v39 = vpack.i.bf16 %v1500_v5, %v1496_v28  ;;  %v1664_v1 = vpack.c.bf16 %v1500_v5, %v1496_v28  ;;  %v1661_v45 = vpack.c.bf16 %v1493_v61, %v1489_v24  ;;  %v14488_v61 = vld [vmem:[%s21121_s4 + $0x20] sm:$0xff] }
 0x2f7   : > { %v1503_v62 = vmax.f32 %v1471_v63, %v1487_v36  ;;  %v1666_v20 = vpack.c.bf16 %v1502_v50, %v1498_v53  ;;  %v15930_v46 = vpack.i.bf16 %v1502_v50, %v1498_v53  ;;  %v1663_v12 = vpack.c.bf16 %v1495_v41, %v1491_v16 }
 0x2f8   : > { %15926 = vrot.lane.b32.xlu1 %v15925_v39, %s18083_s20  ;;  %v1665_v55 = vpack.c.bf16 %v1501_v25, %v1497_v48  ;;  %v15940_v29 = vpack.i.bf16 %v1501_v25, %v1497_v48  ;;  %v1490_v26 = vmax.f32 %v18578_v43, %v1474_v51  ;;  %v1660_v38 = vpack.c.bf16 %v18584_v33, %v18582_v31  ;;  %v16808_v33 = vld [vmem:[%s21120_s3 + $0x48] sm:$0xff]  }
 0x2f9   : > { %v1667_v17 = vpack.c.bf16 %v1503_v62, %v1499_v42  ;;  %v15945_v0 = vpack.i.bf16 %v1503_v62, %v1499_v42  ;;  %v15950_v43 = vpack.i.bf16 %v1495_v41, %v1491_v16  ;;  %v21155_v31 = vmov 0  }
 0x2fa   : > { %1696 = vmatprep.subr.bf16.mxu0 %v1665_v55  ;;  %15941 = vrot.lane.b32.xlu0 %v15940_v29, %s18083_s20  ;;  %v1662_v2 = vpack.c.bf16 %v1494_v19, %v1490_v26  ;;  %v15935_v24 = vpack.i.bf16 %v1494_v19, %v1490_v26 }
 0x2fb   : > { %1697 = vmatpush1.bf16.msra.mxu0 %v1664_v1  ;;  %1749 = vmatprep.subr.bf16.mxu1 %v1667_v17 }
 0x2fc   : > { %1698 = vmatprep.subr.bf16.mxu0 %v1661_v45  ;;  %1750 = vmatpush1.bf16.msra.mxu1 %v1666_v20 }
 0x2fd   : > { %15931 = vrot.lane.b32.xlu1 %v15930_v46, %s18083_s20  ;;  %1751 = vmatprep.subr.bf16.mxu1 %v1663_v12 }
 0x2fe   : > { %15946 = vrot.lane.b32.xlu0 %v15945_v0, %s18083_s20 }
 0x2ff   : > { %1699 = vmatpush1.bf16.msra.mxu0 %v1660_v38 }
 0x300   : > { %1752 = vmatpush1.bf16.msra.mxu1 %v1662_v2 }
 0x301   : > { %15936 = vrot.lane.b32.xlu1 %v15935_v24, %s18083_s20 }
 0x302   : > { %15951 = vrot.lane.b32.xlu0 %v15950_v43, %s18083_s20  ;;  %14494 = vmatmul.mubr.msk.bf16.vlgmr.msra.gmra.mxu0 %vm1055_vm12, %v16807_v40 }
 0x303   : > { %14496 = vmatmul.mubr.msk.bf16.vlgmr.msra.gmra.mxu1 %vm1055_vm12, %v16807_v40  ;;  %1726 = vmatprep.mubr.bf16.mxu0 %v21155_v31 }
 0x304   : > { %1779 = vmatprep.mubr.bf16.mxu1 %v21155_v31 }
 0x305   : > { %15956 = vrot.lane.b32.xlu1 %v15925_v39, %s18084_s21 }
 0x306   : > { %15971 = vrot.lane.b32.xlu0 %v15920_v34, %s18084_s21 }
 0x309   : > { %15961 = vrot.lane.b32.xlu1 %v15930_v46, %s18084_s21 }
 0x30a   : > { %15981 = vrot.lane.b32.xlu0 %v15940_v29, %s18084_s21  ;;  %14495 = vmatmul.mubr.msk.bf16.gmra.mxu0 %vm1055_vm12, %v16808_v33 }
 0x30b   : > { %14497 = vmatmul.mubr.msk.bf16.gmra.mxu1 %vm1055_vm12, %v16808_v33  ;;  %1838 = vmatprep.mubr.bf16.mxu0 %v21155_v31 }
 0x30c   : > { %1891 = vmatprep.mubr.bf16.mxu1 %v21155_v31 }
 0x30d   : > { %15966 = vrot.lane.b32.xlu1 %v18593_v59, %s18084_s21 }
 0x30e   : > { %15986 = vrot.lane.b32.xlu0 %v15945_v0, %s18084_s21 }
 0x311   : > { %15976 = vrot.lane.b32.xlu1 %v15935_v24, %s18084_s21 }
 0x312   : > { %15991 = vrot.lane.b32.xlu0 %v15950_v43, %s18084_s21 }
 0x315   : > { %2060 = vperm.xlu1 %15834, %v14488_v61   ;;  %v16809_v61 = vld [vmem:[%s21120_s3 + $0x30] sm:$0xff]  }
 0x316   : > { %2065 = vperm.xlu0 %15833, %v14489_v7  }
 0x319   : > { %2070 = vperm.xlu1 %15834, %v14490_v44  }
 0x31a   : > { %2075 = vperm.xlu0 %15833, %v14491_v9  }
 0x363   : > { %v15917_v54 = vpop.permute.xlu1 %15916 }
 0x364   : > { %v15922_v11 = vpop.permute.xlu0 %15921  ;;  %v15919_v23 = vunpack.i.h.bf16 %v15917_v54  ;;  %v15918_v63 = vunpack.i.l.bf16 %v15917_v54 }
 0x365   : > { %v15924_v56 = vunpack.i.h.bf16 %v15922_v11  ;;  %v15923_v30 = vunpack.i.l.bf16 %v15922_v11 }
 0x367   : > { %v1564_v22 = vsel %vm389_vm2, %v15918_v63, %v15923_v30  ;;  %v1565_v36 = vsel %vm389_vm2, %v15919_v23, %v15924_v56 }
 0x368   : > { %v14507_v20 = vpack.c.bf16 %v1565_v36, %v1564_v22 }
 0x36a   : > { %v15927_v8 = vpop.permute.xlu1 %15926 }
 0x36b   : > { %v15929_v13 = vunpack.i.h.bf16 %v15927_v8  ;;  %v15928_v3 = vunpack.i.l.bf16 %v15927_v8 }
 0x36c   : > { %v15942_v60 = vpop.permute.xlu0 %15941 }
 0x36d   : > { %v15944_v49 = vunpack.i.h.bf16 %v15942_v60  ;;  %v15943_v6 = vunpack.i.l.bf16 %v15942_v60 }
 0x36f   : > { %v1566_v59 = vsel %vm389_vm2, %v15928_v3, %v15943_v6  ;;  %v1567_v14 = vsel %vm389_vm2, %v15929_v13, %v15944_v49  ;;  %v15932_v52 = vpop.permute.xlu1 %15931 }
 0x370   : > { %v15934_v34 = vunpack.i.h.bf16 %v15932_v52  ;;  %v15933_v28 = vunpack.i.l.bf16 %v15932_v52  ;;  %v15947_v5 = vpop.permute.xlu0 %15946  ;;  %v14501_v27 = vpack.c.bf16 %v1567_v14, %v1566_v59  ;;  %v16810_v52 = vld [vmem:[%s21120_s3 + $0x38] sm:$0xff]  }
 0x371   : > { %v15949_v15 = vunpack.i.h.bf16 %v15947_v5  ;;  %v15948_v32 = vunpack.i.l.bf16 %v15947_v5 }
 0x372   : > { %v1563_v48 = vsel %vm389_vm2, %v15944_v49, %v15934_v34  ;;  %14502 = vmatprep.subr.msk.bf16.mxu0 %vm18398_vm13, %v14501_v27  ;;  %v1562_v50 = vsel %vm389_vm2, %v15943_v6, %v15933_v28 }
 0x373   : > { %v1558_v25 = vsel %vm389_vm2, %v15933_v28, %v15948_v32  ;;  %v1559_v39 = vsel %vm389_vm2, %v15934_v34, %v15949_v15  ;;  %v1570_v41 = vsel %vm389_vm2, %v15948_v32, %v15928_v3  ;;  %v15937_v42 = vpop.permute.xlu1 %15936  ;;  %v1571_v62 = vsel %vm389_vm2, %v15949_v15, %v15929_v13 }
 0x374   : > { %v15939_v51 = vunpack.i.h.bf16 %v15937_v42  ;;  %v15938_v53 = vunpack.i.l.bf16 %v15937_v42  ;;  %v15952_v55 = vpop.permute.xlu0 %15951  ;;  %v14515_v29 = vpack.c.bf16 %v1559_v39, %v1558_v25  ;;  %v14504_v16 = vpack.c.bf16 %v1571_v62, %v1570_v41 }
 0x375   : > { %v15954_v1 = vunpack.i.h.bf16 %v15952_v55  ;;  %v15953_v17 = vunpack.i.l.bf16 %v15952_v55  ;;  %v14518_v19 = vpack.c.bf16 %v1563_v48, %v1562_v50 }
 0x376   : > { %v1561_v45 = vsel %vm389_vm2, %v15924_v56, %v15939_v51  ;;  %14516 = vmatprep.subr.msk.bf16.mxu1 %vm18430_vm15, %v14515_v29  ;;  %v1560_v46 = vsel %vm389_vm2, %v15923_v30, %v15938_v53  ;;  %14505 = vmatpush1.bf16.msk.msra.mxu0 %vm18415_vm14, %v14504_v16 }
 0x377   : > { %v1556_v12 = vsel %vm389_vm2, %v15938_v53, %v15953_v17  ;;  %v1557_v26 = vsel %vm389_vm2, %v15939_v51, %v15954_v1  ;;  %v1568_v0 = vsel %vm389_vm2, %v15953_v17, %v15918_v63  ;;  %v15957_v38 = vpop.permute.xlu1 %15956  ;;  %v1569_v2 = vsel %vm389_vm2, %v15954_v1, %v15919_v23  ;;  %14508 = vmatprep.subr.msk.bf16.mxu0 %vm18398_vm13, %v14507_v20 }
 0x378   : > { %14519 = vmatpush1.bf16.msk.msra.mxu1 %vm18437_vm0, %v14518_v19  ;;  %v15972_v40 = vpop.permute.xlu0 %15971  ;;  %v14521_v24 = vpack.c.bf16 %v1557_v26, %v1556_v12  ;;  %v14510_v43 = vpack.c.bf16 %v1569_v2, %v1568_v0  ;;  %v14524_v33 = vpack.c.bf16 %v1561_v45, %v1560_v46  ;;  %v15959_v18 = vunpack.i.h.bf16 %v15957_v38  ;;  %v16815_v45 = vld [vmem:[#allocation3 + $0xe4] ss:$16 sps:$4 sm:$0xff]   ;;  %v16813_v0 = vld [vmem:[#allocation3 + $0xe0] ss:$16 sps:$4 sm:$0xff]  }
 0x379   : > { %v15958_v44 = vunpack.i.l.bf16 %v15957_v38  ;;  %v15974_v63 = vunpack.i.h.bf16 %v15972_v40  ;;  %v15973_v15 = vunpack.i.l.bf16 %v15972_v40  ;;  %v16811_v12 = vld [vmem:[%s21120_s3 + $0x50] sm:$0xff]  }
 0x37a   : > { %14522 = vmatprep.subr.msk.bf16.mxu1 %vm18430_vm15, %v14521_v24  ;;  %14511 = vmatpush1.bf16.msk.msra.mxu0 %vm18415_vm14, %v14510_v43  ;;  %v16818_v26 = vld [vmem:[#allocation3 + $0x2e4] ss:$16 sps:$4 sm:$0xff]   ;;  %v16816_v2 = vld [vmem:[#allocation3 + $0x2e0] ss:$16 sps:$4 sm:$0xff]  }
 0x37b   : > { %v15962_v7 = vpop.permute.xlu1 %15961  ;;  %v16821_v38 = vld [vmem:[#allocation3 + $0xc4] ss:$16 sps:$4 sm:$0xff]   ;;  %v16822_v40 = vld [vmem:[#allocation3 + $0x2c0] ss:$16 sps:$4 sm:$0xff]  }
 0x37c   : > { %14525 = vmatpush1.bf16.msk.msra.mxu1 %vm18437_vm0, %v14524_v33  ;;  %v15982_v9 = vpop.permute.xlu0 %15981  ;;  %v15964_v54 = vunpack.i.h.bf16 %v15962_v7  ;;  %v15963_v11 = vunpack.i.l.bf16 %v15962_v7  ;;  %v16830_v24 = vld [vmem:[#allocation3 + $0x2a4] ss:$16 sps:$4 sm:$0xff]   ;;  %v16825_v43 = vld [vmem:[#allocation3 + $0xa0] ss:$16 sps:$4 sm:$0xff]   ;;  %vm343_vm0 = vcmp.lt.s32.totalorder %v18208_v21, 32 }
 0x37d   : > { %v15984_v8 = vunpack.i.h.bf16 %v15982_v9  ;;  %v15983_v60 = vunpack.i.l.bf16 %v15982_v9  ;;  %14512 = vmatmul.mubr.msk.bf16.vlgmr.msra.gmra.mxu0 %vm1055_vm12, %v16809_v61  ;;  %v16833_v33 = vld [vmem:[#allocation3 + $0x84] ss:$16 sps:$4 sm:$0xff]   ;;  %v16834_v9 = vld [vmem:[#allocation3 + $0x280] ss:$16 sps:$4 sm:$0xff]  }
 0x37e   : > { %1848 = vmatprep.mubr.bf16.mxu0 %v21155_v31  ;;  %v16836_v7 = vld [vmem:[#allocation3 + $0x284] ss:$16 sps:$4 sm:$0xff]  }
 0x37f   : > { %v1610_v35 = vsel %vm402_vm3, %v15983_v60, %v15963_v11  ;;  %v1611_v13 = vsel %vm402_vm3, %v15984_v8, %v15964_v54  ;;  %v1614_v10 = vsel %vm402_vm3, %v15958_v44, %v15983_v60  ;;  %v1615_v4 = vsel %vm402_vm3, %v15959_v18, %v15984_v8  ;;  %v15967_v3 = vpop.permute.xlu1 %15966  ;;  %14526 = vmatmul.mubr.msk.bf16.vlgmr.msra.gmra.mxu1 %vm1055_vm12, %v16809_v61  ;;  %v16828_v61 = vld [vmem:[#allocation3 + $0x2a0] ss:$16 sps:$4 sm:$0xff]   ;;  %v16845_v8 = vld [vmem:[#allocation3 + $0x44] ss:$16 sps:$4 sm:$0xff]  }
 0x380   : > { %v14534_v49 = vpack.c.bf16 %v1615_v4, %v1614_v10  ;;  %v15987_v6 = vpop.permute.xlu0 %15986  ;;  %v14531_v56 = vpack.c.bf16 %v1611_v13, %v1610_v35  ;;  %1901 = vmatprep.mubr.bf16.mxu1 %v21155_v31  ;;  %v15969_v59 = vunpack.i.h.bf16 %v15967_v3  ;;  %v15968_v14 = vunpack.i.l.bf16 %v15967_v3  ;;  %v16840_v60 = vld [vmem:[#allocation3 + $0x260] ss:$16 sps:$4 sm:$0xff]   ;;  %v16848_v35 = vld [vmem:[#allocation3 + $0x244] ss:$16 sps:$4 sm:$0xff]  }
 0x381   : > { %v15989_v30 = vunpack.i.h.bf16 %v15987_v6  ;;  %v15988_v23 = vunpack.i.l.bf16 %v15987_v6  ;;  %v16843_v13 = vld [vmem:[#allocation3 + $0x40] ss:$16 sps:$4 sm:$0xff]   ;;  %v16851_v10 = vld [vmem:[#allocation3 + $0x24] ss:$16 sps:$4 sm:$0xff]  }
 0x382   : > { %14532 = vmatprep.subr.msk.bf16.mxu0 %vm18483_vm1, %v14531_v56  ;;  %v1613_v42 = vsel %vm402_vm3, %v15969_v59, %v15974_v63  ;;  %v1612_v62 = vsel %vm402_vm3, %v15968_v14, %v15973_v15  ;;  %v16846_v4 = vld [vmem:[#allocation3 + $0x240] ss:$16 sps:$4 sm:$0xff]   ;;  %v16854_v3 = vld [vmem:[#allocation3 + $0x224] ss:$16 sps:$4 sm:$0xff]  }
 0x383   : > { %v1606_v34 = vsel %vm402_vm3, %v15963_v11, %v15988_v23  ;;  %v1607_v28 = vsel %vm402_vm3, %v15964_v54, %v15989_v30  ;;  %v1618_v5 = vsel %vm402_vm3, %v15988_v23, %v15958_v44  ;;  %v15977_v27 = vpop.permute.xlu1 %15976  ;;  %14535 = vmatpush1.bf16.msk.msra.mxu0 %vm18490_vm4, %v14534_v49  ;;  %v1619_v32 = vsel %vm402_vm3, %v15989_v30, %v15959_v18  ;;  %v16831_v18 = vld [vmem:[#allocation3 + $0x80] ss:$16 sps:$4 sm:$0xff]   ;;  %v16839_v44 = vld [vmem:[#allocation3 + $0x64] ss:$16 sps:$4 sm:$0xff]  }
 0x384   : > { %v15979_v22 = vunpack.i.h.bf16 %v15977_v27  ;;  %v15978_v36 = vunpack.i.l.bf16 %v15977_v27  ;;  %v15992_v48 = vpop.permute.xlu0 %15991  ;;  %v14548_v50 = vpack.c.bf16 %v1607_v28, %v1606_v34  ;;  %v14545_v41 = vpack.c.bf16 %v1619_v32, %v1618_v5  ;;  %v16842_v54 = vld [vmem:[#allocation3 + $0x264] ss:$16 sps:$4 sm:$0xff]   ;;  %v16837_v11 = vld [vmem:[#allocation3 + $0x60] ss:$16 sps:$4 sm:$0xff]  }
 0x385   : > { %v15994_v25 = vunpack.i.h.bf16 %v15992_v48  ;;  %v15993_v39 = vunpack.i.l.bf16 %v15992_v48  ;;  %14513 = vmatmul.mubr.msk.bf16.gmra.mxu0 %vm1055_vm12, %v16810_v52  ;;  %v14540_v20 = vpack.c.bf16 %v1613_v42, %v1612_v62  ;;  %v16849_v49 = vld [vmem:[#allocation3 + $0x20] ss:$16 sps:$4 sm:$0xff]   ;;  %v16857_v6 = vld [vmem:[#allocation3 + $0x4] ss:$16 sps:$4 sm:$0xff]  }
 0x386   : > { %v1609_v51 = vsel %vm402_vm3, %v15974_v63, %v15979_v22  ;;  %v1608_v53 = vsel %vm402_vm3, %v15973_v15, %v15978_v36  ;;  %14546 = vmatprep.subr.msk.bf16.mxu1 %vm18514_vm5, %v14545_v41  ;;  %1968 = vmatprep.mubr.bf16.mxu0 %v21155_v31  ;;  %v16852_v56 = vld [vmem:[#allocation3 + $0x220] ss:$16 sps:$4 sm:$0xff]   ;;  %v16860_v30 = vld [vmem:[#allocation3 + $0x204] ss:$16 sps:$4 sm:$0xff]  }
 0x387   : > { %v1604_v55 = vsel %vm402_vm3, %v15978_v36, %v15993_v39  ;;  %v1605_v29 = vsel %vm402_vm3, %v15979_v22, %v15994_v25  ;;  %v1616_v16 = vsel %vm402_vm3, %v15993_v39, %v15968_v14  ;;  %v1617_v1 = vsel %vm402_vm3, %v15994_v25, %v15969_v59  ;;  %14527 = vmatmul.mubr.msk.bf16.gmra.mxu1 %vm1055_vm12, %v16810_v52  ;;  %v16855_v23 = vld [vmem:[#allocation3] ss:$16 sps:$4 sm:$0xff]   ;;  %v16863_v52 = vld [vmem:[#allocation3 + $0x1e4] ss:$16 sps:$4 sm:$0xff]  }
 0x388   : > { %v14537_v17 = vpack.c.bf16 %v1609_v51, %v1608_v53  ;;  %v14551_v19 = vpack.c.bf16 %v1617_v1, %v1616_v16  ;;  %v14554_v46 = vpack.c.bf16 %v1605_v29, %v1604_v55  ;;  %14549 = vmatpush1.bf16.msk.msra.mxu1 %vm18530_vm6, %v14548_v50  ;;  %2021 = vmatprep.mubr.bf16.mxu1 %v21155_v31  ;;  %v16858_v59 = vld [vmem:[#allocation3 + $0x200] ss:$16 sps:$4 sm:$0xff]   ;;  %v16866_v34 = vld [vmem:[#allocation3 + $0x3e4] ss:$16 sps:$4 sm:$0xff]  }
 0x389   : > { %v16861_v14 = vld [vmem:[#allocation3 + $0x1e0] ss:$16 sps:$4 sm:$0xff]   ;;  %v16869_v5 = vld [vmem:[#allocation3 + $0x1c4] ss:$16 sps:$4 sm:$0xff]  }
 0x38a   : > { %14538 = vmatprep.subr.msk.bf16.mxu0 %vm18483_vm1, %v14537_v17  ;;  %14552 = vmatprep.subr.msk.bf16.mxu1 %vm18514_vm5, %v14551_v19  ;;  %v16864_v63 = vld [vmem:[#allocation3 + $0x3e0] ss:$16 sps:$4 sm:$0xff]   ;;  %v16872_v15 = vld [vmem:[#allocation3 + $0x3c4] ss:$16 sps:$4 sm:$0xff]  }
 0x38b   : > { %14541 = vmatpush1.bf16.msk.msra.mxu0 %vm18490_vm4, %v14540_v20  ;;  %v16867_v28 = vld [vmem:[#allocation3 + $0x1c0] ss:$16 sps:$4 sm:$0xff]   ;;  %v16875_v22 = vld [vmem:[#allocation3 + $0x1a4] ss:$16 sps:$4 sm:$0xff]  }
 0x38c   : > { %2902 = vmatprep.subr.bf16.mxu0 %v16815_v45  ;;  %14555 = vmatpush1.bf16.msk.msra.mxu1 %vm18530_vm6, %v14554_v46  ;;  %v16870_v27 = vld [vmem:[#allocation3 + $0x3c0] ss:$16 sps:$4 sm:$0xff]   ;;  %v16878_v48 = vld [vmem:[#allocation3 + $0x3a4] ss:$16 sps:$4 sm:$0xff]  }
 0x38d   : > { %2955 = vmatprep.subr.bf16.mxu1 %v16818_v26  ;;  %v16873_v32 = vld [vmem:[#allocation3 + $0x1a0] ss:$16 sps:$4 sm:$0xff]   ;;  %v16881_v25 = vld [vmem:[#allocation3 + $0x184] ss:$16 sps:$4 sm:$0xff]  }
 0x38e   : > { %14542 = vmatmul.mubr.msk.bf16.vlgmr.msra.gmra.mxu0 %vm1055_vm12, %v16811_v12  ;;  %v16876_v36 = vld [vmem:[#allocation3 + $0x3a0] ss:$16 sps:$4 sm:$0xff]   ;;  %v16884_v41 = vld [vmem:[#allocation3 + $0x384] ss:$16 sps:$4 sm:$0xff]  }
 0x38f   : > { %1978 = vmatprep.mubr.bf16.mxu0 %v21155_v31  ;;  %2903 = vmatpush1.bf16.msra.mxu0 %v16813_v0  ;;  %v16879_v50 = vld [vmem:[#allocation3 + $0x180] ss:$16 sps:$4 sm:$0xff]   ;;  %v16887_v62 = vld [vmem:[#allocation3 + $0x164] ss:$16 sps:$4 sm:$0xff]  }
 0x390   : > { %14556 = vmatmul.mubr.msk.bf16.vlgmr.msra.gmra.mxu1 %vm1055_vm12, %v16811_v12  ;;  %2904 = vmatprep.subr.bf16.mxu0 %v16821_v38  ;;  %v16882_v39 = vld [vmem:[#allocation3 + $0x380] ss:$16 sps:$4 sm:$0xff]   ;;  %v16890_v53 = vld [vmem:[#allocation3 + $0x364] ss:$16 sps:$4 sm:$0xff]   ;;  %v16911_v38 = vld [vmem:[#allocation3 + $0xec] ss:$16 sps:$4 sm:$0xff]  }
 0x391   : > { %2031 = vmatprep.mubr.bf16.mxu1 %v21155_v31  ;;  %2956 = vmatpush1.bf16.msra.mxu1 %v16816_v2  ;;  %v16885_v42 = vld [vmem:[#allocation3 + $0x160] ss:$16 sps:$4 sm:$0xff]   ;;  %v16893_v55 = vld [vmem:[#allocation3 + $0x144] ss:$16 sps:$4 sm:$0xff]   ;;  %v16914_v2 = vld [vmem:[#allocation3 + $0x2ec] ss:$16 sps:$4 sm:$0xff]  }
 0x392   : > { %2957 = vmatprep.subr.bf16.mxu1 %v16824_v37  ;;  %v16888_v51 = vld [vmem:[#allocation3 + $0x360] ss:$16 sps:$4 sm:$0xff]   ;;  %v16896_v16 = vld [vmem:[#allocation3 + $0x344] ss:$16 sps:$4 sm:$0xff]  }
 0x393   : > { %2905 = vmatpush1.bf16.msra.mxu0 %v16819_v58  ;;  %v16891_v29 = vld [vmem:[#allocation3 + $0x140] ss:$16 sps:$4 sm:$0xff]   ;;  %v16899_v19 = vld [vmem:[#allocation3 + $0x124] ss:$16 sps:$4 sm:$0xff]  }
 0x394   : > { %2906 = vmatprep.subr.bf16.mxu0 %v16827_v57  ;;  %v16894_v1 = vld [vmem:[#allocation3 + $0x340] ss:$16 sps:$4 sm:$0xff]   ;;  %v16902_v20 = vld [vmem:[#allocation3 + $0x324] ss:$16 sps:$4 sm:$0xff]  }
 0x395   : > { %2958 = vmatpush1.bf16.msra.mxu1 %v16822_v40  ;;  %v16897_v17 = vld [vmem:[#allocation3 + $0x120] ss:$16 sps:$4 sm:$0xff]   ;;  %v16905_v12 = vld [vmem:[#allocation3 + $0x104] ss:$16 sps:$4 sm:$0xff]  }
 0x396   : > { %14543 = vmatmul.mubr.msk.bf16.gmra.mxu0 %vm1055_vm12, %v16812_v47  ;;  %2959 = vmatprep.subr.bf16.mxu1 %v16830_v24  ;;  %v16900_v45 = vld [vmem:[#allocation3 + $0x320] ss:$16 sps:$4 sm:$0xff]   ;;  %v16908_v0 = vld [vmem:[#allocation3 + $0x304] ss:$16 sps:$4 sm:$0xff]  }
 0x397   : > { %2907 = vmatpush1.bf16.msra.mxu0 %v16825_v43  ;;  %v16903_v46 = vld [vmem:[#allocation3 + $0x100] ss:$16 sps:$4 sm:$0xff]  }
 0x398   : > { %14557 = vmatmul.mubr.msk.bf16.gmra.mxu1 %vm1055_vm12, %v16812_v47  ;;  %2908 = vmatprep.subr.bf16.mxu0 %v16833_v33  ;;  %v16906_v26 = vld [vmem:[#allocation3 + $0x300] ss:$16 sps:$4 sm:$0xff]  }
 0x399   : > { %2960 = vmatpush1.bf16.msra.mxu1 %v16828_v61 }
 0x39a   : > { %2961 = vmatprep.subr.bf16.mxu1 %v16836_v7 }
 0x39b   : > { %2909 = vmatpush1.bf16.msra.mxu0 %v16831_v18 }
 0x39c   : > { %2910 = vmatprep.subr.bf16.mxu0 %v16839_v44 }
 0x39d   : > { %2962 = vmatpush1.bf16.msra.mxu1 %v16834_v9 }
 0x39e   : > { %2963 = vmatprep.subr.bf16.mxu1 %v16842_v54 }
 0x39f   : > { %2911 = vmatpush1.bf16.msra.mxu0 %v16837_v11 }
 0x3a0   : > { %2912 = vmatprep.subr.bf16.mxu0 %v16845_v8 }
 0x3a1   : > { %2964 = vmatpush1.bf16.msra.mxu1 %v16840_v60 }
 0x3a2   : > { %2965 = vmatprep.subr.bf16.mxu1 %v16848_v35 }
 0x3a3   : > { %2913 = vmatpush1.bf16.msra.mxu0 %v16843_v13 }
 0x3a4   : > { %2914 = vmatprep.subr.bf16.mxu0 %v16851_v10 }
 0x3a5   : > { %2966 = vmatpush1.bf16.msra.mxu1 %v16846_v4 }
 0x3a6   : > { %2967 = vmatprep.subr.bf16.mxu1 %v16854_v3 }
 0x3a7   : > { %2915 = vmatpush1.bf16.msra.mxu0 %v16849_v49 }
 0x3a8   : > { %2916 = vmatprep.subr.bf16.mxu0 %v16857_v6 }
 0x3a9   : > { %2968 = vmatpush1.bf16.msra.mxu1 %v16852_v56 }
 0x3aa   : > { %2969 = vmatprep.subr.bf16.mxu1 %v16860_v30 }
 0x3ab   : > { %2917 = vmatpush1.bf16.msra.mxu0 %v16855_v23 }
 0x3ac   : > { %2918 = vmatprep.subr.bf16.mxu0 %v16863_v52 }
 0x3ad   : > { %2970 = vmatpush1.bf16.msra.mxu1 %v16858_v59 }
 0x3ae   : > { %2971 = vmatprep.subr.bf16.mxu1 %v16866_v34 }
 0x3af   : > { %2919 = vmatpush2.bf16.msra.mxu0 %v16861_v14 }
 0x3b0   : > { %2920 = vmatprep.subr.bf16.mxu0 %v16869_v5 }
 0x3b1   : > { %2972 = vmatpush2.bf16.msra.mxu1 %v16864_v63 }
 0x3b2   : > { %2973 = vmatprep.subr.bf16.mxu1 %v16872_v15 }
 0x3b3   : > { %2921 = vmatpush2.bf16.msra.mxu0 %v16867_v28 }
 0x3b4   : > { %2922 = vmatprep.subr.bf16.mxu0 %v16875_v22 }
 0x3b5   : > { %2974 = vmatpush2.bf16.msra.mxu1 %v16870_v27 }
 0x3b6   : > { %2975 = vmatprep.subr.bf16.mxu1 %v16878_v48  ;;  %v2061_v48 = vpop.permute.xlu1 %2060 }
 0x3b7   : > { %2923 = vmatpush2.bf16.msra.mxu0 %v16873_v32 }
 0x3b8   : > { %2924 = vmatprep.subr.bf16.mxu0 %v16881_v25 }
 0x3b9   : > { %2976 = vmatpush2.bf16.msra.mxu1 %v16876_v36 }
 0x3ba   : > { %2977 = vmatprep.subr.bf16.mxu1 %v16884_v41 }
 0x3bb   : > { %2925 = vmatpush2.bf16.msra.mxu0 %v16879_v50 }
 0x3bc   : > { %2926 = vmatprep.subr.bf16.mxu0 %v16887_v62 }
 0x3bd   : > { %2978 = vmatpush2.bf16.msra.mxu1 %v16882_v39 }
 0x3be   : > { %2979 = vmatprep.subr.bf16.mxu1 %v16890_v53 }
 0x3bf   : > { %2927 = vmatpush2.bf16.msra.mxu0 %v16885_v42 }
 0x3c0   : > { %2928 = vmatprep.subr.bf16.mxu0 %v16893_v55 }
 0x3c1   : > { %2980 = vmatpush2.bf16.msra.mxu1 %v16888_v51 }
 0x3c2   : > { %2981 = vmatprep.subr.bf16.mxu1 %v16896_v16  ;;  %v1718_v37 = vpop.f32.mrf.mxu0 }
 0x3c3   : > { %2929 = vmatpush2.bf16.msra.mxu0 %v16891_v29  ;;  %v1771_v58 = vpop.f32.mrf.mxu1 }
 0x3c4   : > { %2930 = vmatprep.subr.bf16.mxu0 %v16899_v19  ;;  %v1720_v57 = vpop.f32.mrf.mxu0 }
 0x3c5   : > { %2982 = vmatpush2.bf16.msra.mxu1 %v16894_v1  ;;  %v1773_v40 = vpop.f32.mrf.mxu1 }
 0x3c6   : > { %2983 = vmatprep.subr.bf16.mxu1 %v16902_v20  ;;  %v1722_v47 = vpop.f32.mrf.mxu0 }
 0x3c7   : > { %2931 = vmatpush2.bf16.msra.mxu0 %v16897_v17  ;;  %v1775_v24 = vpop.f32.mrf.mxu1 }
 0x3c8   : > { %2932 = vmatprep.subr.bf16.mxu0 %v16905_v12  ;;  %v1724_v43 = vpop.f32.mrf.mxu0 }
 0x3c9   : > { %2984 = vmatpush2.bf16.msra.mxu1 %v16900_v45  ;;  %v1777_v33 = vpop.f32.mrf.mxu1 }
 0x3ca   : > { %2985 = vmatprep.subr.bf16.mxu1 %v16908_v0  ;;  %v1728_v61 = vpop.f32.mrf.mxu0 }
 0x3cb   : > { %2933 = vmatpush2.bf16.msra.mxu0 %v16903_v46  ;;  %v1781_v7 = vpop.f32.mrf.mxu1  ;;  %v2066_v46 = vpop.permute.xlu0 %2065 }
 0x3cc   : > { %3008 = vmatprep.subr.bf16.mxu0 %v16911_v38  ;;  %v1730_v18 = vpop.f32.mrf.mxu0 }
 0x3cd   : > { %2986 = vmatpush2.bf16.msra.mxu1 %v16906_v26  ;;  %v1783_v44 = vpop.f32.mrf.mxu1 }
 0x3ce   : > { %3061 = vmatprep.subr.bf16.mxu1 %v16914_v2  ;;  %v1732_v9 = vpop.f32.mrf.mxu0 }
 0x3cf   : > { %v1785_v54 = vpop.f32.mrf.mxu1 }
 0x3d0   : > { %v18766_v11 = vpop.f32.mrf.mxu0 }
 0x3d1   : > { %v18768_v8 = vpop.f32.mrf.mxu1 }
 0x43d   : > { %v1840_v60 = vpop.f32.mrf.mxu0 }
 0x43e   : > { %v1841_v34 = vadd.f32 %v1840_v60, %v1718_v37 }
 0x43f   : > { %v1893_v35 = vpop.f32.mrf.mxu1  ;;  %v1842_v13 = vpop.f32.mrf.mxu0 }
 0x440   : > { %v1894_v27 = vadd.f32 %v1893_v35, %v1771_v58  ;;  %v1843_v15 = vadd.f32 %v1842_v13, %v1720_v57 }
 0x441   : > { %v1895_v10 = vpop.f32.mrf.mxu1  ;;  %v1844_v4 = vpop.f32.mrf.mxu0 }
 0x442   : > { %v1896_v50 = vadd.f32 %v1895_v10, %v1773_v40  ;;  %v1845_v41 = vadd.f32 %v1844_v4, %v1722_v47 }
 0x443   : > { %v1897_v3 = vpop.f32.mrf.mxu1  ;;  %v1846_v49 = vpop.f32.mrf.mxu0 }
 0x444   : > { %v1898_v51 = vadd.f32 %v1897_v3, %v1775_v24  ;;  %v1847_v53 = vadd.f32 %v1846_v49, %v1724_v43 }
 0x445   : > { %v1899_v6 = vpop.f32.mrf.mxu1  ;;  %v1850_v56 = vpop.f32.mrf.mxu0 }
 0x446   : > { %v1900_v16 = vadd.f32 %v1899_v6, %v1777_v33  ;;  %v1851_v1 = vadd.f32 %v1850_v56, %v1728_v61 }
 0x447   : > { %v1903_v30 = vpop.f32.mrf.mxu1  ;;  %v1852_v23 = vpop.f32.mrf.mxu0 }
 0x448   : > { %v1904_v12 = vadd.f32 %v1903_v30, %v1781_v7  ;;  %v1853_v26 = vadd.f32 %v1852_v23, %v1730_v18 }
 0x449   : > { %v1905_v59 = vpop.f32.mrf.mxu1  ;;  %v1854_v14 = vpop.f32.mrf.mxu0 }
 0x44a   : > { %v1906_v0 = vadd.f32 %v1905_v59, %v1783_v44  ;;  %v1855_v24 = vadd.f32 %v1854_v14, %v1732_v9  ;;  %v2071_v59 = vpop.permute.xlu1 %2070 }
 0x44b   : > { %v1907_v52 = vpop.f32.mrf.mxu1  ;;  %v1856_v63 = vpop.f32.mrf.mxu0 }
 0x44c   : > { %v1908_v43 = vadd.f32 %v1907_v52, %v1785_v54  ;;  %v1857_v18 = vadd.f32 %v1856_v63, %v18766_v11 }
 0x44d   : > { %v1909_v28 = vpop.f32.mrf.mxu1 }
 0x44e   : > { %v1970_v5 = vpop.f32.mrf.mxu0 }
 0x44f   : > { %v2042_v32 = vadd.f32 %v1970_v5, %v1841_v34 }
 0x450   : > { %v2023_v22 = vpop.f32.mrf.mxu1  ;;  %v1972_v36 = vpop.f32.mrf.mxu0 }
 0x451   : > { %v2044_v25 = vadd.f32 %v2023_v22, %v1894_v27  ;;  %v2043_v39 = vadd.f32 %v1972_v36, %v1843_v15  ;;  %v2078_v55 = vadd.f32 %v2061_v48, %v2042_v32  ;;  %v1910_v27 = vadd.f32 %v1909_v28, %v18768_v8 }
 0x452   : > { %v2025_v42 = vpop.f32.mrf.mxu1  ;;  %v1974_v62 = vpop.f32.mrf.mxu0 }
 0x453   : > { %v2045_v29 = vadd.f32 %v2025_v42, %v1896_v50  ;;  %v18770_v17 = vadd.f32 %v2061_v48, %v2044_v25  ;;  %v2046_v19 = vadd.f32 %v1974_v62, %v1845_v41  ;;  %v2079_v38 = vadd.f32 %v2061_v48, %v2043_v39 }
 0x454   : > { %v2027_v45 = vpop.f32.mrf.mxu1  ;;  %v1976_v20 = vpop.f32.mrf.mxu0  ;;  %v2094_v33 = vmul.f32 0.2, %v2078_v55 }
 0x455   : > { %v2081_v2 = vadd.f32 %v2061_v48, %v2045_v29  ;;  %v2082_v37 = vadd.f32 %v2066_v46, %v2046_v19  ;;  %v2048_v58 = vadd.f32 %v2027_v45, %v1898_v51  ;;  %v2047_v57 = vadd.f32 %v1976_v20, %v1847_v53  ;;  %v2076_v53 = vpop.permute.xlu0 %2075  ;;  %v16909_v45 = vld [vmem:[#allocation3 + $0xe8] ss:$16 sps:$4 sm:$0xff]  }
 0x456   : > { %v2029_v40 = vpop.f32.mrf.mxu1  ;;  %v1980_v47 = vpop.f32.mrf.mxu0  ;;  %v2096_v60 = vmul.f32 0.2, %v18770_v17  ;;  %v2095_v44 = vmul.f32 0.2, %v2079_v38  ;;  %v2110_v15 = vmax.f32 %v2078_v55, %v2094_v33  ;;  %v16912_v20 = vld [vmem:[#allocation3 + $0x2e8] ss:$16 sps:$4 sm:$0xff]  }
 0x457   : > { %v2049_v61 = vadd.f32 %v2029_v40, %v1900_v16  ;;  %v2098_v35 = vmul.f32 0.2, %v2082_v37  ;;  %v2084_v13 = vadd.f32 %v2066_v46, %v2048_v58  ;;  %v2083_v10 = vadd.f32 %v2066_v46, %v2047_v57 }
 0x458   : > { %v2033_v4 = vpop.f32.mrf.mxu1  ;;  %v1982_v7 = vpop.f32.mrf.mxu0  ;;  %v2097_v6 = vmul.f32 0.2, %v2081_v2  ;;  %v2050_v23 = vadd.f32 %v1980_v47, %v1851_v1  ;;  %v2112_v32 = vmax.f32 %v18770_v17, %v2096_v60  ;;  %v2111_v36 = vmax.f32 %v2079_v38, %v2095_v44  ;;  %v16917_v38 = vld [vmem:[#allocation3 + $0xcc] ss:$16 sps:$4 sm:$0xff]  }
 0x459   : > { %v2085_v3 = vadd.f32 %v2066_v46, %v2049_v61  ;;  %v2051_v49 = vadd.f32 %v1982_v7, %v1853_v26  ;;  %v2100_v56 = vmul.f32 0.2, %v2084_v13  ;;  %v2099_v30 = vmul.f32 0.2, %v2083_v10  ;;  %v16915_v61 = vld [vmem:[#allocation3 + $0xc8] ss:$16 sps:$4 sm:$0xff]  }
 0x45a   : > { %v2035_v9 = vpop.f32.mrf.mxu1  ;;  %v1984_v54 = vpop.f32.mrf.mxu0  ;;  %v2114_v14 = vmax.f32 %v2082_v37, %v2098_v35  ;;  %v2052_v34 = vadd.f32 %v2033_v4, %v1904_v12  ;;  %v2113_v39 = vmax.f32 %v2081_v2, %v2097_v6  ;;  %v2086_v16 = vadd.f32 %v2071_v59, %v2050_v23  ;;  %v16920_v2 = vld [vmem:[#allocation3 + $0x2cc] ss:$16 sps:$4 sm:$0xff]  }
 0x45b   : > { %v2101_v52 = vmul.f32 0.2, %v2085_v3  ;;  %v2053_v5 = vadd.f32 %v2035_v9, %v1906_v0  ;;  %v2115_v11 = vmax.f32 %v2083_v10, %v2099_v30  ;;  %v2116_v48 = vmax.f32 %v2084_v13, %v2100_v56  ;;  %v16918_v10 = vld [vmem:[#allocation3 + $0x2c8] ss:$16 sps:$4 sm:$0xff]   ;;  %v16923_v44 = vld [vmem:[#allocation3 + $0xac] ss:$16 sps:$4 sm:$0xff]  }
 0x45c   : > { %v2037_v63 = vpop.f32.mrf.mxu1  ;;  %v1986_v22 = vpop.f32.mrf.mxu0  ;;  %v2087_v25 = vadd.f32 %v2071_v59, %v2051_v49  ;;  %v2054_v42 = vadd.f32 %v1984_v54, %v1855_v24  ;;  %v18776_v29 = vpack.c.bf16 %v2114_v14, %v2110_v15  ;;  %v2088_v8 = vadd.f32 %v2071_v59, %v2052_v34  ;;  %v16926_v6 = vld [vmem:[#allocation3 + $0x2ac] ss:$16 sps:$4 sm:$0xff]   ;;  %v16921_v30 = vld [vmem:[#allocation3 + $0xa8] ss:$16 sps:$4 sm:$0xff]  }
 0x45d   : > { %v2117_v50 = vmax.f32 %v2085_v3, %v2101_v52  ;;  %v2089_v41 = vadd.f32 %v2071_v59, %v2053_v5  ;;  %v2056_v62 = vadd.f32 %v2037_v63, %v1908_v43  ;;  %v2055_v28 = vadd.f32 %v1986_v22, %v1857_v18  ;;  %v16924_v54 = vld [vmem:[#allocation3 + $0x2a8] ss:$16 sps:$4 sm:$0xff]   ;;  %v16929_v14 = vld [vmem:[#allocation3 + $0x8c] ss:$16 sps:$4 sm:$0xff]  }
 0x45e   : > { %v2039_v51 = vpop.f32.mrf.mxu1  ;;  %v2090_v55 = vadd.f32 %v2076_v53, %v2054_v42  ;;  %v2127_v19 = vpack.c.bf16 %v2115_v11, %v2111_v36  ;;  %v18778_v46 = vpack.c.bf16 %v2116_v48, %v2112_v32  ;;  %v2103_v12 = vmul.f32 0.2, %v2087_v25  ;;  %v16932_v52 = vld [vmem:[#allocation3 + $0x28c] ss:$16 sps:$4 sm:$0xff]   ;;  %v16927_v34 = vld [vmem:[#allocation3 + $0x88] ss:$16 sps:$4 sm:$0xff]  }
 0x45f   : > { %v2092_v1 = vadd.f32 %v2076_v53, %v2056_v62  ;;  %v2057_v17 = vadd.f32 %v2039_v51, %v1910_v27  ;;  %v2091_v26 = vadd.f32 %v2076_v53, %v2055_v28  ;;  %v2129_v0 = vpack.c.bf16 %v2117_v50, %v2113_v39  ;;  %v16930_v5 = vld [vmem:[#allocation3 + $0x288] ss:$16 sps:$4 sm:$0xff]   ;;  %v16935_v27 = vld [vmem:[#allocation3 + $0x6c] ss:$16 sps:$4 sm:$0xff]  }
 0x460   : > { %v2105_v37 = vmul.f32 0.2, %v2089_v41  ;;  %v2106_v58 = vmul.f32 0.2, %v2090_v55  ;;  %2934 = vmatprep.mubr.bf16.mxu0 %v2127_v19  ;;  %v2102_v47 = vmul.f32 0.2, %v2086_v16  ;;  %v2119_v60 = vmax.f32 %v2087_v25, %v2103_v12 }
 0x461   : > { %v2108_v57 = vmul.f32 0.2, %v2092_v1  ;;  %v2093_v40 = vadd.f32 %v2076_v53, %v2057_v17  ;;  %v2107_v24 = vmul.f32 0.2, %v2091_v26  ;;  %2935 = vmatmul.mubr.bf16.vlgmr.msra.gmra.mxu0 %v18776_v29  ;;  %2987 = vmatprep.mubr.bf16.mxu1 %v2129_v0  ;;  %v2104_v43 = vmul.f32 0.2, %v2088_v8 }
 0x462   : > { %3009 = vmatpush1.bf16.msra.mxu0 %v16909_v45  ;;  %2988 = vmatmul.mubr.bf16.vlgmr.msra.gmra.mxu1 %v18778_v46  ;;  %v2122_v35 = vmax.f32 %v2090_v55, %v2106_v58  ;;  %v2121_v4 = vmax.f32 %v2089_v41, %v2105_v37  ;;  %v2118_v3 = vmax.f32 %v2086_v16, %v2102_v47  ;;  %v16938_v15 = vld [vmem:[#allocation3 + $0x26c] ss:$16 sps:$4 sm:$0xff]   ;;  %v16933_v32 = vld [vmem:[#allocation3 + $0x68] ss:$16 sps:$4 sm:$0xff]  }
 0x463   : > { %v2109_v33 = vmul.f32 0.2, %v2093_v40  ;;  %v2123_v13 = vmax.f32 %v2091_v26, %v2107_v24  ;;  %3062 = vmatpush1.bf16.msra.mxu1 %v16912_v20  ;;  %3010 = vmatprep.subr.bf16.mxu0 %v16917_v38  ;;  %v2124_v7 = vmax.f32 %v2092_v1, %v2108_v57  ;;  %v2120_v56 = vmax.f32 %v2088_v8, %v2104_v43  ;;  %v16936_v11 = vld [vmem:[#allocation3 + $0x268] ss:$16 sps:$4 sm:$0xff]   ;;  %v16941_v63 = vld [vmem:[#allocation3 + $0x4c] ss:$16 sps:$4 sm:$0xff]  }
 0x464   : > { %3063 = vmatprep.subr.bf16.mxu1 %v16920_v2  ;;  %v18787_v9 = vpack.c.bf16 %v2122_v35, %v2118_v3  ;;  %v16944_v22 = vld [vmem:[#allocation3 + $0x24c] ss:$16 sps:$4 sm:$0xff]   ;;  %v16939_v36 = vld [vmem:[#allocation3 + $0x48] ss:$16 sps:$4 sm:$0xff]  }
 0x465   : > { %v2125_v18 = vmax.f32 %v2093_v40, %v2109_v33  ;;  %v18782_v49 = vpack.c.bf16 %v2123_v13, %v2119_v60  ;;  %v18790_v59 = vpack.c.bf16 %v2124_v7, %v2120_v56  ;;  %v16942_v48 = vld [vmem:[#allocation3 + $0x248] ss:$16 sps:$4 sm:$0xff]   ;;  %v16947_v50 = vld [vmem:[#allocation3 + $0x2c] ss:$16 sps:$4 sm:$0xff]  }
 0x466   : > { %3011 = vmatpush1.bf16.msra.mxu0 %v16915_v61  ;;  %v16950_v25 = vld [vmem:[#allocation3 + $0x22c] ss:$16 sps:$4 sm:$0xff]   ;;  %v16945_v39 = vld [vmem:[#allocation3 + $0x28] ss:$16 sps:$4 sm:$0xff]  }
 0x467   : > { %v18784_v23 = vpack.c.bf16 %v2125_v18, %v2121_v4  ;;  %3064 = vmatpush1.bf16.msra.mxu1 %v16918_v10  ;;  %2944 = vmatprep.mubr.bf16.mxu0 %v18782_v49  ;;  %v16948_v41 = vld [vmem:[#allocation3 + $0x228] ss:$16 sps:$4 sm:$0xff]   ;;  %v16953_v42 = vld [vmem:[#allocation3 + $0xc] ss:$16 sps:$4 sm:$0xff]  }
 0x468   : > { %3012 = vmatprep.subr.bf16.mxu0 %v16923_v44  ;;  %3065 = vmatprep.subr.bf16.mxu1 %v16926_v6  ;;  %v16956_v62 = vld [vmem:[#allocation3 + $0x20c] ss:$16 sps:$4 sm:$0xff]   ;;  %v16951_v51 = vld [vmem:[#allocation3 + $0x8] ss:$16 sps:$4 sm:$0xff]  }
 0x469   : > { %2997 = vmatprep.mubr.bf16.mxu1 %v18784_v23  ;;  %2945 = vmatmul.mubr.bf16.gmra.mxu0 %v18787_v9  ;;  %v16954_v53 = vld [vmem:[#allocation3 + $0x208] ss:$16 sps:$4 sm:$0xff]   ;;  %v16959_v16 = vld [vmem:[#allocation3 + $0x1ec] ss:$16 sps:$4 sm:$0xff]  }
 0x46a   : > { %3013 = vmatpush1.bf16.msra.mxu0 %v16921_v30  ;;  %2998 = vmatmul.mubr.bf16.gmra.mxu1 %v18790_v59  ;;  %v16962_v8 = vld [vmem:[#allocation3 + $0x3ec] ss:$16 sps:$4 sm:$0xff]   ;;  %v16957_v28 = vld [vmem:[#allocation3 + $0x1e8] ss:$16 sps:$4 sm:$0xff]  }
 0x46b   : > { %3040 = vmatprep.mubr.bf16.mxu0 %v2127_v19  ;;  %3066 = vmatpush1.bf16.msra.mxu1 %v16924_v54  ;;  %v16960_v55 = vld [vmem:[#allocation3 + $0x3e8] ss:$16 sps:$4 sm:$0xff]   ;;  %v16965_v1 = vld [vmem:[#allocation3 + $0x1cc] ss:$16 sps:$4 sm:$0xff]  }
 0x46c   : > { %3093 = vmatprep.mubr.bf16.mxu1 %v2129_v0  ;;  %3014 = vmatprep.subr.bf16.mxu0 %v16929_v14  ;;  %v16968_v17 = vld [vmem:[#allocation3 + $0x3cc] ss:$16 sps:$4 sm:$0xff]   ;;  %v16963_v19 = vld [vmem:[#allocation3 + $0x1c8] ss:$16 sps:$4 sm:$0xff]  }
 0x46d   : > { %3067 = vmatprep.subr.bf16.mxu1 %v16932_v52  ;;  %v16966_v45 = vld [vmem:[#allocation3 + $0x3c8] ss:$16 sps:$4 sm:$0xff]   ;;  %v16971_v20 = vld [vmem:[#allocation3 + $0x1ac] ss:$16 sps:$4 sm:$0xff]  }
 0x46e   : > { %3015 = vmatpush1.bf16.msra.mxu0 %v16927_v34  ;;  %v16974_v12 = vld [vmem:[#allocation3 + $0x3ac] ss:$16 sps:$4 sm:$0xff]   ;;  %v16969_v26 = vld [vmem:[#allocation3 + $0x1a8] ss:$16 sps:$4 sm:$0xff]  }
 0x46f   : > { %3068 = vmatpush1.bf16.msra.mxu1 %v16930_v5  ;;  %3016 = vmatprep.subr.bf16.mxu0 %v16935_v27  ;;  %v16972_v0 = vld [vmem:[#allocation3 + $0x3a8] ss:$16 sps:$4 sm:$0xff]   ;;  %v16977_v38 = vld [vmem:[#allocation3 + $0x18c] ss:$16 sps:$4 sm:$0xff]  }
 0x470   : > { %3069 = vmatprep.subr.bf16.mxu1 %v16938_v15  ;;  %v16980_v2 = vld [vmem:[#allocation3 + $0x38c] ss:$16 sps:$4 sm:$0xff]   ;;  %v16975_v37 = vld [vmem:[#allocation3 + $0x188] ss:$16 sps:$4 sm:$0xff]  }
 0x471   : > { %v16978_v58 = vld [vmem:[#allocation3 + $0x388] ss:$16 sps:$4 sm:$0xff]   ;;  %v16983_v57 = vld [vmem:[#allocation3 + $0x16c] ss:$16 sps:$4 sm:$0xff]  }
 0x472   : > { %3017 = vmatpush1.bf16.msra.mxu0 %v16933_v32  ;;  %v16986_v40 = vld [vmem:[#allocation3 + $0x36c] ss:$16 sps:$4 sm:$0xff]   ;;  %v16981_v47 = vld [vmem:[#allocation3 + $0x168] ss:$16 sps:$4 sm:$0xff]  }
 0x473   : > { %3070 = vmatpush1.bf16.msra.mxu1 %v16936_v11  ;;  %3018 = vmatprep.subr.bf16.mxu0 %v16941_v63  ;;  %v16984_v24 = vld [vmem:[#allocation3 + $0x368] ss:$16 sps:$4 sm:$0xff]   ;;  %v16989_v43 = vld [vmem:[#allocation3 + $0x14c] ss:$16 sps:$4 sm:$0xff]  }
 0x474   : > { %3071 = vmatprep.subr.bf16.mxu1 %v16944_v22  ;;  %v16992_v33 = vld [vmem:[#allocation3 + $0x34c] ss:$16 sps:$4 sm:$0xff]   ;;  %v16987_v61 = vld [vmem:[#allocation3 + $0x148] ss:$16 sps:$4 sm:$0xff]  }
 0x475   : > { %v16990_v60 = vld [vmem:[#allocation3 + $0x348] ss:$16 sps:$4 sm:$0xff]   ;;  %v16995_v35 = vld [vmem:[#allocation3 + $0x12c] ss:$16 sps:$4 sm:$0xff]  }
 0x476   : > { %3019 = vmatpush1.bf16.msra.mxu0 %v16939_v36  ;;  %v16998_v13 = vld [vmem:[#allocation3 + $0x32c] ss:$16 sps:$4 sm:$0xff]   ;;  %v16993_v10 = vld [vmem:[#allocation3 + $0x128] ss:$16 sps:$4 sm:$0xff]  }
 0x477   : > { %3072 = vmatpush1.bf16.msra.mxu1 %v16942_v48  ;;  %3020 = vmatprep.subr.bf16.mxu0 %v16947_v50  ;;  %v16996_v4 = vld [vmem:[#allocation3 + $0x328] ss:$16 sps:$4 sm:$0xff]   ;;  %v17001_v7 = vld [vmem:[#allocation3 + $0x10c] ss:$16 sps:$4 sm:$0xff]  }
 0x478   : > { %3073 = vmatprep.subr.bf16.mxu1 %v16950_v25  ;;  %v17004_v18 = vld [vmem:[#allocation3 + $0x30c] ss:$16 sps:$4 sm:$0xff]   ;;  %v16999_v44 = vld [vmem:[#allocation3 + $0x108] ss:$16 sps:$4 sm:$0xff]  }
 0x479   : > { %v17002_v3 = vld [vmem:[#allocation3 + $0x308] ss:$16 sps:$4 sm:$0xff]  }
 0x47a   : > { %3021 = vmatpush1.bf16.msra.mxu0 %v16945_v39 }
 0x47b   : > { %3074 = vmatpush1.bf16.msra.mxu1 %v16948_v41  ;;  %3022 = vmatprep.subr.bf16.mxu0 %v16953_v42 }
 0x47c   : > { %3075 = vmatprep.subr.bf16.mxu1 %v16956_v62 }
 0x47e   : > { %3023 = vmatpush1.bf16.msra.mxu0 %v16951_v51 }
 0x47f   : > { %3076 = vmatpush1.bf16.msra.mxu1 %v16954_v53  ;;  %3024 = vmatprep.subr.bf16.mxu0 %v16959_v16 }
 0x480   : > { %3077 = vmatprep.subr.bf16.mxu1 %v16962_v8 }
 0x482   : > { %3025 = vmatpush2.bf16.msra.mxu0 %v16957_v28 }
 0x483   : > { %3078 = vmatpush2.bf16.msra.mxu1 %v16960_v55  ;;  %3026 = vmatprep.subr.bf16.mxu0 %v16965_v1 }
 0x484   : > { %3079 = vmatprep.subr.bf16.mxu1 %v16968_v17 }
 0x486   : > { %3027 = vmatpush2.bf16.msra.mxu0 %v16963_v19 }
 0x487   : > { %3080 = vmatpush2.bf16.msra.mxu1 %v16966_v45  ;;  %3028 = vmatprep.subr.bf16.mxu0 %v16971_v20 }
 0x488   : > { %3081 = vmatprep.subr.bf16.mxu1 %v16974_v12 }
 0x48a   : > { %3029 = vmatpush2.bf16.msra.mxu0 %v16969_v26  ;;  %v17005_v26 = vld [vmem:[%s21120_s3 + $0x70] sm:$0xff]  }
 0x48b   : > { %3082 = vmatpush2.bf16.msra.mxu1 %v16972_v0  ;;  %3030 = vmatprep.subr.bf16.mxu0 %v16977_v38 }
 0x48c   : > { %3083 = vmatprep.subr.bf16.mxu1 %v16980_v2 }
 0x48e   : > { %3031 = vmatpush2.bf16.msra.mxu0 %v16975_v37 }
 0x48f   : > { %3084 = vmatpush2.bf16.msra.mxu1 %v16978_v58  ;;  %3032 = vmatprep.subr.bf16.mxu0 %v16983_v57 }
 0x490   : > { %3085 = vmatprep.subr.bf16.mxu1 %v16986_v40 }
 0x492   : > { %3033 = vmatpush2.bf16.msra.mxu0 %v16981_v47 }
 0x493   : > { %3086 = vmatpush2.bf16.msra.mxu1 %v16984_v24  ;;  %3034 = vmatprep.subr.bf16.mxu0 %v16989_v43 }
 0x494   : > { %3087 = vmatprep.subr.bf16.mxu1 %v16992_v33 }
 0x496   : > { %3035 = vmatpush2.bf16.msra.mxu0 %v16987_v61 }
 0x497   : > { %3088 = vmatpush2.bf16.msra.mxu1 %v16990_v60  ;;  %3036 = vmatprep.subr.bf16.mxu0 %v16995_v35 }
 0x498   : > { %3089 = vmatprep.subr.bf16.mxu1 %v16998_v13  ;;  %v17006_v13 = vld [vmem:[%s21120_s3 + $0x78] sm:$0xff]  }
 0x49a   : > { %3037 = vmatpush2.bf16.msra.mxu0 %v16993_v10 }
 0x49b   : > { %3090 = vmatpush2.bf16.msra.mxu1 %v16996_v4  ;;  %3038 = vmatprep.subr.bf16.mxu0 %v17001_v7 }
 0x49c   : > { %3091 = vmatprep.subr.bf16.mxu1 %v17004_v18 }
 0x49e   : > { %3039 = vmatpush2.bf16.msra.mxu0 %v16999_v44 }
 0x49f   : > { %3092 = vmatpush2.bf16.msra.mxu1 %v17002_v3 }
 0x4a1   : > { %3041 = vmatmul.mubr.bf16.vlgmr.msra.gmra.mxu0 %v18776_v29 }
 0x4a2   : > { %3050 = vmatprep.mubr.bf16.mxu0 %v18782_v49  ;;  %3094 = vmatmul.mubr.bf16.vlgmr.msra.gmra.mxu1 %v18778_v46 }
 0x4a3   : > { %3103 = vmatprep.mubr.bf16.mxu1 %v18784_v23 }
 0x4a9   : > { %3051 = vmatmul.mubr.bf16.gmra.mxu0 %v18787_v9 }
 0x4aa   : > { %3104 = vmatmul.mubr.bf16.gmra.mxu1 %v18790_v59  ;;  %3310 = vmatprep.mubr.bf16.mxu0 %v21155_v31 }
 0x4ab   : > { %3363 = vmatprep.mubr.bf16.mxu1 %v21155_v31 }
 0x521   : > { %v2936_v6 = vpop.f32.mrf.mxu0 }
 0x522   : > { %v2989_v56 = vpop.f32.mrf.mxu1 }
 0x523   : > { %v2938_v30 = vpop.f32.mrf.mxu0  ;;  %v2990_v14 = vadd.f32 %v2989_v56, %v2936_v6 }
 0x524   : > { %v2991_v54 = vpop.f32.mrf.mxu1 }
 0x525   : > { %v2940_v29 = vpop.f32.mrf.mxu0  ;;  %v2992_v49 = vadd.f32 %v2991_v54, %v2938_v30  ;;  %v3114_v23 = vmul.f32 0.33333334, %v2990_v14 }
 0x526   : > { %v2993_v52 = vpop.f32.mrf.mxu1 }
 0x527   : > { %v2994_v34 = vadd.f32 %v2993_v52, %v2940_v29  ;;  %v2942_v46 = vpop.f32.mrf.mxu0  ;;  %v3115_v32 = vmul.f32 0.33333334, %v2992_v49 }
 0x528   : > { %v2995_v5 = vpop.f32.mrf.mxu1 }
 0x529   : > { %v3118_v27 = vmul.f32 0.33333334, %v2994_v34  ;;  %v2996_v9 = vadd.f32 %v2995_v5, %v2942_v46  ;;  %v2946_v15 = vpop.f32.mrf.mxu0 }
 0x52a   : > { %v2999_v59 = vpop.f32.mrf.mxu1 }
 0x52b   : > { %v3119_v11 = vmul.f32 0.33333334, %v2996_v9  ;;  %v2948_v63 = vpop.f32.mrf.mxu0  ;;  %v18802_v22 = vpack.i.bf16 %v3118_v27, %v3114_v23  ;;  %v3000_v48 = vadd.f32 %v2999_v59, %v2946_v15  ;;  %v3254_v12 = vpack.c.bf16 %v3118_v27, %v3114_v23 }
 0x52c   : > { %v3001_v36 = vpop.f32.mrf.mxu1 }
 0x52d   : > { %15996 = vrot.lane.b32.xlu1 %v18802_v22, %s18083_s20  ;;  %v2950_v50 = vpop.f32.mrf.mxu0  ;;  %v18806_v25 = vpack.i.bf16 %v3119_v11, %v3115_v32  ;;  %v3002_v41 = vadd.f32 %v3001_v36, %v2948_v63  ;;  %v3122_v53 = vmul.f32 0.33333334, %v3000_v48  ;;  %v3255_v20 = vpack.c.bf16 %v3119_v11, %v3115_v32  ;;  %v14700_v48 = vld [vmem:[%s21121_s4 + $0x50] sm:$0xff] }
 0x52e   : > { %v3003_v39 = vpop.f32.mrf.mxu1 }
 0x52f   : > { %v3004_v42 = vadd.f32 %v3003_v39, %v2950_v50  ;;  %16001 = vrot.lane.b32.xlu0 %v18806_v25, %s18083_s20  ;;  %v2952_v62 = vpop.f32.mrf.mxu0  ;;  %v3123_v28 = vmul.f32 0.33333334, %v3002_v41  ;;  %v14701_v50 = vld [vmem:[%s21121_s4 + $0x58] sm:$0xff] }
 0x530   : > { %v3005_v51 = vpop.f32.mrf.mxu1 }
 0x531   : > { %v3126_v16 = vmul.f32 0.33333334, %v3004_v42  ;;  %v3006_v8 = vadd.f32 %v3005_v51, %v2952_v62 }
 0x533   : > { %v3127_v55 = vmul.f32 0.33333334, %v3006_v8  ;;  %v18810_v1 = vpack.i.bf16 %v3126_v16, %v3122_v53  ;;  %v3258_v45 = vpack.c.bf16 %v3126_v16, %v3122_v53 }
 0x535   : > { %16006 = vrot.lane.b32.xlu1 %v18810_v1, %s18083_s20  ;;  %v18814_v17 = vpack.i.bf16 %v3127_v55, %v3123_v28  ;;  %v3259_v19 = vpack.c.bf16 %v3127_v55, %v3123_v28 }
 0x537   : > { %16011 = vrot.lane.b32.xlu0 %v18814_v17, %s18083_s20  ;;  %3290 = vmatprep.subr.bf16.mxu0 %v3259_v19 }
 0x538   : > { %3291 = vmatpush1.bf16.msra.mxu0 %v3258_v45 }
 0x539   : > { %3292 = vmatprep.subr.bf16.mxu0 %v3255_v20 }
 0x53c   : > { %3293 = vmatpush1.bf16.msra.mxu0 %v3254_v12 }
 0x53f   : > { %14704 = vmatmul.mubr.msk.bf16.vlgmr.msra.gmra.mxu0 %vm1055_vm12, %v17005_v26 }
 0x540   : > { %3320 = vmatprep.mubr.bf16.mxu0 %v21155_v31 }
 0x547   : > { %14705 = vmatmul.mubr.msk.bf16.gmra.mxu0 %vm1055_vm12, %v17006_v13 }
 0x548   : > { %3432 = vmatprep.mubr.bf16.mxu0 %v21155_v31 }
 0x561   : > { %v3042_v0 = vpop.f32.mrf.mxu0 }
 0x562   : > { %v3095_v38 = vpop.f32.mrf.mxu1 }
 0x563   : > { %v3044_v2 = vpop.f32.mrf.mxu0  ;;  %v3096_v6 = vadd.f32 %v3095_v38, %v3042_v0 }
 0x564   : > { %v3097_v37 = vpop.f32.mrf.mxu1 }
 0x565   : > { %v3046_v58 = vpop.f32.mrf.mxu0  ;;  %v3098_v30 = vadd.f32 %v3097_v37, %v3044_v2  ;;  %v3116_v23 = vmul.f32 0.33333334, %v3096_v6 }
 0x566   : > { %v3099_v57 = vpop.f32.mrf.mxu1 }
 0x567   : > { %v3048_v40 = vpop.f32.mrf.mxu0  ;;  %v3100_v10 = vadd.f32 %v3099_v57, %v3046_v58  ;;  %v3117_v27 = vmul.f32 0.33333334, %v3098_v30 }
 0x568   : > { %v3101_v47 = vpop.f32.mrf.mxu1 }
 0x569   : > { %v3052_v24 = vpop.f32.mrf.mxu0  ;;  %v3102_v7 = vadd.f32 %v3101_v47, %v3048_v40  ;;  %v3120_v52 = vmul.f32 0.33333334, %v3100_v10 }
 0x56a   : > { %v3105_v43 = vpop.f32.mrf.mxu1 }
 0x56b   : > { %v3054_v33 = vpop.f32.mrf.mxu0  ;;  %v3106_v60 = vadd.f32 %v3105_v43, %v3052_v24  ;;  %v3121_v49 = vmul.f32 0.33333334, %v3102_v7  ;;  %v16020_v32 = vpack.i.bf16 %v3120_v52, %v3116_v23  ;;  %v3256_v36 = vpack.c.bf16 %v3120_v52, %v3116_v23 }
 0x56c   : > { %v3107_v61 = vpop.f32.mrf.mxu1 }
 0x56d   : > { %v3056_v35 = vpop.f32.mrf.mxu0  ;;  %v3108_v18 = vadd.f32 %v3107_v61, %v3054_v33  ;;  %v3124_v54 = vmul.f32 0.33333334, %v3106_v60  ;;  %v3257_v11 = vpack.c.bf16 %v3121_v49, %v3117_v27  ;;  %v16030_v63 = vpack.i.bf16 %v3121_v49, %v3117_v27 }
 0x56e   : > { %v3109_v4 = vpop.f32.mrf.mxu1 }
 0x56f   : > { %v3110_v44 = vadd.f32 %v3109_v4, %v3056_v35  ;;  %v3058_v3 = vpop.f32.mrf.mxu0  ;;  %v3125_v34 = vmul.f32 0.33333334, %v3108_v18 }
 0x570   : > { %v3111_v56 = vpop.f32.mrf.mxu1 }
 0x571   : > { %v3128_v14 = vmul.f32 0.33333334, %v3110_v44  ;;  %v3112_v29 = vadd.f32 %v3111_v56, %v3058_v3 }
 0x573   : > { %v3129_v46 = vmul.f32 0.33333334, %v3112_v29  ;;  %v16015_v5 = vpack.i.bf16 %v3128_v14, %v3124_v54  ;;  %v3260_v59 = vpack.c.bf16 %v3128_v14, %v3124_v54 }
 0x575   : > { %16016 = vrot.lane.b32.xlu1 %v16015_v5, %s18083_s20  ;;  %v3261_v9 = vpack.c.bf16 %v3129_v46, %v3125_v34  ;;  %v16025_v15 = vpack.i.bf16 %v3129_v46, %v3125_v34 }
 0x577   : > { %3343 = vmatprep.subr.bf16.mxu1 %v3261_v9  ;;  %16026 = vrot.lane.b32.xlu0 %v16025_v15, %s18083_s20  ;;  %v17007_v9 = vld [vmem:[%s21120_s3 + $0x60] sm:$0xff]  }
 0x578   : > { %3344 = vmatpush1.bf16.msra.mxu1 %v3260_v59 }
 0x579   : > { %16021 = vrot.lane.b32.xlu1 %v16020_v32, %s18083_s20  ;;  %3345 = vmatprep.subr.bf16.mxu1 %v3257_v11 }
 0x57b   : > { %16031 = vrot.lane.b32.xlu0 %v16030_v63, %s18083_s20 }
 0x57c   : > { %3346 = vmatpush1.bf16.msra.mxu1 %v3256_v36 }
 0x57d   : > { %16036 = vrot.lane.b32.xlu1 %v18810_v1, %s18084_s21 }
 0x57f   : > { %16041 = vrot.lane.b32.xlu0 %v18814_v17, %s18084_s21  ;;  %14706 = vmatmul.mubr.msk.bf16.vlgmr.msra.gmra.mxu1 %vm1055_vm12, %v17005_v26 }
 0x580   : > { %3373 = vmatprep.mubr.bf16.mxu1 %v21155_v31 }
 0x581   : > { %16046 = vrot.lane.b32.xlu1 %v16015_v5, %s18084_s21 }
 0x583   : > { %16056 = vrot.lane.b32.xlu0 %v18806_v25, %s18084_s21  ;;  %v14699_v25 = vld [vmem:[%s21121_s4 + $0x48] sm:$0xff] }
 0x585   : > { %16051 = vrot.lane.b32.xlu1 %v18802_v22, %s18084_s21  ;;  %v14698_v22 = vld [vmem:[%s21121_s4 + $0x40] sm:$0xff] }
 0x587   : > { %16066 = vrot.lane.b32.xlu0 %v16025_v15, %s18084_s21  ;;  %14707 = vmatmul.mubr.msk.bf16.gmra.mxu1 %vm1055_vm12, %v17006_v13 }
 0x588   : > { %3485 = vmatprep.mubr.bf16.mxu1 %v21155_v31 }
 0x589   : > { %16061 = vrot.lane.b32.xlu1 %v16020_v32, %s18084_s21 }
 0x58b   : > { %16071 = vrot.lane.b32.xlu0 %v16030_v63, %s18084_s21 }
 0x58d   : > { %3664 = vperm.xlu1 %15834, %v14700_v48  }
 0x58f   : > { %3669 = vperm.xlu0 %15833, %v14701_v50  }
 0x591   : > { %3654 = vperm.xlu1 %15834, %v14698_v22  }
 0x593   : > { %3659 = vperm.xlu0 %15833, %v14699_v25  }
 0x59f   : > { %v15997_v39 = vpop.permute.xlu1 %15996 }
 0x5a0   : > { %v15999_v26 = vunpack.i.h.bf16 %v15997_v39  ;;  %v15998_v0 = vunpack.i.l.bf16 %v15997_v39 }
 0x5a1   : > { %v16002_v41 = vpop.permute.xlu0 %16001 }
 0x5a2   : > { %v16004_v17 = vunpack.i.h.bf16 %v16002_v41  ;;  %v16003_v19 = vunpack.i.l.bf16 %v16002_v41 }
 0x5a4   : > { %v3190_v47 = vsel %vm389_vm2, %v15998_v0, %v16003_v19  ;;  %v3191_v24 = vsel %vm389_vm2, %v15999_v26, %v16004_v17 }
 0x5a5   : > { %v3247_v3 = vpack.c.bf16 %v3191_v24, %v3190_v47 }
 0x5a7   : > { %v16007_v42 = vpop.permute.xlu1 %16006 }
 0x5a8   : > { %v16009_v51 = vunpack.i.h.bf16 %v16007_v42  ;;  %v16008_v53 = vunpack.i.l.bf16 %v16007_v42 }
 0x5a9   : > { %v16012_v62 = vpop.permute.xlu0 %16011 }
 0x5aa   : > { %v16014_v16 = vunpack.i.h.bf16 %v16012_v62  ;;  %v16013_v8 = vunpack.i.l.bf16 %v16012_v62 }
 0x5ac   : > { %v3192_v28 = vsel %vm389_vm2, %v16008_v53, %v16013_v8  ;;  %v3193_v55 = vsel %vm389_vm2, %v16009_v51, %v16014_v16 }
 0x5ad   : > { %v3251_v1 = vpack.c.bf16 %v3193_v55, %v3192_v28 }
 0x5af   : > { %3412 = vmatprep.subr.bf16.mxu0 %v3251_v1  ;;  %v17008_v1 = vld [vmem:[%s21120_s3 + $0x68] sm:$0xff]  }
 0x5e7   : > { %v16017_v45 = vpop.permute.xlu1 %16016 }
 0x5e8   : > { %v16019_v20 = vunpack.i.h.bf16 %v16017_v45  ;;  %v16018_v12 = vunpack.i.l.bf16 %v16017_v45 }
 0x5e9   : > { %v16027_v38 = vpop.permute.xlu0 %16026 }
 0x5ea   : > { %v3188_v2 = vsel %vm389_vm2, %v16013_v8, %v16018_v12  ;;  %v3189_v37 = vsel %vm389_vm2, %v16014_v16, %v16019_v20  ;;  %v16029_v58 = vunpack.i.h.bf16 %v16027_v38  ;;  %v16028_v57 = vunpack.i.l.bf16 %v16027_v38 }
 0x5eb   : > { %v16022_v40 = vpop.permute.xlu1 %16021  ;;  %v3252_v43 = vpack.c.bf16 %v3189_v37, %v3188_v2 }
 0x5ec   : > { %v3197_v33 = vsel %vm389_vm2, %v16029_v58, %v16009_v51  ;;  %v3196_v61 = vsel %vm389_vm2, %v16028_v57, %v16008_v53  ;;  %v16024_v60 = vunpack.i.h.bf16 %v16022_v40  ;;  %v16023_v35 = vunpack.i.l.bf16 %v16022_v40 }
 0x5ed   : > { %v16032_v13 = vpop.permute.xlu0 %16031  ;;  %v3250_v10 = vpack.c.bf16 %v3197_v33, %v3196_v61  ;;  %v3184_v4 = vsel %vm389_vm2, %v16018_v12, %v16028_v57  ;;  %v3185_v7 = vsel %vm389_vm2, %v16019_v20, %v16029_v58 }
 0x5ee   : > { %v16034_v18 = vunpack.i.h.bf16 %v16032_v13  ;;  %v16033_v44 = vunpack.i.l.bf16 %v16032_v13  ;;  %v3253_v56 = vpack.c.bf16 %v3185_v7, %v3184_v4  ;;  %v3187_v30 = vsel %vm389_vm2, %v16004_v17, %v16024_v60 }
 0x5ef   : > { %v16037_v6 = vpop.permute.xlu1 %16036  ;;  %3413 = vmatpush1.bf16.msra.mxu0 %v3250_v10  ;;  %v3186_v29 = vsel %vm389_vm2, %v16003_v19, %v16023_v35 }
 0x5f0   : > { %v3195_v54 = vsel %vm389_vm2, %v16034_v18, %v15999_v26  ;;  %v3194_v14 = vsel %vm389_vm2, %v16033_v44, %v15998_v0  ;;  %3414 = vmatprep.subr.bf16.mxu0 %v3247_v3  ;;  %3465 = vmatprep.subr.bf16.mxu1 %v3253_v56  ;;  %v3182_v34 = vsel %vm389_vm2, %v16023_v35, %v16033_v44  ;;  %v16039_v15 = vunpack.i.h.bf16 %v16037_v6  ;;  %v17009_v44 = vld [vmem:[%s21120_s3 + $0x80] sm:$0xff]   ;;  %v17010_v3 = vld [vmem:[%s21120_s3 + $0x88] sm:$0xff]  }
 0x5f1   : > { %v16042_v52 = vpop.permute.xlu0 %16041  ;;  %v3246_v49 = vpack.c.bf16 %v3195_v54, %v3194_v14  ;;  %v3183_v46 = vsel %vm389_vm2, %v16024_v60, %v16034_v18  ;;  %3466 = vmatpush1.bf16.msra.mxu1 %v3252_v43  ;;  %v16038_v59 = vunpack.i.l.bf16 %v16037_v6  ;;  %v3248_v36 = vpack.c.bf16 %v3187_v30, %v3186_v29 }
 0x5f2   : > { %v16044_v5 = vunpack.i.h.bf16 %v16042_v52  ;;  %v16043_v23 = vunpack.i.l.bf16 %v16042_v52  ;;  %v3249_v27 = vpack.c.bf16 %v3183_v46, %v3182_v34 }
 0x5f3   : > { %v16047_v32 = vpop.permute.xlu1 %16046  ;;  %3415 = vmatpush1.bf16.msra.mxu0 %v3246_v49 }
 0x5f4   : > { %v16049_v11 = vunpack.i.h.bf16 %v16047_v32  ;;  %v16048_v63 = vunpack.i.l.bf16 %v16047_v32  ;;  %3467 = vmatprep.subr.bf16.mxu1 %v3249_v27  ;;  %v3241_v48 = vsel %vm402_vm3, %v16039_v15, %v16044_v5  ;;  %v3240_v50 = vsel %vm402_vm3, %v16038_v59, %v16043_v23 }
 0x5f5   : > { %v16057_v22 = vpop.permute.xlu0 %16056  ;;  %3468 = vmatpush1.bf16.msra.mxu1 %v3248_v36  ;;  %v3510_v51 = vpack.c.bf16 %v3241_v48, %v3240_v50 }
 0x5f6   : > { %14710 = vmatmul.mubr.msk.bf16.vlgmr.msra.gmra.mxu0 %vm1055_vm12, %v17007_v9  ;;  %v3236_v25 = vsel %vm402_vm3, %v16043_v23, %v16048_v63  ;;  %v3237_v39 = vsel %vm402_vm3, %v16044_v5, %v16049_v11  ;;  %v16058_v53 = vunpack.i.l.bf16 %v16057_v22  ;;  %v16059_v17 = vunpack.i.h.bf16 %v16057_v22 }
 0x5f7   : > { %v16052_v41 = vpop.permute.xlu1 %16051  ;;  %v3511_v42 = vpack.c.bf16 %v3237_v39, %v3236_v25  ;;  %3442 = vmatprep.mubr.bf16.mxu0 %v21155_v31 }
 0x5f8   : > { %v16053_v62 = vunpack.i.l.bf16 %v16052_v41  ;;  %v16054_v16 = vunpack.i.h.bf16 %v16052_v41  ;;  %14712 = vmatmul.mubr.msk.bf16.vlgmr.msra.gmra.mxu1 %vm1055_vm12, %v17007_v9 }
 0x5f9   : > { %v16067_v8 = vpop.permute.xlu0 %16066  ;;  %3542 = vmatprep.subr.bf16.mxu0 %v3511_v42  ;;  %3495 = vmatprep.mubr.bf16.mxu1 %v21155_v31 }
 0x5fa   : > { %v16069_v28 = vunpack.i.h.bf16 %v16067_v8  ;;  %v16068_v55 = vunpack.i.l.bf16 %v16067_v8  ;;  %3543 = vmatpush1.bf16.msra.mxu0 %v3510_v51  ;;  %v3238_v19 = vsel %vm402_vm3, %v16053_v62, %v16058_v53  ;;  %v3239_v38 = vsel %vm402_vm3, %v16054_v16, %v16059_v17 }
 0x5fb   : > { %v16062_v45 = vpop.permute.xlu1 %16061  ;;  %v3506_v10 = vpack.c.bf16 %v3239_v38, %v3238_v19 }
 0x5fc   : > { %v3233_v20 = vsel %vm402_vm3, %v16049_v11, %v16069_v28  ;;  %v3232_v12 = vsel %vm402_vm3, %v16048_v63, %v16068_v55  ;;  %v16064_v26 = vunpack.i.h.bf16 %v16062_v45  ;;  %v16063_v0 = vunpack.i.l.bf16 %v16062_v45 }
 0x5fd   : > { %v16072_v2 = vpop.permute.xlu0 %16071  ;;  %v3244_v37 = vsel %vm402_vm3, %v16068_v55, %v16038_v59  ;;  %v3245_v58 = vsel %vm402_vm3, %v16069_v28, %v16039_v15  ;;  %v3512_v57 = vpack.c.bf16 %v3233_v20, %v3232_v12 }
 0x5fe   : > { %v16074_v40 = vunpack.i.h.bf16 %v16072_v2  ;;  %v16073_v47 = vunpack.i.l.bf16 %v16072_v2  ;;  %14711 = vmatmul.mubr.msk.bf16.gmra.mxu0 %vm1055_vm12, %v17008_v1  ;;  %v3513_v24 = vpack.c.bf16 %v3245_v58, %v3244_v37  ;;  %v3234_v43 = vsel %vm402_vm3, %v16058_v53, %v16063_v0 }
 0x5ff   : > { %v3235_v33 = vsel %vm402_vm3, %v16059_v17, %v16064_v26  ;;  %3562 = vmatprep.mubr.bf16.mxu0 %v21155_v31  ;;  %v3312_v6 = vpop.f32.mrf.mxu0 }
 0x600   : > { %v3231_v61 = vsel %vm402_vm3, %v16064_v26, %v16074_v40  ;;  %v3230_v60 = vsel %vm402_vm3, %v16063_v0, %v16073_v47  ;;  %3595 = vmatprep.subr.bf16.mxu1 %v3513_v24  ;;  %v3507_v35 = vpack.c.bf16 %v3235_v33, %v3234_v43  ;;  %v3242_v13 = vsel %vm402_vm3, %v16073_v47, %v16053_v62 }
 0x601   : > { %14713 = vmatmul.mubr.msk.bf16.gmra.mxu1 %vm1055_vm12, %v17008_v1  ;;  %v3243_v4 = vsel %vm402_vm3, %v16074_v40, %v16054_v16  ;;  %v3508_v18 = vpack.c.bf16 %v3231_v61, %v3230_v60  ;;  %v3314_v30 = vpop.f32.mrf.mxu0 }
 0x602   : > { %3596 = vmatpush1.bf16.msra.mxu1 %v3512_v57  ;;  %3544 = vmatprep.subr.bf16.mxu0 %v3507_v35  ;;  %v3509_v7 = vpack.c.bf16 %v3243_v4, %v3242_v13 }
 0x603   : > { %3545 = vmatpush1.bf16.msra.mxu0 %v3506_v10  ;;  %3615 = vmatprep.mubr.bf16.mxu1 %v21155_v31  ;;  %v3316_v14 = vpop.f32.mrf.mxu0 }
 0x604   : > { %3597 = vmatprep.subr.bf16.mxu1 %v3509_v7 }
 0x605   : > { %v3318_v52 = vpop.f32.mrf.mxu0 }
 0x606   : > { %3598 = vmatpush1.bf16.msra.mxu1 %v3508_v18  ;;  %14716 = vmatmul.mubr.msk.bf16.vlgmr.msra.gmra.mxu0 %vm1055_vm12, %v17009_v44 }
 0x607   : > { %3572 = vmatprep.mubr.bf16.mxu0 %v21155_v31  ;;  %v3322_v34 = vpop.f32.mrf.mxu0 }
 0x608   : > { %v18954_v62 = vpop.permute.xlu1 %3664 }
 0x609   : > { %14718 = vmatmul.mubr.msk.bf16.vlgmr.msra.gmra.mxu1 %vm1055_vm12, %v17009_v44  ;;  %v3324_v5 = vpop.f32.mrf.mxu0 }
 0x60a   : > { %3625 = vmatprep.mubr.bf16.mxu1 %v21155_v31  ;;  %v18956_v55 = vpop.permute.xlu0 %3669 }
 0x60b   : > { %v3326_v27 = vpop.f32.mrf.mxu0 }
 0x60c   : > { %v3655_v20 = vpop.permute.xlu1 %3654 }
 0x60d   : > { %v3328_v15 = vpop.f32.mrf.mxu0 }
 0x60e   : > { %14717 = vmatmul.mubr.msk.bf16.gmra.mxu0 %vm1055_vm12, %v17010_v3  ;;  %v3660_v35 = vpop.permute.xlu0 %3659 }
 0x60f   : > { %3916 = vmatprep.mubr.bf16.mxu0 %v21155_v31 }
 0x611   : > { %14719 = vmatmul.mubr.msk.bf16.gmra.mxu1 %vm1055_vm12, %v17010_v3 }
 0x612   : > { %3969 = vmatprep.mubr.bf16.mxu1 %v21155_v31 }
 0x63f   : > { %v3365_v56 = vpop.f32.mrf.mxu1 }
 0x641   : > { %v3367_v54 = vpop.f32.mrf.mxu1 }
 0x643   : > { %v3369_v29 = vpop.f32.mrf.mxu1 }
 0x645   : > { %v3371_v49 = vpop.f32.mrf.mxu1 }
 0x647   : > { %v3375_v46 = vpop.f32.mrf.mxu1 }
 0x649   : > { %v3377_v23 = vpop.f32.mrf.mxu1 }
 0x64b   : > { %v18952_v9 = vpop.f32.mrf.mxu1 }
 0x64d   : > { %v3381_v32 = vpop.f32.mrf.mxu1 }
 0x6b6   : > { %v3434_v59 = vpop.f32.mrf.mxu0 }
 0x6b7   : > { %v3435_v8 = vadd.f32 %v3434_v59, %v3312_v6 }
 0x6b8   : > { %v3436_v11 = vpop.f32.mrf.mxu0  ;;  %v3487_v63 = vpop.f32.mrf.mxu1 }
 0x6b9   : > { %v3437_v17 = vadd.f32 %v3436_v11, %v3314_v30  ;;  %v3488_v12 = vadd.f32 %v3487_v63, %v3365_v56  ;;  %v21156_v63 = vld [vmem:[#allocation6_spill] sm:$0xff] }
 0x6ba   : > { %v3438_v36 = vpop.f32.mrf.mxu0  ;;  %v3489_v48 = vpop.f32.mrf.mxu1  ;;  %vm348_vm8 = vcmp.lt.s32.totalorder %v21156_v63, 64  ;;  %vm344_vm1 = vcmp.lt.s32.totalorder %v21156_v63, 32 }
 0x6bb   : > { %v3439_v0 = vadd.f32 %v3438_v36, %v3316_v14  ;;  %v3490_v58 = vadd.f32 %v3489_v48, %v3367_v54  ;;  %vm19009_vm10 = vmpackc.low %vm348_vm8, %vm348_vm8 }
 0x6bc   : > { %v3440_v50 = vpop.f32.mrf.mxu0  ;;  %v3491_v22 = vpop.f32.mrf.mxu1  ;;  %vm19477_vm6 = vmpackc.low %vm344_vm1, %vm344_vm1 }
 0x6bd   : > { %v3441_v57 = vadd.f32 %v3440_v50, %v3318_v52  ;;  %v3492_v24 = vadd.f32 %v3491_v22, %v3369_v29 }
 0x6be   : > { %v3444_v25 = vpop.f32.mrf.mxu0  ;;  %v3493_v39 = vpop.f32.mrf.mxu1 }
 0x6bf   : > { %v3445_v43 = vadd.f32 %v3444_v25, %v3322_v34  ;;  %v3494_v13 = vadd.f32 %v3493_v39, %v3371_v49 }
 0x6c0   : > { %v3446_v41 = vpop.f32.mrf.mxu0 }
 0x6c1   : > { %v3497_v42 = vpop.f32.mrf.mxu1  ;;  %v3447_v4 = vadd.f32 %v3446_v41, %v3324_v5 }
 0x6c2   : > { %v3448_v51 = vpop.f32.mrf.mxu0  ;;  %v3498_v10 = vadd.f32 %v3497_v42, %v3375_v46 }
 0x6c3   : > { %v3499_v53 = vpop.f32.mrf.mxu1  ;;  %v3449_v44 = vadd.f32 %v3448_v51, %v3326_v27 }
 0x6c4   : > { %v3450_v16 = vpop.f32.mrf.mxu0  ;;  %v3500_v54 = vadd.f32 %v3499_v53, %v3377_v23 }
 0x6c5   : > { %v3501_v28 = vpop.f32.mrf.mxu1  ;;  %v3451_v14 = vadd.f32 %v3450_v16, %v3328_v15 }
 0x6c6   : > { %v3564_v1 = vpop.f32.mrf.mxu0  ;;  %v3502_v27 = vadd.f32 %v3501_v28, %v18952_v9 }
 0x6c7   : > { %v3503_v19 = vpop.f32.mrf.mxu1  ;;  %v3636_v45 = vadd.f32 %v3564_v1, %v3435_v8 }
 0x6c8   : > { %v3566_v26 = vpop.f32.mrf.mxu0  ;;  %v3504_v36 = vadd.f32 %v3503_v19, %v3381_v32 }
 0x6c9   : > { %v3672_v38 = vadd.f32 %v3655_v20, %v3636_v45  ;;  %v3617_v2 = vpop.f32.mrf.mxu1  ;;  %v3637_v37 = vadd.f32 %v3566_v26, %v3437_v17 }
 0x6ca   : > { %v3638_v40 = vadd.f32 %v3617_v2, %v3488_v12  ;;  %v3568_v47 = vpop.f32.mrf.mxu0 }
 0x6cb   : > { %v3673_v33 = vadd.f32 %v3655_v20, %v3637_v37  ;;  %v3619_v61 = vpop.f32.mrf.mxu1  ;;  %v3640_v60 = vadd.f32 %v3568_v47, %v3439_v0  ;;  %v3688_v3 = vmul.f32 0.2, %v3672_v38 }
 0x6cc   : > { %v3639_v7 = vadd.f32 %v3619_v61, %v3490_v58  ;;  %v3570_v18 = vpop.f32.mrf.mxu0  ;;  %v18959_v29 = vadd.f32 %v3655_v20, %v3638_v40 }
 0x6cd   : > { %v3676_v6 = vadd.f32 %v3660_v35, %v3640_v60  ;;  %v3621_v56 = vpop.f32.mrf.mxu1  ;;  %v3641_v30 = vadd.f32 %v3570_v18, %v3441_v57  ;;  %v3689_v59 = vmul.f32 0.2, %v3673_v33  ;;  %v18965_v23 = vmax.f32 %v3672_v38, %v3688_v3 }
 0x6ce   : > { %v3642_v52 = vadd.f32 %v3621_v56, %v3492_v24  ;;  %v3574_v34 = vpop.f32.mrf.mxu0  ;;  %v18961_v11 = vadd.f32 %v3655_v20, %v3639_v7  ;;  %v18971_v42 = vmul.f32 0.2, %v18959_v29 }
 0x6cf   : > { %v3677_v49 = vadd.f32 %v3660_v35, %v3641_v30  ;;  %v3623_v46 = vpop.f32.mrf.mxu1  ;;  %v3644_v5 = vadd.f32 %v3574_v34, %v3445_v43  ;;  %v3692_v48 = vmul.f32 0.2, %v3676_v6  ;;  %v18973_v9 = vmax.f32 %v3673_v33, %v3689_v59  ;;  %v21157_v43 = vld [vmem:[#allocation7_spill] sm:$0xff] }
 0x6d0   : > { %v3643_v50 = vadd.f32 %v3623_v46, %v3494_v13  ;;  %v3576_v22 = vpop.f32.mrf.mxu0  ;;  %v18967_v15 = vadd.f32 %v3660_v35, %v3642_v52  ;;  %v3691_v32 = vmul.f32 0.2, %v18961_v11  ;;  %vm350_vm9 = vcmp.lt.s32.totalorder %v21157_v43, 64 }
 0x6d1   : > { %v3680_v25 = vadd.f32 %v18954_v62, %v3644_v5  ;;  %v3627_v39 = vpop.f32.mrf.mxu1  ;;  %v3645_v41 = vadd.f32 %v3576_v22, %v3447_v4  ;;  %v3693_v51 = vmul.f32 0.2, %v3677_v49  ;;  %v18977_v19 = vmax.f32 %v3676_v6, %v3692_v48  ;;  %vm19033_vm13 = vmpackc.low %vm350_vm9, %vm350_vm9 }
 0x6d2   : > { %v3679_v53 = vadd.f32 %v3660_v35, %v3643_v50  ;;  %v3646_v16 = vadd.f32 %v3627_v39, %v3498_v10  ;;  %v3578_v8 = vpop.f32.mrf.mxu0  ;;  %v3694_v0 = vmul.f32 0.2, %v18967_v15  ;;  %v3720_v18 = vsel %vm347_vm7, %v18965_v23, 0.0 }
 0x6d3   : > { %v3696_v28 = vmul.f32 0.2, %v3680_v25  ;;  %v3681_v1 = vadd.f32 %v18954_v62, %v3645_v41  ;;  %v3629_v17 = vpop.f32.mrf.mxu1  ;;  %v3648_v2 = vadd.f32 %v3578_v8, %v3449_v44  ;;  %v3709_v57 = vmax.f32 %v3677_v49, %v3693_v51 }
 0x6d4   : > { %v3695_v45 = vmul.f32 0.2, %v3679_v53  ;;  %v3682_v20 = vadd.f32 %v18954_v62, %v3646_v16  ;;  %v3647_v12 = vadd.f32 %v3629_v17, %v3500_v54  ;;  %v3580_v26 = vpop.f32.mrf.mxu0  ;;  %v3724_v6 = vsel %vm347_vm7, %v18977_v19, 0.0 }
 0x6d5   : > { %v3697_v38 = vmul.f32 0.2, %v3681_v1  ;;  %v3631_v37 = vpop.f32.mrf.mxu1  ;;  %v3649_v58 = vadd.f32 %v3580_v26, %v3451_v14  ;;  %v3712_v40 = vmax.f32 %v3680_v25, %v3696_v28  ;;  %v3684_v61 = vadd.f32 %v18956_v55, %v3648_v2 }
 0x6d6   : > { %v3698_v47 = vmul.f32 0.2, %v3682_v20  ;;  %v3683_v24 = vadd.f32 %v18954_v62, %v3647_v12  ;;  %v18983_v33 = vmax.f32 %v3679_v53, %v3695_v45  ;;  %v3650_v60 = vadd.f32 %v3631_v37, %v3502_v27  ;;  %v21164_v45 = vld [vmem:[#allocation8_spill] sm:$0xff] }
 0x6d7   : > { %v3685_v35 = vadd.f32 %v18956_v55, %v3649_v58  ;;  %v3633_v13 = vpop.f32.mrf.mxu1  ;;  %v3713_v10 = vmax.f32 %v3681_v1, %v3697_v38  ;;  %v3700_v44 = vmul.f32 0.2, %v3684_v61  ;;  %v18995_v54 = vpack.i.bf16 %v3724_v6, %v3720_v18 }
 0x6d8   : > { %v3699_v4 = vmul.f32 0.2, %v3683_v24  ;;  %v3651_v7 = vadd.f32 %v3633_v13, %v3504_v36  ;;  %v3686_v62 = vadd.f32 %v18956_v55, %v3650_v60  ;;  %v3714_v56 = vmax.f32 %v3682_v20, %v3698_v47  ;;  %v14732_v60 = vld [vmem:[%s21121_s4 + $0x60] sm:$0xff]  ;;  %v14734_v13 = vld [vmem:[%s21121_s4 + $0x70] sm:$0xff] }
 0x6d9   : > { %v3701_v3 = vmul.f32 0.2, %v3685_v35  ;;  %v3721_v14 = vsel %vm348_vm8, %v18973_v9, 0.0  ;;  %v3716_v52 = vmax.f32 %v3684_v61, %v3700_v44  ;;  %v3725_v49 = vsel %vm348_vm8, %v3709_v57, 0.0  ;;  %16076 = vrot.lane.b32.xlu1 %v18995_v54, %s18083_s20 }
 0x6da   : > { %v3687_v30 = vadd.f32 %v18956_v55, %v3651_v7  ;;  %v3702_v34 = vmul.f32 0.2, %v3686_v62  ;;  %v3715_v46 = vmax.f32 %v3683_v24, %v3699_v4  ;;  %v16080_v27 = vpack.i.bf16 %v3725_v49, %v3721_v14 }
 0x6db   : > { %v3717_v59 = vmax.f32 %v3685_v35, %v3701_v3  ;;  %v3728_v55 = vsel %vm347_vm7, %v3712_v40, 0.0  ;;  %v3732_v50 = vsel %vm347_vm7, %v3716_v52, 0.0  ;;  %v3729_v39 = vsel %vm348_vm8, %v3713_v10, 0.0  ;;  %v14733_v35 = vld [vmem:[%s21121_s4 + $0x68] sm:$0xff]  ;;  %vm19488_vm7 = vmpackc.low %vm343_vm0, %vm343_vm0 }
 0x6dc   : > { %v3703_v5 = vmul.f32 0.2, %v3687_v30  ;;  %v3718_v48 = vmax.f32 %v3686_v62, %v3702_v34  ;;  %v14742_v41 = vpack.c.bf16 %v3716_v52, %v3712_v40  ;;  %16081 = vrot.lane.b32.xlu0 %v16080_v27, %s18083_s20  ;;  %v16085_v53 = vpack.i.bf16 %v3732_v50, %v3728_v55 }
 0x6dd   : > { %v14739_v22 = vpack.c.bf16 %v3717_v59, %v3713_v10  ;;  %v3733_v16 = vsel %vm348_vm8, %v3717_v59, 0.0  ;;  %v3710_v8 = vmax.f32 %v18967_v15, %v3694_v0  ;;  %v14745_v17 = vpack.c.bf16 %v3709_v57, %v18973_v9  ;;  %v17011_v57 = vld [vmem:[%s21120_s3 + $0xa0] sm:$0xff]   ;;  %v14735_v10 = vld [vmem:[%s21121_s4 + $0x78] sm:$0xff] }
 0x6de   : > { %v3719_v51 = vmax.f32 %v3687_v30, %v3703_v5  ;;  %v16100_v1 = vpack.i.bf16 %v3733_v16, %v3729_v39  ;;  %vm349_vm14 = vcmp.lt.s32.totalorder %v21164_v45, 64  ;;  %v3707_v20 = vmax.f32 %v18961_v11, %v3691_v32  ;;  %16086 = vrot.lane.b32.xlu1 %v16085_v53, %s18083_s20 }
 0x6df   : > { %14740 = vmatprep.subr.msk.bf16.mxu0 %vm19009_vm10, %v14739_v22  ;;  %vm19046_vm15 = vmpackc.low %vm349_vm14, %vm349_vm14  ;;  %v3734_v9 = vsel %vm349_vm14, %v3718_v48, 0.0  ;;  %v3706_v26 = vmax.f32 %v18959_v29, %v18971_v42  ;;  %v14756_v11 = vpack.c.bf16 %v3718_v48, %v3714_v56  ;;  %v3730_v32 = vsel %vm349_vm14, %v3714_v56, 0.0 }
 0x6e0   : > { %14743 = vmatpush1.bf16.msk.msra.mxu0 %vm19018_vm11, %v14742_v41  ;;  %v14753_v15 = vpack.c.bf16 %v3719_v51, %v3715_v46  ;;  %v3735_v0 = vsel %vm350_vm9, %v3719_v51, 0.0  ;;  %16101 = vrot.lane.b32.xlu0 %v16100_v1, %s18083_s20  ;;  %v14759_v38 = vpack.c.bf16 %v18983_v33, %v3707_v20  ;;  %v16090_v2 = vpack.i.bf16 %v3734_v9, %v3730_v32 }
 0x6e1   : > { %14746 = vmatprep.subr.msk.bf16.mxu0 %vm19009_vm10, %v14745_v17  ;;  %v14748_v29 = vpack.c.bf16 %v18977_v19, %v18965_v23  ;;  %v3731_v42 = vsel %vm350_vm9, %v3715_v46, 0.0  ;;  %v3726_v37 = vsel %vm349_vm14, %v3710_v8, 0.0  ;;  %v14762_v23 = vpack.c.bf16 %v3710_v8, %v3706_v26 }
 0x6e2   : > { %14754 = vmatprep.subr.msk.bf16.mxu1 %vm19033_vm13, %v14753_v15  ;;  %16091 = vrot.lane.b32.xlu1 %v16090_v2, %s18083_s20  ;;  %v16105_v58 = vpack.i.bf16 %v3735_v0, %v3731_v42  ;;  %v3722_v19 = vsel %vm349_vm14, %v3706_v26, 0.0  ;;  %v3727_v40 = vsel %vm350_vm9, %v18983_v33, 0.0  ;;  %v3723_v24 = vsel %vm350_vm9, %v3707_v20, 0.0  ;;  %v17012_v33 = vld [vmem:[%s21120_s3 + $0xa8] sm:$0xff]  }
 0x6e3   : > { %14757 = vmatpush1.bf16.msk.msra.mxu1 %vm19046_vm15, %v14756_v11  ;;  %v16095_v47 = vpack.i.bf16 %v3726_v37, %v3722_v19  ;;  %v16110_v61 = vpack.i.bf16 %v3727_v40, %v3723_v24  ;;  %vm346_vm4 = vcmp.lt.s32.totalorder %v21157_v43, 32  ;;  %vm345_vm5 = vcmp.lt.s32.totalorder %v21164_v45, 32 }
 0x6e4   : > { %14760 = vmatprep.subr.msk.bf16.mxu1 %vm19033_vm13, %v14759_v38  ;;  %14749 = vmatpush1.bf16.msk.msra.mxu0 %vm19018_vm11, %v14748_v29  ;;  %vm19495_vm8 = vmpackc.low %vm346_vm4, %vm346_vm4  ;;  %vm339_vm10 = vcmp.lt.s32.totalorder %v18208_v21, 16  ;;  %vm340_vm11 = vcmp.lt.s32.totalorder %v21156_v63, 16  ;;  %vm342_vm13 = vcmp.lt.s32.totalorder %v21157_v43, 16  ;;  %vm341_vm14 = vcmp.lt.s32.totalorder %v21164_v45, 16 }
 0x6e5   : > { %16106 = vrot.lane.b32.xlu0 %v16105_v58, %s18083_s20  ;;  %vm19509_vm9 = vmpackc.low %vm345_vm5, %vm345_vm5 }
 0x6e6   : > { %16096 = vrot.lane.b32.xlu1 %v16095_v47, %s18083_s20 }
 0x6e7   : > { %14763 = vmatpush1.bf16.msk.msra.mxu1 %vm19046_vm15, %v14762_v23  ;;  %14750 = vmatmul.mubr.msk.bf16.vlgmr.msra.gmra.mxu0 %vm1055_vm12, %v17011_v57  ;;  %vm19938_vm15 = vmpackc.low %vm340_vm11, %vm340_vm11 }
 0x6e8   : > { %3926 = vmatprep.mubr.bf16.mxu0 %v21155_v31 }
 0x6e9   : > { %16111 = vrot.lane.b32.xlu0 %v16110_v61, %s18083_s20 }
 0x6ea   : > { %14764 = vmatmul.mubr.msk.bf16.vlgmr.msra.gmra.mxu1 %vm1055_vm12, %v17011_v57  ;;  %16116 = vrot.lane.b32.xlu1 %v16085_v53, %s18084_s21 }
 0x6eb   : > { %3979 = vmatprep.mubr.bf16.mxu1 %v21155_v31 }
 0x6ed   : > { %16121 = vrot.lane.b32.xlu0 %v16100_v1, %s18084_s21 }
 0x6ee   : > { %16126 = vrot.lane.b32.xlu1 %v16090_v2, %s18084_s21 }
 0x6ef   : > { %14751 = vmatmul.mubr.msk.bf16.gmra.mxu0 %vm1055_vm12, %v17012_v33 }
 0x6f0   : > { %4038 = vmatprep.mubr.bf16.mxu0 %v21155_v31 }
 0x6f1   : > { %16136 = vrot.lane.b32.xlu0 %v16080_v27, %s18084_s21 }
 0x6f2   : > { %14765 = vmatmul.mubr.msk.bf16.gmra.mxu1 %vm1055_vm12, %v17012_v33  ;;  %16131 = vrot.lane.b32.xlu1 %v18995_v54, %s18084_s21 }
 0x6f3   : > { %4091 = vmatprep.mubr.bf16.mxu1 %v21155_v31 }
 0x6f5   : > { %16146 = vrot.lane.b32.xlu0 %v16105_v58, %s18084_s21 }
 0x6f6   : > { %16141 = vrot.lane.b32.xlu1 %v16095_v47, %s18084_s21  ;;  %v17013_v47 = vld [vmem:[%s21120_s3 + $0x90] sm:$0xff]  }
 0x6f9   : > { %16151 = vrot.lane.b32.xlu0 %v16110_v61, %s18084_s21 }
 0x6fa   : > { %4260 = vperm.xlu1 %15834, %v14732_v60  }
 0x6fd   : > { %4265 = vperm.xlu0 %15833, %v14733_v35  }
 0x6fe   : > { %4270 = vperm.xlu1 %15834, %v14734_v13  }
 0x701   : > { %4275 = vperm.xlu0 %15833, %v14735_v10  }
 0x74b   : > { %v16077_v4 = vpop.permute.xlu1 %16076 }
 0x74c   : > { %v16079_v46 = vunpack.i.h.bf16 %v16077_v4  ;;  %v16078_v5 = vunpack.i.l.bf16 %v16077_v4 }
 0x74e   : > { %v16082_v7 = vpop.permute.xlu0 %16081 }
 0x74f   : > { %v16084_v30 = vunpack.i.h.bf16 %v16082_v7  ;;  %v16083_v54 = vunpack.i.l.bf16 %v16082_v7 }
 0x750   : > { %v16087_v18 = vpop.permute.xlu1 %16086 }
 0x751   : > { %v16089_v62 = vunpack.i.h.bf16 %v16087_v18  ;;  %v16088_v3 = vunpack.i.l.bf16 %v16087_v18  ;;  %v3796_v25 = vsel %vm389_vm2, %v16078_v5, %v16083_v54  ;;  %v3797_v39 = vsel %vm389_vm2, %v16079_v46, %v16084_v30 }
 0x752   : > { %v16102_v44 = vpop.permute.xlu0 %16101  ;;  %v3853_v9 = vpack.c.bf16 %v3797_v39, %v3796_v25 }
 0x753   : > { %v16104_v6 = vunpack.i.h.bf16 %v16102_v44  ;;  %v16103_v56 = vunpack.i.l.bf16 %v16102_v44 }
 0x754   : > { %v16092_v14 = vpop.permute.xlu1 %16091 }
 0x755   : > { %v16094_v52 = vunpack.i.h.bf16 %v16092_v14  ;;  %v16093_v34 = vunpack.i.l.bf16 %v16092_v14  ;;  %v3798_v59 = vsel %vm389_vm2, %v16088_v3, %v16103_v56  ;;  %v3799_v49 = vsel %vm389_vm2, %v16089_v62, %v16104_v6 }
 0x756   : > { %v3857_v55 = vpack.c.bf16 %v3799_v49, %v3798_v59  ;;  %v17014_v59 = vld [vmem:[%s21120_s3 + $0x98] sm:$0xff]  }
 0x757   : > { %v16107_v27 = vpop.permute.xlu0 %16106  ;;  %v3795_v50 = vsel %vm389_vm2, %v16104_v6, %v16094_v52  ;;  %v3794_v41 = vsel %vm389_vm2, %v16103_v56, %v16093_v34 }
 0x758   : > { %v16109_v36 = vunpack.i.h.bf16 %v16107_v27  ;;  %v16108_v48 = vunpack.i.l.bf16 %v16107_v27  ;;  %v16097_v22 = vpop.permute.xlu1 %16096  ;;  %4018 = vmatprep.subr.bf16.mxu0 %v3857_v55  ;;  %v3858_v2 = vpack.c.bf16 %v3795_v50, %v3794_v41 }
 0x759   : > { %v16099_v16 = vunpack.i.h.bf16 %v16097_v22  ;;  %v16098_v8 = vunpack.i.l.bf16 %v16097_v22 }
 0x75a   : > { %v3802_v51 = vsel %vm389_vm2, %v16108_v48, %v16088_v3  ;;  %v3803_v53 = vsel %vm389_vm2, %v16109_v36, %v16089_v62  ;;  %v3790_v17 = vsel %vm389_vm2, %v16093_v34, %v16108_v48  ;;  %v3791_v20 = vsel %vm389_vm2, %v16094_v52, %v16109_v36 }
 0x75b   : > { %v16112_v28 = vpop.permute.xlu0 %16111  ;;  %v3856_v1 = vpack.c.bf16 %v3803_v53, %v3802_v51  ;;  %v3859_v11 = vpack.c.bf16 %v3791_v20, %v3790_v17  ;;  %v3793_v32 = vsel %vm389_vm2, %v16084_v30, %v16099_v16  ;;  %v3792_v29 = vsel %vm389_vm2, %v16083_v54, %v16098_v8 }
 0x75c   : > { %v16114_v15 = vunpack.i.h.bf16 %v16112_v28  ;;  %v16113_v12 = vunpack.i.l.bf16 %v16112_v28  ;;  %v16117_v26 = vpop.permute.xlu1 %16116  ;;  %v3854_v13 = vpack.c.bf16 %v3793_v32, %v3792_v29  ;;  %v17025_v29 = vld [vmem:[#allocation3 + $0x4c4] ss:$16 sps:$4 sm:$0xff]  }
 0x75d   : > { %4019 = vmatpush1.bf16.msra.mxu0 %v3856_v1  ;;  %4071 = vmatprep.subr.bf16.mxu1 %v3859_v11  ;;  %v16119_v24 = vunpack.i.h.bf16 %v16117_v26  ;;  %v16118_v61 = vunpack.i.l.bf16 %v16117_v26 }
 0x75e   : > { %v3800_v0 = vsel %vm389_vm2, %v16113_v12, %v16078_v5  ;;  %v3801_v38 = vsel %vm389_vm2, %v16114_v15, %v16079_v46  ;;  %4020 = vmatprep.subr.bf16.mxu0 %v3853_v9  ;;  %v3788_v58 = vsel %vm389_vm2, %v16098_v8, %v16113_v12  ;;  %v3789_v57 = vsel %vm389_vm2, %v16099_v16, %v16114_v15  ;;  %v17019_v12 = vld [vmem:[#allocation3 + $0x4e4] ss:$16 sps:$4 sm:$0xff]  }
 0x75f   : > { %v16122_v42 = vpop.permute.xlu0 %16121  ;;  %v3852_v37 = vpack.c.bf16 %v3801_v38, %v3800_v0  ;;  %4072 = vmatpush1.bf16.msra.mxu1 %v3858_v2  ;;  %v3855_v40 = vpack.c.bf16 %v3789_v57, %v3788_v58  ;;  %v17015_v0 = vld [vmem:[%s21120_s3 + $0xb0] sm:$0xff]  }
 0x760   : > { %v16124_v23 = vunpack.i.h.bf16 %v16122_v42  ;;  %v16123_v19 = vunpack.i.l.bf16 %v16122_v42  ;;  %v16127_v33 = vpop.permute.xlu1 %16126  ;;  %v17017_v38 = vld [vmem:[#allocation3 + $0x4e0] ss:$16 sps:$4 sm:$0xff]   ;;  %v17022_v2 = vld [vmem:[#allocation3 + $0x6e4] ss:$16 sps:$4 sm:$0xff]  }
 0x761   : > { %4021 = vmatpush1.bf16.msra.mxu0 %v3852_v37  ;;  %v16129_v60 = vunpack.i.h.bf16 %v16127_v33  ;;  %v16128_v35 = vunpack.i.l.bf16 %v16127_v33  ;;  %4073 = vmatprep.subr.bf16.mxu1 %v3855_v40  ;;  %v17020_v42 = vld [vmem:[#allocation3 + $0x6e0] ss:$16 sps:$4 sm:$0xff]   ;;  %v17028_v58 = vld [vmem:[#allocation3 + $0x6c4] ss:$16 sps:$4 sm:$0xff]  }
 0x762   : > { %v3846_v10 = vsel %vm402_vm3, %v16118_v61, %v16123_v19  ;;  %v3847_v4 = vsel %vm402_vm3, %v16119_v24, %v16124_v23  ;;  %v17023_v37 = vld [vmem:[#allocation3 + $0x4c0] ss:$16 sps:$4 sm:$0xff]   ;;  %v17031_v57 = vld [vmem:[#allocation3 + $0x4a4] ss:$16 sps:$4 sm:$0xff]  }
 0x763   : > { %v16137_v7 = vpop.permute.xlu0 %16136  ;;  %4074 = vmatpush1.bf16.msra.mxu1 %v3854_v13  ;;  %v3842_v18 = vsel %vm402_vm3, %v16123_v19, %v16128_v35  ;;  %v3843_v44 = vsel %vm402_vm3, %v16124_v23, %v16129_v60  ;;  %v4116_v56 = vpack.c.bf16 %v3847_v4, %v3846_v10  ;;  %v17016_v23 = vld [vmem:[%s21120_s3 + $0xb8] sm:$0xff]   ;;  %v17026_v19 = vld [vmem:[#allocation3 + $0x6c0] ss:$16 sps:$4 sm:$0xff]  }
 0x764   : > { %14768 = vmatmul.mubr.msk.bf16.vlgmr.msra.gmra.mxu0 %vm1055_vm12, %v17013_v47  ;;  %v16132_v62 = vpop.permute.xlu1 %16131  ;;  %v4117_v3 = vpack.c.bf16 %v3843_v44, %v3842_v18  ;;  %v16139_v30 = vunpack.i.h.bf16 %v16137_v7  ;;  %v16138_v49 = vunpack.i.l.bf16 %v16137_v7  ;;  %v17029_v40 = vld [vmem:[#allocation3 + $0x4a0] ss:$16 sps:$4 sm:$0xff]   ;;  %v17046_v4 = vld [vmem:[#allocation3 + $0x664] ss:$16 sps:$4 sm:$0xff]  }
 0x765   : > { %4048 = vmatprep.mubr.bf16.mxu0 %v21155_v31  ;;  %v16134_v6 = vunpack.i.h.bf16 %v16132_v62  ;;  %v16133_v54 = vunpack.i.l.bf16 %v16132_v62  ;;  %v17035_v33 = vld [vmem:[#allocation3 + $0x480] ss:$16 sps:$4 sm:$0xff]   ;;  %v17049_v7 = vld [vmem:[#allocation3 + $0x444] ss:$16 sps:$4 sm:$0xff]  }
 0x766   : > { %14770 = vmatmul.mubr.msk.bf16.vlgmr.msra.gmra.mxu1 %vm1055_vm12, %v17013_v47  ;;  %4148 = vmatprep.subr.bf16.mxu0 %v4117_v3  ;;  %v17034_v47 = vld [vmem:[#allocation3 + $0x6a4] ss:$16 sps:$4 sm:$0xff]   ;;  %v17038_v13 = vld [vmem:[#allocation3 + $0x680] ss:$16 sps:$4 sm:$0xff]  }
 0x767   : > { %v16147_v14 = vpop.permute.xlu0 %16146  ;;  %4149 = vmatpush1.bf16.msra.mxu0 %v4116_v56  ;;  %4101 = vmatprep.mubr.bf16.mxu1 %v21155_v31  ;;  %v3845_v46 = vsel %vm402_vm3, %v16134_v6, %v16139_v30  ;;  %v3844_v50 = vsel %vm402_vm3, %v16133_v54, %v16138_v49  ;;  %v17041_v10 = vld [vmem:[#allocation3 + $0x460] ss:$16 sps:$4 sm:$0xff]   ;;  %v17052_v62 = vld [vmem:[#allocation3 + $0x644] ss:$16 sps:$4 sm:$0xff]  }
 0x768   : > { %v16149_v52 = vunpack.i.h.bf16 %v16147_v14  ;;  %v16148_v34 = vunpack.i.l.bf16 %v16147_v14  ;;  %v16142_v5 = vpop.permute.xlu1 %16141  ;;  %v4112_v9 = vpack.c.bf16 %v3845_v46, %v3844_v50  ;;  %v17044_v18 = vld [vmem:[#allocation3 + $0x660] ss:$16 sps:$4 sm:$0xff]   ;;  %v17055_v3 = vld [vmem:[#allocation3 + $0x424] ss:$16 sps:$4 sm:$0xff]  }
 0x769   : > { %v16144_v36 = vunpack.i.h.bf16 %v16142_v5  ;;  %v16143_v48 = vunpack.i.l.bf16 %v16142_v5  ;;  %v17047_v44 = vld [vmem:[#allocation3 + $0x440] ss:$16 sps:$4 sm:$0xff]   ;;  %v17067_v46 = vld [vmem:[#allocation3 + $0x5e4] ss:$16 sps:$4 sm:$0xff]  }
 0x76a   : > { %v3838_v27 = vsel %vm402_vm3, %v16128_v35, %v16148_v34  ;;  %v3839_v55 = vsel %vm402_vm3, %v16129_v60, %v16149_v52  ;;  %v3850_v25 = vsel %vm402_vm3, %v16148_v34, %v16118_v61  ;;  %v3851_v39 = vsel %vm402_vm3, %v16149_v52, %v16119_v24  ;;  %v17037_v24 = vld [vmem:[#allocation3 + $0x484] ss:$16 sps:$4 sm:$0xff]   ;;  %v17032_v61 = vld [vmem:[#allocation3 + $0x6a0] ss:$16 sps:$4 sm:$0xff]  }
 0x76b   : > { %v16152_v22 = vpop.permute.xlu0 %16151  ;;  %v4118_v41 = vpack.c.bf16 %v3839_v55, %v3838_v27  ;;  %v4119_v16 = vpack.c.bf16 %v3851_v39, %v3850_v25  ;;  %v3840_v8 = vsel %vm402_vm3, %v16138_v49, %v16143_v48  ;;  %v3841_v28 = vsel %vm402_vm3, %v16139_v30, %v16144_v36  ;;  %v17040_v60 = vld [vmem:[#allocation3 + $0x684] ss:$16 sps:$4 sm:$0xff]   ;;  %v17053_v56 = vld [vmem:[#allocation3 + $0x420] ss:$16 sps:$4 sm:$0xff]  }
 0x76c   : > { %v16154_v51 = vunpack.i.h.bf16 %v16152_v22  ;;  %v16153_v53 = vunpack.i.l.bf16 %v16152_v22  ;;  %14769 = vmatmul.mubr.msk.bf16.gmra.mxu0 %vm1055_vm12, %v17014_v59  ;;  %v4113_v20 = vpack.c.bf16 %v3841_v28, %v3840_v8  ;;  %v17043_v35 = vld [vmem:[#allocation3 + $0x464] ss:$16 sps:$4 sm:$0xff]   ;;  %v17056_v14 = vld [vmem:[#allocation3 + $0x620] ss:$16 sps:$4 sm:$0xff]  }
 0x76d   : > { %4168 = vmatprep.mubr.bf16.mxu0 %v21155_v31  ;;  %4201 = vmatprep.subr.bf16.mxu1 %v4119_v16  ;;  %v17058_v30 = vld [vmem:[#allocation3 + $0x624] ss:$16 sps:$4 sm:$0xff]   ;;  %v17059_v52 = vld [vmem:[#allocation3 + $0x400] ss:$16 sps:$4 sm:$0xff]  }
 0x76e   : > { %v3836_v1 = vsel %vm402_vm3, %v16143_v48, %v16153_v53  ;;  %v3837_v17 = vsel %vm402_vm3, %v16144_v36, %v16154_v51  ;;  %v3848_v15 = vsel %vm402_vm3, %v16153_v53, %v16133_v54  ;;  %14771 = vmatmul.mubr.msk.bf16.gmra.mxu1 %vm1055_vm12, %v17014_v59  ;;  %v3849_v26 = vsel %vm402_vm3, %v16154_v51, %v16134_v6  ;;  %v17050_v6 = vld [vmem:[#allocation3 + $0x640] ss:$16 sps:$4 sm:$0xff]   ;;  %v17061_v54 = vld [vmem:[#allocation3 + $0x404] ss:$16 sps:$4 sm:$0xff]  }
 0x76f   : > { %4202 = vmatpush1.bf16.msra.mxu1 %v4118_v41  ;;  %4150 = vmatprep.subr.bf16.mxu0 %v4113_v20  ;;  %v4115_v11 = vpack.c.bf16 %v3849_v26, %v3848_v15  ;;  %v4114_v32 = vpack.c.bf16 %v3837_v17, %v3836_v1  ;;  %v17064_v34 = vld [vmem:[#allocation3 + $0x604] ss:$16 sps:$4 sm:$0xff]   ;;  %v17062_v59 = vld [vmem:[#allocation3 + $0x600] ss:$16 sps:$4 sm:$0xff]  }
 0x770   : > { %4151 = vmatpush1.bf16.msra.mxu0 %v4112_v9  ;;  %4221 = vmatprep.mubr.bf16.mxu1 %v21155_v31  ;;  %v17065_v49 = vld [vmem:[#allocation3 + $0x5e0] ss:$16 sps:$4 sm:$0xff]   ;;  %v17070_v27 = vld [vmem:[#allocation3 + $0x7e4] ss:$16 sps:$4 sm:$0xff]  }
 0x771   : > { %4203 = vmatprep.subr.bf16.mxu1 %v4115_v11  ;;  %5103 = vmatprep.subr.bf16.mxu0 %v17019_v12  ;;  %v17068_v5 = vld [vmem:[#allocation3 + $0x7e0] ss:$16 sps:$4 sm:$0xff]   ;;  %v17073_v36 = vld [vmem:[#allocation3 + $0x5c4] ss:$16 sps:$4 sm:$0xff]  }
 0x772   : > { %v17071_v55 = vld [vmem:[#allocation3 + $0x5c0] ss:$16 sps:$4 sm:$0xff]   ;;  %v17076_v50 = vld [vmem:[#allocation3 + $0x7c4] ss:$16 sps:$4 sm:$0xff]  }
 0x773   : > { %4204 = vmatpush1.bf16.msra.mxu1 %v4114_v32  ;;  %v17074_v48 = vld [vmem:[#allocation3 + $0x7c0] ss:$16 sps:$4 sm:$0xff]   ;;  %v17079_v25 = vld [vmem:[#allocation3 + $0x5a4] ss:$16 sps:$4 sm:$0xff]  }
 0x774   : > { %14774 = vmatmul.mubr.msk.bf16.vlgmr.msra.gmra.mxu0 %vm1055_vm12, %v17015_v0  ;;  %5156 = vmatprep.subr.bf16.mxu1 %v17022_v2  ;;  %v17077_v22 = vld [vmem:[#allocation3 + $0x5a0] ss:$16 sps:$4 sm:$0xff]   ;;  %v17082_v41 = vld [vmem:[#allocation3 + $0x7a4] ss:$16 sps:$4 sm:$0xff]  }
 0x775   : > { %4178 = vmatprep.mubr.bf16.mxu0 %v21155_v31  ;;  %5104 = vmatpush1.bf16.msra.mxu0 %v17017_v38  ;;  %v17080_v39 = vld [vmem:[#allocation3 + $0x7a0] ss:$16 sps:$4 sm:$0xff]   ;;  %v17085_v53 = vld [vmem:[#allocation3 + $0x584] ss:$16 sps:$4 sm:$0xff]  }
 0x776   : > { %5105 = vmatprep.subr.bf16.mxu0 %v17025_v29  ;;  %14776 = vmatmul.mubr.msk.bf16.vlgmr.msra.gmra.mxu1 %vm1055_vm12, %v17015_v0  ;;  %v17083_v51 = vld [vmem:[#allocation3 + $0x580] ss:$16 sps:$4 sm:$0xff]   ;;  %v17088_v8 = vld [vmem:[#allocation3 + $0x784] ss:$16 sps:$4 sm:$0xff]  }
 0x777   : > { %4231 = vmatprep.mubr.bf16.mxu1 %v21155_v31  ;;  %5157 = vmatpush1.bf16.msra.mxu1 %v17020_v42  ;;  %v17086_v16 = vld [vmem:[#allocation3 + $0x780] ss:$16 sps:$4 sm:$0xff]   ;;  %v17091_v1 = vld [vmem:[#allocation3 + $0x564] ss:$16 sps:$4 sm:$0xff]  }
 0x778   : > { %5158 = vmatprep.subr.bf16.mxu1 %v17028_v58  ;;  %v17089_v28 = vld [vmem:[#allocation3 + $0x560] ss:$16 sps:$4 sm:$0xff]   ;;  %v17094_v20 = vld [vmem:[#allocation3 + $0x764] ss:$16 sps:$4 sm:$0xff]   ;;  %v17115_v58 = vld [vmem:[#allocation3 + $0x4ec] ss:$16 sps:$4 sm:$0xff]  }
 0x779   : > { %5106 = vmatpush1.bf16.msra.mxu0 %v17023_v37  ;;  %v17092_v17 = vld [vmem:[#allocation3 + $0x760] ss:$16 sps:$4 sm:$0xff]   ;;  %v17097_v12 = vld [vmem:[#allocation3 + $0x544] ss:$16 sps:$4 sm:$0xff]  }
 0x77a   : > { %5107 = vmatprep.subr.bf16.mxu0 %v17031_v57  ;;  %v17095_v15 = vld [vmem:[#allocation3 + $0x540] ss:$16 sps:$4 sm:$0xff]   ;;  %v17100_v26 = vld [vmem:[#allocation3 + $0x744] ss:$16 sps:$4 sm:$0xff]   ;;  %v17118_v57 = vld [vmem:[#allocation3 + $0x6ec] ss:$16 sps:$4 sm:$0xff]  }
 0x77b   : > { %5159 = vmatpush1.bf16.msra.mxu1 %v17026_v19  ;;  %v17098_v9 = vld [vmem:[#allocation3 + $0x740] ss:$16 sps:$4 sm:$0xff]   ;;  %v17103_v11 = vld [vmem:[#allocation3 + $0x524] ss:$16 sps:$4 sm:$0xff]  }
 0x77c   : > { %14775 = vmatmul.mubr.msk.bf16.gmra.mxu0 %vm1055_vm12, %v17016_v23  ;;  %5160 = vmatprep.subr.bf16.mxu1 %v17034_v47  ;;  %v17101_v32 = vld [vmem:[#allocation3 + $0x520] ss:$16 sps:$4 sm:$0xff]   ;;  %v17106_v0 = vld [vmem:[#allocation3 + $0x724] ss:$16 sps:$4 sm:$0xff]  }
 0x77d   : > { %5108 = vmatpush1.bf16.msra.mxu0 %v17029_v40  ;;  %v17104_v38 = vld [vmem:[#allocation3 + $0x720] ss:$16 sps:$4 sm:$0xff]   ;;  %v17109_v29 = vld [vmem:[#allocation3 + $0x504] ss:$16 sps:$4 sm:$0xff]  }
 0x77e   : > { %5109 = vmatprep.subr.bf16.mxu0 %v17037_v24  ;;  %14777 = vmatmul.mubr.msk.bf16.gmra.mxu1 %vm1055_vm12, %v17016_v23  ;;  %v17107_v2 = vld [vmem:[#allocation3 + $0x500] ss:$16 sps:$4 sm:$0xff]   ;;  %v17112_v37 = vld [vmem:[#allocation3 + $0x704] ss:$16 sps:$4 sm:$0xff]  }
 0x77f   : > { %5161 = vmatpush1.bf16.msra.mxu1 %v17032_v61  ;;  %v17110_v42 = vld [vmem:[#allocation3 + $0x700] ss:$16 sps:$4 sm:$0xff]  }
 0x780   : > { %5162 = vmatprep.subr.bf16.mxu1 %v17040_v60 }
 0x781   : > { %5110 = vmatpush1.bf16.msra.mxu0 %v17035_v33 }
 0x782   : > { %5111 = vmatprep.subr.bf16.mxu0 %v17043_v35 }
 0x783   : > { %5163 = vmatpush1.bf16.msra.mxu1 %v17038_v13 }
 0x784   : > { %5164 = vmatprep.subr.bf16.mxu1 %v17046_v4 }
 0x785   : > { %5112 = vmatpush1.bf16.msra.mxu0 %v17041_v10 }
 0x786   : > { %5113 = vmatprep.subr.bf16.mxu0 %v17049_v7 }
 0x787   : > { %5165 = vmatpush1.bf16.msra.mxu1 %v17044_v18 }
 0x788   : > { %5166 = vmatprep.subr.bf16.mxu1 %v17052_v62 }
 0x789   : > { %5114 = vmatpush1.bf16.msra.mxu0 %v17047_v44 }
 0x78a   : > { %5115 = vmatprep.subr.bf16.mxu0 %v17055_v3 }
 0x78b   : > { %5167 = vmatpush1.bf16.msra.mxu1 %v17050_v6 }
 0x78c   : > { %5168 = vmatprep.subr.bf16.mxu1 %v17058_v30 }
 0x78d   : > { %5116 = vmatpush1.bf16.msra.mxu0 %v17053_v56 }
 0x78e   : > { %5117 = vmatprep.subr.bf16.mxu0 %v17061_v54 }
 0x78f   : > { %5169 = vmatpush1.bf16.msra.mxu1 %v17056_v14 }
 0x790   : > { %5170 = vmatprep.subr.bf16.mxu1 %v17064_v34 }
 0x791   : > { %5118 = vmatpush1.bf16.msra.mxu0 %v17059_v52 }
 0x792   : > { %5119 = vmatprep.subr.bf16.mxu0 %v17067_v46 }
 0x793   : > { %5171 = vmatpush1.bf16.msra.mxu1 %v17062_v59 }
 0x794   : > { %5172 = vmatprep.subr.bf16.mxu1 %v17070_v27 }
 0x795   : > { %5120 = vmatpush2.bf16.msra.mxu0 %v17065_v49 }
 0x796   : > { %5121 = vmatprep.subr.bf16.mxu0 %v17073_v36 }
 0x797   : > { %5173 = vmatpush2.bf16.msra.mxu1 %v17068_v5 }
 0x798   : > { %5174 = vmatprep.subr.bf16.mxu1 %v17076_v50 }
 0x799   : > { %5122 = vmatpush2.bf16.msra.mxu0 %v17071_v55 }
 0x79a   : > { %5123 = vmatprep.subr.bf16.mxu0 %v17079_v25 }
 0x79b   : > { %5175 = vmatpush2.bf16.msra.mxu1 %v17074_v48 }
 0x79c   : > { %5176 = vmatprep.subr.bf16.mxu1 %v17082_v41 }
 0x79d   : > { %5124 = vmatpush2.bf16.msra.mxu0 %v17077_v22 }
 0x79e   : > { %5125 = vmatprep.subr.bf16.mxu0 %v17085_v53 }
 0x79f   : > { %5177 = vmatpush2.bf16.msra.mxu1 %v17080_v39 }
 0x7a0   : > { %5178 = vmatprep.subr.bf16.mxu1 %v17088_v8 }
 0x7a1   : > { %5126 = vmatpush2.bf16.msra.mxu0 %v17083_v51 }
 0x7a2   : > { %5127 = vmatprep.subr.bf16.mxu0 %v17091_v1 }
 0x7a3   : > { %5179 = vmatpush2.bf16.msra.mxu1 %v17086_v16 }
 0x7a4   : > { %5180 = vmatprep.subr.bf16.mxu1 %v17094_v20 }
 0x7a5   : > { %5128 = vmatpush2.bf16.msra.mxu0 %v17089_v28  ;;  %v4261_v28 = vpop.permute.xlu1 %4260 }
 0x7a6   : > { %5129 = vmatprep.subr.bf16.mxu0 %v17097_v12 }
 0x7a7   : > { %5181 = vmatpush2.bf16.msra.mxu1 %v17092_v17  ;;  %v3918_v23 = vpop.f32.mrf.mxu0 }
 0x7a8   : > { %5182 = vmatprep.subr.bf16.mxu1 %v17100_v26 }
 0x7a9   : > { %5130 = vmatpush2.bf16.msra.mxu0 %v17095_v15  ;;  %v3920_v40 = vpop.f32.mrf.mxu0 }
 0x7aa   : > { %5131 = vmatprep.subr.bf16.mxu0 %v17103_v11  ;;  %v3971_v19 = vpop.f32.mrf.mxu1 }
 0x7ab   : > { %5183 = vmatpush2.bf16.msra.mxu1 %v17098_v9  ;;  %v3922_v24 = vpop.f32.mrf.mxu0 }
 0x7ac   : > { %5184 = vmatprep.subr.bf16.mxu1 %v17106_v0  ;;  %v3973_v47 = vpop.f32.mrf.mxu1  ;;  %v4266_v0 = vpop.permute.xlu0 %4265 }
 0x7ad   : > { %5132 = vmatpush2.bf16.msra.mxu0 %v17101_v32  ;;  %v3924_v33 = vpop.f32.mrf.mxu0 }
 0x7ae   : > { %5133 = vmatprep.subr.bf16.mxu0 %v17109_v29  ;;  %v3975_v61 = vpop.f32.mrf.mxu1 }
 0x7af   : > { %5185 = vmatpush2.bf16.msra.mxu1 %v17104_v38  ;;  %v3928_v35 = vpop.f32.mrf.mxu0 }
 0x7b0   : > { %5186 = vmatprep.subr.bf16.mxu1 %v17112_v37  ;;  %v3977_v60 = vpop.f32.mrf.mxu1 }
 0x7b1   : > { %5134 = vmatpush2.bf16.msra.mxu0 %v17107_v2  ;;  %v3930_v10 = vpop.f32.mrf.mxu0 }
 0x7b2   : > { %5209 = vmatprep.subr.bf16.mxu0 %v17115_v58  ;;  %v3981_v13 = vpop.f32.mrf.mxu1 }
 0x7b3   : > { %5187 = vmatpush2.bf16.msra.mxu1 %v17110_v42  ;;  %v3932_v7 = vpop.f32.mrf.mxu0 }
 0x7b4   : > { %5262 = vmatprep.subr.bf16.mxu1 %v17118_v57  ;;  %v3983_v4 = vpop.f32.mrf.mxu1 }
 0x7b5   : > { %v3934_v44 = vpop.f32.mrf.mxu0 }
 0x7b6   : > { %v3985_v18 = vpop.f32.mrf.mxu1 }
 0x7b8   : > { %v19214_v3 = vpop.f32.mrf.mxu1 }
 0x824   : > { %v4040_v62 = vpop.f32.mrf.mxu0 }
 0x825   : > { %v4041_v36 = vadd.f32 %v4040_v62, %v3918_v23 }
 0x826   : > { %v4042_v6 = vpop.f32.mrf.mxu0  ;;  %v4093_v56 = vpop.f32.mrf.mxu1 }
 0x827   : > { %v4043_v22 = vadd.f32 %v4042_v6, %v3920_v40  ;;  %v4094_v41 = vadd.f32 %v4093_v56, %v3971_v19 }
 0x828   : > { %v4044_v30 = vpop.f32.mrf.mxu0  ;;  %v4095_v54 = vpop.f32.mrf.mxu1 }
 0x829   : > { %v4045_v53 = vadd.f32 %v4044_v30, %v3922_v24  ;;  %v4096_v1 = vadd.f32 %v4095_v54, %v3973_v47 }
 0x82a   : > { %v4046_v14 = vpop.f32.mrf.mxu0  ;;  %v4097_v52 = vpop.f32.mrf.mxu1 }
 0x82b   : > { %v4047_v17 = vadd.f32 %v4046_v14, %v3924_v33  ;;  %v4098_v12 = vadd.f32 %v4097_v52, %v3975_v61 }
 0x82c   : > { %v4050_v34 = vpop.f32.mrf.mxu0  ;;  %v4099_v59 = vpop.f32.mrf.mxu1 }
 0x82d   : > { %v4100_v38 = vadd.f32 %v4099_v59, %v3977_v60  ;;  %v4051_v2 = vadd.f32 %v4050_v34, %v3928_v35 }
 0x82e   : > { %v4052_v49 = vpop.f32.mrf.mxu0  ;;  %v4103_v46 = vpop.f32.mrf.mxu1 }
 0x82f   : > { %v4053_v29 = vadd.f32 %v4052_v49, %v3930_v10  ;;  %v4104_v58 = vadd.f32 %v4103_v46, %v3981_v13  ;;  %v4271_v46 = vpop.permute.xlu1 %4270 }
 0x830   : > { %v4054_v5 = vpop.f32.mrf.mxu0  ;;  %v4105_v27 = vpop.f32.mrf.mxu1 }
 0x831   : > { %v4106_v47 = vadd.f32 %v4105_v27, %v3983_v4  ;;  %v4055_v24 = vadd.f32 %v4054_v5, %v3932_v7 }
 0x832   : > { %v4056_v55 = vpop.f32.mrf.mxu0  ;;  %v4107_v48 = vpop.f32.mrf.mxu1 }
 0x833   : > { %v4108_v30 = vadd.f32 %v4107_v48, %v3985_v18  ;;  %v4057_v54 = vadd.f32 %v4056_v55, %v3934_v44 }
 0x834   : > { %v4170_v50 = vpop.f32.mrf.mxu0  ;;  %v4109_v25 = vpop.f32.mrf.mxu1 }
 0x835   : > { %v4242_v39 = vadd.f32 %v4170_v50, %v4041_v36  ;;  %v4110_v5 = vadd.f32 %v4109_v25, %v19214_v3 }
 0x836   : > { %v4172_v51 = vpop.f32.mrf.mxu0  ;;  %v4223_v16 = vpop.f32.mrf.mxu1 }
 0x837   : > { %v4243_v8 = vadd.f32 %v4172_v51, %v4043_v22  ;;  %v4244_v20 = vadd.f32 %v4223_v16, %v4094_v41  ;;  %v19216_v9 = vadd.f32 %v4261_v28, %v4242_v39 }
 0x838   : > { %v4174_v15 = vpop.f32.mrf.mxu0  ;;  %v4225_v11 = vpop.f32.mrf.mxu1 }
 0x839   : > { %v19218_v26 = vadd.f32 %v4261_v28, %v4243_v8  ;;  %v4246_v32 = vadd.f32 %v4174_v15, %v4045_v53  ;;  %v4245_v42 = vadd.f32 %v4225_v11, %v4096_v1  ;;  %v19220_v57 = vadd.f32 %v4261_v28, %v4244_v20  ;;  %v4276_v20 = vpop.permute.xlu0 %4275 }
 0x83a   : > { %v4176_v37 = vpop.f32.mrf.mxu0  ;;  %v4227_v19 = vpop.f32.mrf.mxu1  ;;  %v4294_v6 = vmul.f32 0.2, %v19216_v9 }
 0x83b   : > { %v4282_v23 = vadd.f32 %v4266_v0, %v4246_v32  ;;  %v4247_v40 = vadd.f32 %v4176_v37, %v4047_v17  ;;  %v4281_v61 = vadd.f32 %v4261_v28, %v4245_v42  ;;  %v4248_v33 = vadd.f32 %v4227_v19, %v4098_v12 }
 0x83c   : > { %v4180_v62 = vpop.f32.mrf.mxu0  ;;  %v4295_v56 = vmul.f32 0.2, %v19218_v26  ;;  %v4229_v10 = vpop.f32.mrf.mxu1  ;;  %v4296_v34 = vmul.f32 0.2, %v19220_v57  ;;  %v4310_v39 = vmax.f32 %v19216_v9, %v4294_v6 }
 0x83d   : > { %v4298_v60 = vmul.f32 0.2, %v4282_v23  ;;  %v4283_v35 = vadd.f32 %v4266_v0, %v4247_v40  ;;  %v4284_v13 = vadd.f32 %v4266_v0, %v4248_v33  ;;  %v4249_v14 = vadd.f32 %v4229_v10, %v4100_v38 }
 0x83e   : > { %v4182_v52 = vpop.f32.mrf.mxu0  ;;  %v4250_v4 = vadd.f32 %v4180_v62, %v4051_v2  ;;  %v4233_v7 = vpop.f32.mrf.mxu1  ;;  %v4297_v27 = vmul.f32 0.2, %v4281_v61  ;;  %v4311_v18 = vmax.f32 %v19218_v26, %v4295_v56  ;;  %v4312_v28 = vmax.f32 %v19220_v57, %v4296_v34  ;;  %v17113_v57 = vld [vmem:[#allocation3 + $0x4e8] ss:$16 sps:$4 sm:$0xff]   ;;  %v17124_v56 = vld [vmem:[#allocation3 + $0x6cc] ss:$16 sps:$4 sm:$0xff]  }
 0x83f   : > { %v4299_v59 = vmul.f32 0.2, %v4283_v35  ;;  %v4251_v49 = vadd.f32 %v4182_v52, %v4053_v29  ;;  %v4300_v36 = vmul.f32 0.2, %v4284_v13  ;;  %v4285_v50 = vadd.f32 %v4266_v0, %v4249_v14  ;;  %v17119_v14 = vld [vmem:[#allocation3 + $0x4c8] ss:$16 sps:$4 sm:$0xff]  }
 0x840   : > { %v4184_v22 = vpop.f32.mrf.mxu0  ;;  %v4314_v44 = vmax.f32 %v4282_v23, %v4298_v60  ;;  %v4235_v48 = vpop.f32.mrf.mxu1  ;;  %v4252_v53 = vadd.f32 %v4233_v7, %v4104_v58  ;;  %v4286_v1 = vadd.f32 %v4271_v46, %v4250_v4  ;;  %v4313_v15 = vmax.f32 %v4281_v61, %v4297_v27  ;;  %v17116_v23 = vld [vmem:[#allocation3 + $0x6e8] ss:$16 sps:$4 sm:$0xff]   ;;  %v17121_v61 = vld [vmem:[#allocation3 + $0x4cc] ss:$16 sps:$4 sm:$0xff]  }
 0x841   : > { %v4287_v55 = vadd.f32 %v4271_v46, %v4251_v49  ;;  %v4315_v41 = vmax.f32 %v4283_v35, %v4299_v59  ;;  %v4301_v51 = vmul.f32 0.2, %v4285_v50  ;;  %v4253_v16 = vadd.f32 %v4235_v48, %v4106_v47  ;;  %v17122_v34 = vld [vmem:[#allocation3 + $0x6c8] ss:$16 sps:$4 sm:$0xff]   ;;  %v17127_v4 = vld [vmem:[#allocation3 + $0x4ac] ss:$16 sps:$4 sm:$0xff]  }
 0x842   : > { %v4186_v8 = vpop.f32.mrf.mxu0  ;;  %v4254_v3 = vadd.f32 %v4184_v22, %v4055_v24  ;;  %v4237_v25 = vpop.f32.mrf.mxu1  ;;  %v4316_v12 = vmax.f32 %v4284_v13, %v4300_v36  ;;  %v19229_v29 = vpack.c.bf16 %v4314_v44, %v4310_v39  ;;  %v4288_v42 = vadd.f32 %v4271_v46, %v4252_v53  ;;  %v17136_v48 = vld [vmem:[#allocation3 + $0x68c] ss:$16 sps:$4 sm:$0xff]  }
 0x843   : > { %v4255_v17 = vadd.f32 %v4186_v8, %v4057_v54  ;;  %v4317_v9 = vmax.f32 %v4285_v50, %v4301_v51  ;;  %v4289_v11 = vadd.f32 %v4271_v46, %v4253_v16  ;;  %v4303_v26 = vmul.f32 0.2, %v4287_v55  ;;  %v17125_v50 = vld [vmem:[#allocation3 + $0x4a8] ss:$16 sps:$4 sm:$0xff]   ;;  %v17139_v53 = vld [vmem:[#allocation3 + $0x46c] ss:$16 sps:$4 sm:$0xff]  }
 0x844   : > { %v4290_v32 = vadd.f32 %v4276_v20, %v4254_v3  ;;  %v4256_v0 = vadd.f32 %v4237_v25, %v4108_v30  ;;  %v4239_v2 = vpop.f32.mrf.mxu1  ;;  %v4327_v58 = vpack.c.bf16 %v4315_v41, %v4311_v18  ;;  %v19231_v33 = vpack.c.bf16 %v4316_v12, %v4312_v28  ;;  %v17128_v18 = vld [vmem:[#allocation3 + $0x6a8] ss:$16 sps:$4 sm:$0xff]   ;;  %v17142_v16 = vld [vmem:[#allocation3 + $0x66c] ss:$16 sps:$4 sm:$0xff]  }
 0x845   : > { %v4291_v38 = vadd.f32 %v4276_v20, %v4255_v17  ;;  %v4257_v37 = vadd.f32 %v4239_v2, %v4110_v5  ;;  %v4329_v24 = vpack.c.bf16 %v4317_v9, %v4313_v15  ;;  %v4305_v62 = vmul.f32 0.2, %v4289_v11  ;;  %v17130_v5 = vld [vmem:[#allocation3 + $0x6ac] ss:$16 sps:$4 sm:$0xff]   ;;  %v17131_v41 = vld [vmem:[#allocation3 + $0x488] ss:$16 sps:$4 sm:$0xff]  }
 0x846   : > { %v4306_v19 = vmul.f32 0.2, %v4290_v32  ;;  %v4292_v40 = vadd.f32 %v4276_v20, %v4256_v0  ;;  %5135 = vmatprep.mubr.bf16.mxu0 %v4327_v58  ;;  %v4302_v60 = vmul.f32 0.2, %v4286_v1  ;;  %v4319_v35 = vmax.f32 %v4287_v55, %v4303_v26  ;;  %v17133_v55 = vld [vmem:[#allocation3 + $0x48c] ss:$16 sps:$4 sm:$0xff]  }
 0x847   : > { %v4307_v47 = vmul.f32 0.2, %v4291_v38  ;;  %v4293_v6 = vadd.f32 %v4276_v20, %v4257_v37  ;;  %5136 = vmatmul.mubr.bf16.vlgmr.msra.gmra.mxu0 %v19229_v29  ;;  %5188 = vmatprep.mubr.bf16.mxu1 %v4329_v24  ;;  %v4304_v54 = vmul.f32 0.2, %v4288_v42  ;;  %v4321_v7 = vmax.f32 %v4289_v11, %v4305_v62  ;;  %v17134_v51 = vld [vmem:[#allocation3 + $0x688] ss:$16 sps:$4 sm:$0xff]  }
 0x848   : > { %v4308_v10 = vmul.f32 0.2, %v4292_v40  ;;  %5210 = vmatpush1.bf16.msra.mxu0 %v17113_v57  ;;  %5189 = vmatmul.mubr.bf16.vlgmr.msra.gmra.mxu1 %v19231_v33  ;;  %v4322_v52 = vmax.f32 %v4290_v32, %v4306_v19  ;;  %v4318_v27 = vmax.f32 %v4286_v1, %v4302_v60  ;;  %v17137_v8 = vld [vmem:[#allocation3 + $0x468] ss:$16 sps:$4 sm:$0xff]   ;;  %v17145_v1 = vld [vmem:[#allocation3 + $0x44c] ss:$16 sps:$4 sm:$0xff]  }
 0x849   : > { %v4323_v30 = vmax.f32 %v4291_v38, %v4307_v47  ;;  %v4309_v13 = vmul.f32 0.2, %v4293_v6  ;;  %5263 = vmatpush1.bf16.msra.mxu1 %v17116_v23  ;;  %5211 = vmatprep.subr.bf16.mxu0 %v17121_v61  ;;  %v4320_v36 = vmax.f32 %v4288_v42, %v4304_v54  ;;  %v17140_v28 = vld [vmem:[#allocation3 + $0x668] ss:$16 sps:$4 sm:$0xff]   ;;  %v17148_v3 = vld [vmem:[#allocation3 + $0x64c] ss:$16 sps:$4 sm:$0xff]  }
 0x84a   : > { %v4324_v49 = vmax.f32 %v4292_v40, %v4308_v10  ;;  %5264 = vmatprep.subr.bf16.mxu1 %v17124_v56  ;;  %v19240_v39 = vpack.c.bf16 %v4322_v52, %v4318_v27  ;;  %v17143_v25 = vld [vmem:[#allocation3 + $0x448] ss:$16 sps:$4 sm:$0xff]   ;;  %v17151_v20 = vld [vmem:[#allocation3 + $0x42c] ss:$16 sps:$4 sm:$0xff]  }
 0x84b   : > { %v19235_v59 = vpack.c.bf16 %v4323_v30, %v4319_v35  ;;  %v4325_v46 = vmax.f32 %v4293_v6, %v4309_v13  ;;  %v17146_v17 = vld [vmem:[#allocation3 + $0x648] ss:$16 sps:$4 sm:$0xff]   ;;  %v17154_v15 = vld [vmem:[#allocation3 + $0x62c] ss:$16 sps:$4 sm:$0xff]  }
 0x84c   : > { %5212 = vmatpush1.bf16.msra.mxu0 %v17119_v14  ;;  %v19242_v44 = vpack.c.bf16 %v4324_v49, %v4320_v36  ;;  %v17149_v12 = vld [vmem:[#allocation3 + $0x428] ss:$16 sps:$4 sm:$0xff]   ;;  %v17157_v11 = vld [vmem:[#allocation3 + $0x40c] ss:$16 sps:$4 sm:$0xff]  }
 0x84d   : > { %5145 = vmatprep.mubr.bf16.mxu0 %v19235_v59  ;;  %v19238_v22 = vpack.c.bf16 %v4325_v46, %v4321_v7  ;;  %5265 = vmatpush1.bf16.msra.mxu1 %v17122_v34  ;;  %v17152_v9 = vld [vmem:[#allocation3 + $0x628] ss:$16 sps:$4 sm:$0xff]   ;;  %v17160_v26 = vld [vmem:[#allocation3 + $0x60c] ss:$16 sps:$4 sm:$0xff]  }
 0x84e   : > { %5213 = vmatprep.subr.bf16.mxu0 %v17127_v4  ;;  %5266 = vmatprep.subr.bf16.mxu1 %v17130_v5  ;;  %v17155_v32 = vld [vmem:[#allocation3 + $0x408] ss:$16 sps:$4 sm:$0xff]   ;;  %v17163_v38 = vld [vmem:[#allocation3 + $0x5ec] ss:$16 sps:$4 sm:$0xff]  }
 0x84f   : > { %5198 = vmatprep.mubr.bf16.mxu1 %v19238_v22  ;;  %5146 = vmatmul.mubr.bf16.gmra.mxu0 %v19240_v39  ;;  %v17158_v0 = vld [vmem:[#allocation3 + $0x608] ss:$16 sps:$4 sm:$0xff]   ;;  %v17166_v2 = vld [vmem:[#allocation3 + $0x7ec] ss:$16 sps:$4 sm:$0xff]  }
 0x850   : > { %5214 = vmatpush1.bf16.msra.mxu0 %v17125_v50  ;;  %5199 = vmatmul.mubr.bf16.gmra.mxu1 %v19242_v44  ;;  %v17161_v42 = vld [vmem:[#allocation3 + $0x5e8] ss:$16 sps:$4 sm:$0xff]   ;;  %v17172_v57 = vld [vmem:[#allocation3 + $0x7cc] ss:$16 sps:$4 sm:$0xff]  }
 0x851   : > { %5241 = vmatprep.mubr.bf16.mxu0 %v4327_v58  ;;  %5267 = vmatpush1.bf16.msra.mxu1 %v17128_v18  ;;  %v17164_v37 = vld [vmem:[#allocation3 + $0x7e8] ss:$16 sps:$4 sm:$0xff]   ;;  %v17169_v58 = vld [vmem:[#allocation3 + $0x5cc] ss:$16 sps:$4 sm:$0xff]  }
 0x852   : > { %5294 = vmatprep.mubr.bf16.mxu1 %v4329_v24  ;;  %5215 = vmatprep.subr.bf16.mxu0 %v17133_v55  ;;  %v17167_v23 = vld [vmem:[#allocation3 + $0x5c8] ss:$16 sps:$4 sm:$0xff]   ;;  %v17175_v40 = vld [vmem:[#allocation3 + $0x5ac] ss:$16 sps:$4 sm:$0xff]  }
 0x853   : > { %5268 = vmatprep.subr.bf16.mxu1 %v17136_v48  ;;  %v17170_v19 = vld [vmem:[#allocation3 + $0x7c8] ss:$16 sps:$4 sm:$0xff]   ;;  %v17178_v47 = vld [vmem:[#allocation3 + $0x7ac] ss:$16 sps:$4 sm:$0xff]  }
 0x854   : > { %5216 = vmatpush1.bf16.msra.mxu0 %v17131_v41  ;;  %v17173_v24 = vld [vmem:[#allocation3 + $0x5a8] ss:$16 sps:$4 sm:$0xff]   ;;  %v17181_v62 = vld [vmem:[#allocation3 + $0x58c] ss:$16 sps:$4 sm:$0xff]  }
 0x855   : > { %5269 = vmatpush1.bf16.msra.mxu1 %v17134_v51  ;;  %5217 = vmatprep.subr.bf16.mxu0 %v17139_v53  ;;  %v17176_v61 = vld [vmem:[#allocation3 + $0x7a8] ss:$16 sps:$4 sm:$0xff]   ;;  %v17184_v6 = vld [vmem:[#allocation3 + $0x78c] ss:$16 sps:$4 sm:$0xff]  }
 0x856   : > { %5270 = vmatprep.subr.bf16.mxu1 %v17142_v16  ;;  %v17179_v56 = vld [vmem:[#allocation3 + $0x588] ss:$16 sps:$4 sm:$0xff]   ;;  %v17187_v35 = vld [vmem:[#allocation3 + $0x56c] ss:$16 sps:$4 sm:$0xff]  }
 0x857   : > { %v17182_v60 = vld [vmem:[#allocation3 + $0x788] ss:$16 sps:$4 sm:$0xff]   ;;  %v17190_v10 = vld [vmem:[#allocation3 + $0x76c] ss:$16 sps:$4 sm:$0xff]  }
 0x858   : > { %5218 = vmatpush1.bf16.msra.mxu0 %v17137_v8  ;;  %v17185_v30 = vld [vmem:[#allocation3 + $0x568] ss:$16 sps:$4 sm:$0xff]   ;;  %v17193_v13 = vld [vmem:[#allocation3 + $0x54c] ss:$16 sps:$4 sm:$0xff]  }
 0x859   : > { %5271 = vmatpush1.bf16.msra.mxu1 %v17140_v28  ;;  %5219 = vmatprep.subr.bf16.mxu0 %v17145_v1  ;;  %v17188_v54 = vld [vmem:[#allocation3 + $0x768] ss:$16 sps:$4 sm:$0xff]   ;;  %v17196_v14 = vld [vmem:[#allocation3 + $0x74c] ss:$16 sps:$4 sm:$0xff]  }
 0x85a   : > { %5272 = vmatprep.subr.bf16.mxu1 %v17148_v3  ;;  %v17191_v52 = vld [vmem:[#allocation3 + $0x548] ss:$16 sps:$4 sm:$0xff]   ;;  %v17199_v4 = vld [vmem:[#allocation3 + $0x52c] ss:$16 sps:$4 sm:$0xff]  }
 0x85b   : > { %v17194_v34 = vld [vmem:[#allocation3 + $0x748] ss:$16 sps:$4 sm:$0xff]   ;;  %v17202_v7 = vld [vmem:[#allocation3 + $0x72c] ss:$16 sps:$4 sm:$0xff]  }
 0x85c   : > { %5220 = vmatpush1.bf16.msra.mxu0 %v17143_v25  ;;  %v17197_v49 = vld [vmem:[#allocation3 + $0x528] ss:$16 sps:$4 sm:$0xff]   ;;  %v17205_v5 = vld [vmem:[#allocation3 + $0x50c] ss:$16 sps:$4 sm:$0xff]  }
 0x85d   : > { %5273 = vmatpush1.bf16.msra.mxu1 %v17146_v17  ;;  %5221 = vmatprep.subr.bf16.mxu0 %v17151_v20  ;;  %v17200_v46 = vld [vmem:[#allocation3 + $0x728] ss:$16 sps:$4 sm:$0xff]   ;;  %v17208_v27 = vld [vmem:[#allocation3 + $0x70c] ss:$16 sps:$4 sm:$0xff]  }
 0x85e   : > { %5274 = vmatprep.subr.bf16.mxu1 %v17154_v15  ;;  %v17203_v36 = vld [vmem:[#allocation3 + $0x508] ss:$16 sps:$4 sm:$0xff]  }
 0x85f   : > { %v17206_v50 = vld [vmem:[#allocation3 + $0x708] ss:$16 sps:$4 sm:$0xff]  }
 0x860   : > { %5222 = vmatpush1.bf16.msra.mxu0 %v17149_v12 }
 0x861   : > { %5275 = vmatpush1.bf16.msra.mxu1 %v17152_v9  ;;  %5223 = vmatprep.subr.bf16.mxu0 %v17157_v11 }
 0x862   : > { %5276 = vmatprep.subr.bf16.mxu1 %v17160_v26 }
 0x864   : > { %5224 = vmatpush1.bf16.msra.mxu0 %v17155_v32 }
 0x865   : > { %5277 = vmatpush1.bf16.msra.mxu1 %v17158_v0  ;;  %5225 = vmatprep.subr.bf16.mxu0 %v17163_v38 }
 0x866   : > { %5278 = vmatprep.subr.bf16.mxu1 %v17166_v2 }
 0x868   : > { %5226 = vmatpush2.bf16.msra.mxu0 %v17161_v42 }
 0x869   : > { %5279 = vmatpush2.bf16.msra.mxu1 %v17164_v37  ;;  %5227 = vmatprep.subr.bf16.mxu0 %v17169_v58 }
 0x86a   : > { %5280 = vmatprep.subr.bf16.mxu1 %v17172_v57 }
 0x86c   : > { %5228 = vmatpush2.bf16.msra.mxu0 %v17167_v23 }
 0x86d   : > { %5281 = vmatpush2.bf16.msra.mxu1 %v17170_v19  ;;  %5229 = vmatprep.subr.bf16.mxu0 %v17175_v40 }
 0x86e   : > { %5282 = vmatprep.subr.bf16.mxu1 %v17178_v47 }
 0x870   : > { %5230 = vmatpush2.bf16.msra.mxu0 %v17173_v24 }
 0x871   : > { %5283 = vmatpush2.bf16.msra.mxu1 %v17176_v61  ;;  %5231 = vmatprep.subr.bf16.mxu0 %v17181_v62 }
 0x872   : > { %5284 = vmatprep.subr.bf16.mxu1 %v17184_v6  ;;  %v17209_v6 = vld [vmem:[%s21120_s3 + $0xd0] sm:$0xff]  }
 0x874   : > { %5232 = vmatpush2.bf16.msra.mxu0 %v17179_v56 }
 0x875   : > { %5285 = vmatpush2.bf16.msra.mxu1 %v17182_v60  ;;  %5233 = vmatprep.subr.bf16.mxu0 %v17187_v35 }
 0x876   : > { %5286 = vmatprep.subr.bf16.mxu1 %v17190_v10 }
 0x878   : > { %5234 = vmatpush2.bf16.msra.mxu0 %v17185_v30 }
 0x879   : > { %5287 = vmatpush2.bf16.msra.mxu1 %v17188_v54  ;;  %5235 = vmatprep.subr.bf16.mxu0 %v17193_v13 }
 0x87a   : > { %5288 = vmatprep.subr.bf16.mxu1 %v17196_v14 }
 0x87c   : > { %5236 = vmatpush2.bf16.msra.mxu0 %v17191_v52 }
 0x87d   : > { %5289 = vmatpush2.bf16.msra.mxu1 %v17194_v34  ;;  %5237 = vmatprep.subr.bf16.mxu0 %v17199_v4 }
 0x87e   : > { %5290 = vmatprep.subr.bf16.mxu1 %v17202_v7 }
 0x880   : > { %5238 = vmatpush2.bf16.msra.mxu0 %v17197_v49 }
 0x881   : > { %5291 = vmatpush2.bf16.msra.mxu1 %v17200_v46  ;;  %5239 = vmatprep.subr.bf16.mxu0 %v17205_v5 }
 0x882   : > { %5292 = vmatprep.subr.bf16.mxu1 %v17208_v27 }
 0x884   : > { %5240 = vmatpush2.bf16.msra.mxu0 %v17203_v36  ;;  %v17210_v36 = vld [vmem:[%s21120_s3 + $0xd8] sm:$0xff]  }
 0x885   : > { %5293 = vmatpush2.bf16.msra.mxu1 %v17206_v50 }
 0x887   : > { %5242 = vmatmul.mubr.bf16.vlgmr.msra.gmra.mxu0 %v19229_v29 }
 0x888   : > { %5251 = vmatprep.mubr.bf16.mxu0 %v19235_v59  ;;  %5295 = vmatmul.mubr.bf16.vlgmr.msra.gmra.mxu1 %v19231_v33 }
 0x889   : > { %5304 = vmatprep.mubr.bf16.mxu1 %v19238_v22 }
 0x88f   : > { %5252 = vmatmul.mubr.bf16.gmra.mxu0 %v19240_v39 }
 0x890   : > { %5305 = vmatmul.mubr.bf16.gmra.mxu1 %v19242_v44  ;;  %5511 = vmatprep.mubr.bf16.mxu0 %v21155_v31 }
 0x891   : > { %5564 = vmatprep.mubr.bf16.mxu1 %v21155_v31 }
 0x907   : > { %v5137_v18 = vpop.f32.mrf.mxu0 }
 0x908   : > { %v5190_v55 = vpop.f32.mrf.mxu1 }
 0x909   : > { %v5139_v48 = vpop.f32.mrf.mxu0  ;;  %v5191_v51 = vadd.f32 %v5190_v55, %v5137_v18 }
 0x90a   : > { %v5192_v41 = vpop.f32.mrf.mxu1 }
 0x90b   : > { %v5141_v29 = vpop.f32.mrf.mxu0  ;;  %v5193_v59 = vadd.f32 %v5192_v41, %v5139_v48  ;;  %v5315_v22 = vmul.f32 0.33333334, %v5191_v51 }
 0x90c   : > { %v5194_v53 = vpop.f32.mrf.mxu1 }
 0x90d   : > { %v5195_v16 = vadd.f32 %v5194_v53, %v5141_v29  ;;  %v5143_v33 = vpop.f32.mrf.mxu0  ;;  %v5316_v3 = vmul.f32 0.33333334, %v5193_v59 }
 0x90e   : > { %v5196_v8 = vpop.f32.mrf.mxu1 }
 0x90f   : > { %v5319_v28 = vmul.f32 0.33333334, %v5195_v16  ;;  %v5197_v39 = vadd.f32 %v5196_v8, %v5143_v33  ;;  %v5147_v1 = vpop.f32.mrf.mxu0 }
 0x910   : > { %v5200_v44 = vpop.f32.mrf.mxu1 }
 0x911   : > { %v19255_v25 = vpack.i.bf16 %v5319_v28, %v5315_v22  ;;  %v5320_v17 = vmul.f32 0.33333334, %v5197_v39  ;;  %v5149_v20 = vpop.f32.mrf.mxu0  ;;  %v5201_v9 = vadd.f32 %v5200_v44, %v5147_v1  ;;  %v5455_v62 = vpack.c.bf16 %v5319_v28, %v5315_v22 }
 0x912   : > { %v5202_v15 = vpop.f32.mrf.mxu1 }
 0x913   : > { %v19257_v12 = vpack.i.bf16 %v5320_v17, %v5316_v3  ;;  %v5151_v11 = vpop.f32.mrf.mxu0  ;;  %16156 = vrot.lane.b32.xlu1 %v19255_v25, %s18083_s20  ;;  %v5203_v32 = vadd.f32 %v5202_v15, %v5149_v20  ;;  %v5323_v42 = vmul.f32 0.33333334, %v5201_v9  ;;  %v5456_v61 = vpack.c.bf16 %v5320_v17, %v5316_v3 }
 0x914   : > { %v5204_v26 = vpop.f32.mrf.mxu1 }
 0x915   : > { %v5205_v0 = vadd.f32 %v5204_v26, %v5151_v11  ;;  %16161 = vrot.lane.b32.xlu0 %v19257_v12, %s18083_s20  ;;  %v5153_v38 = vpop.f32.mrf.mxu0  ;;  %v5324_v57 = vmul.f32 0.33333334, %v5203_v32  ;;  %v14920_v32 = vld [vmem:[%s21121_s4 + $0x90] sm:$0xff] }
 0x916   : > { %v5206_v2 = vpop.f32.mrf.mxu1 }
 0x917   : > { %v5327_v37 = vmul.f32 0.33333334, %v5205_v0  ;;  %v5207_v58 = vadd.f32 %v5206_v2, %v5153_v38  ;;  %v14919_v0 = vld [vmem:[%s21121_s4 + $0x88] sm:$0xff] }
 0x919   : > { %v5328_v23 = vmul.f32 0.33333334, %v5207_v58  ;;  %v19263_v19 = vpack.i.bf16 %v5327_v37, %v5323_v42  ;;  %v5459_v24 = vpack.c.bf16 %v5327_v37, %v5323_v42 }
 0x91b   : > { %16166 = vrot.lane.b32.xlu1 %v19263_v19, %s18083_s20  ;;  %v19267_v40 = vpack.i.bf16 %v5328_v23, %v5324_v57  ;;  %v5460_v47 = vpack.c.bf16 %v5328_v23, %v5324_v57 }
 0x91d   : > { %16171 = vrot.lane.b32.xlu0 %v19267_v40, %s18083_s20  ;;  %5491 = vmatprep.subr.bf16.mxu0 %v5460_v47 }
 0x91e   : > { %5492 = vmatpush1.bf16.msra.mxu0 %v5459_v24 }
 0x91f   : > { %5493 = vmatprep.subr.bf16.mxu0 %v5456_v61 }
 0x922   : > { %5494 = vmatpush1.bf16.msra.mxu0 %v5455_v62 }
 0x925   : > { %14924 = vmatmul.mubr.msk.bf16.vlgmr.msra.gmra.mxu0 %vm1055_vm12, %v17209_v6 }
 0x926   : > { %5521 = vmatprep.mubr.bf16.mxu0 %v21155_v31 }
 0x92d   : > { %14925 = vmatmul.mubr.msk.bf16.gmra.mxu0 %vm1055_vm12, %v17210_v36 }
 0x92e   : > { %5633 = vmatprep.mubr.bf16.mxu0 %v21155_v31 }
 0x947   : > { %v5243_v56 = vpop.f32.mrf.mxu0 }
 0x948   : > { %v5296_v60 = vpop.f32.mrf.mxu1 }
 0x949   : > { %v5245_v35 = vpop.f32.mrf.mxu0  ;;  %v5297_v41 = vadd.f32 %v5296_v60, %v5243_v56 }
 0x94a   : > { %v5298_v10 = vpop.f32.mrf.mxu1 }
 0x94b   : > { %v5247_v30 = vpop.f32.mrf.mxu0  ;;  %v5299_v29 = vadd.f32 %v5298_v10, %v5245_v35  ;;  %v5317_v1 = vmul.f32 0.33333334, %v5297_v41 }
 0x94c   : > { %v5300_v54 = vpop.f32.mrf.mxu1 }
 0x94d   : > { %v5249_v13 = vpop.f32.mrf.mxu0  ;;  %v5301_v5 = vadd.f32 %v5300_v54, %v5247_v30  ;;  %v5318_v44 = vmul.f32 0.33333334, %v5299_v29 }
 0x94e   : > { %v5302_v14 = vpop.f32.mrf.mxu1 }
 0x94f   : > { %v5253_v52 = vpop.f32.mrf.mxu0  ;;  %v5303_v50 = vadd.f32 %v5302_v14, %v5249_v13  ;;  %v5321_v33 = vmul.f32 0.33333334, %v5301_v5 }
 0x950   : > { %v5306_v34 = vpop.f32.mrf.mxu1 }
 0x951   : > { %v5255_v4 = vpop.f32.mrf.mxu0  ;;  %v5307_v49 = vadd.f32 %v5306_v34, %v5253_v52  ;;  %v5322_v8 = vmul.f32 0.33333334, %v5303_v50  ;;  %v16180_v15 = vpack.i.bf16 %v5321_v33, %v5317_v1  ;;  %v5457_v26 = vpack.c.bf16 %v5321_v33, %v5317_v1 }
 0x952   : > { %v5308_v7 = vpop.f32.mrf.mxu1 }
 0x953   : > { %v5257_v46 = vpop.f32.mrf.mxu0  ;;  %v5309_v18 = vadd.f32 %v5308_v7, %v5255_v4  ;;  %v5325_v53 = vmul.f32 0.33333334, %v5307_v49  ;;  %v5458_v9 = vpack.c.bf16 %v5322_v8, %v5318_v44  ;;  %v16190_v11 = vpack.i.bf16 %v5322_v8, %v5318_v44 }
 0x954   : > { %v5310_v27 = vpop.f32.mrf.mxu1 }
 0x955   : > { %v5311_v55 = vadd.f32 %v5310_v27, %v5257_v46  ;;  %v5259_v48 = vpop.f32.mrf.mxu0  ;;  %v5326_v22 = vmul.f32 0.33333334, %v5309_v18 }
 0x956   : > { %v5312_v51 = vpop.f32.mrf.mxu1 }
 0x957   : > { %v5329_v59 = vmul.f32 0.33333334, %v5311_v55  ;;  %v5313_v16 = vadd.f32 %v5312_v51, %v5259_v48 }
 0x959   : > { %v5330_v28 = vmul.f32 0.33333334, %v5313_v16  ;;  %v16175_v39 = vpack.i.bf16 %v5329_v59, %v5325_v53  ;;  %v5461_v20 = vpack.c.bf16 %v5329_v59, %v5325_v53 }
 0x95b   : > { %16176 = vrot.lane.b32.xlu1 %v16175_v39, %s18083_s20  ;;  %v5462_v3 = vpack.c.bf16 %v5330_v28, %v5326_v22  ;;  %v16185_v17 = vpack.i.bf16 %v5330_v28, %v5326_v22 }
 0x95d   : > { %5544 = vmatprep.subr.bf16.mxu1 %v5462_v3  ;;  %16186 = vrot.lane.b32.xlu0 %v16185_v17, %s18083_s20 }
 0x95e   : > { %5545 = vmatpush1.bf16.msra.mxu1 %v5461_v20 }
 0x95f   : > { %16181 = vrot.lane.b32.xlu1 %v16180_v15, %s18083_s20  ;;  %5546 = vmatprep.subr.bf16.mxu1 %v5458_v9 }
 0x961   : > { %16191 = vrot.lane.b32.xlu0 %v16190_v11, %s18083_s20 }
 0x962   : > { %5547 = vmatpush1.bf16.msra.mxu1 %v5457_v26 }
 0x963   : > { %16196 = vrot.lane.b32.xlu1 %v19263_v19, %s18084_s21 }
 0x965   : > { %16201 = vrot.lane.b32.xlu0 %v19267_v40, %s18084_s21  ;;  %14926 = vmatmul.mubr.msk.bf16.vlgmr.msra.gmra.mxu1 %vm1055_vm12, %v17209_v6 }
 0x966   : > { %5574 = vmatprep.mubr.bf16.mxu1 %v21155_v31 }
 0x967   : > { %16206 = vrot.lane.b32.xlu1 %v16175_v39, %s18084_s21 }
 0x969   : > { %16216 = vrot.lane.b32.xlu0 %v19257_v12, %s18084_s21  ;;  %v14921_v12 = vld [vmem:[%s21121_s4 + $0x98] sm:$0xff] }
 0x96b   : > { %16211 = vrot.lane.b32.xlu1 %v19255_v25, %s18084_s21  ;;  %v14918_v25 = vld [vmem:[%s21121_s4 + $0x80] sm:$0xff] }
 0x96d   : > { %16226 = vrot.lane.b32.xlu0 %v16185_v17, %s18084_s21  ;;  %14927 = vmatmul.mubr.msk.bf16.gmra.mxu1 %vm1055_vm12, %v17210_v36 }
 0x96e   : > { %5686 = vmatprep.mubr.bf16.mxu1 %v21155_v31 }
 0x96f   : > { %16221 = vrot.lane.b32.xlu1 %v16180_v15, %s18084_s21  ;;  %v17211_v15 = vld [vmem:[%s21120_s3 + $0xc0] sm:$0xff]  }
 0x971   : > { %16231 = vrot.lane.b32.xlu0 %v16190_v11, %s18084_s21 }
 0x973   : > { %5865 = vperm.xlu1 %15834, %v14920_v32  }
 0x975   : > { %5870 = vperm.xlu0 %15833, %v14921_v12  }
 0x977   : > { %5855 = vperm.xlu1 %15834, %v14918_v25  }
 0x979   : > { %5860 = vperm.xlu0 %15833, %v14919_v0  }
 0x985   : > { %v16157_v38 = vpop.permute.xlu1 %16156 }
 0x986   : > { %v16159_v35 = vunpack.i.h.bf16 %v16157_v38  ;;  %v16158_v10 = vunpack.i.l.bf16 %v16157_v38 }
 0x987   : > { %v16162_v2 = vpop.permute.xlu0 %16161 }
 0x988   : > { %v16164_v61 = vunpack.i.h.bf16 %v16162_v2  ;;  %v16163_v62 = vunpack.i.l.bf16 %v16162_v2 }
 0x98a   : > { %v5391_v4 = vsel %vm389_vm2, %v16158_v10, %v16163_v62  ;;  %v5392_v7 = vsel %vm389_vm2, %v16159_v35, %v16164_v61 }
 0x98b   : > { %v5448_v29 = vpack.c.bf16 %v5392_v7, %v5391_v4 }
 0x98d   : > { %v16167_v42 = vpop.permute.xlu1 %16166 }
 0x98e   : > { %v16169_v58 = vunpack.i.h.bf16 %v16167_v42  ;;  %v16168_v57 = vunpack.i.l.bf16 %v16167_v42 }
 0x98f   : > { %v16172_v37 = vpop.permute.xlu0 %16171 }
 0x990   : > { %v16174_v23 = vunpack.i.h.bf16 %v16172_v37  ;;  %v16173_v19 = vunpack.i.l.bf16 %v16172_v37 }
 0x992   : > { %v5393_v40 = vsel %vm389_vm2, %v16168_v57, %v16173_v19  ;;  %v5394_v47 = vsel %vm389_vm2, %v16169_v58, %v16174_v23 }
 0x993   : > { %v5452_v24 = vpack.c.bf16 %v5394_v47, %v5393_v40 }
 0x995   : > { %5613 = vmatprep.subr.bf16.mxu0 %v5452_v24 }
 0x9cd   : > { %v16177_v6 = vpop.permute.xlu1 %16176 }
 0x9ce   : > { %v16179_v56 = vunpack.i.h.bf16 %v16177_v6  ;;  %v16178_v60 = vunpack.i.l.bf16 %v16177_v6  ;;  %v17212_v6 = vld [vmem:[%s21120_s3 + $0xc8] sm:$0xff]  }
 0x9cf   : > { %v16187_v30 = vpop.permute.xlu0 %16186 }
 0x9d0   : > { %v5389_v54 = vsel %vm389_vm2, %v16173_v19, %v16178_v60  ;;  %v5390_v13 = vsel %vm389_vm2, %v16174_v23, %v16179_v56  ;;  %v16189_v14 = vunpack.i.h.bf16 %v16187_v30  ;;  %v16188_v52 = vunpack.i.l.bf16 %v16187_v30 }
 0x9d1   : > { %v16182_v34 = vpop.permute.xlu1 %16181  ;;  %v5453_v49 = vpack.c.bf16 %v5390_v13, %v5389_v54 }
 0x9d2   : > { %v5398_v46 = vsel %vm389_vm2, %v16189_v14, %v16169_v58  ;;  %v5397_v5 = vsel %vm389_vm2, %v16188_v52, %v16168_v57  ;;  %v16184_v27 = vunpack.i.h.bf16 %v16182_v34  ;;  %v16183_v36 = vunpack.i.l.bf16 %v16182_v34 }
 0x9d3   : > { %v16192_v50 = vpop.permute.xlu0 %16191  ;;  %v5451_v18 = vpack.c.bf16 %v5398_v46, %v5397_v5  ;;  %v5385_v55 = vsel %vm389_vm2, %v16178_v60, %v16188_v52  ;;  %v5386_v48 = vsel %vm389_vm2, %v16179_v56, %v16189_v14 }
 0x9d4   : > { %v16194_v41 = vunpack.i.h.bf16 %v16192_v50  ;;  %v16193_v51 = vunpack.i.l.bf16 %v16192_v50  ;;  %v5454_v59 = vpack.c.bf16 %v5386_v48, %v5385_v55  ;;  %v5388_v16 = vsel %vm389_vm2, %v16164_v61, %v16184_v27 }
 0x9d5   : > { %v16197_v53 = vpop.permute.xlu1 %16196  ;;  %5614 = vmatpush1.bf16.msra.mxu0 %v5451_v18  ;;  %v5387_v22 = vsel %vm389_vm2, %v16163_v62, %v16183_v36 }
 0x9d6   : > { %v5396_v33 = vsel %vm389_vm2, %v16194_v41, %v16159_v35  ;;  %v5395_v8 = vsel %vm389_vm2, %v16193_v51, %v16158_v10  ;;  %5615 = vmatprep.subr.bf16.mxu0 %v5448_v29  ;;  %5666 = vmatprep.subr.bf16.mxu1 %v5454_v59  ;;  %v5383_v1 = vsel %vm389_vm2, %v16183_v36, %v16193_v51  ;;  %v16199_v9 = vunpack.i.h.bf16 %v16197_v53  ;;  %v17213_v59 = vld [vmem:[%s21120_s3 + $0xe0] sm:$0xff]  }
 0x9d7   : > { %v16202_v28 = vpop.permute.xlu0 %16201  ;;  %v5447_v39 = vpack.c.bf16 %v5396_v33, %v5395_v8  ;;  %v5384_v44 = vsel %vm389_vm2, %v16184_v27, %v16194_v41  ;;  %5667 = vmatpush1.bf16.msra.mxu1 %v5453_v49  ;;  %v16198_v11 = vunpack.i.l.bf16 %v16197_v53  ;;  %v5449_v25 = vpack.c.bf16 %v5388_v16, %v5387_v22  ;;  %v17214_v16 = vld [vmem:[%s21120_s3 + $0xe8] sm:$0xff]  }
 0x9d8   : > { %v16204_v3 = vunpack.i.h.bf16 %v16202_v28  ;;  %v16203_v17 = vunpack.i.l.bf16 %v16202_v28  ;;  %v5450_v20 = vpack.c.bf16 %v5384_v44, %v5383_v1 }
 0x9d9   : > { %v16207_v26 = vpop.permute.xlu1 %16206  ;;  %5616 = vmatpush1.bf16.msra.mxu0 %v5447_v39 }
 0x9da   : > { %v16209_v32 = vunpack.i.h.bf16 %v16207_v26  ;;  %v16208_v12 = vunpack.i.l.bf16 %v16207_v26  ;;  %5668 = vmatprep.subr.bf16.mxu1 %v5450_v20  ;;  %v5442_v0 = vsel %vm402_vm3, %v16199_v9, %v16204_v3  ;;  %v5441_v38 = vsel %vm402_vm3, %v16198_v11, %v16203_v17 }
 0x9db   : > { %v16217_v2 = vpop.permute.xlu0 %16216  ;;  %5669 = vmatpush1.bf16.msra.mxu1 %v5449_v25  ;;  %v5711_v19 = vpack.c.bf16 %v5442_v0, %v5441_v38 }
 0x9dc   : > { %14930 = vmatmul.mubr.msk.bf16.vlgmr.msra.gmra.mxu0 %vm1055_vm12, %v17211_v15  ;;  %v5437_v42 = vsel %vm402_vm3, %v16203_v17, %v16208_v12  ;;  %v5438_v37 = vsel %vm402_vm3, %v16204_v3, %v16209_v32  ;;  %v16218_v40 = vunpack.i.l.bf16 %v16217_v2  ;;  %v16219_v56 = vunpack.i.h.bf16 %v16217_v2 }
 0x9dd   : > { %v16212_v58 = vpop.permute.xlu1 %16211  ;;  %v5712_v57 = vpack.c.bf16 %v5438_v37, %v5437_v42  ;;  %5643 = vmatprep.mubr.bf16.mxu0 %v21155_v31 }
 0x9de   : > { %v16213_v23 = vunpack.i.l.bf16 %v16212_v58  ;;  %v16214_v47 = vunpack.i.h.bf16 %v16212_v58  ;;  %14932 = vmatmul.mubr.msk.bf16.vlgmr.msra.gmra.mxu1 %vm1055_vm12, %v17211_v15 }
 0x9df   : > { %v16227_v24 = vpop.permute.xlu0 %16226  ;;  %5743 = vmatprep.subr.bf16.mxu0 %v5712_v57  ;;  %5696 = vmatprep.mubr.bf16.mxu1 %v21155_v31 }
 0x9e0   : > { %v16229_v61 = vunpack.i.h.bf16 %v16227_v24  ;;  %v16228_v62 = vunpack.i.l.bf16 %v16227_v24  ;;  %5744 = vmatpush1.bf16.msra.mxu0 %v5711_v19  ;;  %v5439_v60 = vsel %vm402_vm3, %v16213_v23, %v16218_v40  ;;  %v5440_v14 = vsel %vm402_vm3, %v16214_v47, %v16219_v56 }
 0x9e1   : > { %v16222_v35 = vpop.permute.xlu1 %16221  ;;  %v5707_v41 = vpack.c.bf16 %v5440_v14, %v5439_v60 }
 0x9e2   : > { %v5434_v10 = vsel %vm402_vm3, %v16209_v32, %v16229_v61  ;;  %v5433_v30 = vsel %vm402_vm3, %v16208_v12, %v16228_v62  ;;  %v16224_v54 = vunpack.i.h.bf16 %v16222_v35  ;;  %v16223_v13 = vunpack.i.l.bf16 %v16222_v35 }
 0x9e3   : > { %v16232_v52 = vpop.permute.xlu0 %16231  ;;  %v5445_v34 = vsel %vm402_vm3, %v16228_v62, %v16198_v11  ;;  %v5446_v4 = vsel %vm402_vm3, %v16229_v61, %v16199_v9  ;;  %v5713_v7 = vpack.c.bf16 %v5434_v10, %v5433_v30 }
 0x9e4   : > { %v16234_v49 = vunpack.i.h.bf16 %v16232_v52  ;;  %v16233_v46 = vunpack.i.l.bf16 %v16232_v52  ;;  %14931 = vmatmul.mubr.msk.bf16.gmra.mxu0 %vm1055_vm12, %v17212_v6  ;;  %v5714_v5 = vpack.c.bf16 %v5446_v4, %v5445_v34  ;;  %v5435_v27 = vsel %vm402_vm3, %v16218_v40, %v16223_v13 }
 0x9e5   : > { %v5436_v36 = vsel %vm402_vm3, %v16219_v56, %v16224_v54  ;;  %5763 = vmatprep.mubr.bf16.mxu0 %v21155_v31  ;;  %v5513_v33 = vpop.f32.mrf.mxu0 }
 0x9e6   : > { %v5432_v50 = vsel %vm402_vm3, %v16224_v54, %v16234_v49  ;;  %v5431_v18 = vsel %vm402_vm3, %v16223_v13, %v16233_v46  ;;  %5796 = vmatprep.subr.bf16.mxu1 %v5714_v5  ;;  %v5708_v55 = vpack.c.bf16 %v5436_v36, %v5435_v27  ;;  %v5443_v48 = vsel %vm402_vm3, %v16233_v46, %v16213_v23 }
 0x9e7   : > { %14933 = vmatmul.mubr.msk.bf16.gmra.mxu1 %vm1055_vm12, %v17212_v6  ;;  %v5444_v51 = vsel %vm402_vm3, %v16234_v49, %v16214_v47  ;;  %v5709_v53 = vpack.c.bf16 %v5432_v50, %v5431_v18  ;;  %v5515_v22 = vpop.f32.mrf.mxu0 }
 0x9e8   : > { %5797 = vmatpush1.bf16.msra.mxu1 %v5713_v7  ;;  %5745 = vmatprep.subr.bf16.mxu0 %v5708_v55  ;;  %v5710_v29 = vpack.c.bf16 %v5444_v51, %v5443_v48 }
 0x9e9   : > { %5746 = vmatpush1.bf16.msra.mxu0 %v5707_v41  ;;  %5816 = vmatprep.mubr.bf16.mxu1 %v21155_v31  ;;  %v5517_v39 = vpop.f32.mrf.mxu0 }
 0x9ea   : > { %5798 = vmatprep.subr.bf16.mxu1 %v5710_v29 }
 0x9eb   : > { %v5519_v44 = vpop.f32.mrf.mxu0 }
 0x9ec   : > { %5799 = vmatpush1.bf16.msra.mxu1 %v5709_v53  ;;  %14936 = vmatmul.mubr.msk.bf16.vlgmr.msra.gmra.mxu0 %vm1055_vm12, %v17213_v59 }
 0x9ed   : > { %5773 = vmatprep.mubr.bf16.mxu0 %v21155_v31  ;;  %v5523_v17 = vpop.f32.mrf.mxu0 }
 0x9ee   : > { %v19413_v24 = vpop.permute.xlu1 %5865 }
 0x9ef   : > { %14938 = vmatmul.mubr.msk.bf16.vlgmr.msra.gmra.mxu1 %vm1055_vm12, %v17213_v59  ;;  %v5525_v15 = vpop.f32.mrf.mxu0 }
 0x9f0   : > { %5826 = vmatprep.mubr.bf16.mxu1 %v21155_v31  ;;  %v19415_v60 = vpop.permute.xlu0 %5870 }
 0x9f1   : > { %v5527_v11 = vpop.f32.mrf.mxu0 }
 0x9f2   : > { %v5856_v14 = vpop.permute.xlu1 %5855 }
 0x9f3   : > { %v19409_v32 = vpop.f32.mrf.mxu0 }
 0x9f4   : > { %14937 = vmatmul.mubr.msk.bf16.gmra.mxu0 %vm1055_vm12, %v17214_v16  ;;  %v19417_v36 = vpop.permute.xlu0 %5860 }
 0x9f5   : > { %6117 = vmatprep.mubr.bf16.mxu0 %v21155_v31 }
 0x9f7   : > { %14939 = vmatmul.mubr.msk.bf16.gmra.mxu1 %vm1055_vm12, %v17214_v16 }
 0x9f8   : > { %6170 = vmatprep.mubr.bf16.mxu1 %v21155_v31 }
 0xa25   : > { %v5566_v8 = vpop.f32.mrf.mxu1 }
 0xa27   : > { %v5568_v28 = vpop.f32.mrf.mxu1 }
 0xa29   : > { %v5570_v1 = vpop.f32.mrf.mxu1 }
 0xa2b   : > { %v5572_v3 = vpop.f32.mrf.mxu1 }
 0xa2d   : > { %v5576_v20 = vpop.f32.mrf.mxu1 }
 0xa2f   : > { %v19405_v9 = vpop.f32.mrf.mxu1 }
 0xa31   : > { %v19407_v26 = vpop.f32.mrf.mxu1 }
 0xa33   : > { %v19411_v25 = vpop.f32.mrf.mxu1 }
 0xa9c   : > { %v5635_v12 = vpop.f32.mrf.mxu0 }
 0xa9d   : > { %v5636_v6 = vadd.f32 %v5635_v12, %v5513_v33 }
 0xa9e   : > { %v5637_v0 = vpop.f32.mrf.mxu0  ;;  %v5688_v38 = vpop.f32.mrf.mxu1 }
 0xa9f   : > { %v5638_v10 = vadd.f32 %v5637_v0, %v5515_v22  ;;  %v5689_v51 = vadd.f32 %v5688_v38, %v5566_v8 }
 0xaa0   : > { %v5639_v2 = vpop.f32.mrf.mxu0  ;;  %v5690_v42 = vpop.f32.mrf.mxu1 }
 0xaa1   : > { %v5640_v52 = vadd.f32 %v5639_v2, %v5517_v39  ;;  %v5691_v29 = vadd.f32 %v5690_v42, %v5568_v28 }
 0xaa2   : > { %v5641_v37 = vpop.f32.mrf.mxu0  ;;  %v5692_v58 = vpop.f32.mrf.mxu1 }
 0xaa3   : > { %v5642_v46 = vadd.f32 %v5641_v37, %v5519_v44  ;;  %v5693_v16 = vadd.f32 %v5692_v58, %v5570_v1 }
 0xaa4   : > { %v5645_v57 = vpop.f32.mrf.mxu0  ;;  %v5694_v23 = vpop.f32.mrf.mxu1 }
 0xaa5   : > { %v5695_v33 = vadd.f32 %v5694_v23, %v5572_v3  ;;  %v5646_v22 = vadd.f32 %v5645_v57, %v5523_v17 }
 0xaa6   : > { %v5647_v19 = vpop.f32.mrf.mxu0 }
 0xaa7   : > { %v5698_v40 = vpop.f32.mrf.mxu1  ;;  %v5648_v12 = vadd.f32 %v5647_v19, %v5525_v15 }
 0xaa8   : > { %v5649_v47 = vpop.f32.mrf.mxu0 }
 0xaa9   : > { %v5700_v61 = vpop.f32.mrf.mxu1 }
 0xaaa   : > { %v5651_v62 = vpop.f32.mrf.mxu0  ;;  %v5701_v38 = vadd.f32 %v5700_v61, %v19405_v9 }
 0xaab   : > { %v5702_v56 = vpop.f32.mrf.mxu1  ;;  %v5652_v15 = vadd.f32 %v5651_v62, %v19409_v32 }
 0xaac   : > { %v5765_v35 = vpop.f32.mrf.mxu0  ;;  %v5703_v58 = vadd.f32 %v5702_v56, %v19407_v26 }
 0xaad   : > { %v5704_v30 = vpop.f32.mrf.mxu1  ;;  %v5837_v54 = vadd.f32 %v5765_v35, %v5636_v6  ;;  %v5699_v35 = vadd.f32 %v5698_v40, %v5576_v20 }
 0xaae   : > { %v5767_v13 = vpop.f32.mrf.mxu0  ;;  %v5705_v57 = vadd.f32 %v5704_v30, %v19411_v25 }
 0xaaf   : > { %v5818_v34 = vpop.f32.mrf.mxu1  ;;  %v5838_v4 = vadd.f32 %v5767_v13, %v5638_v10  ;;  %v5873_v7 = vadd.f32 %v5856_v14, %v5837_v54  ;;  %v5650_v10 = vadd.f32 %v5649_v47, %v5527_v11 }
 0xab0   : > { %v5769_v49 = vpop.f32.mrf.mxu0  ;;  %v5839_v0 = vadd.f32 %v5818_v34, %v5689_v51 }
 0xab1   : > { %v5820_v5 = vpop.f32.mrf.mxu1  ;;  %v5841_v27 = vadd.f32 %v5769_v49, %v5640_v52  ;;  %v5874_v50 = vadd.f32 %v5856_v14, %v5838_v4  ;;  %v5889_v53 = vmul.f32 0.2, %v5873_v7 }
 0xab2   : > { %v5771_v18 = vpop.f32.mrf.mxu0  ;;  %v5840_v1 = vadd.f32 %v5820_v5, %v5691_v29  ;;  %v19430_v11 = vadd.f32 %v5856_v14, %v5839_v0 }
 0xab3   : > { %v5877_v55 = vadd.f32 %v19417_v36, %v5841_v27  ;;  %v5822_v48 = vpop.f32.mrf.mxu1  ;;  %v5842_v41 = vadd.f32 %v5771_v18, %v5642_v46  ;;  %v5890_v2 = vmul.f32 0.2, %v5874_v50  ;;  %v19424_v42 = vmax.f32 %v5873_v7, %v5889_v53 }
 0xab4   : > { %v5775_v59 = vpop.f32.mrf.mxu0  ;;  %v5843_v3 = vadd.f32 %v5822_v48, %v5693_v16  ;;  %v5876_v25 = vadd.f32 %v5856_v14, %v5840_v1 }
 0xab5   : > { %v5878_v39 = vadd.f32 %v19417_v36, %v5842_v41  ;;  %v5824_v44 = vpop.f32.mrf.mxu1  ;;  %v5893_v37 = vmul.f32 0.2, %v5877_v55  ;;  %v5845_v8 = vadd.f32 %v5775_v59, %v5646_v22  ;;  %v19432_v19 = vmax.f32 %v5874_v50, %v5890_v2 }
 0xab6   : > { %v5777_v6 = vpop.f32.mrf.mxu0  ;;  %v5844_v61 = vadd.f32 %v5824_v44, %v5695_v33  ;;  %v5921_v32 = vsel %vm343_vm0, %v19424_v42, 0.0  ;;  %v5879_v62 = vadd.f32 %v19417_v36, %v5843_v3 }
 0xab7   : > { %v5894_v54 = vmul.f32 0.2, %v5878_v39  ;;  %v5828_v28 = vpop.f32.mrf.mxu1  ;;  %v5881_v23 = vadd.f32 %v19413_v24, %v5845_v8  ;;  %v19434_v40 = vmax.f32 %v5877_v55, %v5893_v37  ;;  %v5846_v13 = vadd.f32 %v5777_v6, %v5648_v12 }
 0xab8   : > { %v5779_v17 = vpop.f32.mrf.mxu0  ;;  %v5847_v9 = vadd.f32 %v5828_v28, %v5699_v35  ;;  %v5922_v5 = vsel %vm344_vm1, %v19432_v19, 0.0  ;;  %v5880_v18 = vadd.f32 %v19417_v36, %v5844_v61  ;;  %v5891_v36 = vmul.f32 0.2, %v19430_v11 }
 0xab9   : > { %v5830_v20 = vpop.f32.mrf.mxu1  ;;  %v19436_v47 = vmax.f32 %v5878_v39, %v5894_v54  ;;  %v5897_v30 = vmul.f32 0.2, %v5881_v23  ;;  %v5882_v4 = vadd.f32 %v19413_v24, %v5846_v13  ;;  %v5849_v49 = vadd.f32 %v5779_v17, %v5650_v10 }
 0xaba   : > { %v5848_v52 = vadd.f32 %v5830_v20, %v5701_v38  ;;  %v5781_v56 = vpop.f32.mrf.mxu0  ;;  %v5883_v34 = vadd.f32 %v19413_v24, %v5847_v9  ;;  %v5925_v14 = vsel %vm343_vm0, %v19434_v40, 0.0  ;;  %v5896_v2 = vmul.f32 0.2, %v5880_v18 }
 0xabb   : > { %v5832_v26 = vpop.f32.mrf.mxu1  ;;  %v5850_v50 = vadd.f32 %v5781_v56, %v5652_v15  ;;  %v5898_v55 = vmul.f32 0.2, %v5882_v4  ;;  %v5885_v48 = vadd.f32 %v19415_v60, %v5849_v49  ;;  %v5913_v41 = vmax.f32 %v5881_v23, %v5897_v30 }
 0xabc   : > { %v5884_v7 = vadd.f32 %v19413_v24, %v5848_v52  ;;  %v5851_v27 = vadd.f32 %v5832_v26, %v5703_v58  ;;  %v5926_v24 = vsel %vm344_vm1, %v19436_v47, 0.0  ;;  %v5899_v59 = vmul.f32 0.2, %v5883_v34 }
 0xabd   : > { %v5834_v46 = vpop.f32.mrf.mxu1  ;;  %v5886_v29 = vadd.f32 %v19415_v60, %v5850_v50  ;;  %v5901_v33 = vmul.f32 0.2, %v5885_v48  ;;  %v19460_v22 = vpack.i.bf16 %v5925_v14, %v5921_v32  ;;  %v5914_v39 = vmax.f32 %v5882_v4, %v5898_v55  ;;  %v17215_v50 = vld [vmem:[%s21120_s3 + $0x100] sm:$0xff]  }
 0xabe   : > { %v5887_v51 = vadd.f32 %v19415_v60, %v5851_v27  ;;  %v5852_v53 = vadd.f32 %v5834_v46, %v5705_v57  ;;  %v5900_v16 = vmul.f32 0.2, %v5884_v7  ;;  %v19466_v6 = vpack.i.bf16 %v5926_v24, %v5922_v5 }
 0xabf   : > { %v5902_v12 = vmul.f32 0.2, %v5886_v29  ;;  %v5917_v37 = vmax.f32 %v5885_v48, %v5901_v33  ;;  %16236 = vrot.lane.b32.xlu1 %v19460_v22, %s18083_s20  ;;  %v5895_v35 = vmul.f32 0.2, %v5879_v62  ;;  %v5892_v28 = vmul.f32 0.2, %v5876_v25 }
 0xac0   : > { %v5903_v44 = vmul.f32 0.2, %v5887_v51  ;;  %v5888_v0 = vadd.f32 %v19415_v60, %v5852_v53  ;;  %v5929_v38 = vsel %vm343_vm0, %v5913_v41, 0.0  ;;  %v5915_v1 = vmax.f32 %v5883_v34, %v5899_v59  ;;  %16241 = vrot.lane.b32.xlu0 %v19466_v6, %s18083_s20  ;;  %v14954_v53 = vld [vmem:[%s21121_s4 + $0xb0] sm:$0xff]  ;;  %v14955_v59 = vld [vmem:[%s21121_s4 + $0xb8] sm:$0xff] }
 0xac1   : > { %v5918_v54 = vmax.f32 %v5886_v29, %v5902_v12  ;;  %v5933_v60 = vsel %vm343_vm0, %v5917_v37, 0.0  ;;  %v5930_v17 = vsel %vm344_vm1, %v5914_v39, 0.0  ;;  %v5916_v58 = vmax.f32 %v5884_v7, %v5900_v16  ;;  %v14953_v29 = vld [vmem:[%s21121_s4 + $0xa8] sm:$0xff]  ;;  %vm19949_vm0 = vmpackc.low %vm339_vm10, %vm339_vm10 }
 0xac2   : > { %v5919_v10 = vmax.f32 %v5887_v51, %v5903_v44  ;;  %v5904_v8 = vmul.f32 0.2, %v5888_v0  ;;  %v5912_v20 = vmax.f32 %v5880_v18, %v5896_v2  ;;  %v16245_v9 = vpack.i.bf16 %v5933_v60, %v5929_v38  ;;  %v14952_v51 = vld [vmem:[%s21121_s4 + $0xa0] sm:$0xff] }
 0xac3   : > { %v5934_v15 = vsel %vm344_vm1, %v5918_v54, 0.0  ;;  %v14959_v61 = vpack.c.bf16 %v5918_v54, %v5914_v39  ;;  %v5911_v26 = vmax.f32 %v5879_v62, %v5895_v35  ;;  %v14962_v56 = vpack.c.bf16 %v5917_v37, %v5913_v41  ;;  %v17216_v41 = vld [vmem:[%s21120_s3 + $0x108] sm:$0xff]   ;;  %vm19956_vm1 = vmpackc.low %vm342_vm13, %vm342_vm13 }
 0xac4   : > { %v5920_v57 = vmax.f32 %v5888_v0, %v5904_v8  ;;  %v16260_v52 = vpack.i.bf16 %v5934_v15, %v5930_v17  ;;  %v5935_v32 = vsel %vm345_vm5, %v5919_v10, 0.0  ;;  %v5908_v34 = vmax.f32 %v5876_v25, %v5892_v28  ;;  %16246 = vrot.lane.b32.xlu1 %v16245_v9, %s18083_s20 }
 0xac5   : > { %14960 = vmatprep.subr.msk.bf16.mxu0 %vm19477_vm6, %v14959_v61  ;;  %v14965_v4 = vpack.c.bf16 %v19436_v47, %v19432_v19  ;;  %v5907_v62 = vmax.f32 %v19430_v11, %v5891_v36  ;;  %v5931_v25 = vsel %vm345_vm5, %v5915_v1, 0.0  ;;  %v14976_v49 = vpack.c.bf16 %v5919_v10, %v5915_v1 }
 0xac6   : > { %v14973_v30 = vpack.c.bf16 %v5920_v57, %v5916_v58  ;;  %v5936_v46 = vsel %vm346_vm4, %v5920_v57, 0.0  ;;  %14963 = vmatpush1.bf16.msk.msra.mxu0 %vm19488_vm7, %v14962_v56  ;;  %16261 = vrot.lane.b32.xlu0 %v16260_v52, %s18083_s20  ;;  %v14979_v19 = vpack.c.bf16 %v5912_v20, %v5908_v34  ;;  %v16250_v11 = vpack.i.bf16 %v5935_v32, %v5931_v25 }
 0xac7   : > { %14966 = vmatprep.subr.msk.bf16.mxu0 %vm19477_vm6, %v14965_v4  ;;  %v14968_v47 = vpack.c.bf16 %v19434_v40, %v19424_v42  ;;  %v5927_v5 = vsel %vm345_vm5, %v5911_v26, 0.0  ;;  %v5932_v14 = vsel %vm346_vm4, %v5916_v58, 0.0  ;;  %v5923_v42 = vsel %vm345_vm5, %v5907_v62, 0.0 }
 0xac8   : > { %14974 = vmatprep.subr.msk.bf16.mxu1 %vm19495_vm8, %v14973_v30  ;;  %16251 = vrot.lane.b32.xlu1 %v16250_v11, %s18083_s20  ;;  %v16265_v27 = vpack.i.bf16 %v5936_v46, %v5932_v14  ;;  %v14982_v40 = vpack.c.bf16 %v5911_v26, %v5907_v62  ;;  %v5928_v24 = vsel %vm346_vm4, %v5912_v20, 0.0  ;;  %v16255_v18 = vpack.i.bf16 %v5927_v5, %v5923_v42 }
 0xac9   : > { %14977 = vmatpush1.bf16.msk.msra.mxu1 %vm19509_vm9, %v14976_v49  ;;  %v5924_v55 = vsel %vm346_vm4, %v5908_v34, 0.0  ;;  %vm19970_vm4 = vmpackc.low %vm341_vm14, %vm341_vm14  ;;  %vm335_vm5 = vcmp.lt.s32.totalorder %v18208_v21, 8  ;;  %vm336_vm6 = vcmp.lt.s32.totalorder %v21156_v63, 8 }
 0xaca   : > { %14980 = vmatprep.subr.msk.bf16.mxu1 %vm19495_vm8, %v14979_v19  ;;  %14969 = vmatpush1.bf16.msk.msra.mxu0 %vm19488_vm7, %v14968_v47  ;;  %v16270_v48 = vpack.i.bf16 %v5928_v24, %v5924_v55  ;;  %vm337_vm7 = vcmp.lt.s32.totalorder %v21164_v45, 8  ;;  %vm338_vm8 = vcmp.lt.s32.totalorder %v21157_v43, 8 }
 0xacb   : > { %16266 = vrot.lane.b32.xlu0 %v16265_v27, %s18083_s20 }
 0xacc   : > { %16256 = vrot.lane.b32.xlu1 %v16255_v18, %s18083_s20 }
 0xacd   : > { %14983 = vmatpush1.bf16.msk.msra.mxu1 %vm19509_vm9, %v14982_v40  ;;  %14970 = vmatmul.mubr.msk.bf16.vlgmr.msra.gmra.mxu0 %vm1055_vm12, %v17215_v50  ;;  %vm20393_vm9 = vmpackc.low %vm336_vm6, %vm336_vm6 }
 0xace   : > { %6127 = vmatprep.mubr.bf16.mxu0 %v21155_v31 }
 0xacf   : > { %16271 = vrot.lane.b32.xlu0 %v16270_v48, %s18083_s20 }
 0xad0   : > { %14984 = vmatmul.mubr.msk.bf16.vlgmr.msra.gmra.mxu1 %vm1055_vm12, %v17215_v50  ;;  %16276 = vrot.lane.b32.xlu1 %v16245_v9, %s18084_s21 }
 0xad1   : > { %6180 = vmatprep.mubr.bf16.mxu1 %v21155_v31 }
 0xad3   : > { %16281 = vrot.lane.b32.xlu0 %v16260_v52, %s18084_s21 }
 0xad4   : > { %16286 = vrot.lane.b32.xlu1 %v16250_v11, %s18084_s21 }
 0xad5   : > { %14971 = vmatmul.mubr.msk.bf16.gmra.mxu0 %vm1055_vm12, %v17216_v41 }
 0xad6   : > { %6239 = vmatprep.mubr.bf16.mxu0 %v21155_v31 }
 0xad7   : > { %16296 = vrot.lane.b32.xlu0 %v19466_v6, %s18084_s21 }
 0xad8   : > { %14985 = vmatmul.mubr.msk.bf16.gmra.mxu1 %vm1055_vm12, %v17216_v41  ;;  %16291 = vrot.lane.b32.xlu1 %v19460_v22, %s18084_s21 }
 0xad9   : > { %6292 = vmatprep.mubr.bf16.mxu1 %v21155_v31 }
 0xadb   : > { %16306 = vrot.lane.b32.xlu0 %v16265_v27, %s18084_s21 }
 0xadc   : > { %16301 = vrot.lane.b32.xlu1 %v16255_v18, %s18084_s21  ;;  %v17217_v18 = vld [vmem:[%s21120_s3 + $0xf0] sm:$0xff]  }
 0xadf   : > { %16311 = vrot.lane.b32.xlu0 %v16270_v48, %s18084_s21 }
 0xae0   : > { %6461 = vperm.xlu1 %15834, %v14952_v51  }
 0xae3   : > { %6466 = vperm.xlu0 %15833, %v14953_v29  }
 0xae4   : > { %6471 = vperm.xlu1 %15834, %v14954_v53  }
 0xae7   : > { %6476 = vperm.xlu0 %15833, %v14955_v59  }
 0xb31   : > { %v16237_v16 = vpop.permute.xlu1 %16236 }
 0xb32   : > { %v16242_v33 = vpop.permute.xlu0 %16241  ;;  %v16239_v28 = vunpack.i.h.bf16 %v16237_v16  ;;  %v16238_v38 = vunpack.i.l.bf16 %v16237_v16 }
 0xb33   : > { %v16244_v2 = vunpack.i.h.bf16 %v16242_v33  ;;  %v16243_v37 = vunpack.i.l.bf16 %v16242_v33 }
 0xb35   : > { %v5997_v57 = vsel %vm389_vm2, %v16238_v38, %v16243_v37  ;;  %v5998_v23 = vsel %vm389_vm2, %v16239_v28, %v16244_v2 }
 0xb36   : > { %v16247_v22 = vpop.permute.xlu1 %16246  ;;  %v6054_v7 = vpack.c.bf16 %v5998_v23, %v5997_v57 }
 0xb37   : > { %v16249_v44 = vunpack.i.h.bf16 %v16247_v22  ;;  %v16248_v12 = vunpack.i.l.bf16 %v16247_v22 }
 0xb38   : > { %v16262_v39 = vpop.permute.xlu0 %16261 }
 0xb39   : > { %v16264_v0 = vunpack.i.h.bf16 %v16262_v39  ;;  %v16263_v36 = vunpack.i.l.bf16 %v16262_v39 }
 0xb3a   : > { %v16252_v6 = vpop.permute.xlu1 %16251 }
 0xb3b   : > { %v16254_v35 = vunpack.i.h.bf16 %v16252_v6  ;;  %v16253_v10 = vunpack.i.l.bf16 %v16252_v6  ;;  %v5999_v54 = vsel %vm389_vm2, %v16248_v12, %v16263_v36  ;;  %v6000_v8 = vsel %vm389_vm2, %v16249_v44, %v16264_v0 }
 0xb3c   : > { %v6058_v60 = vpack.c.bf16 %v6000_v8, %v5999_v54  ;;  %v17218_v54 = vld [vmem:[%s21120_s3 + $0xf8] sm:$0xff]  }
 0xb3d   : > { %v16267_v1 = vpop.permute.xlu0 %16266  ;;  %v5996_v58 = vsel %vm389_vm2, %v16264_v0, %v16254_v35  ;;  %v5995_v20 = vsel %vm389_vm2, %v16263_v36, %v16253_v10 }
 0xb3e   : > { %v16269_v3 = vunpack.i.h.bf16 %v16267_v1  ;;  %v16268_v17 = vunpack.i.l.bf16 %v16267_v1  ;;  %v16257_v15 = vpop.permute.xlu1 %16256  ;;  %6219 = vmatprep.subr.bf16.mxu0 %v6058_v60  ;;  %v6059_v11 = vpack.c.bf16 %v5996_v58, %v5995_v20 }
 0xb3f   : > { %v16259_v13 = vunpack.i.h.bf16 %v16257_v15  ;;  %v16258_v52 = vunpack.i.l.bf16 %v16257_v15 }
 0xb40   : > { %v6003_v9 = vsel %vm389_vm2, %v16268_v17, %v16248_v12  ;;  %v6004_v61 = vsel %vm389_vm2, %v16269_v3, %v16249_v44  ;;  %v5991_v32 = vsel %vm389_vm2, %v16253_v10, %v16268_v17  ;;  %v5992_v30 = vsel %vm389_vm2, %v16254_v35, %v16269_v3 }
 0xb41   : > { %v16272_v26 = vpop.permute.xlu0 %16271  ;;  %v6057_v56 = vpack.c.bf16 %v6004_v61, %v6003_v9  ;;  %v6060_v25 = vpack.c.bf16 %v5992_v30, %v5991_v32  ;;  %v5994_v49 = vsel %vm389_vm2, %v16244_v2, %v16259_v13  ;;  %v5993_v47 = vsel %vm389_vm2, %v16243_v37, %v16258_v52 }
 0xb42   : > { %v16274_v34 = vunpack.i.h.bf16 %v16272_v26  ;;  %v16273_v4 = vunpack.i.l.bf16 %v16272_v26  ;;  %v16277_v62 = vpop.permute.xlu1 %16276  ;;  %v6055_v53 = vpack.c.bf16 %v5994_v49, %v5993_v47  ;;  %v17229_v47 = vld [vmem:[#allocation3 + $0x8c4] ss:$16 sps:$4 sm:$0xff]  }
 0xb43   : > { %6220 = vmatpush1.bf16.msra.mxu0 %v6057_v56  ;;  %6272 = vmatprep.subr.bf16.mxu1 %v6060_v25  ;;  %v16279_v55 = vunpack.i.h.bf16 %v16277_v62  ;;  %v16278_v48 = vunpack.i.l.bf16 %v16277_v62 }
 0xb44   : > { %v6001_v46 = vsel %vm389_vm2, %v16273_v4, %v16238_v38  ;;  %v6002_v19 = vsel %vm389_vm2, %v16274_v34, %v16239_v28  ;;  %6221 = vmatprep.subr.bf16.mxu0 %v6054_v7  ;;  %v5989_v27 = vsel %vm389_vm2, %v16258_v52, %v16273_v4  ;;  %v5990_v50 = vsel %vm389_vm2, %v16259_v13, %v16274_v34  ;;  %v17223_v4 = vld [vmem:[#allocation3 + $0x8e4] ss:$16 sps:$4 sm:$0xff]  }
 0xb45   : > { %v16282_v5 = vpop.permute.xlu0 %16281  ;;  %v6053_v14 = vpack.c.bf16 %v6002_v19, %v6001_v46  ;;  %6273 = vmatpush1.bf16.msra.mxu1 %v6059_v11  ;;  %v6056_v24 = vpack.c.bf16 %v5990_v50, %v5989_v27  ;;  %v17219_v46 = vld [vmem:[%s21120_s3 + $0x110] sm:$0xff]  }
 0xb46   : > { %v16284_v42 = vunpack.i.h.bf16 %v16282_v5  ;;  %v16283_v40 = vunpack.i.l.bf16 %v16282_v5  ;;  %v16287_v41 = vpop.permute.xlu1 %16286  ;;  %v17221_v19 = vld [vmem:[#allocation3 + $0x8e0] ss:$16 sps:$4 sm:$0xff]   ;;  %v17226_v11 = vld [vmem:[#allocation3 + $0xae4] ss:$16 sps:$4 sm:$0xff]  }
 0xb47   : > { %6222 = vmatpush1.bf16.msra.mxu0 %v6053_v14  ;;  %v16289_v51 = vunpack.i.h.bf16 %v16287_v41  ;;  %v16288_v29 = vunpack.i.l.bf16 %v16287_v41  ;;  %6274 = vmatprep.subr.bf16.mxu1 %v6056_v24  ;;  %v17224_v5 = vld [vmem:[#allocation3 + $0xae0] ss:$16 sps:$4 sm:$0xff]   ;;  %v17232_v27 = vld [vmem:[#allocation3 + $0xac4] ss:$16 sps:$4 sm:$0xff]  }
 0xb48   : > { %v6047_v59 = vsel %vm402_vm3, %v16278_v48, %v16283_v40  ;;  %v6048_v16 = vsel %vm402_vm3, %v16279_v55, %v16284_v42  ;;  %v17227_v14 = vld [vmem:[#allocation3 + $0x8c0] ss:$16 sps:$4 sm:$0xff]   ;;  %v17235_v50 = vld [vmem:[#allocation3 + $0x8a4] ss:$16 sps:$4 sm:$0xff]  }
 0xb49   : > { %v16297_v33 = vpop.permute.xlu0 %16296  ;;  %6275 = vmatpush1.bf16.msra.mxu1 %v6055_v53  ;;  %v6043_v22 = vsel %vm402_vm3, %v16283_v40, %v16288_v29  ;;  %v6044_v39 = vsel %vm402_vm3, %v16284_v42, %v16289_v51  ;;  %v6317_v36 = vpack.c.bf16 %v6048_v16, %v6047_v59  ;;  %v17220_v42 = vld [vmem:[%s21120_s3 + $0x118] sm:$0xff]   ;;  %v17230_v40 = vld [vmem:[#allocation3 + $0xac0] ss:$16 sps:$4 sm:$0xff]  }
 0xb4a   : > { %14988 = vmatmul.mubr.msk.bf16.vlgmr.msra.gmra.mxu0 %vm1055_vm12, %v17217_v18  ;;  %v16292_v44 = vpop.permute.xlu1 %16291  ;;  %v6318_v12 = vpack.c.bf16 %v6044_v39, %v6043_v22  ;;  %v16299_v2 = vunpack.i.h.bf16 %v16297_v33  ;;  %v16298_v8 = vunpack.i.l.bf16 %v16297_v33  ;;  %v17233_v24 = vld [vmem:[#allocation3 + $0x8a0] ss:$16 sps:$4 sm:$0xff]   ;;  %v17250_v16 = vld [vmem:[#allocation3 + $0xa64] ss:$16 sps:$4 sm:$0xff]  }
 0xb4b   : > { %6249 = vmatprep.mubr.bf16.mxu0 %v21155_v31  ;;  %v16294_v0 = vunpack.i.h.bf16 %v16292_v44  ;;  %v16293_v37 = vunpack.i.l.bf16 %v16292_v44  ;;  %v17239_v41 = vld [vmem:[#allocation3 + $0x880] ss:$16 sps:$4 sm:$0xff]   ;;  %v17253_v33 = vld [vmem:[#allocation3 + $0x844] ss:$16 sps:$4 sm:$0xff]  }
 0xb4c   : > { %14990 = vmatmul.mubr.msk.bf16.vlgmr.msra.gmra.mxu1 %vm1055_vm12, %v17217_v18  ;;  %6349 = vmatprep.subr.bf16.mxu0 %v6318_v12  ;;  %v17238_v18 = vld [vmem:[#allocation3 + $0xaa4] ss:$16 sps:$4 sm:$0xff]   ;;  %v17242_v53 = vld [vmem:[#allocation3 + $0xa80] ss:$16 sps:$4 sm:$0xff]  }
 0xb4d   : > { %v16307_v6 = vpop.permute.xlu0 %16306  ;;  %6350 = vmatpush1.bf16.msra.mxu0 %v6317_v36  ;;  %6302 = vmatprep.mubr.bf16.mxu1 %v21155_v31  ;;  %v6046_v28 = vsel %vm402_vm3, %v16294_v0, %v16299_v2  ;;  %v6045_v58 = vsel %vm402_vm3, %v16293_v37, %v16298_v8  ;;  %v17245_v59 = vld [vmem:[#allocation3 + $0x860] ss:$16 sps:$4 sm:$0xff]   ;;  %v17256_v44 = vld [vmem:[#allocation3 + $0xa44] ss:$16 sps:$4 sm:$0xff]  }
 0xb4e   : > { %v16309_v35 = vunpack.i.h.bf16 %v16307_v6  ;;  %v16308_v10 = vunpack.i.l.bf16 %v16307_v6  ;;  %v16302_v38 = vpop.permute.xlu1 %16301  ;;  %v6313_v7 = vpack.c.bf16 %v6046_v28, %v6045_v58  ;;  %v17248_v22 = vld [vmem:[#allocation3 + $0xa60] ss:$16 sps:$4 sm:$0xff]   ;;  %v17259_v12 = vld [vmem:[#allocation3 + $0x824] ss:$16 sps:$4 sm:$0xff]  }
 0xb4f   : > { %v16304_v3 = vunpack.i.h.bf16 %v16302_v38  ;;  %v16303_v17 = vunpack.i.l.bf16 %v16302_v38  ;;  %v17251_v39 = vld [vmem:[#allocation3 + $0x840] ss:$16 sps:$4 sm:$0xff]   ;;  %v17271_v28 = vld [vmem:[#allocation3 + $0x9e4] ss:$16 sps:$4 sm:$0xff]  }
 0xb50   : > { %v6039_v1 = vsel %vm402_vm3, %v16288_v29, %v16308_v10  ;;  %v6040_v60 = vsel %vm402_vm3, %v16289_v51, %v16309_v35  ;;  %v6051_v57 = vsel %vm402_vm3, %v16308_v10, %v16278_v48  ;;  %v6052_v23 = vsel %vm402_vm3, %v16309_v35, %v16279_v55  ;;  %v17241_v55 = vld [vmem:[#allocation3 + $0x884] ss:$16 sps:$4 sm:$0xff]   ;;  %v17236_v48 = vld [vmem:[#allocation3 + $0xaa0] ss:$16 sps:$4 sm:$0xff]  }
 0xb51   : > { %v16312_v15 = vpop.permute.xlu0 %16311  ;;  %v6319_v20 = vpack.c.bf16 %v6040_v60, %v6039_v1  ;;  %v6320_v13 = vpack.c.bf16 %v6052_v23, %v6051_v57  ;;  %v6041_v52 = vsel %vm402_vm3, %v16298_v8, %v16303_v17  ;;  %v6042_v26 = vsel %vm402_vm3, %v16299_v2, %v16304_v3  ;;  %v17244_v51 = vld [vmem:[#allocation3 + $0xa84] ss:$16 sps:$4 sm:$0xff]   ;;  %v17257_v36 = vld [vmem:[#allocation3 + $0x820] ss:$16 sps:$4 sm:$0xff]  }
 0xb52   : > { %v16314_v9 = vunpack.i.h.bf16 %v16312_v15  ;;  %v16313_v61 = vunpack.i.l.bf16 %v16312_v15  ;;  %14989 = vmatmul.mubr.msk.bf16.gmra.mxu0 %vm1055_vm12, %v17218_v54  ;;  %v6314_v30 = vpack.c.bf16 %v6042_v26, %v6041_v52  ;;  %v17247_v29 = vld [vmem:[#allocation3 + $0x864] ss:$16 sps:$4 sm:$0xff]   ;;  %v17260_v6 = vld [vmem:[#allocation3 + $0xa20] ss:$16 sps:$4 sm:$0xff]  }
 0xb53   : > { %6369 = vmatprep.mubr.bf16.mxu0 %v21155_v31  ;;  %6402 = vmatprep.subr.bf16.mxu1 %v6320_v13  ;;  %v17262_v2 = vld [vmem:[#allocation3 + $0xa24] ss:$16 sps:$4 sm:$0xff]   ;;  %v17263_v35 = vld [vmem:[#allocation3 + $0x800] ss:$16 sps:$4 sm:$0xff]  }
 0xb54   : > { %v6037_v56 = vsel %vm402_vm3, %v16303_v17, %v16313_v61  ;;  %v6038_v32 = vsel %vm402_vm3, %v16304_v3, %v16314_v9  ;;  %v6049_v34 = vsel %vm402_vm3, %v16313_v61, %v16293_v37  ;;  %14991 = vmatmul.mubr.msk.bf16.gmra.mxu1 %vm1055_vm12, %v17218_v54  ;;  %v6050_v62 = vsel %vm402_vm3, %v16314_v9, %v16294_v0  ;;  %v17254_v0 = vld [vmem:[#allocation3 + $0xa40] ss:$16 sps:$4 sm:$0xff]   ;;  %v17265_v37 = vld [vmem:[#allocation3 + $0x804] ss:$16 sps:$4 sm:$0xff]  }
 0xb55   : > { %6403 = vmatpush1.bf16.msra.mxu1 %v6319_v20  ;;  %6351 = vmatprep.subr.bf16.mxu0 %v6314_v30  ;;  %v6316_v25 = vpack.c.bf16 %v6050_v62, %v6049_v34  ;;  %v6315_v49 = vpack.c.bf16 %v6038_v32, %v6037_v56  ;;  %v17268_v10 = vld [vmem:[#allocation3 + $0xa04] ss:$16 sps:$4 sm:$0xff]   ;;  %v17266_v54 = vld [vmem:[#allocation3 + $0xa00] ss:$16 sps:$4 sm:$0xff]  }
 0xb56   : > { %6352 = vmatpush1.bf16.msra.mxu0 %v6313_v7  ;;  %6422 = vmatprep.mubr.bf16.mxu1 %v21155_v31  ;;  %v17269_v8 = vld [vmem:[#allocation3 + $0x9e0] ss:$16 sps:$4 sm:$0xff]   ;;  %v17274_v1 = vld [vmem:[#allocation3 + $0xbe4] ss:$16 sps:$4 sm:$0xff]  }
 0xb57   : > { %6404 = vmatprep.subr.bf16.mxu1 %v6316_v25  ;;  %7304 = vmatprep.subr.bf16.mxu0 %v17223_v4  ;;  %v17272_v38 = vld [vmem:[#allocation3 + $0xbe0] ss:$16 sps:$4 sm:$0xff]   ;;  %v17277_v3 = vld [vmem:[#allocation3 + $0x9c4] ss:$16 sps:$4 sm:$0xff]  }
 0xb58   : > { %v17275_v60 = vld [vmem:[#allocation3 + $0x9c0] ss:$16 sps:$4 sm:$0xff]   ;;  %v17280_v58 = vld [vmem:[#allocation3 + $0xbc4] ss:$16 sps:$4 sm:$0xff]  }
 0xb59   : > { %6405 = vmatpush1.bf16.msra.mxu1 %v6315_v49  ;;  %v17278_v17 = vld [vmem:[#allocation3 + $0xbc0] ss:$16 sps:$4 sm:$0xff]   ;;  %v17283_v57 = vld [vmem:[#allocation3 + $0x9a4] ss:$16 sps:$4 sm:$0xff]  }
 0xb5a   : > { %14994 = vmatmul.mubr.msk.bf16.vlgmr.msra.gmra.mxu0 %vm1055_vm12, %v17219_v46  ;;  %7357 = vmatprep.subr.bf16.mxu1 %v17226_v11  ;;  %v17281_v15 = vld [vmem:[#allocation3 + $0x9a0] ss:$16 sps:$4 sm:$0xff]   ;;  %v17286_v20 = vld [vmem:[#allocation3 + $0xba4] ss:$16 sps:$4 sm:$0xff]  }
 0xb5b   : > { %6379 = vmatprep.mubr.bf16.mxu0 %v21155_v31  ;;  %7305 = vmatpush1.bf16.msra.mxu0 %v17221_v19  ;;  %v17284_v23 = vld [vmem:[#allocation3 + $0xba0] ss:$16 sps:$4 sm:$0xff]   ;;  %v17289_v61 = vld [vmem:[#allocation3 + $0x984] ss:$16 sps:$4 sm:$0xff]  }
 0xb5c   : > { %7306 = vmatprep.subr.bf16.mxu0 %v17229_v47  ;;  %14996 = vmatmul.mubr.msk.bf16.vlgmr.msra.gmra.mxu1 %vm1055_vm12, %v17219_v46  ;;  %v17287_v9 = vld [vmem:[#allocation3 + $0x980] ss:$16 sps:$4 sm:$0xff]   ;;  %v17292_v52 = vld [vmem:[#allocation3 + $0xb84] ss:$16 sps:$4 sm:$0xff]  }
 0xb5d   : > { %6432 = vmatprep.mubr.bf16.mxu1 %v21155_v31  ;;  %7358 = vmatpush1.bf16.msra.mxu1 %v17224_v5  ;;  %v17290_v13 = vld [vmem:[#allocation3 + $0xb80] ss:$16 sps:$4 sm:$0xff]   ;;  %v17295_v56 = vld [vmem:[#allocation3 + $0x964] ss:$16 sps:$4 sm:$0xff]  }
 0xb5e   : > { %7359 = vmatprep.subr.bf16.mxu1 %v17232_v27  ;;  %v17293_v26 = vld [vmem:[#allocation3 + $0x960] ss:$16 sps:$4 sm:$0xff]   ;;  %v17298_v30 = vld [vmem:[#allocation3 + $0xb64] ss:$16 sps:$4 sm:$0xff]   ;;  %v17319_v27 = vld [vmem:[#allocation3 + $0x8ec] ss:$16 sps:$4 sm:$0xff]  }
 0xb5f   : > { %7307 = vmatpush1.bf16.msra.mxu0 %v17227_v14  ;;  %v17296_v32 = vld [vmem:[#allocation3 + $0xb60] ss:$16 sps:$4 sm:$0xff]   ;;  %v17301_v34 = vld [vmem:[#allocation3 + $0x944] ss:$16 sps:$4 sm:$0xff]  }
 0xb60   : > { %7308 = vmatprep.subr.bf16.mxu0 %v17235_v50  ;;  %v17299_v4 = vld [vmem:[#allocation3 + $0x940] ss:$16 sps:$4 sm:$0xff]   ;;  %v17304_v7 = vld [vmem:[#allocation3 + $0xb44] ss:$16 sps:$4 sm:$0xff]   ;;  %v17322_v50 = vld [vmem:[#allocation3 + $0xaec] ss:$16 sps:$4 sm:$0xff]  }
 0xb61   : > { %7360 = vmatpush1.bf16.msra.mxu1 %v17230_v40  ;;  %v17302_v62 = vld [vmem:[#allocation3 + $0xb40] ss:$16 sps:$4 sm:$0xff]   ;;  %v17307_v49 = vld [vmem:[#allocation3 + $0x924] ss:$16 sps:$4 sm:$0xff]  }
 0xb62   : > { %14995 = vmatmul.mubr.msk.bf16.gmra.mxu0 %vm1055_vm12, %v17220_v42  ;;  %7361 = vmatprep.subr.bf16.mxu1 %v17238_v18  ;;  %v17305_v25 = vld [vmem:[#allocation3 + $0x920] ss:$16 sps:$4 sm:$0xff]   ;;  %v17310_v19 = vld [vmem:[#allocation3 + $0xb24] ss:$16 sps:$4 sm:$0xff]  }
 0xb63   : > { %7309 = vmatpush1.bf16.msra.mxu0 %v17233_v24  ;;  %v17308_v46 = vld [vmem:[#allocation3 + $0xb20] ss:$16 sps:$4 sm:$0xff]   ;;  %v17313_v11 = vld [vmem:[#allocation3 + $0x904] ss:$16 sps:$4 sm:$0xff]  }
 0xb64   : > { %7310 = vmatprep.subr.bf16.mxu0 %v17241_v55  ;;  %14997 = vmatmul.mubr.msk.bf16.gmra.mxu1 %vm1055_vm12, %v17220_v42  ;;  %v17311_v47 = vld [vmem:[#allocation3 + $0x900] ss:$16 sps:$4 sm:$0xff]   ;;  %v17316_v5 = vld [vmem:[#allocation3 + $0xb04] ss:$16 sps:$4 sm:$0xff]  }
 0xb65   : > { %7362 = vmatpush1.bf16.msra.mxu1 %v17236_v48  ;;  %v17314_v14 = vld [vmem:[#allocation3 + $0xb00] ss:$16 sps:$4 sm:$0xff]  }
 0xb66   : > { %7363 = vmatprep.subr.bf16.mxu1 %v17244_v51 }
 0xb67   : > { %7311 = vmatpush1.bf16.msra.mxu0 %v17239_v41 }
 0xb68   : > { %7312 = vmatprep.subr.bf16.mxu0 %v17247_v29 }
 0xb69   : > { %7364 = vmatpush1.bf16.msra.mxu1 %v17242_v53 }
 0xb6a   : > { %7365 = vmatprep.subr.bf16.mxu1 %v17250_v16 }
 0xb6b   : > { %7313 = vmatpush1.bf16.msra.mxu0 %v17245_v59 }
 0xb6c   : > { %7314 = vmatprep.subr.bf16.mxu0 %v17253_v33 }
 0xb6d   : > { %7366 = vmatpush1.bf16.msra.mxu1 %v17248_v22 }
 0xb6e   : > { %7367 = vmatprep.subr.bf16.mxu1 %v17256_v44 }
 0xb6f   : > { %7315 = vmatpush1.bf16.msra.mxu0 %v17251_v39 }
 0xb70   : > { %7316 = vmatprep.subr.bf16.mxu0 %v17259_v12 }
 0xb71   : > { %7368 = vmatpush1.bf16.msra.mxu1 %v17254_v0 }
 0xb72   : > { %7369 = vmatprep.subr.bf16.mxu1 %v17262_v2 }
 0xb73   : > { %7317 = vmatpush1.bf16.msra.mxu0 %v17257_v36 }
 0xb74   : > { %7318 = vmatprep.subr.bf16.mxu0 %v17265_v37 }
 0xb75   : > { %7370 = vmatpush1.bf16.msra.mxu1 %v17260_v6 }
 0xb76   : > { %7371 = vmatprep.subr.bf16.mxu1 %v17268_v10 }
 0xb77   : > { %7319 = vmatpush1.bf16.msra.mxu0 %v17263_v35 }
 0xb78   : > { %7320 = vmatprep.subr.bf16.mxu0 %v17271_v28 }
 0xb79   : > { %7372 = vmatpush1.bf16.msra.mxu1 %v17266_v54 }
 0xb7a   : > { %7373 = vmatprep.subr.bf16.mxu1 %v17274_v1 }
 0xb7b   : > { %7321 = vmatpush2.bf16.msra.mxu0 %v17269_v8 }
 0xb7c   : > { %7322 = vmatprep.subr.bf16.mxu0 %v17277_v3 }
 0xb7d   : > { %7374 = vmatpush2.bf16.msra.mxu1 %v17272_v38 }
 0xb7e   : > { %7375 = vmatprep.subr.bf16.mxu1 %v17280_v58 }
 0xb7f   : > { %7323 = vmatpush2.bf16.msra.mxu0 %v17275_v60 }
 0xb80   : > { %7324 = vmatprep.subr.bf16.mxu0 %v17283_v57 }
 0xb81   : > { %7376 = vmatpush2.bf16.msra.mxu1 %v17278_v17 }
 0xb82   : > { %7377 = vmatprep.subr.bf16.mxu1 %v17286_v20 }
 0xb83   : > { %7325 = vmatpush2.bf16.msra.mxu0 %v17281_v15 }
 0xb84   : > { %7326 = vmatprep.subr.bf16.mxu0 %v17289_v61 }
 0xb85   : > { %7378 = vmatpush2.bf16.msra.mxu1 %v17284_v23 }
 0xb86   : > { %7379 = vmatprep.subr.bf16.mxu1 %v17292_v52 }
 0xb87   : > { %7327 = vmatpush2.bf16.msra.mxu0 %v17287_v9 }
 0xb88   : > { %7328 = vmatprep.subr.bf16.mxu0 %v17295_v56 }
 0xb89   : > { %7380 = vmatpush2.bf16.msra.mxu1 %v17290_v13 }
 0xb8a   : > { %7381 = vmatprep.subr.bf16.mxu1 %v17298_v30 }
 0xb8b   : > { %7329 = vmatpush2.bf16.msra.mxu0 %v17293_v26  ;;  %v6462_v26 = vpop.permute.xlu1 %6461 }
 0xb8c   : > { %7330 = vmatprep.subr.bf16.mxu0 %v17301_v34 }
 0xb8d   : > { %7382 = vmatpush2.bf16.msra.mxu1 %v17296_v32  ;;  %v6119_v42 = vpop.f32.mrf.mxu0 }
 0xb8e   : > { %7383 = vmatprep.subr.bf16.mxu1 %v17304_v7 }
 0xb8f   : > { %7331 = vmatpush2.bf16.msra.mxu0 %v17299_v4  ;;  %v6121_v24 = vpop.f32.mrf.mxu0 }
 0xb90   : > { %7332 = vmatprep.subr.bf16.mxu0 %v17307_v49  ;;  %v6172_v40 = vpop.f32.mrf.mxu1 }
 0xb91   : > { %7384 = vmatpush2.bf16.msra.mxu1 %v17302_v62  ;;  %v6123_v55 = vpop.f32.mrf.mxu0 }
 0xb92   : > { %7385 = vmatprep.subr.bf16.mxu1 %v17310_v19  ;;  %v6174_v18 = vpop.f32.mrf.mxu1 }
 0xb93   : > { %7333 = vmatpush2.bf16.msra.mxu0 %v17305_v25  ;;  %v6125_v41 = vpop.f32.mrf.mxu0 }
 0xb94   : > { %7334 = vmatprep.subr.bf16.mxu0 %v17313_v11  ;;  %v6176_v48 = vpop.f32.mrf.mxu1 }
 0xb95   : > { %7386 = vmatpush2.bf16.msra.mxu1 %v17308_v46  ;;  %v6129_v29 = vpop.f32.mrf.mxu0  ;;  %v6467_v46 = vpop.permute.xlu0 %6466 }
 0xb96   : > { %7387 = vmatprep.subr.bf16.mxu1 %v17316_v5  ;;  %v6178_v51 = vpop.f32.mrf.mxu1 }
 0xb97   : > { %7335 = vmatpush2.bf16.msra.mxu0 %v17311_v47  ;;  %v6131_v59 = vpop.f32.mrf.mxu0 }
 0xb98   : > { %7410 = vmatprep.subr.bf16.mxu0 %v17319_v27  ;;  %v6182_v53 = vpop.f32.mrf.mxu1 }
 0xb99   : > { %7388 = vmatpush2.bf16.msra.mxu1 %v17314_v14  ;;  %v6133_v33 = vpop.f32.mrf.mxu0 }
 0xb9a   : > { %7463 = vmatprep.subr.bf16.mxu1 %v17322_v50  ;;  %v6184_v16 = vpop.f32.mrf.mxu1 }
 0xb9b   : > { %v6135_v39 = vpop.f32.mrf.mxu0 }
 0xb9c   : > { %v6186_v22 = vpop.f32.mrf.mxu1 }
 0xb9e   : > { %v19675_v12 = vpop.f32.mrf.mxu1 }
 0xc0a   : > { %v6241_v44 = vpop.f32.mrf.mxu0 }
 0xc0b   : > { %v6242_v3 = vadd.f32 %v6241_v44, %v6119_v42 }
 0xc0c   : > { %v6243_v0 = vpop.f32.mrf.mxu0  ;;  %v6294_v36 = vpop.f32.mrf.mxu1 }
 0xc0d   : > { %v6244_v15 = vadd.f32 %v6243_v0, %v6121_v24  ;;  %v6295_v20 = vadd.f32 %v6294_v36, %v6172_v40 }
 0xc0e   : > { %v6245_v2 = vpop.f32.mrf.mxu0  ;;  %v6296_v37 = vpop.f32.mrf.mxu1 }
 0xc0f   : > { %v6246_v61 = vadd.f32 %v6245_v2, %v6123_v55  ;;  %v6297_v56 = vadd.f32 %v6296_v37, %v6174_v18 }
 0xc10   : > { %v6247_v6 = vpop.f32.mrf.mxu0  ;;  %v6298_v35 = vpop.f32.mrf.mxu1 }
 0xc11   : > { %v6248_v32 = vadd.f32 %v6247_v6, %v6125_v41  ;;  %v6299_v4 = vadd.f32 %v6298_v35, %v6176_v48 }
 0xc12   : > { %v6251_v10 = vpop.f32.mrf.mxu0  ;;  %v6300_v54 = vpop.f32.mrf.mxu1 }
 0xc13   : > { %v6301_v19 = vadd.f32 %v6300_v54, %v6178_v51  ;;  %v6252_v11 = vadd.f32 %v6251_v10, %v6129_v29 }
 0xc14   : > { %v6253_v8 = vpop.f32.mrf.mxu0  ;;  %v6304_v28 = vpop.f32.mrf.mxu1 }
 0xc15   : > { %v6254_v47 = vadd.f32 %v6253_v8, %v6131_v59  ;;  %v6305_v27 = vadd.f32 %v6304_v28, %v6182_v53  ;;  %v6472_v28 = vpop.permute.xlu1 %6471 }
 0xc16   : > { %v6255_v38 = vpop.f32.mrf.mxu0  ;;  %v6306_v1 = vpop.f32.mrf.mxu1 }
 0xc17   : > { %v6307_v18 = vadd.f32 %v6306_v1, %v6184_v16  ;;  %v6256_v55 = vadd.f32 %v6255_v38, %v6133_v33 }
 0xc18   : > { %v6257_v60 = vpop.f32.mrf.mxu0  ;;  %v6308_v17 = vpop.f32.mrf.mxu1 }
 0xc19   : > { %v6309_v2 = vadd.f32 %v6308_v17, %v6186_v22  ;;  %v6258_v37 = vadd.f32 %v6257_v60, %v6135_v39 }
 0xc1a   : > { %v6371_v58 = vpop.f32.mrf.mxu0  ;;  %v6310_v57 = vpop.f32.mrf.mxu1 }
 0xc1b   : > { %v6443_v23 = vadd.f32 %v6371_v58, %v6242_v3  ;;  %v6311_v38 = vadd.f32 %v6310_v57, %v19675_v12 }
 0xc1c   : > { %v6373_v9 = vpop.f32.mrf.mxu0  ;;  %v6424_v13 = vpop.f32.mrf.mxu1 }
 0xc1d   : > { %v6444_v52 = vadd.f32 %v6373_v9, %v6244_v15  ;;  %v6445_v30 = vadd.f32 %v6424_v13, %v6295_v20  ;;  %v19677_v7 = vadd.f32 %v6462_v26, %v6443_v23 }
 0xc1e   : > { %v6375_v34 = vpop.f32.mrf.mxu0  ;;  %v6426_v25 = vpop.f32.mrf.mxu1 }
 0xc1f   : > { %v19679_v62 = vadd.f32 %v6462_v26, %v6444_v52  ;;  %v6447_v49 = vadd.f32 %v6375_v34, %v6246_v61  ;;  %v6446_v5 = vadd.f32 %v6426_v25, %v6297_v56  ;;  %v19681_v50 = vadd.f32 %v6462_v26, %v6445_v30  ;;  %v6477_v30 = vpop.permute.xlu0 %6476 }
 0xc20   : > { %v6377_v14 = vpop.f32.mrf.mxu0  ;;  %v6428_v40 = vpop.f32.mrf.mxu1  ;;  %v6495_v0 = vmul.f32 0.2, %v19677_v7 }
 0xc21   : > { %v6483_v42 = vadd.f32 %v6467_v46, %v6447_v49  ;;  %v6448_v24 = vadd.f32 %v6377_v14, %v6248_v32  ;;  %v6482_v48 = vadd.f32 %v6462_v26, %v6446_v5  ;;  %v6449_v41 = vadd.f32 %v6428_v40, %v6299_v4 }
 0xc22   : > { %v6381_v44 = vpop.f32.mrf.mxu0  ;;  %v6496_v36 = vmul.f32 0.2, %v19679_v62  ;;  %v6430_v59 = vpop.f32.mrf.mxu1  ;;  %v6497_v10 = vmul.f32 0.2, %v19681_v50  ;;  %v6511_v23 = vmax.f32 %v19677_v7, %v6495_v0 }
 0xc23   : > { %v6499_v51 = vmul.f32 0.2, %v6483_v42  ;;  %v6484_v29 = vadd.f32 %v6467_v46, %v6448_v24  ;;  %v6485_v53 = vadd.f32 %v6467_v46, %v6449_v41  ;;  %v6450_v6 = vadd.f32 %v6430_v59, %v6301_v19 }
 0xc24   : > { %v6383_v35 = vpop.f32.mrf.mxu0  ;;  %v6451_v16 = vadd.f32 %v6381_v44, %v6252_v11  ;;  %v6434_v33 = vpop.f32.mrf.mxu1  ;;  %v6498_v1 = vmul.f32 0.2, %v6482_v48  ;;  %v6512_v22 = vmax.f32 %v19679_v62, %v6496_v36  ;;  %v6513_v26 = vmax.f32 %v19681_v50, %v6497_v10  ;;  %v17317_v50 = vld [vmem:[#allocation3 + $0x8e8] ss:$16 sps:$4 sm:$0xff]   ;;  %v17328_v36 = vld [vmem:[#allocation3 + $0xacc] ss:$16 sps:$4 sm:$0xff]  }
 0xc25   : > { %v6500_v54 = vmul.f32 0.2, %v6484_v29  ;;  %v6452_v8 = vadd.f32 %v6383_v35, %v6254_v47  ;;  %v6501_v3 = vmul.f32 0.2, %v6485_v53  ;;  %v6486_v58 = vadd.f32 %v6467_v46, %v6450_v6  ;;  %v17323_v6 = vld [vmem:[#allocation3 + $0x8c8] ss:$16 sps:$4 sm:$0xff]  }
 0xc26   : > { %v6385_v15 = vpop.f32.mrf.mxu0  ;;  %v6515_v39 = vmax.f32 %v6483_v42, %v6499_v51  ;;  %v6436_v17 = vpop.f32.mrf.mxu1  ;;  %v6453_v61 = vadd.f32 %v6434_v33, %v6305_v27  ;;  %v6487_v56 = vadd.f32 %v6472_v28, %v6451_v16  ;;  %v6514_v34 = vmax.f32 %v6482_v48, %v6498_v1  ;;  %v17320_v42 = vld [vmem:[#allocation3 + $0xae8] ss:$16 sps:$4 sm:$0xff]   ;;  %v17325_v48 = vld [vmem:[#allocation3 + $0x8cc] ss:$16 sps:$4 sm:$0xff]  }
 0xc27   : > { %v6488_v60 = vadd.f32 %v6472_v28, %v6452_v8  ;;  %v6516_v20 = vmax.f32 %v6484_v29, %v6500_v54  ;;  %v6502_v9 = vmul.f32 0.2, %v6486_v58  ;;  %v6454_v13 = vadd.f32 %v6436_v17, %v6307_v18  ;;  %v17326_v10 = vld [vmem:[#allocation3 + $0xac8] ss:$16 sps:$4 sm:$0xff]   ;;  %v17331_v16 = vld [vmem:[#allocation3 + $0x8ac] ss:$16 sps:$4 sm:$0xff]  }
 0xc28   : > { %v6387_v52 = vpop.f32.mrf.mxu0  ;;  %v6455_v12 = vadd.f32 %v6385_v15, %v6256_v55  ;;  %v6438_v57 = vpop.f32.mrf.mxu1  ;;  %v6517_v4 = vmax.f32 %v6485_v53, %v6501_v3  ;;  %v19690_v47 = vpack.c.bf16 %v6515_v39, %v6511_v23  ;;  %v6489_v5 = vadd.f32 %v6472_v28, %v6453_v61  ;;  %v17340_v17 = vld [vmem:[#allocation3 + $0xa8c] ss:$16 sps:$4 sm:$0xff]  }
 0xc29   : > { %v6456_v32 = vadd.f32 %v6387_v52, %v6258_v37  ;;  %v6518_v7 = vmax.f32 %v6486_v58, %v6502_v9  ;;  %v6490_v25 = vadd.f32 %v6472_v28, %v6454_v13  ;;  %v6504_v62 = vmul.f32 0.2, %v6488_v60  ;;  %v17329_v58 = vld [vmem:[#allocation3 + $0x8a8] ss:$16 sps:$4 sm:$0xff]   ;;  %v17343_v61 = vld [vmem:[#allocation3 + $0x86c] ss:$16 sps:$4 sm:$0xff]  }
 0xc2a   : > { %v6491_v49 = vadd.f32 %v6477_v30, %v6455_v12  ;;  %v6457_v46 = vadd.f32 %v6438_v57, %v6309_v2  ;;  %v6440_v11 = vpop.f32.mrf.mxu1  ;;  %v6528_v27 = vpack.c.bf16 %v6516_v20, %v6512_v22  ;;  %v19692_v41 = vpack.c.bf16 %v6517_v4, %v6513_v26  ;;  %v17332_v22 = vld [vmem:[#allocation3 + $0xaa8] ss:$16 sps:$4 sm:$0xff]   ;;  %v17346_v13 = vld [vmem:[#allocation3 + $0xa6c] ss:$16 sps:$4 sm:$0xff]  }
 0xc2b   : > { %v6492_v19 = vadd.f32 %v6477_v30, %v6456_v32  ;;  %v6458_v14 = vadd.f32 %v6440_v11, %v6311_v38  ;;  %v6530_v55 = vpack.c.bf16 %v6518_v7, %v6514_v34  ;;  %v6506_v44 = vmul.f32 0.2, %v6490_v25  ;;  %v17334_v38 = vld [vmem:[#allocation3 + $0xaac] ss:$16 sps:$4 sm:$0xff]   ;;  %v17335_v20 = vld [vmem:[#allocation3 + $0x888] ss:$16 sps:$4 sm:$0xff]  }
 0xc2c   : > { %v6507_v40 = vmul.f32 0.2, %v6491_v49  ;;  %v6493_v24 = vadd.f32 %v6477_v30, %v6457_v46  ;;  %7336 = vmatprep.mubr.bf16.mxu0 %v6528_v27  ;;  %v6503_v51 = vmul.f32 0.2, %v6487_v56  ;;  %v6520_v29 = vmax.f32 %v6488_v60, %v6504_v62  ;;  %v17337_v60 = vld [vmem:[#allocation3 + $0x88c] ss:$16 sps:$4 sm:$0xff]  }
 0xc2d   : > { %v6508_v18 = vmul.f32 0.2, %v6492_v19  ;;  %v6494_v0 = vadd.f32 %v6477_v30, %v6458_v14  ;;  %7337 = vmatmul.mubr.bf16.vlgmr.msra.gmra.mxu0 %v19690_v47  ;;  %7389 = vmatprep.mubr.bf16.mxu1 %v6530_v55  ;;  %v6505_v37 = vmul.f32 0.2, %v6489_v5  ;;  %v6522_v33 = vmax.f32 %v6490_v25, %v6506_v44  ;;  %v17338_v9 = vld [vmem:[#allocation3 + $0xa88] ss:$16 sps:$4 sm:$0xff]  }
 0xc2e   : > { %v6509_v59 = vmul.f32 0.2, %v6493_v24  ;;  %7411 = vmatpush1.bf16.msra.mxu0 %v17317_v50  ;;  %7390 = vmatmul.mubr.bf16.vlgmr.msra.gmra.mxu1 %v19692_v41  ;;  %v6523_v35 = vmax.f32 %v6491_v49, %v6507_v40  ;;  %v6519_v1 = vmax.f32 %v6487_v56, %v6503_v51  ;;  %v17341_v52 = vld [vmem:[#allocation3 + $0x868] ss:$16 sps:$4 sm:$0xff]   ;;  %v17349_v56 = vld [vmem:[#allocation3 + $0x84c] ss:$16 sps:$4 sm:$0xff]  }
 0xc2f   : > { %v6524_v2 = vmax.f32 %v6492_v19, %v6508_v18  ;;  %v6510_v53 = vmul.f32 0.2, %v6494_v0  ;;  %7464 = vmatpush1.bf16.msra.mxu1 %v17320_v42  ;;  %7412 = vmatprep.subr.bf16.mxu0 %v17325_v48  ;;  %v6521_v3 = vmax.f32 %v6489_v5, %v6505_v37  ;;  %v17344_v26 = vld [vmem:[#allocation3 + $0xa68] ss:$16 sps:$4 sm:$0xff]   ;;  %v17352_v12 = vld [vmem:[#allocation3 + $0xa4c] ss:$16 sps:$4 sm:$0xff]  }
 0xc30   : > { %v6525_v8 = vmax.f32 %v6493_v24, %v6509_v59  ;;  %7465 = vmatprep.subr.bf16.mxu1 %v17328_v36  ;;  %v19701_v23 = vpack.c.bf16 %v6523_v35, %v6519_v1  ;;  %v17347_v57 = vld [vmem:[#allocation3 + $0x848] ss:$16 sps:$4 sm:$0xff]   ;;  %v17355_v30 = vld [vmem:[#allocation3 + $0x82c] ss:$16 sps:$4 sm:$0xff]  }
 0xc31   : > { %v19696_v54 = vpack.c.bf16 %v6524_v2, %v6520_v29  ;;  %v6526_v28 = vmax.f32 %v6494_v0, %v6510_v53  ;;  %v17350_v32 = vld [vmem:[#allocation3 + $0xa48] ss:$16 sps:$4 sm:$0xff]   ;;  %v17358_v34 = vld [vmem:[#allocation3 + $0xa2c] ss:$16 sps:$4 sm:$0xff]  }
 0xc32   : > { %7413 = vmatpush1.bf16.msra.mxu0 %v17323_v6  ;;  %v19703_v39 = vpack.c.bf16 %v6525_v8, %v6521_v3  ;;  %v17353_v4 = vld [vmem:[#allocation3 + $0x828] ss:$16 sps:$4 sm:$0xff]   ;;  %v17361_v25 = vld [vmem:[#allocation3 + $0x80c] ss:$16 sps:$4 sm:$0xff]  }
 0xc33   : > { %7346 = vmatprep.mubr.bf16.mxu0 %v19696_v54  ;;  %v19699_v15 = vpack.c.bf16 %v6526_v28, %v6522_v33  ;;  %7466 = vmatpush1.bf16.msra.mxu1 %v17326_v10  ;;  %v17356_v7 = vld [vmem:[#allocation3 + $0xa28] ss:$16 sps:$4 sm:$0xff]   ;;  %v17364_v62 = vld [vmem:[#allocation3 + $0xa0c] ss:$16 sps:$4 sm:$0xff]  }
 0xc34   : > { %7414 = vmatprep.subr.bf16.mxu0 %v17331_v16  ;;  %7467 = vmatprep.subr.bf16.mxu1 %v17334_v38  ;;  %v17359_v49 = vld [vmem:[#allocation3 + $0x808] ss:$16 sps:$4 sm:$0xff]   ;;  %v17367_v19 = vld [vmem:[#allocation3 + $0x9ec] ss:$16 sps:$4 sm:$0xff]  }
 0xc35   : > { %7399 = vmatprep.mubr.bf16.mxu1 %v19699_v15  ;;  %7347 = vmatmul.mubr.bf16.gmra.mxu0 %v19701_v23  ;;  %v17362_v46 = vld [vmem:[#allocation3 + $0xa08] ss:$16 sps:$4 sm:$0xff]   ;;  %v17370_v11 = vld [vmem:[#allocation3 + $0xbec] ss:$16 sps:$4 sm:$0xff]  }
 0xc36   : > { %7415 = vmatpush1.bf16.msra.mxu0 %v17329_v58  ;;  %7400 = vmatmul.mubr.bf16.gmra.mxu1 %v19703_v39  ;;  %v17365_v5 = vld [vmem:[#allocation3 + $0x9e8] ss:$16 sps:$4 sm:$0xff]   ;;  %v17376_v50 = vld [vmem:[#allocation3 + $0xbcc] ss:$16 sps:$4 sm:$0xff]  }
 0xc37   : > { %7442 = vmatprep.mubr.bf16.mxu0 %v6528_v27  ;;  %7468 = vmatpush1.bf16.msra.mxu1 %v17332_v22  ;;  %v17368_v14 = vld [vmem:[#allocation3 + $0xbe8] ss:$16 sps:$4 sm:$0xff]   ;;  %v17373_v27 = vld [vmem:[#allocation3 + $0x9cc] ss:$16 sps:$4 sm:$0xff]  }
 0xc38   : > { %7495 = vmatprep.mubr.bf16.mxu1 %v6530_v55  ;;  %7416 = vmatprep.subr.bf16.mxu0 %v17337_v60  ;;  %v17371_v42 = vld [vmem:[#allocation3 + $0x9c8] ss:$16 sps:$4 sm:$0xff]   ;;  %v17379_v24 = vld [vmem:[#allocation3 + $0x9ac] ss:$16 sps:$4 sm:$0xff]  }
 0xc39   : > { %7469 = vmatprep.subr.bf16.mxu1 %v17340_v17  ;;  %v17374_v40 = vld [vmem:[#allocation3 + $0xbc8] ss:$16 sps:$4 sm:$0xff]   ;;  %v17382_v18 = vld [vmem:[#allocation3 + $0xbac] ss:$16 sps:$4 sm:$0xff]  }
 0xc3a   : > { %7417 = vmatpush1.bf16.msra.mxu0 %v17335_v20  ;;  %v17377_v55 = vld [vmem:[#allocation3 + $0x9a8] ss:$16 sps:$4 sm:$0xff]   ;;  %v17385_v44 = vld [vmem:[#allocation3 + $0x98c] ss:$16 sps:$4 sm:$0xff]  }
 0xc3b   : > { %7470 = vmatpush1.bf16.msra.mxu1 %v17338_v9  ;;  %7418 = vmatprep.subr.bf16.mxu0 %v17343_v61  ;;  %v17380_v48 = vld [vmem:[#allocation3 + $0xba8] ss:$16 sps:$4 sm:$0xff]   ;;  %v17388_v0 = vld [vmem:[#allocation3 + $0xb8c] ss:$16 sps:$4 sm:$0xff]  }
 0xc3c   : > { %7471 = vmatprep.subr.bf16.mxu1 %v17346_v13  ;;  %v17383_v36 = vld [vmem:[#allocation3 + $0x988] ss:$16 sps:$4 sm:$0xff]   ;;  %v17391_v29 = vld [vmem:[#allocation3 + $0x96c] ss:$16 sps:$4 sm:$0xff]  }
 0xc3d   : > { %v17386_v51 = vld [vmem:[#allocation3 + $0xb88] ss:$16 sps:$4 sm:$0xff]   ;;  %v17394_v59 = vld [vmem:[#allocation3 + $0xb6c] ss:$16 sps:$4 sm:$0xff]  }
 0xc3e   : > { %7419 = vmatpush1.bf16.msra.mxu0 %v17341_v52  ;;  %v17389_v2 = vld [vmem:[#allocation3 + $0x968] ss:$16 sps:$4 sm:$0xff]   ;;  %v17397_v53 = vld [vmem:[#allocation3 + $0x94c] ss:$16 sps:$4 sm:$0xff]  }
 0xc3f   : > { %7472 = vmatpush1.bf16.msra.mxu1 %v17344_v26  ;;  %7420 = vmatprep.subr.bf16.mxu0 %v17349_v56  ;;  %v17392_v37 = vld [vmem:[#allocation3 + $0xb68] ss:$16 sps:$4 sm:$0xff]   ;;  %v17400_v6 = vld [vmem:[#allocation3 + $0xb4c] ss:$16 sps:$4 sm:$0xff]  }
 0xc40   : > { %7473 = vmatprep.subr.bf16.mxu1 %v17352_v12  ;;  %v17395_v35 = vld [vmem:[#allocation3 + $0x948] ss:$16 sps:$4 sm:$0xff]   ;;  %v17403_v16 = vld [vmem:[#allocation3 + $0x92c] ss:$16 sps:$4 sm:$0xff]  }
 0xc41   : > { %v17398_v10 = vld [vmem:[#allocation3 + $0xb48] ss:$16 sps:$4 sm:$0xff]   ;;  %v17406_v33 = vld [vmem:[#allocation3 + $0xb2c] ss:$16 sps:$4 sm:$0xff]  }
 0xc42   : > { %7421 = vmatpush1.bf16.msra.mxu0 %v17347_v57  ;;  %v17401_v8 = vld [vmem:[#allocation3 + $0x928] ss:$16 sps:$4 sm:$0xff]   ;;  %v17409_v38 = vld [vmem:[#allocation3 + $0x90c] ss:$16 sps:$4 sm:$0xff]  }
 0xc43   : > { %7474 = vmatpush1.bf16.msra.mxu1 %v17350_v32  ;;  %7422 = vmatprep.subr.bf16.mxu0 %v17355_v30  ;;  %v17404_v28 = vld [vmem:[#allocation3 + $0xb28] ss:$16 sps:$4 sm:$0xff]   ;;  %v17412_v1 = vld [vmem:[#allocation3 + $0xb0c] ss:$16 sps:$4 sm:$0xff]  }
 0xc44   : > { %7475 = vmatprep.subr.bf16.mxu1 %v17358_v34  ;;  %v17407_v3 = vld [vmem:[#allocation3 + $0x908] ss:$16 sps:$4 sm:$0xff]  }
 0xc45   : > { %v17410_v58 = vld [vmem:[#allocation3 + $0xb08] ss:$16 sps:$4 sm:$0xff]  }
 0xc46   : > { %7423 = vmatpush1.bf16.msra.mxu0 %v17353_v4 }
 0xc47   : > { %7476 = vmatpush1.bf16.msra.mxu1 %v17356_v7  ;;  %7424 = vmatprep.subr.bf16.mxu0 %v17361_v25 }
 0xc48   : > { %7477 = vmatprep.subr.bf16.mxu1 %v17364_v62 }
 0xc4a   : > { %7425 = vmatpush1.bf16.msra.mxu0 %v17359_v49 }
 0xc4b   : > { %7478 = vmatpush1.bf16.msra.mxu1 %v17362_v46  ;;  %7426 = vmatprep.subr.bf16.mxu0 %v17367_v19 }
 0xc4c   : > { %7479 = vmatprep.subr.bf16.mxu1 %v17370_v11 }
 0xc4e   : > { %7427 = vmatpush2.bf16.msra.mxu0 %v17365_v5 }
 0xc4f   : > { %7480 = vmatpush2.bf16.msra.mxu1 %v17368_v14  ;;  %7428 = vmatprep.subr.bf16.mxu0 %v17373_v27 }
 0xc50   : > { %7481 = vmatprep.subr.bf16.mxu1 %v17376_v50 }
 0xc52   : > { %7429 = vmatpush2.bf16.msra.mxu0 %v17371_v42 }
 0xc53   : > { %7482 = vmatpush2.bf16.msra.mxu1 %v17374_v40  ;;  %7430 = vmatprep.subr.bf16.mxu0 %v17379_v24 }
 0xc54   : > { %7483 = vmatprep.subr.bf16.mxu1 %v17382_v18 }
 0xc56   : > { %7431 = vmatpush2.bf16.msra.mxu0 %v17377_v55 }
 0xc57   : > { %7484 = vmatpush2.bf16.msra.mxu1 %v17380_v48  ;;  %7432 = vmatprep.subr.bf16.mxu0 %v17385_v44 }
 0xc58   : > { %7485 = vmatprep.subr.bf16.mxu1 %v17388_v0  ;;  %v17413_v0 = vld [vmem:[%s21120_s3 + $0x130] sm:$0xff]  }
 0xc5a   : > { %7433 = vmatpush2.bf16.msra.mxu0 %v17383_v36 }
 0xc5b   : > { %7486 = vmatpush2.bf16.msra.mxu1 %v17386_v51  ;;  %7434 = vmatprep.subr.bf16.mxu0 %v17391_v29 }
 0xc5c   : > { %7487 = vmatprep.subr.bf16.mxu1 %v17394_v59 }
 0xc5e   : > { %7435 = vmatpush2.bf16.msra.mxu0 %v17389_v2 }
 0xc5f   : > { %7488 = vmatpush2.bf16.msra.mxu1 %v17392_v37  ;;  %7436 = vmatprep.subr.bf16.mxu0 %v17397_v53 }
 0xc60   : > { %7489 = vmatprep.subr.bf16.mxu1 %v17400_v6 }
 0xc62   : > { %7437 = vmatpush2.bf16.msra.mxu0 %v17395_v35 }
 0xc63   : > { %7490 = vmatpush2.bf16.msra.mxu1 %v17398_v10  ;;  %7438 = vmatprep.subr.bf16.mxu0 %v17403_v16 }
 0xc64   : > { %7491 = vmatprep.subr.bf16.mxu1 %v17406_v33 }
 0xc66   : > { %7439 = vmatpush2.bf16.msra.mxu0 %v17401_v8 }
 0xc67   : > { %7492 = vmatpush2.bf16.msra.mxu1 %v17404_v28  ;;  %7440 = vmatprep.subr.bf16.mxu0 %v17409_v38  ;;  %v17414_v38 = vld [vmem:[%s21120_s3 + $0x138] sm:$0xff]  }
 0xc68   : > { %7493 = vmatprep.subr.bf16.mxu1 %v17412_v1 }
 0xc6a   : > { %7441 = vmatpush2.bf16.msra.mxu0 %v17407_v3 }
 0xc6b   : > { %7494 = vmatpush2.bf16.msra.mxu1 %v17410_v58 }
 0xc6d   : > { %7443 = vmatmul.mubr.bf16.vlgmr.msra.gmra.mxu0 %v19690_v47 }
 0xc6e   : > { %7452 = vmatprep.mubr.bf16.mxu0 %v19696_v54  ;;  %7496 = vmatmul.mubr.bf16.vlgmr.msra.gmra.mxu1 %v19692_v41 }
 0xc6f   : > { %7505 = vmatprep.mubr.bf16.mxu1 %v19699_v15 }
 0xc75   : > { %7453 = vmatmul.mubr.bf16.gmra.mxu0 %v19701_v23 }
 0xc76   : > { %7506 = vmatmul.mubr.bf16.gmra.mxu1 %v19703_v39  ;;  %7712 = vmatprep.mubr.bf16.mxu0 %v21155_v31 }
 0xc77   : > { %7765 = vmatprep.mubr.bf16.mxu1 %v21155_v31 }
 0xced   : > { %v7338_v22 = vpop.f32.mrf.mxu0 }
 0xcee   : > { %v7391_v60 = vpop.f32.mrf.mxu1 }
 0xcef   : > { %v7340_v17 = vpop.f32.mrf.mxu0  ;;  %v7392_v9 = vadd.f32 %v7391_v60, %v7338_v22 }
 0xcf0   : > { %v7393_v20 = vpop.f32.mrf.mxu1 }
 0xcf1   : > { %v7342_v47 = vpop.f32.mrf.mxu0  ;;  %v7394_v54 = vadd.f32 %v7393_v20, %v7340_v17  ;;  %v7516_v15 = vmul.f32 0.33333334, %v7392_v9 }
 0xcf2   : > { %v7395_v61 = vpop.f32.mrf.mxu1 }
 0xcf3   : > { %v7396_v13 = vadd.f32 %v7395_v61, %v7342_v47  ;;  %v7344_v41 = vpop.f32.mrf.mxu0  ;;  %v7517_v12 = vmul.f32 0.33333334, %v7394_v54 }
 0xcf4   : > { %v7397_v52 = vpop.f32.mrf.mxu1 }
 0xcf5   : > { %v7520_v26 = vmul.f32 0.33333334, %v7396_v13  ;;  %v7398_v23 = vadd.f32 %v7397_v52, %v7344_v41  ;;  %v7348_v56 = vpop.f32.mrf.mxu0 }
 0xcf6   : > { %v7401_v39 = vpop.f32.mrf.mxu1 }
 0xcf7   : > { %v19716_v57 = vpack.i.bf16 %v7520_v26, %v7516_v15  ;;  %v7521_v32 = vmul.f32 0.33333334, %v7398_v23  ;;  %v7350_v30 = vpop.f32.mrf.mxu0  ;;  %v7402_v7 = vadd.f32 %v7401_v39, %v7348_v56  ;;  %v7656_v44 = vpack.c.bf16 %v7520_v26, %v7516_v15 }
 0xcf8   : > { %v7403_v34 = vpop.f32.mrf.mxu1 }
 0xcf9   : > { %v19718_v4 = vpack.i.bf16 %v7521_v32, %v7517_v12  ;;  %16316 = vrot.lane.b32.xlu1 %v19716_v57, %s18083_s20  ;;  %v7352_v25 = vpop.f32.mrf.mxu0  ;;  %v7404_v49 = vadd.f32 %v7403_v34, %v7350_v30  ;;  %v7524_v5 = vmul.f32 0.33333334, %v7402_v7  ;;  %v7657_v48 = vpack.c.bf16 %v7521_v32, %v7517_v12 }
 0xcfa   : > { %v7405_v62 = vpop.f32.mrf.mxu1 }
 0xcfb   : > { %v7406_v46 = vadd.f32 %v7405_v62, %v7352_v25  ;;  %16321 = vrot.lane.b32.xlu0 %v19718_v4, %s18083_s20  ;;  %v7354_v19 = vpop.f32.mrf.mxu0  ;;  %v7525_v50 = vmul.f32 0.33333334, %v7404_v49  ;;  %v15140_v49 = vld [vmem:[%s21121_s4 + $0xd0] sm:$0xff] }
 0xcfc   : > { %v7407_v11 = vpop.f32.mrf.mxu1 }
 0xcfd   : > { %v7528_v14 = vmul.f32 0.33333334, %v7406_v46  ;;  %v7408_v27 = vadd.f32 %v7407_v11, %v7354_v19  ;;  %v15139_v46 = vld [vmem:[%s21121_s4 + $0xc8] sm:$0xff] }
 0xcff   : > { %v19724_v42 = vpack.i.bf16 %v7528_v14, %v7524_v5  ;;  %v7529_v40 = vmul.f32 0.33333334, %v7408_v27  ;;  %v7660_v55 = vpack.c.bf16 %v7528_v14, %v7524_v5 }
 0xd01   : > { %v19726_v24 = vpack.i.bf16 %v7529_v40, %v7525_v50  ;;  %16326 = vrot.lane.b32.xlu1 %v19724_v42, %s18083_s20  ;;  %v7661_v18 = vpack.c.bf16 %v7529_v40, %v7525_v50 }
 0xd03   : > { %16331 = vrot.lane.b32.xlu0 %v19726_v24, %s18083_s20  ;;  %7692 = vmatprep.subr.bf16.mxu0 %v7661_v18 }
 0xd04   : > { %7693 = vmatpush1.bf16.msra.mxu0 %v7660_v55 }
 0xd05   : > { %7694 = vmatprep.subr.bf16.mxu0 %v7657_v48 }
 0xd08   : > { %7695 = vmatpush1.bf16.msra.mxu0 %v7656_v44 }
 0xd0b   : > { %15144 = vmatmul.mubr.msk.bf16.vlgmr.msra.gmra.mxu0 %vm1055_vm12, %v17413_v0 }
 0xd0c   : > { %7722 = vmatprep.mubr.bf16.mxu0 %v21155_v31 }
 0xd13   : > { %15145 = vmatmul.mubr.msk.bf16.gmra.mxu0 %vm1055_vm12, %v17414_v38 }
 0xd14   : > { %7834 = vmatprep.mubr.bf16.mxu0 %v21155_v31 }
 0xd2d   : > { %v7444_v36 = vpop.f32.mrf.mxu0 }
 0xd2e   : > { %v7497_v51 = vpop.f32.mrf.mxu1 }
 0xd2f   : > { %v7446_v29 = vpop.f32.mrf.mxu0  ;;  %v7498_v20 = vadd.f32 %v7497_v51, %v7444_v36 }
 0xd30   : > { %v7499_v59 = vpop.f32.mrf.mxu1 }
 0xd31   : > { %v7448_v2 = vpop.f32.mrf.mxu0  ;;  %v7500_v47 = vadd.f32 %v7499_v59, %v7446_v29  ;;  %v7518_v56 = vmul.f32 0.33333334, %v7498_v20 }
 0xd32   : > { %v7501_v37 = vpop.f32.mrf.mxu1 }
 0xd33   : > { %v7450_v53 = vpop.f32.mrf.mxu0  ;;  %v7502_v1 = vadd.f32 %v7501_v37, %v7448_v2  ;;  %v7519_v39 = vmul.f32 0.33333334, %v7500_v47 }
 0xd34   : > { %v7503_v6 = vpop.f32.mrf.mxu1 }
 0xd35   : > { %v7454_v35 = vpop.f32.mrf.mxu0  ;;  %v7504_v58 = vadd.f32 %v7503_v6, %v7450_v53  ;;  %v7522_v41 = vmul.f32 0.33333334, %v7502_v1 }
 0xd36   : > { %v7507_v10 = vpop.f32.mrf.mxu1 }
 0xd37   : > { %v7456_v16 = vpop.f32.mrf.mxu0  ;;  %v7508_v8 = vadd.f32 %v7507_v10, %v7454_v35  ;;  %v7523_v52 = vmul.f32 0.33333334, %v7504_v58  ;;  %v16340_v34 = vpack.i.bf16 %v7522_v41, %v7518_v56  ;;  %v7658_v62 = vpack.c.bf16 %v7522_v41, %v7518_v56 }
 0xd38   : > { %v7509_v33 = vpop.f32.mrf.mxu1 }
 0xd39   : > { %v7458_v28 = vpop.f32.mrf.mxu0  ;;  %v7510_v22 = vadd.f32 %v7509_v33, %v7456_v16  ;;  %v7526_v61 = vmul.f32 0.33333334, %v7508_v8  ;;  %v7659_v7 = vpack.c.bf16 %v7523_v52, %v7519_v39  ;;  %v16350_v25 = vpack.i.bf16 %v7523_v52, %v7519_v39 }
 0xd3a   : > { %v7511_v3 = vpop.f32.mrf.mxu1 }
 0xd3b   : > { %v7512_v60 = vadd.f32 %v7511_v3, %v7458_v28  ;;  %v7460_v17 = vpop.f32.mrf.mxu0  ;;  %v7527_v15 = vmul.f32 0.33333334, %v7510_v22 }
 0xd3c   : > { %v7513_v9 = vpop.f32.mrf.mxu1 }
 0xd3d   : > { %v7530_v54 = vmul.f32 0.33333334, %v7512_v60  ;;  %v7514_v13 = vadd.f32 %v7513_v9, %v7460_v17 }
 0xd3f   : > { %v16335_v26 = vpack.i.bf16 %v7530_v54, %v7526_v61  ;;  %v7531_v23 = vmul.f32 0.33333334, %v7514_v13  ;;  %v7662_v30 = vpack.c.bf16 %v7530_v54, %v7526_v61 }
 0xd41   : > { %v16345_v12 = vpack.i.bf16 %v7531_v23, %v7527_v15  ;;  %16336 = vrot.lane.b32.xlu1 %v16335_v26, %s18083_s20  ;;  %v7663_v32 = vpack.c.bf16 %v7531_v23, %v7527_v15 }
 0xd43   : > { %7745 = vmatprep.subr.bf16.mxu1 %v7663_v32  ;;  %16346 = vrot.lane.b32.xlu0 %v16345_v12, %s18083_s20 }
 0xd44   : > { %7746 = vmatpush1.bf16.msra.mxu1 %v7662_v30 }
 0xd45   : > { %16341 = vrot.lane.b32.xlu1 %v16340_v34, %s18083_s20  ;;  %7747 = vmatprep.subr.bf16.mxu1 %v7659_v7 }
 0xd47   : > { %16351 = vrot.lane.b32.xlu0 %v16350_v25, %s18083_s20 }
 0xd48   : > { %7748 = vmatpush1.bf16.msra.mxu1 %v7658_v62 }
 0xd49   : > { %16356 = vrot.lane.b32.xlu1 %v19724_v42, %s18084_s21 }
 0xd4b   : > { %16361 = vrot.lane.b32.xlu0 %v19726_v24, %s18084_s21  ;;  %15146 = vmatmul.mubr.msk.bf16.vlgmr.msra.gmra.mxu1 %vm1055_vm12, %v17413_v0 }
 0xd4c   : > { %7775 = vmatprep.mubr.bf16.mxu1 %v21155_v31 }
 0xd4d   : > { %16366 = vrot.lane.b32.xlu1 %v16335_v26, %s18084_s21 }
 0xd4f   : > { %16376 = vrot.lane.b32.xlu0 %v19718_v4, %s18084_s21  ;;  %v15141_v4 = vld [vmem:[%s21121_s4 + $0xd8] sm:$0xff] }
 0xd51   : > { %16371 = vrot.lane.b32.xlu1 %v19716_v57, %s18084_s21  ;;  %v15138_v57 = vld [vmem:[%s21121_s4 + $0xc0] sm:$0xff] }
 0xd53   : > { %16386 = vrot.lane.b32.xlu0 %v16345_v12, %s18084_s21  ;;  %15147 = vmatmul.mubr.msk.bf16.gmra.mxu1 %vm1055_vm12, %v17414_v38 }
 0xd54   : > { %7887 = vmatprep.mubr.bf16.mxu1 %v21155_v31 }
 0xd55   : > { %16381 = vrot.lane.b32.xlu1 %v16340_v34, %s18084_s21  ;;  %v17415_v34 = vld [vmem:[%s21120_s3 + $0x120] sm:$0xff]  }
 0xd57   : > { %16391 = vrot.lane.b32.xlu0 %v16350_v25, %s18084_s21 }
 0xd59   : > { %8066 = vperm.xlu1 %15834, %v15140_v49  }
 0xd5b   : > { %8071 = vperm.xlu0 %15833, %v15141_v4  }
 0xd5d   : > { %8056 = vperm.xlu1 %15834, %v15138_v57  }
 0xd5f   : > { %8061 = vperm.xlu0 %15833, %v15139_v46  }
 0xd6b   : > { %v16317_v19 = vpop.permute.xlu1 %16316 }
 0xd6c   : > { %v16319_v29 = vunpack.i.h.bf16 %v16317_v19  ;;  %v16318_v59 = vunpack.i.l.bf16 %v16317_v19 }
 0xd6d   : > { %v16322_v11 = vpop.permute.xlu0 %16321 }
 0xd6e   : > { %v16324_v48 = vunpack.i.h.bf16 %v16322_v11  ;;  %v16323_v44 = vunpack.i.l.bf16 %v16322_v11 }
 0xd70   : > { %v7592_v16 = vsel %vm389_vm2, %v16318_v59, %v16323_v44  ;;  %v7593_v33 = vsel %vm389_vm2, %v16319_v29, %v16324_v48 }
 0xd71   : > { %v7649_v47 = vpack.c.bf16 %v7593_v33, %v7592_v16 }
 0xd73   : > { %v16327_v5 = vpop.permute.xlu1 %16326 }
 0xd74   : > { %v16329_v27 = vunpack.i.h.bf16 %v16327_v5  ;;  %v16328_v50 = vunpack.i.l.bf16 %v16327_v5 }
 0xd75   : > { %v16332_v14 = vpop.permute.xlu0 %16331 }
 0xd76   : > { %v16334_v42 = vunpack.i.h.bf16 %v16332_v14  ;;  %v16333_v40 = vunpack.i.l.bf16 %v16332_v14 }
 0xd78   : > { %v7594_v24 = vsel %vm389_vm2, %v16328_v50, %v16333_v40  ;;  %v7595_v18 = vsel %vm389_vm2, %v16329_v27, %v16334_v42 }
 0xd79   : > { %v7653_v55 = vpack.c.bf16 %v7595_v18, %v7594_v24 }
 0xd7b   : > { %7814 = vmatprep.subr.bf16.mxu0 %v7653_v55 }
 0xdb3   : > { %v16337_v0 = vpop.permute.xlu1 %16336 }
 0xdb4   : > { %v16339_v36 = vunpack.i.h.bf16 %v16337_v0  ;;  %v16338_v51 = vunpack.i.l.bf16 %v16337_v0  ;;  %v17416_v0 = vld [vmem:[%s21120_s3 + $0x128] sm:$0xff]  }
 0xdb5   : > { %v16347_v2 = vpop.permute.xlu0 %16346 }
 0xdb6   : > { %v7590_v37 = vsel %vm389_vm2, %v16333_v40, %v16338_v51  ;;  %v7591_v53 = vsel %vm389_vm2, %v16334_v42, %v16339_v36  ;;  %v16349_v6 = vunpack.i.h.bf16 %v16347_v2  ;;  %v16348_v35 = vunpack.i.l.bf16 %v16347_v2 }
 0xdb7   : > { %v16342_v10 = vpop.permute.xlu1 %16341  ;;  %v7654_v8 = vpack.c.bf16 %v7591_v53, %v7590_v37 }
 0xdb8   : > { %v7599_v28 = vsel %vm389_vm2, %v16349_v6, %v16329_v27  ;;  %v7598_v38 = vsel %vm389_vm2, %v16348_v35, %v16328_v50  ;;  %v16344_v1 = vunpack.i.h.bf16 %v16342_v10  ;;  %v16343_v3 = vunpack.i.l.bf16 %v16342_v10 }
 0xdb9   : > { %v16352_v58 = vpop.permute.xlu0 %16351  ;;  %v7652_v22 = vpack.c.bf16 %v7599_v28, %v7598_v38  ;;  %v7586_v60 = vsel %vm389_vm2, %v16338_v51, %v16348_v35  ;;  %v7587_v17 = vsel %vm389_vm2, %v16339_v36, %v16349_v6 }
 0xdba   : > { %v16354_v20 = vunpack.i.h.bf16 %v16352_v58  ;;  %v16353_v9 = vunpack.i.l.bf16 %v16352_v58  ;;  %v7655_v54 = vpack.c.bf16 %v7587_v17, %v7586_v60  ;;  %v7589_v13 = vsel %vm389_vm2, %v16324_v48, %v16344_v1 }
 0xdbb   : > { %v16357_v61 = vpop.permute.xlu1 %16356  ;;  %7815 = vmatpush1.bf16.msra.mxu0 %v7652_v22  ;;  %v7588_v15 = vsel %vm389_vm2, %v16323_v44, %v16343_v3 }
 0xdbc   : > { %v7597_v41 = vsel %vm389_vm2, %v16354_v20, %v16319_v29  ;;  %v7596_v52 = vsel %vm389_vm2, %v16353_v9, %v16318_v59  ;;  %7816 = vmatprep.subr.bf16.mxu0 %v7649_v47  ;;  %7867 = vmatprep.subr.bf16.mxu1 %v7655_v54  ;;  %v7584_v56 = vsel %vm389_vm2, %v16343_v3, %v16353_v9  ;;  %v16359_v7 = vunpack.i.h.bf16 %v16357_v61  ;;  %v17417_v54 = vld [vmem:[%s21120_s3 + $0x140] sm:$0xff]  }
 0xdbd   : > { %v16362_v26 = vpop.permute.xlu0 %16361  ;;  %v7648_v23 = vpack.c.bf16 %v7597_v41, %v7596_v52  ;;  %v7585_v39 = vsel %vm389_vm2, %v16344_v1, %v16354_v20  ;;  %7868 = vmatpush1.bf16.msra.mxu1 %v7654_v8  ;;  %v16358_v25 = vunpack.i.l.bf16 %v16357_v61  ;;  %v7650_v57 = vpack.c.bf16 %v7589_v13, %v7588_v15  ;;  %v17418_v13 = vld [vmem:[%s21120_s3 + $0x148] sm:$0xff]  }
 0xdbe   : > { %v16364_v12 = vunpack.i.h.bf16 %v16362_v26  ;;  %v16363_v32 = vunpack.i.l.bf16 %v16362_v26  ;;  %v7651_v30 = vpack.c.bf16 %v7585_v39, %v7584_v56 }
 0xdbf   : > { %v16367_v62 = vpop.permute.xlu1 %16366  ;;  %7817 = vmatpush1.bf16.msra.mxu0 %v7648_v23 }
 0xdc0   : > { %v16369_v49 = vunpack.i.h.bf16 %v16367_v62  ;;  %v16368_v4 = vunpack.i.l.bf16 %v16367_v62  ;;  %7869 = vmatprep.subr.bf16.mxu1 %v7651_v30  ;;  %v7643_v46 = vsel %vm402_vm3, %v16359_v7, %v16364_v12  ;;  %v7642_v19 = vsel %vm402_vm3, %v16358_v25, %v16363_v32 }
 0xdc1   : > { %v16377_v11 = vpop.permute.xlu0 %16376  ;;  %7870 = vmatpush1.bf16.msra.mxu1 %v7650_v57  ;;  %v7912_v40 = vpack.c.bf16 %v7643_v46, %v7642_v19 }
 0xdc2   : > { %15150 = vmatmul.mubr.msk.bf16.vlgmr.msra.gmra.mxu0 %vm1055_vm12, %v17415_v34  ;;  %v7638_v5 = vsel %vm402_vm3, %v16363_v32, %v16368_v4  ;;  %v7639_v14 = vsel %vm402_vm3, %v16364_v12, %v16369_v49  ;;  %v16378_v24 = vunpack.i.l.bf16 %v16377_v11  ;;  %v16379_v36 = vunpack.i.h.bf16 %v16377_v11 }
 0xdc3   : > { %v16372_v27 = vpop.permute.xlu1 %16371  ;;  %v7913_v50 = vpack.c.bf16 %v7639_v14, %v7638_v5  ;;  %7844 = vmatprep.mubr.bf16.mxu0 %v21155_v31 }
 0xdc4   : > { %v16373_v42 = vunpack.i.l.bf16 %v16372_v27  ;;  %v16374_v18 = vunpack.i.h.bf16 %v16372_v27  ;;  %15152 = vmatmul.mubr.msk.bf16.vlgmr.msra.gmra.mxu1 %vm1055_vm12, %v17415_v34 }
 0xdc5   : > { %v16387_v55 = vpop.permute.xlu0 %16386  ;;  %7944 = vmatprep.subr.bf16.mxu0 %v7913_v50  ;;  %7897 = vmatprep.mubr.bf16.mxu1 %v21155_v31 }
 0xdc6   : > { %v16389_v48 = vunpack.i.h.bf16 %v16387_v55  ;;  %v16388_v44 = vunpack.i.l.bf16 %v16387_v55  ;;  %7945 = vmatpush1.bf16.msra.mxu0 %v7912_v40  ;;  %v7640_v51 = vsel %vm402_vm3, %v16373_v42, %v16378_v24  ;;  %v7641_v6 = vsel %vm402_vm3, %v16374_v18, %v16379_v36 }
 0xdc7   : > { %v16382_v29 = vpop.permute.xlu1 %16381  ;;  %v7908_v20 = vpack.c.bf16 %v7641_v6, %v7640_v51 }
 0xdc8   : > { %v7635_v59 = vsel %vm402_vm3, %v16369_v49, %v16389_v48  ;;  %v7634_v2 = vsel %vm402_vm3, %v16368_v4, %v16388_v44  ;;  %v16384_v37 = vunpack.i.h.bf16 %v16382_v29  ;;  %v16383_v53 = vunpack.i.l.bf16 %v16382_v29 }
 0xdc9   : > { %v16392_v35 = vpop.permute.xlu0 %16391  ;;  %v7646_v10 = vsel %vm402_vm3, %v16388_v44, %v16358_v25  ;;  %v7647_v16 = vsel %vm402_vm3, %v16389_v48, %v16359_v7  ;;  %v7914_v33 = vpack.c.bf16 %v7635_v59, %v7634_v2 }
 0xdca   : > { %v16394_v8 = vunpack.i.h.bf16 %v16392_v35  ;;  %v16393_v28 = vunpack.i.l.bf16 %v16392_v35  ;;  %15151 = vmatmul.mubr.msk.bf16.gmra.mxu0 %vm1055_vm12, %v17416_v0  ;;  %v7915_v38 = vpack.c.bf16 %v7647_v16, %v7646_v10  ;;  %v7636_v1 = vsel %vm402_vm3, %v16378_v24, %v16383_v53 }
 0xdcb   : > { %v7637_v3 = vsel %vm402_vm3, %v16379_v36, %v16384_v37  ;;  %7964 = vmatprep.mubr.bf16.mxu0 %v21155_v31  ;;  %v7714_v41 = vpop.f32.mrf.mxu0 }
 0xdcc   : > { %v7633_v58 = vsel %vm402_vm3, %v16384_v37, %v16394_v8  ;;  %v7632_v22 = vsel %vm402_vm3, %v16383_v53, %v16393_v28  ;;  %7997 = vmatprep.subr.bf16.mxu1 %v7915_v38  ;;  %v7909_v60 = vpack.c.bf16 %v7637_v3, %v7636_v1  ;;  %v7644_v17 = vsel %vm402_vm3, %v16393_v28, %v16373_v42 }
 0xdcd   : > { %15153 = vmatmul.mubr.msk.bf16.gmra.mxu1 %vm1055_vm12, %v17416_v0  ;;  %v7645_v9 = vsel %vm402_vm3, %v16394_v8, %v16374_v18  ;;  %v7910_v61 = vpack.c.bf16 %v7633_v58, %v7632_v22  ;;  %v7716_v15 = vpop.f32.mrf.mxu0 }
 0xdce   : > { %7998 = vmatpush1.bf16.msra.mxu1 %v7914_v33  ;;  %7946 = vmatprep.subr.bf16.mxu0 %v7909_v60  ;;  %v7911_v47 = vpack.c.bf16 %v7645_v9, %v7644_v17 }
 0xdcf   : > { %7947 = vmatpush1.bf16.msra.mxu0 %v7908_v20  ;;  %8017 = vmatprep.mubr.bf16.mxu1 %v21155_v31  ;;  %v7718_v23 = vpop.f32.mrf.mxu0 }
 0xdd0   : > { %7999 = vmatprep.subr.bf16.mxu1 %v7911_v47 }
 0xdd1   : > { %v7720_v39 = vpop.f32.mrf.mxu0 }
 0xdd2   : > { %8000 = vmatpush1.bf16.msra.mxu1 %v7910_v61  ;;  %15156 = vmatmul.mubr.msk.bf16.vlgmr.msra.gmra.mxu0 %vm1055_vm12, %v17417_v54 }
 0xdd3   : > { %7974 = vmatprep.mubr.bf16.mxu0 %v21155_v31  ;;  %v7724_v32 = vpop.f32.mrf.mxu0 }
 0xdd4   : > { %v19874_v55 = vpop.permute.xlu1 %8066 }
 0xdd5   : > { %15158 = vmatmul.mubr.msk.bf16.vlgmr.msra.gmra.mxu1 %vm1055_vm12, %v17417_v54  ;;  %v7726_v34 = vpop.f32.mrf.mxu0 }
 0xdd6   : > { %8027 = vmatprep.mubr.bf16.mxu1 %v21155_v31  ;;  %v19876_v51 = vpop.permute.xlu0 %8071 }
 0xdd7   : > { %v7728_v25 = vpop.f32.mrf.mxu0 }
 0xdd8   : > { %v8057_v6 = vpop.permute.xlu1 %8056 }
 0xdd9   : > { %v19870_v49 = vpop.f32.mrf.mxu0 }
 0xdda   : > { %15157 = vmatmul.mubr.msk.bf16.gmra.mxu0 %vm1055_vm12, %v17418_v13  ;;  %v19878_v3 = vpop.permute.xlu0 %8061 }
 0xddb   : > { %8318 = vmatprep.mubr.bf16.mxu0 %v21155_v31 }
 0xddd   : > { %15159 = vmatmul.mubr.msk.bf16.gmra.mxu1 %vm1055_vm12, %v17418_v13 }
 0xdde   : > { %8371 = vmatprep.mubr.bf16.mxu1 %v21155_v31 }
 0xe0b   : > { %v7767_v52 = vpop.f32.mrf.mxu1 }
 0xe0d   : > { %v7769_v26 = vpop.f32.mrf.mxu1 }
 0xe0f   : > { %v7771_v56 = vpop.f32.mrf.mxu1 }
 0xe11   : > { %v7773_v12 = vpop.f32.mrf.mxu1 }
 0xe13   : > { %v7777_v30 = vpop.f32.mrf.mxu1 }
 0xe15   : > { %v19866_v7 = vpop.f32.mrf.mxu1 }
 0xe17   : > { %v19868_v62 = vpop.f32.mrf.mxu1 }
 0xe19   : > { %v19872_v57 = vpop.f32.mrf.mxu1 }
 0xe82   : > { %v7836_v4 = vpop.f32.mrf.mxu0 }
 0xe83   : > { %v7837_v0 = vadd.f32 %v7836_v4, %v7714_v41 }
 0xe84   : > { %v7838_v46 = vpop.f32.mrf.mxu0  ;;  %v7889_v19 = vpop.f32.mrf.mxu1 }
 0xe85   : > { %v7839_v59 = vadd.f32 %v7838_v46, %v7716_v15  ;;  %v7890_v9 = vadd.f32 %v7889_v19, %v7767_v52 }
 0xe86   : > { %v7840_v11 = vpop.f32.mrf.mxu0  ;;  %v7891_v5 = vpop.f32.mrf.mxu1 }
 0xe87   : > { %v7841_v35 = vadd.f32 %v7840_v11, %v7718_v23  ;;  %v7892_v47 = vadd.f32 %v7891_v5, %v7769_v26 }
 0xe88   : > { %v7842_v14 = vpop.f32.mrf.mxu0  ;;  %v7893_v27 = vpop.f32.mrf.mxu1 }
 0xe89   : > { %v7843_v28 = vadd.f32 %v7842_v14, %v7720_v39  ;;  %v7894_v13 = vadd.f32 %v7893_v27, %v7771_v56 }
 0xe8a   : > { %v7846_v50 = vpop.f32.mrf.mxu0  ;;  %v7895_v42 = vpop.f32.mrf.mxu1 }
 0xe8b   : > { %v7896_v41 = vadd.f32 %v7895_v42, %v7773_v12  ;;  %v7847_v15 = vadd.f32 %v7846_v50, %v7724_v32 }
 0xe8c   : > { %v7848_v40 = vpop.f32.mrf.mxu0 }
 0xe8d   : > { %v7899_v24 = vpop.f32.mrf.mxu1  ;;  %v7849_v4 = vadd.f32 %v7848_v40, %v7726_v34 }
 0xe8e   : > { %v7850_v18 = vpop.f32.mrf.mxu0 }
 0xe8f   : > { %v7901_v48 = vpop.f32.mrf.mxu1 }
 0xe90   : > { %v7852_v44 = vpop.f32.mrf.mxu0  ;;  %v7902_v19 = vadd.f32 %v7901_v48, %v19866_v7 }
 0xe91   : > { %v7903_v36 = vpop.f32.mrf.mxu1  ;;  %v7853_v34 = vadd.f32 %v7852_v44, %v19870_v49 }
 0xe92   : > { %v7966_v29 = vpop.f32.mrf.mxu0  ;;  %v7904_v27 = vadd.f32 %v7903_v36, %v19868_v62 }
 0xe93   : > { %v7905_v2 = vpop.f32.mrf.mxu1  ;;  %v8038_v37 = vadd.f32 %v7966_v29, %v7837_v0  ;;  %v7900_v29 = vadd.f32 %v7899_v24, %v7777_v30 }
 0xe94   : > { %v7968_v53 = vpop.f32.mrf.mxu0  ;;  %v7906_v50 = vadd.f32 %v7905_v2, %v19872_v57 }
 0xe95   : > { %v8019_v10 = vpop.f32.mrf.mxu1  ;;  %v8039_v16 = vadd.f32 %v7968_v53, %v7839_v59  ;;  %v8074_v33 = vadd.f32 %v8057_v6, %v8038_v37  ;;  %v7851_v59 = vadd.f32 %v7850_v18, %v7728_v25 }
 0xe96   : > { %v7970_v8 = vpop.f32.mrf.mxu0  ;;  %v8040_v46 = vadd.f32 %v8019_v10, %v7890_v9 }
 0xe97   : > { %v8021_v38 = vpop.f32.mrf.mxu1  ;;  %v8042_v1 = vadd.f32 %v7970_v8, %v7841_v35  ;;  %v8075_v58 = vadd.f32 %v8057_v6, %v8039_v16  ;;  %v8090_v61 = vmul.f32 0.2, %v8074_v33 }
 0xe98   : > { %v7972_v22 = vpop.f32.mrf.mxu0  ;;  %v8041_v56 = vadd.f32 %v8021_v38, %v7892_v47  ;;  %v19891_v25 = vadd.f32 %v8057_v6, %v8040_v46 }
 0xe99   : > { %v8078_v60 = vadd.f32 %v19878_v3, %v8042_v1  ;;  %v8023_v17 = vpop.f32.mrf.mxu1  ;;  %v8043_v20 = vadd.f32 %v7972_v22, %v7843_v28  ;;  %v8091_v11 = vmul.f32 0.2, %v8075_v58  ;;  %v19885_v5 = vmax.f32 %v8074_v33, %v8090_v61 }
 0xe9a   : > { %v7976_v54 = vpop.f32.mrf.mxu0  ;;  %v8044_v12 = vadd.f32 %v8023_v17, %v7894_v13  ;;  %v8077_v57 = vadd.f32 %v8057_v6, %v8041_v56 }
 0xe9b   : > { %v8079_v23 = vadd.f32 %v19878_v3, %v8043_v20  ;;  %v8025_v39 = vpop.f32.mrf.mxu1  ;;  %v8094_v14 = vmul.f32 0.2, %v8078_v60  ;;  %v8046_v52 = vadd.f32 %v7976_v54, %v7847_v15  ;;  %v19893_v40 = vmax.f32 %v8075_v58, %v8091_v11 }
 0xe9c   : > { %v7978_v0 = vpop.f32.mrf.mxu0  ;;  %v8045_v48 = vadd.f32 %v8025_v39, %v7896_v41  ;;  %v8122_v49 = vsel %vm339_vm10, %v19885_v5, 0.0  ;;  %v8080_v44 = vadd.f32 %v19878_v3, %v8044_v12 }
 0xe9d   : > { %v8095_v37 = vmul.f32 0.2, %v8079_v23  ;;  %v8029_v26 = vpop.f32.mrf.mxu1  ;;  %v8082_v42 = vadd.f32 %v19874_v55, %v8046_v52  ;;  %v19895_v24 = vmax.f32 %v8078_v60, %v8094_v14  ;;  %v8047_v53 = vadd.f32 %v7978_v0, %v7849_v4 }
 0xe9e   : > { %v7980_v32 = vpop.f32.mrf.mxu0  ;;  %v8048_v7 = vadd.f32 %v8029_v26, %v7900_v29  ;;  %v8123_v38 = vsel %vm340_vm11, %v19893_v40, 0.0  ;;  %v8081_v22 = vadd.f32 %v19878_v3, %v8045_v48  ;;  %v8092_v3 = vmul.f32 0.2, %v19891_v25 }
 0xe9f   : > { %v8031_v30 = vpop.f32.mrf.mxu1  ;;  %v19897_v18 = vmax.f32 %v8079_v23, %v8095_v37  ;;  %v8098_v2 = vmul.f32 0.2, %v8082_v42  ;;  %v8083_v16 = vadd.f32 %v19874_v55, %v8047_v53  ;;  %v8050_v8 = vadd.f32 %v7980_v32, %v7851_v59 }
 0xea0   : > { %v8049_v35 = vadd.f32 %v8031_v30, %v7902_v19  ;;  %v7982_v36 = vpop.f32.mrf.mxu0  ;;  %v8084_v10 = vadd.f32 %v19874_v55, %v8048_v7  ;;  %v8126_v6 = vsel %vm339_vm10, %v19895_v24, 0.0  ;;  %v8097_v11 = vmul.f32 0.2, %v8081_v22 }
 0xea1   : > { %v8033_v62 = vpop.f32.mrf.mxu1  ;;  %v8051_v58 = vadd.f32 %v7982_v36, %v7853_v34  ;;  %v8099_v60 = vmul.f32 0.2, %v8083_v16  ;;  %v8086_v17 = vadd.f32 %v19876_v51, %v8050_v8  ;;  %v8114_v20 = vmax.f32 %v8082_v42, %v8098_v2 }
 0xea2   : > { %v8085_v33 = vadd.f32 %v19874_v55, %v8049_v35  ;;  %v8052_v1 = vadd.f32 %v8033_v62, %v7904_v27  ;;  %v8127_v55 = vsel %vm340_vm11, %v19897_v18, 0.0  ;;  %v8100_v54 = vmul.f32 0.2, %v8084_v10 }
 0xea3   : > { %v8035_v28 = vpop.f32.mrf.mxu1  ;;  %v8087_v47 = vadd.f32 %v19876_v51, %v8051_v58  ;;  %v8102_v41 = vmul.f32 0.2, %v8086_v17  ;;  %v19921_v15 = vpack.i.bf16 %v8126_v6, %v8122_v49  ;;  %v8115_v23 = vmax.f32 %v8083_v16, %v8099_v60  ;;  %v17419_v58 = vld [vmem:[%s21120_s3 + $0x160] sm:$0xff]  }
 0xea4   : > { %v8088_v9 = vadd.f32 %v19876_v51, %v8052_v1  ;;  %v8053_v61 = vadd.f32 %v8035_v28, %v7906_v50  ;;  %v8101_v13 = vmul.f32 0.2, %v8085_v33  ;;  %v19927_v0 = vpack.i.bf16 %v8127_v55, %v8123_v38 }
 0xea5   : > { %v8103_v4 = vmul.f32 0.2, %v8087_v47  ;;  %v8118_v14 = vmax.f32 %v8086_v17, %v8102_v41  ;;  %16396 = vrot.lane.b32.xlu1 %v19921_v15, %s18083_s20  ;;  %v8096_v29 = vmul.f32 0.2, %v8080_v44  ;;  %v8093_v26 = vmul.f32 0.2, %v8077_v57 }
 0xea6   : > { %v8104_v39 = vmul.f32 0.2, %v8088_v9  ;;  %v8089_v46 = vadd.f32 %v19876_v51, %v8053_v61  ;;  %v8130_v19 = vsel %vm339_vm10, %v8114_v20, 0.0  ;;  %v8116_v56 = vmax.f32 %v8084_v10, %v8100_v54  ;;  %16401 = vrot.lane.b32.xlu0 %v19927_v0, %s18083_s20  ;;  %v15174_v61 = vld [vmem:[%s21121_s4 + $0xf0] sm:$0xff]  ;;  %v15175_v54 = vld [vmem:[%s21121_s4 + $0xf8] sm:$0xff] }
 0xea7   : > { %v8119_v37 = vmax.f32 %v8087_v47, %v8103_v4  ;;  %v8134_v51 = vsel %vm339_vm10, %v8118_v14, 0.0  ;;  %v8131_v32 = vsel %vm340_vm11, %v8115_v23, 0.0  ;;  %v8117_v27 = vmax.f32 %v8085_v33, %v8101_v13  ;;  %v15173_v47 = vld [vmem:[%s21121_s4 + $0xe8] sm:$0xff]  ;;  %vm20402_vm10 = vmpackc.low %vm338_vm8, %vm338_vm8 }
 0xea8   : > { %v8120_v59 = vmax.f32 %v8088_v9, %v8104_v39  ;;  %v8105_v52 = vmul.f32 0.2, %v8089_v46  ;;  %v8113_v30 = vmax.f32 %v8081_v22, %v8097_v11  ;;  %v16405_v7 = vpack.i.bf16 %v8134_v51, %v8130_v19  ;;  %v15172_v9 = vld [vmem:[%s21121_s4 + $0xe0] sm:$0xff] }
 0xea9   : > { %v8135_v34 = vsel %vm340_vm11, %v8119_v37, 0.0  ;;  %v15179_v48 = vpack.c.bf16 %v8119_v37, %v8115_v23  ;;  %v8112_v62 = vmax.f32 %v8080_v44, %v8096_v29  ;;  %v15182_v36 = vpack.c.bf16 %v8118_v14, %v8114_v20  ;;  %v17420_v20 = vld [vmem:[%s21120_s3 + $0x168] sm:$0xff]   ;;  %vm20413_vm11 = vmpackc.low %vm335_vm5, %vm335_vm5 }
 0xeaa   : > { %v8121_v50 = vmax.f32 %v8089_v46, %v8105_v52  ;;  %v16420_v35 = vpack.i.bf16 %v8135_v34, %v8131_v32  ;;  %v8136_v49 = vsel %vm341_vm14, %v8120_v59, 0.0  ;;  %v8109_v10 = vmax.f32 %v8077_v57, %v8093_v26  ;;  %16406 = vrot.lane.b32.xlu1 %v16405_v7, %s18083_s20 }
 0xeab   : > { %15180 = vmatprep.subr.msk.bf16.mxu0 %vm19938_vm15, %v15179_v48  ;;  %v15185_v16 = vpack.c.bf16 %v19897_v18, %v19893_v40  ;;  %v8108_v44 = vmax.f32 %v19891_v25, %v8092_v3  ;;  %v8132_v57 = vsel %vm341_vm14, %v8116_v56, 0.0  ;;  %v15196_v8 = vpack.c.bf16 %v8120_v59, %v8116_v56 }
 0xeac   : > { %v15193_v2 = vpack.c.bf16 %v8121_v50, %v8117_v27  ;;  %v8137_v28 = vsel %vm342_vm13, %v8121_v50, 0.0  ;;  %15183 = vmatpush1.bf16.msk.msra.mxu0 %vm19949_vm0, %v15182_v36  ;;  %16421 = vrot.lane.b32.xlu0 %v16420_v35, %s18083_s20  ;;  %v15199_v40 = vpack.c.bf16 %v8113_v30, %v8109_v10  ;;  %v16410_v25 = vpack.i.bf16 %v8136_v49, %v8132_v57 }
 0xead   : > { %15186 = vmatprep.subr.msk.bf16.mxu0 %vm19938_vm15, %v15185_v16  ;;  %v15188_v18 = vpack.c.bf16 %v19895_v24, %v19885_v5  ;;  %v8128_v38 = vsel %vm341_vm14, %v8112_v62, 0.0  ;;  %v8133_v6 = vsel %vm342_vm13, %v8117_v27, 0.0  ;;  %v8124_v5 = vsel %vm341_vm14, %v8108_v44, 0.0 }
 0xeae   : > { %15194 = vmatprep.subr.msk.bf16.mxu1 %vm19956_vm1, %v15193_v2  ;;  %16411 = vrot.lane.b32.xlu1 %v16410_v25, %s18083_s20  ;;  %v16425_v1 = vpack.i.bf16 %v8137_v28, %v8133_v6  ;;  %v15202_v24 = vpack.c.bf16 %v8112_v62, %v8108_v44  ;;  %v8129_v55 = vsel %vm342_vm13, %v8113_v30, 0.0  ;;  %v16415_v22 = vpack.i.bf16 %v8128_v38, %v8124_v5 }
 0xeaf   : > { %15197 = vmatpush1.bf16.msk.msra.mxu1 %vm19970_vm4, %v15196_v8  ;;  %v8125_v60 = vsel %vm342_vm13, %v8109_v10, 0.0  ;;  %vm20422_vm13 = vmpackc.low %vm337_vm7, %vm337_vm7  ;;  %vm331_vm14 = vcmp.lt.s32.totalorder %v18208_v21, 4  ;;  %vm332_vm15 = vcmp.lt.s32.totalorder %v21156_v63, 4  ;;  %v17836_v21 = vld [vmem:[#allocation3 + $0x16e0] ss:$16 sps:$4 sm:$0xff]  }
 0xeb0   : > { %15200 = vmatprep.subr.msk.bf16.mxu1 %vm19956_vm1, %v15199_v40  ;;  %15189 = vmatpush1.bf16.msk.msra.mxu0 %vm19949_vm0, %v15188_v18  ;;  %v16430_v17 = vpack.i.bf16 %v8129_v55, %v8125_v60  ;;  %vm333_vm0 = vcmp.lt.s32.totalorder %v21164_v45, 4  ;;  %vm334_vm1 = vcmp.lt.s32.totalorder %v21157_v43, 4  ;;  %v17828_v43 = vld [vmem:[%s21120_s3 + $0x228] sm:$0xff]  }
 0xeb1   : > { %16426 = vrot.lane.b32.xlu0 %v16425_v1, %s18083_s20 }
 0xeb2   : > { %16416 = vrot.lane.b32.xlu1 %v16415_v22, %s18083_s20 }
 0xeb3   : > { %15203 = vmatpush1.bf16.msk.msra.mxu1 %vm19970_vm4, %v15202_v24  ;;  %15190 = vmatmul.mubr.msk.bf16.vlgmr.msra.gmra.mxu0 %vm1055_vm12, %v17419_v58  ;;  %vm20848_vm4 = vmpackc.low %vm332_vm15, %vm332_vm15 }
 0xeb4   : > { %8328 = vmatprep.mubr.bf16.mxu0 %v21155_v31 }
 0xeb5   : > { %16431 = vrot.lane.b32.xlu0 %v16430_v17, %s18083_s20 }
 0xeb6   : > { %15204 = vmatmul.mubr.msk.bf16.vlgmr.msra.gmra.mxu1 %vm1055_vm12, %v17419_v58  ;;  %16436 = vrot.lane.b32.xlu1 %v16405_v7, %s18084_s21 }
 0xeb7   : > { %8381 = vmatprep.mubr.bf16.mxu1 %v21155_v31 }
 0xeb9   : > { %16441 = vrot.lane.b32.xlu0 %v16420_v35, %s18084_s21 }
 0xeba   : > { %16446 = vrot.lane.b32.xlu1 %v16410_v25, %s18084_s21 }
 0xebb   : > { %15191 = vmatmul.mubr.msk.bf16.gmra.mxu0 %vm1055_vm12, %v17420_v20 }
 0xebc   : > { %8440 = vmatprep.mubr.bf16.mxu0 %v21155_v31 }
 0xebd   : > { %16456 = vrot.lane.b32.xlu0 %v19927_v0, %s18084_s21 }
 0xebe   : > { %15205 = vmatmul.mubr.msk.bf16.gmra.mxu1 %vm1055_vm12, %v17420_v20  ;;  %16451 = vrot.lane.b32.xlu1 %v19921_v15, %s18084_s21 }
 0xebf   : > { %8493 = vmatprep.mubr.bf16.mxu1 %v21155_v31 }
 0xec1   : > { %16466 = vrot.lane.b32.xlu0 %v16425_v1, %s18084_s21 }
 0xec2   : > { %16461 = vrot.lane.b32.xlu1 %v16415_v22, %s18084_s21  ;;  %v17421_v22 = vld [vmem:[%s21120_s3 + $0x150] sm:$0xff]  }
 0xec5   : > { %16471 = vrot.lane.b32.xlu0 %v16430_v17, %s18084_s21 }
 0xec6   : > { %8662 = vperm.xlu1 %15834, %v15172_v9  }
 0xec9   : > { %8667 = vperm.xlu0 %15833, %v15173_v47  }
 0xeca   : > { %8672 = vperm.xlu1 %15834, %v15174_v61  }
 0xecd   : > { %8677 = vperm.xlu0 %15833, %v15175_v54  }
 0xf17   : > { %v16397_v13 = vpop.permute.xlu1 %16396 }
 0xf18   : > { %v16402_v41 = vpop.permute.xlu0 %16401  ;;  %v16399_v26 = vunpack.i.h.bf16 %v16397_v13  ;;  %v16398_v19 = vunpack.i.l.bf16 %v16397_v13 }
 0xf19   : > { %v16404_v11 = vunpack.i.h.bf16 %v16402_v41  ;;  %v16403_v14 = vunpack.i.l.bf16 %v16402_v41 }
 0xf1b   : > { %v8198_v50 = vsel %vm389_vm2, %v16398_v19, %v16403_v14  ;;  %v8199_v42 = vsel %vm389_vm2, %v16399_v26, %v16404_v11 }
 0xf1c   : > { %v16407_v15 = vpop.permute.xlu1 %16406  ;;  %v8255_v33 = vpack.c.bf16 %v8199_v42, %v8198_v50 }
 0xf1d   : > { %v16409_v39 = vunpack.i.h.bf16 %v16407_v15  ;;  %v16408_v4 = vunpack.i.l.bf16 %v16407_v15 }
 0xf1e   : > { %v16422_v23 = vpop.permute.xlu0 %16421 }
 0xf1f   : > { %v16424_v46 = vunpack.i.h.bf16 %v16422_v23  ;;  %v16423_v3 = vunpack.i.l.bf16 %v16422_v23 }
 0xf20   : > { %v16412_v0 = vpop.permute.xlu1 %16411 }
 0xf21   : > { %v16414_v29 = vunpack.i.h.bf16 %v16412_v0  ;;  %v16413_v59 = vunpack.i.l.bf16 %v16412_v0  ;;  %v8200_v37 = vsel %vm389_vm2, %v16408_v4, %v16423_v3  ;;  %v8201_v52 = vsel %vm389_vm2, %v16409_v39, %v16424_v46 }
 0xf22   : > { %v8259_v51 = vpack.c.bf16 %v8201_v52, %v8200_v37  ;;  %v17422_v37 = vld [vmem:[%s21120_s3 + $0x158] sm:$0xff]  }
 0xf23   : > { %v16427_v56 = vpop.permute.xlu0 %16426  ;;  %v8197_v27 = vsel %vm389_vm2, %v16424_v46, %v16414_v29  ;;  %v8196_v30 = vsel %vm389_vm2, %v16423_v3, %v16413_v59 }
 0xf24   : > { %v16429_v12 = vunpack.i.h.bf16 %v16427_v56  ;;  %v16428_v32 = vunpack.i.l.bf16 %v16427_v56  ;;  %v16417_v34 = vpop.permute.xlu1 %16416  ;;  %8420 = vmatprep.subr.bf16.mxu0 %v8259_v51  ;;  %v8260_v25 = vpack.c.bf16 %v8197_v27, %v8196_v30 }
 0xf25   : > { %v16419_v53 = vunpack.i.h.bf16 %v16417_v34  ;;  %v16418_v35 = vunpack.i.l.bf16 %v16417_v34 }
 0xf26   : > { %v8204_v7 = vsel %vm389_vm2, %v16428_v32, %v16408_v4  ;;  %v8205_v48 = vsel %vm389_vm2, %v16429_v12, %v16409_v39  ;;  %v8192_v49 = vsel %vm389_vm2, %v16413_v59, %v16428_v32  ;;  %v8193_v2 = vsel %vm389_vm2, %v16414_v29, %v16429_v12 }
 0xf27   : > { %v16432_v62 = vpop.permute.xlu0 %16431  ;;  %v8258_v36 = vpack.c.bf16 %v8205_v48, %v8204_v7  ;;  %v8261_v57 = vpack.c.bf16 %v8193_v2, %v8192_v49  ;;  %v8195_v8 = vsel %vm389_vm2, %v16404_v11, %v16419_v53  ;;  %v8194_v18 = vsel %vm389_vm2, %v16403_v14, %v16418_v35 }
 0xf28   : > { %v16434_v10 = vunpack.i.h.bf16 %v16432_v62  ;;  %v16433_v16 = vunpack.i.l.bf16 %v16432_v62  ;;  %v16437_v44 = vpop.permute.xlu1 %16436  ;;  %v8256_v61 = vpack.c.bf16 %v8195_v8, %v8194_v18  ;;  %v17433_v18 = vld [vmem:[#allocation3 + $0xcc4] ss:$16 sps:$4 sm:$0xff]  }
 0xf29   : > { %8421 = vmatpush1.bf16.msra.mxu0 %v8258_v36  ;;  %8473 = vmatprep.subr.bf16.mxu1 %v8261_v57  ;;  %v16439_v60 = vunpack.i.h.bf16 %v16437_v44  ;;  %v16438_v17 = vunpack.i.l.bf16 %v16437_v44 }
 0xf2a   : > { %v8202_v28 = vsel %vm389_vm2, %v16433_v16, %v16398_v19  ;;  %v8203_v40 = vsel %vm389_vm2, %v16434_v10, %v16399_v26  ;;  %8422 = vmatprep.subr.bf16.mxu0 %v8255_v33  ;;  %v8190_v1 = vsel %vm389_vm2, %v16418_v35, %v16433_v16  ;;  %v8191_v58 = vsel %vm389_vm2, %v16419_v53, %v16434_v10  ;;  %v17427_v16 = vld [vmem:[#allocation3 + $0xce4] ss:$16 sps:$4 sm:$0xff]  }
 0xf2b   : > { %v16442_v38 = vpop.permute.xlu0 %16441  ;;  %v8254_v6 = vpack.c.bf16 %v8203_v40, %v8202_v28  ;;  %8474 = vmatpush1.bf16.msra.mxu1 %v8260_v25  ;;  %v8257_v55 = vpack.c.bf16 %v8191_v58, %v8190_v1  ;;  %v17423_v28 = vld [vmem:[%s21120_s3 + $0x170] sm:$0xff]  }
 0xf2c   : > { %v16444_v5 = vunpack.i.h.bf16 %v16442_v38  ;;  %v16443_v24 = vunpack.i.l.bf16 %v16442_v38  ;;  %v16447_v20 = vpop.permute.xlu1 %16446  ;;  %v17425_v40 = vld [vmem:[#allocation3 + $0xce0] ss:$16 sps:$4 sm:$0xff]   ;;  %v17430_v25 = vld [vmem:[#allocation3 + $0xee4] ss:$16 sps:$4 sm:$0xff]  }
 0xf2d   : > { %8423 = vmatpush1.bf16.msra.mxu0 %v8254_v6  ;;  %v16449_v9 = vunpack.i.h.bf16 %v16447_v20  ;;  %v16448_v47 = vunpack.i.l.bf16 %v16447_v20  ;;  %8475 = vmatprep.subr.bf16.mxu1 %v8257_v55  ;;  %v17428_v38 = vld [vmem:[#allocation3 + $0xee0] ss:$16 sps:$4 sm:$0xff]   ;;  %v17436_v1 = vld [vmem:[#allocation3 + $0xec4] ss:$16 sps:$4 sm:$0xff]  }
 0xf2e   : > { %v8248_v54 = vsel %vm402_vm3, %v16438_v17, %v16443_v24  ;;  %v8249_v13 = vsel %vm402_vm3, %v16439_v60, %v16444_v5  ;;  %v17431_v6 = vld [vmem:[#allocation3 + $0xcc0] ss:$16 sps:$4 sm:$0xff]   ;;  %v17439_v58 = vld [vmem:[#allocation3 + $0xca4] ss:$16 sps:$4 sm:$0xff]  }
 0xf2f   : > { %v16457_v41 = vpop.permute.xlu0 %16456  ;;  %8476 = vmatpush1.bf16.msra.mxu1 %v8256_v61  ;;  %v8244_v15 = vsel %vm402_vm3, %v16443_v24, %v16448_v47  ;;  %v8245_v23 = vsel %vm402_vm3, %v16444_v5, %v16449_v9  ;;  %v8518_v3 = vpack.c.bf16 %v8249_v13, %v8248_v54  ;;  %v17424_v5 = vld [vmem:[%s21120_s3 + $0x178] sm:$0xff]   ;;  %v17434_v24 = vld [vmem:[#allocation3 + $0xec0] ss:$16 sps:$4 sm:$0xff]  }
 0xf30   : > { %15208 = vmatmul.mubr.msk.bf16.vlgmr.msra.gmra.mxu0 %vm1055_vm12, %v17421_v22  ;;  %v16452_v39 = vpop.permute.xlu1 %16451  ;;  %v8519_v4 = vpack.c.bf16 %v8245_v23, %v8244_v15  ;;  %v16459_v11 = vunpack.i.h.bf16 %v16457_v41  ;;  %v16458_v52 = vunpack.i.l.bf16 %v16457_v41  ;;  %v17437_v55 = vld [vmem:[#allocation3 + $0xca0] ss:$16 sps:$4 sm:$0xff]   ;;  %v17454_v13 = vld [vmem:[#allocation3 + $0xe64] ss:$16 sps:$4 sm:$0xff]  }
 0xf31   : > { %8450 = vmatprep.mubr.bf16.mxu0 %v21155_v31  ;;  %v16454_v46 = vunpack.i.h.bf16 %v16452_v39  ;;  %v16453_v14 = vunpack.i.l.bf16 %v16452_v39  ;;  %v17443_v20 = vld [vmem:[#allocation3 + $0xc80] ss:$16 sps:$4 sm:$0xff]   ;;  %v17457_v41 = vld [vmem:[#allocation3 + $0xc44] ss:$16 sps:$4 sm:$0xff]  }
 0xf32   : > { %15210 = vmatmul.mubr.msk.bf16.vlgmr.msra.gmra.mxu1 %vm1055_vm12, %v17421_v22  ;;  %8550 = vmatprep.subr.bf16.mxu0 %v8519_v4  ;;  %v17442_v22 = vld [vmem:[#allocation3 + $0xea4] ss:$16 sps:$4 sm:$0xff]   ;;  %v17446_v61 = vld [vmem:[#allocation3 + $0xe80] ss:$16 sps:$4 sm:$0xff]  }
 0xf33   : > { %v16467_v0 = vpop.permute.xlu0 %16466  ;;  %8551 = vmatpush1.bf16.msra.mxu0 %v8518_v3  ;;  %8503 = vmatprep.mubr.bf16.mxu1 %v21155_v31  ;;  %v8247_v26 = vsel %vm402_vm3, %v16454_v46, %v16459_v11  ;;  %v8246_v27 = vsel %vm402_vm3, %v16453_v14, %v16458_v52  ;;  %v17449_v54 = vld [vmem:[#allocation3 + $0xc60] ss:$16 sps:$4 sm:$0xff]   ;;  %v17460_v39 = vld [vmem:[#allocation3 + $0xe44] ss:$16 sps:$4 sm:$0xff]  }
 0xf34   : > { %v16469_v29 = vunpack.i.h.bf16 %v16467_v0  ;;  %v16468_v59 = vunpack.i.l.bf16 %v16467_v0  ;;  %v16462_v19 = vpop.permute.xlu1 %16461  ;;  %v8514_v33 = vpack.c.bf16 %v8247_v26, %v8246_v27  ;;  %v17452_v15 = vld [vmem:[#allocation3 + $0xe60] ss:$16 sps:$4 sm:$0xff]   ;;  %v17463_v4 = vld [vmem:[#allocation3 + $0xc24] ss:$16 sps:$4 sm:$0xff]  }
 0xf35   : > { %v16464_v12 = vunpack.i.h.bf16 %v16462_v19  ;;  %v16463_v32 = vunpack.i.l.bf16 %v16462_v19  ;;  %v17455_v23 = vld [vmem:[#allocation3 + $0xc40] ss:$16 sps:$4 sm:$0xff]   ;;  %v17475_v26 = vld [vmem:[#allocation3 + $0xde4] ss:$16 sps:$4 sm:$0xff]  }
 0xf36   : > { %v8240_v56 = vsel %vm402_vm3, %v16448_v47, %v16468_v59  ;;  %v8241_v51 = vsel %vm402_vm3, %v16449_v9, %v16469_v29  ;;  %v8252_v50 = vsel %vm402_vm3, %v16468_v59, %v16438_v17  ;;  %v8253_v42 = vsel %vm402_vm3, %v16469_v29, %v16439_v60  ;;  %v17445_v60 = vld [vmem:[#allocation3 + $0xc84] ss:$16 sps:$4 sm:$0xff]   ;;  %v17440_v17 = vld [vmem:[#allocation3 + $0xea0] ss:$16 sps:$4 sm:$0xff]  }
 0xf37   : > { %v16472_v34 = vpop.permute.xlu0 %16471  ;;  %v8520_v30 = vpack.c.bf16 %v8241_v51, %v8240_v56  ;;  %v8521_v53 = vpack.c.bf16 %v8253_v42, %v8252_v50  ;;  %v8242_v35 = vsel %vm402_vm3, %v16458_v52, %v16463_v32  ;;  %v8243_v62 = vsel %vm402_vm3, %v16459_v11, %v16464_v12  ;;  %v17448_v9 = vld [vmem:[#allocation3 + $0xe84] ss:$16 sps:$4 sm:$0xff]   ;;  %v17461_v3 = vld [vmem:[#allocation3 + $0xc20] ss:$16 sps:$4 sm:$0xff]  }
 0xf38   : > { %v16474_v7 = vunpack.i.h.bf16 %v16472_v34  ;;  %v16473_v48 = vunpack.i.l.bf16 %v16472_v34  ;;  %15209 = vmatmul.mubr.msk.bf16.gmra.mxu0 %vm1055_vm12, %v17422_v37  ;;  %v8515_v2 = vpack.c.bf16 %v8243_v62, %v8242_v35  ;;  %v17451_v47 = vld [vmem:[#allocation3 + $0xc64] ss:$16 sps:$4 sm:$0xff]   ;;  %v17464_v0 = vld [vmem:[#allocation3 + $0xe20] ss:$16 sps:$4 sm:$0xff]  }
 0xf39   : > { %8570 = vmatprep.mubr.bf16.mxu0 %v21155_v31  ;;  %8603 = vmatprep.subr.bf16.mxu1 %v8521_v53  ;;  %v17466_v11 = vld [vmem:[#allocation3 + $0xe24] ss:$16 sps:$4 sm:$0xff]   ;;  %v17467_v29 = vld [vmem:[#allocation3 + $0xc00] ss:$16 sps:$4 sm:$0xff]  }
 0xf3a   : > { %v8238_v36 = vsel %vm402_vm3, %v16463_v32, %v16473_v48  ;;  %v8239_v49 = vsel %vm402_vm3, %v16464_v12, %v16474_v7  ;;  %v8250_v10 = vsel %vm402_vm3, %v16473_v48, %v16453_v14  ;;  %15211 = vmatmul.mubr.msk.bf16.gmra.mxu1 %vm1055_vm12, %v17422_v37  ;;  %v8251_v44 = vsel %vm402_vm3, %v16474_v7, %v16454_v46  ;;  %v17458_v46 = vld [vmem:[#allocation3 + $0xe40] ss:$16 sps:$4 sm:$0xff]   ;;  %v17469_v14 = vld [vmem:[#allocation3 + $0xc04] ss:$16 sps:$4 sm:$0xff]  }
 0xf3b   : > { %8604 = vmatpush1.bf16.msra.mxu1 %v8520_v30  ;;  %8552 = vmatprep.subr.bf16.mxu0 %v8515_v2  ;;  %v8517_v57 = vpack.c.bf16 %v8251_v44, %v8250_v10  ;;  %v8516_v8 = vpack.c.bf16 %v8239_v49, %v8238_v36  ;;  %v17472_v59 = vld [vmem:[#allocation3 + $0xe04] ss:$16 sps:$4 sm:$0xff]   ;;  %v17470_v37 = vld [vmem:[#allocation3 + $0xe00] ss:$16 sps:$4 sm:$0xff]  }
 0xf3c   : > { %8553 = vmatpush1.bf16.msra.mxu0 %v8514_v33  ;;  %8623 = vmatprep.mubr.bf16.mxu1 %v21155_v31  ;;  %v17473_v52 = vld [vmem:[#allocation3 + $0xde0] ss:$16 sps:$4 sm:$0xff]   ;;  %v17478_v56 = vld [vmem:[#allocation3 + $0xfe4] ss:$16 sps:$4 sm:$0xff]  }
 0xf3d   : > { %8605 = vmatprep.subr.bf16.mxu1 %v8517_v57  ;;  %9505 = vmatprep.subr.bf16.mxu0 %v17427_v16  ;;  %v17476_v19 = vld [vmem:[#allocation3 + $0xfe0] ss:$16 sps:$4 sm:$0xff]   ;;  %v17481_v12 = vld [vmem:[#allocation3 + $0xdc4] ss:$16 sps:$4 sm:$0xff]  }
 0xf3e   : > { %v17479_v51 = vld [vmem:[#allocation3 + $0xdc0] ss:$16 sps:$4 sm:$0xff]   ;;  %v17484_v27 = vld [vmem:[#allocation3 + $0xfc4] ss:$16 sps:$4 sm:$0xff]  }
 0xf3f   : > { %8606 = vmatpush1.bf16.msra.mxu1 %v8516_v8  ;;  %v17482_v32 = vld [vmem:[#allocation3 + $0xfc0] ss:$16 sps:$4 sm:$0xff]   ;;  %v17487_v50 = vld [vmem:[#allocation3 + $0xda4] ss:$16 sps:$4 sm:$0xff]  }
 0xf40   : > { %15214 = vmatmul.mubr.msk.bf16.vlgmr.msra.gmra.mxu0 %vm1055_vm12, %v17423_v28  ;;  %9558 = vmatprep.subr.bf16.mxu1 %v17430_v25  ;;  %v17485_v34 = vld [vmem:[#allocation3 + $0xda0] ss:$16 sps:$4 sm:$0xff]   ;;  %v17490_v30 = vld [vmem:[#allocation3 + $0xfa4] ss:$16 sps:$4 sm:$0xff]  }
 0xf41   : > { %8580 = vmatprep.mubr.bf16.mxu0 %v21155_v31  ;;  %9506 = vmatpush1.bf16.msra.mxu0 %v17425_v40  ;;  %v17488_v42 = vld [vmem:[#allocation3 + $0xfa0] ss:$16 sps:$4 sm:$0xff]   ;;  %v17493_v48 = vld [vmem:[#allocation3 + $0xd84] ss:$16 sps:$4 sm:$0xff]  }
 0xf42   : > { %9507 = vmatprep.subr.bf16.mxu0 %v17433_v18  ;;  %15216 = vmatmul.mubr.msk.bf16.vlgmr.msra.gmra.mxu1 %vm1055_vm12, %v17423_v28  ;;  %v17491_v7 = vld [vmem:[#allocation3 + $0xd80] ss:$16 sps:$4 sm:$0xff]   ;;  %v17496_v35 = vld [vmem:[#allocation3 + $0xf84] ss:$16 sps:$4 sm:$0xff]  }
 0xf43   : > { %8633 = vmatprep.mubr.bf16.mxu1 %v21155_v31  ;;  %9559 = vmatpush1.bf16.msra.mxu1 %v17428_v38  ;;  %v17494_v53 = vld [vmem:[#allocation3 + $0xf80] ss:$16 sps:$4 sm:$0xff]   ;;  %v17499_v36 = vld [vmem:[#allocation3 + $0xd64] ss:$16 sps:$4 sm:$0xff]  }
 0xf44   : > { %9560 = vmatprep.subr.bf16.mxu1 %v17436_v1  ;;  %v17497_v62 = vld [vmem:[#allocation3 + $0xd60] ss:$16 sps:$4 sm:$0xff]   ;;  %v17502_v2 = vld [vmem:[#allocation3 + $0xf64] ss:$16 sps:$4 sm:$0xff]   ;;  %v17523_v1 = vld [vmem:[#allocation3 + $0xcec] ss:$16 sps:$4 sm:$0xff]  }
 0xf45   : > { %9508 = vmatpush1.bf16.msra.mxu0 %v17431_v6  ;;  %v17500_v49 = vld [vmem:[#allocation3 + $0xf60] ss:$16 sps:$4 sm:$0xff]   ;;  %v17505_v10 = vld [vmem:[#allocation3 + $0xd44] ss:$16 sps:$4 sm:$0xff]  }
 0xf46   : > { %9509 = vmatprep.subr.bf16.mxu0 %v17439_v58  ;;  %v17503_v16 = vld [vmem:[#allocation3 + $0xd40] ss:$16 sps:$4 sm:$0xff]   ;;  %v17508_v33 = vld [vmem:[#allocation3 + $0xf44] ss:$16 sps:$4 sm:$0xff]   ;;  %v17526_v58 = vld [vmem:[#allocation3 + $0xeec] ss:$16 sps:$4 sm:$0xff]  }
 0xf47   : > { %9561 = vmatpush1.bf16.msra.mxu1 %v17434_v24  ;;  %v17506_v44 = vld [vmem:[#allocation3 + $0xf40] ss:$16 sps:$4 sm:$0xff]   ;;  %v17511_v8 = vld [vmem:[#allocation3 + $0xd24] ss:$16 sps:$4 sm:$0xff]  }
 0xf48   : > { %15215 = vmatmul.mubr.msk.bf16.gmra.mxu0 %vm1055_vm12, %v17424_v5  ;;  %9562 = vmatprep.subr.bf16.mxu1 %v17442_v22  ;;  %v17509_v57 = vld [vmem:[#allocation3 + $0xd20] ss:$16 sps:$4 sm:$0xff]   ;;  %v17514_v40 = vld [vmem:[#allocation3 + $0xf24] ss:$16 sps:$4 sm:$0xff]  }
 0xf49   : > { %9510 = vmatpush1.bf16.msra.mxu0 %v17437_v55  ;;  %v17512_v28 = vld [vmem:[#allocation3 + $0xf20] ss:$16 sps:$4 sm:$0xff]   ;;  %v17517_v25 = vld [vmem:[#allocation3 + $0xd04] ss:$16 sps:$4 sm:$0xff]  }
 0xf4a   : > { %9511 = vmatprep.subr.bf16.mxu0 %v17445_v60  ;;  %15217 = vmatmul.mubr.msk.bf16.gmra.mxu1 %vm1055_vm12, %v17424_v5  ;;  %v17515_v18 = vld [vmem:[#allocation3 + $0xd00] ss:$16 sps:$4 sm:$0xff]   ;;  %v17520_v38 = vld [vmem:[#allocation3 + $0xf04] ss:$16 sps:$4 sm:$0xff]  }
 0xf4b   : > { %9563 = vmatpush1.bf16.msra.mxu1 %v17440_v17  ;;  %v17518_v6 = vld [vmem:[#allocation3 + $0xf00] ss:$16 sps:$4 sm:$0xff]  }
 0xf4c   : > { %9564 = vmatprep.subr.bf16.mxu1 %v17448_v9 }
 0xf4d   : > { %9512 = vmatpush1.bf16.msra.mxu0 %v17443_v20 }
 0xf4e   : > { %9513 = vmatprep.subr.bf16.mxu0 %v17451_v47 }
 0xf4f   : > { %9565 = vmatpush1.bf16.msra.mxu1 %v17446_v61 }
 0xf50   : > { %9566 = vmatprep.subr.bf16.mxu1 %v17454_v13 }
 0xf51   : > { %9514 = vmatpush1.bf16.msra.mxu0 %v17449_v54 }
 0xf52   : > { %9515 = vmatprep.subr.bf16.mxu0 %v17457_v41 }
 0xf53   : > { %9567 = vmatpush1.bf16.msra.mxu1 %v17452_v15 }
 0xf54   : > { %9568 = vmatprep.subr.bf16.mxu1 %v17460_v39 }
 0xf55   : > { %9516 = vmatpush1.bf16.msra.mxu0 %v17455_v23 }
 0xf56   : > { %9517 = vmatprep.subr.bf16.mxu0 %v17463_v4 }
 0xf57   : > { %9569 = vmatpush1.bf16.msra.mxu1 %v17458_v46 }
 0xf58   : > { %9570 = vmatprep.subr.bf16.mxu1 %v17466_v11 }
 0xf59   : > { %9518 = vmatpush1.bf16.msra.mxu0 %v17461_v3 }
 0xf5a   : > { %9519 = vmatprep.subr.bf16.mxu0 %v17469_v14 }
 0xf5b   : > { %9571 = vmatpush1.bf16.msra.mxu1 %v17464_v0 }
 0xf5c   : > { %9572 = vmatprep.subr.bf16.mxu1 %v17472_v59 }
 0xf5d   : > { %9520 = vmatpush1.bf16.msra.mxu0 %v17467_v29 }
 0xf5e   : > { %9521 = vmatprep.subr.bf16.mxu0 %v17475_v26 }
 0xf5f   : > { %9573 = vmatpush1.bf16.msra.mxu1 %v17470_v37 }
 0xf60   : > { %9574 = vmatprep.subr.bf16.mxu1 %v17478_v56 }
 0xf61   : > { %9522 = vmatpush2.bf16.msra.mxu0 %v17473_v52 }
 0xf62   : > { %9523 = vmatprep.subr.bf16.mxu0 %v17481_v12 }
 0xf63   : > { %9575 = vmatpush2.bf16.msra.mxu1 %v17476_v19 }
 0xf64   : > { %9576 = vmatprep.subr.bf16.mxu1 %v17484_v27 }
 0xf65   : > { %9524 = vmatpush2.bf16.msra.mxu0 %v17479_v51 }
 0xf66   : > { %9525 = vmatprep.subr.bf16.mxu0 %v17487_v50 }
 0xf67   : > { %9577 = vmatpush2.bf16.msra.mxu1 %v17482_v32 }
 0xf68   : > { %9578 = vmatprep.subr.bf16.mxu1 %v17490_v30 }
 0xf69   : > { %9526 = vmatpush2.bf16.msra.mxu0 %v17485_v34 }
 0xf6a   : > { %9527 = vmatprep.subr.bf16.mxu0 %v17493_v48 }
 0xf6b   : > { %9579 = vmatpush2.bf16.msra.mxu1 %v17488_v42 }
 0xf6c   : > { %9580 = vmatprep.subr.bf16.mxu1 %v17496_v35 }
 0xf6d   : > { %9528 = vmatpush2.bf16.msra.mxu0 %v17491_v7 }
 0xf6e   : > { %9529 = vmatprep.subr.bf16.mxu0 %v17499_v36 }
 0xf6f   : > { %9581 = vmatpush2.bf16.msra.mxu1 %v17494_v53 }
 0xf70   : > { %9582 = vmatprep.subr.bf16.mxu1 %v17502_v2 }
 0xf71   : > { %9530 = vmatpush2.bf16.msra.mxu0 %v17497_v62  ;;  %v8663_v62 = vpop.permute.xlu1 %8662 }
 0xf72   : > { %9531 = vmatprep.subr.bf16.mxu0 %v17505_v10 }
 0xf73   : > { %9583 = vmatpush2.bf16.msra.mxu1 %v17500_v49  ;;  %v8320_v5 = vpop.f32.mrf.mxu0 }
 0xf74   : > { %9584 = vmatprep.subr.bf16.mxu1 %v17508_v33 }
 0xf75   : > { %9532 = vmatpush2.bf16.msra.mxu0 %v17503_v16  ;;  %v8322_v55 = vpop.f32.mrf.mxu0 }
 0xf76   : > { %9533 = vmatprep.subr.bf16.mxu0 %v17511_v8  ;;  %v8373_v24 = vpop.f32.mrf.mxu1 }
 0xf77   : > { %9585 = vmatpush2.bf16.msra.mxu1 %v17506_v44  ;;  %v8324_v60 = vpop.f32.mrf.mxu0 }
 0xf78   : > { %9586 = vmatprep.subr.bf16.mxu1 %v17514_v40  ;;  %v8375_v22 = vpop.f32.mrf.mxu1 }
 0xf79   : > { %9534 = vmatpush2.bf16.msra.mxu0 %v17509_v57  ;;  %v8326_v20 = vpop.f32.mrf.mxu0 }
 0xf7a   : > { %9535 = vmatprep.subr.bf16.mxu0 %v17517_v25  ;;  %v8377_v17 = vpop.f32.mrf.mxu1 }
 0xf7b   : > { %9587 = vmatpush2.bf16.msra.mxu1 %v17512_v28  ;;  %v8330_v47 = vpop.f32.mrf.mxu0  ;;  %v8668_v28 = vpop.permute.xlu0 %8667 }
 0xf7c   : > { %9588 = vmatprep.subr.bf16.mxu1 %v17520_v38  ;;  %v8379_v9 = vpop.f32.mrf.mxu1 }
 0xf7d   : > { %9536 = vmatpush2.bf16.msra.mxu0 %v17515_v18  ;;  %v8332_v54 = vpop.f32.mrf.mxu0 }
 0xf7e   : > { %9611 = vmatprep.subr.bf16.mxu0 %v17523_v1  ;;  %v8383_v61 = vpop.f32.mrf.mxu1 }
 0xf7f   : > { %9589 = vmatpush2.bf16.msra.mxu1 %v17518_v6  ;;  %v8334_v41 = vpop.f32.mrf.mxu0 }
 0xf80   : > { %9664 = vmatprep.subr.bf16.mxu1 %v17526_v58  ;;  %v8385_v13 = vpop.f32.mrf.mxu1 }
 0xf81   : > { %v8336_v23 = vpop.f32.mrf.mxu0 }
 0xf82   : > { %v8387_v15 = vpop.f32.mrf.mxu1 }
 0xf84   : > { %v20136_v4 = vpop.f32.mrf.mxu1 }
 0xff0   : > { %v8442_v39 = vpop.f32.mrf.mxu0 }
 0xff1   : > { %v8443_v12 = vadd.f32 %v8442_v39, %v8320_v5 }
 0xff2   : > { %v8444_v46 = vpop.f32.mrf.mxu0  ;;  %v8495_v3 = vpop.f32.mrf.mxu1 }
 0xff3   : > { %v8445_v34 = vadd.f32 %v8444_v46, %v8322_v55  ;;  %v8496_v30 = vadd.f32 %v8495_v3, %v8373_v24 }
 0xff4   : > { %v8446_v11 = vpop.f32.mrf.mxu0  ;;  %v8497_v14 = vpop.f32.mrf.mxu1 }
 0xff5   : > { %v8447_v48 = vadd.f32 %v8446_v11, %v8324_v60  ;;  %v8498_v36 = vadd.f32 %v8497_v14, %v8375_v22 }
 0xff6   : > { %v8448_v0 = vpop.f32.mrf.mxu0  ;;  %v8499_v29 = vpop.f32.mrf.mxu1 }
 0xff7   : > { %v8449_v49 = vadd.f32 %v8448_v0, %v8326_v20  ;;  %v8500_v16 = vadd.f32 %v8499_v29, %v8377_v17 }
 0xff8   : > { %v8452_v59 = vpop.f32.mrf.mxu0  ;;  %v8501_v37 = vpop.f32.mrf.mxu1 }
 0xff9   : > { %v8502_v40 = vadd.f32 %v8501_v37, %v8379_v9  ;;  %v8453_v25 = vadd.f32 %v8452_v59, %v8330_v47 }
 0xffa   : > { %v8454_v52 = vpop.f32.mrf.mxu0  ;;  %v8505_v26 = vpop.f32.mrf.mxu1 }
 0xffb   : > { %v8455_v18 = vadd.f32 %v8454_v52, %v8332_v54  ;;  %v8506_v1 = vadd.f32 %v8505_v26, %v8383_v61  ;;  %v8673_v26 = vpop.permute.xlu1 %8672 }
 0xffc   : > { %v8456_v19 = vpop.f32.mrf.mxu0  ;;  %v8507_v56 = vpop.f32.mrf.mxu1 }
 0xffd   : > { %v8508_v22 = vadd.f32 %v8507_v56, %v8385_v13  ;;  %v8457_v60 = vadd.f32 %v8456_v19, %v8334_v41 }
 0xffe   : > { %v8458_v51 = vpop.f32.mrf.mxu0  ;;  %v8509_v32 = vpop.f32.mrf.mxu1 }
 0xfff   : > { %v8510_v11 = vadd.f32 %v8509_v32, %v8387_v15  ;;  %v8459_v14 = vadd.f32 %v8458_v51, %v8336_v23 }
0x1000   : > { %v8572_v27 = vpop.f32.mrf.mxu0  ;;  %v8511_v50 = vpop.f32.mrf.mxu1 }
0x1001   : > { %v8644_v42 = vadd.f32 %v8572_v27, %v8443_v12  ;;  %v8512_v19 = vadd.f32 %v8511_v50, %v20136_v4 }
0x1002   : > { %v8574_v7 = vpop.f32.mrf.mxu0  ;;  %v8625_v53 = vpop.f32.mrf.mxu1 }
0x1003   : > { %v8645_v35 = vadd.f32 %v8574_v7, %v8445_v34  ;;  %v8646_v2 = vadd.f32 %v8625_v53, %v8496_v30  ;;  %v20138_v33 = vadd.f32 %v8663_v62, %v8644_v42 }
0x1004   : > { %v8576_v10 = vpop.f32.mrf.mxu0  ;;  %v8627_v57 = vpop.f32.mrf.mxu1 }
0x1005   : > { %v20140_v44 = vadd.f32 %v8663_v62, %v8645_v35  ;;  %v8648_v8 = vadd.f32 %v8576_v10, %v8447_v48  ;;  %v8647_v38 = vadd.f32 %v8627_v57, %v8498_v36  ;;  %v20142_v58 = vadd.f32 %v8663_v62, %v8646_v2  ;;  %v8678_v2 = vpop.permute.xlu0 %8677 }
0x1006   : > { %v8578_v6 = vpop.f32.mrf.mxu0  ;;  %v8629_v24 = vpop.f32.mrf.mxu1  ;;  %v8696_v46 = vmul.f32 0.2, %v20138_v33 }
0x1007   : > { %v8684_v5 = vadd.f32 %v8668_v28, %v8648_v8  ;;  %v8649_v55 = vadd.f32 %v8578_v6, %v8449_v49  ;;  %v8683_v17 = vadd.f32 %v8663_v62, %v8647_v38  ;;  %v8650_v20 = vadd.f32 %v8629_v24, %v8500_v16 }
0x1008   : > { %v8582_v39 = vpop.f32.mrf.mxu0  ;;  %v8697_v3 = vmul.f32 0.2, %v20140_v44  ;;  %v8631_v54 = vpop.f32.mrf.mxu1  ;;  %v8698_v59 = vmul.f32 0.2, %v20142_v58  ;;  %v8712_v42 = vmax.f32 %v20138_v33, %v8696_v46 }
0x1009   : > { %v8700_v9 = vmul.f32 0.2, %v8684_v5  ;;  %v8685_v47 = vadd.f32 %v8668_v28, %v8649_v55  ;;  %v8686_v61 = vadd.f32 %v8668_v28, %v8650_v20  ;;  %v8651_v0 = vadd.f32 %v8631_v54, %v8502_v40 }
0x100a   : > { %v8584_v29 = vpop.f32.mrf.mxu0  ;;  %v8652_v13 = vadd.f32 %v8582_v39, %v8453_v25  ;;  %v8635_v41 = vpop.f32.mrf.mxu1  ;;  %v8699_v56 = vmul.f32 0.2, %v8683_v17  ;;  %v8713_v15 = vmax.f32 %v20140_v44, %v8697_v3  ;;  %v8714_v62 = vmax.f32 %v20142_v58, %v8698_v59  ;;  %v17521_v58 = vld [vmem:[#allocation3 + $0xce8] ss:$16 sps:$4 sm:$0xff]   ;;  %v17532_v3 = vld [vmem:[#allocation3 + $0xecc] ss:$16 sps:$4 sm:$0xff]  }
0x100b   : > { %v8701_v37 = vmul.f32 0.2, %v8685_v47  ;;  %v8653_v52 = vadd.f32 %v8584_v29, %v8455_v18  ;;  %v8702_v12 = vmul.f32 0.2, %v8686_v61  ;;  %v8687_v27 = vadd.f32 %v8668_v28, %v8651_v0  ;;  %v17527_v0 = vld [vmem:[#allocation3 + $0xcc8] ss:$16 sps:$4 sm:$0xff]  }
0x100c   : > { %v8586_v34 = vpop.f32.mrf.mxu0  ;;  %v8716_v23 = vmax.f32 %v8684_v5, %v8700_v9  ;;  %v8637_v32 = vpop.f32.mrf.mxu1  ;;  %v8654_v48 = vadd.f32 %v8635_v41, %v8506_v1  ;;  %v8688_v36 = vadd.f32 %v8673_v26, %v8652_v13  ;;  %v8715_v10 = vmax.f32 %v8683_v17, %v8699_v56  ;;  %v17524_v5 = vld [vmem:[#allocation3 + $0xee8] ss:$16 sps:$4 sm:$0xff]   ;;  %v17529_v17 = vld [vmem:[#allocation3 + $0xccc] ss:$16 sps:$4 sm:$0xff]  }
0x100d   : > { %v8689_v51 = vadd.f32 %v8673_v26, %v8653_v52  ;;  %v8717_v30 = vmax.f32 %v8685_v47, %v8701_v37  ;;  %v8703_v7 = vmul.f32 0.2, %v8687_v27  ;;  %v8655_v53 = vadd.f32 %v8637_v32, %v8508_v22  ;;  %v17530_v59 = vld [vmem:[#allocation3 + $0xec8] ss:$16 sps:$4 sm:$0xff]   ;;  %v17535_v13 = vld [vmem:[#allocation3 + $0xcac] ss:$16 sps:$4 sm:$0xff]  }
0x100e   : > { %v8588_v35 = vpop.f32.mrf.mxu0  ;;  %v8656_v4 = vadd.f32 %v8586_v34, %v8457_v60  ;;  %v8639_v50 = vpop.f32.mrf.mxu1  ;;  %v8718_v16 = vmax.f32 %v8686_v61, %v8702_v12  ;;  %v20151_v18 = vpack.c.bf16 %v8716_v23, %v8712_v42  ;;  %v8690_v38 = vadd.f32 %v8673_v26, %v8654_v48  ;;  %v17544_v32 = vld [vmem:[#allocation3 + $0xe8c] ss:$16 sps:$4 sm:$0xff]  }
0x100f   : > { %v8657_v49 = vadd.f32 %v8588_v35, %v8459_v14  ;;  %v8719_v33 = vmax.f32 %v8687_v27, %v8703_v7  ;;  %v8691_v57 = vadd.f32 %v8673_v26, %v8655_v53  ;;  %v8705_v44 = vmul.f32 0.2, %v8689_v51  ;;  %v17533_v27 = vld [vmem:[#allocation3 + $0xca8] ss:$16 sps:$4 sm:$0xff]   ;;  %v17547_v48 = vld [vmem:[#allocation3 + $0xc6c] ss:$16 sps:$4 sm:$0xff]  }
0x1010   : > { %v8692_v8 = vadd.f32 %v8678_v2, %v8656_v4  ;;  %v8658_v28 = vadd.f32 %v8639_v50, %v8510_v11  ;;  %v8641_v25 = vpop.f32.mrf.mxu1  ;;  %v8729_v1 = vpack.c.bf16 %v8717_v30, %v8713_v15  ;;  %v20153_v20 = vpack.c.bf16 %v8718_v16, %v8714_v62  ;;  %v17536_v15 = vld [vmem:[#allocation3 + $0xea8] ss:$16 sps:$4 sm:$0xff]   ;;  %v17550_v53 = vld [vmem:[#allocation3 + $0xe6c] ss:$16 sps:$4 sm:$0xff]  }
0x1011   : > { %v8693_v40 = vadd.f32 %v8678_v2, %v8657_v49  ;;  %v8659_v6 = vadd.f32 %v8641_v25, %v8512_v19  ;;  %v8731_v60 = vpack.c.bf16 %v8719_v33, %v8715_v10  ;;  %v8707_v39 = vmul.f32 0.2, %v8691_v57  ;;  %v17538_v19 = vld [vmem:[#allocation3 + $0xeac] ss:$16 sps:$4 sm:$0xff]   ;;  %v17539_v30 = vld [vmem:[#allocation3 + $0xc88] ss:$16 sps:$4 sm:$0xff]  }
0x1012   : > { %v8708_v24 = vmul.f32 0.2, %v8692_v8  ;;  %v8694_v55 = vadd.f32 %v8678_v2, %v8658_v28  ;;  %9537 = vmatprep.mubr.bf16.mxu0 %v8729_v1  ;;  %v8704_v9 = vmul.f32 0.2, %v8688_v36  ;;  %v8721_v47 = vmax.f32 %v8689_v51, %v8705_v44  ;;  %v17541_v51 = vld [vmem:[#allocation3 + $0xc8c] ss:$16 sps:$4 sm:$0xff]  }
0x1013   : > { %v8709_v22 = vmul.f32 0.2, %v8693_v40  ;;  %v8695_v46 = vadd.f32 %v8678_v2, %v8659_v6  ;;  %9538 = vmatmul.mubr.bf16.vlgmr.msra.gmra.mxu0 %v20151_v18  ;;  %9590 = vmatprep.mubr.bf16.mxu1 %v8731_v60  ;;  %v8706_v14 = vmul.f32 0.2, %v8690_v38  ;;  %v8723_v41 = vmax.f32 %v8691_v57, %v8707_v39  ;;  %v17542_v7 = vld [vmem:[#allocation3 + $0xe88] ss:$16 sps:$4 sm:$0xff]  }
0x1014   : > { %v8710_v54 = vmul.f32 0.2, %v8694_v55  ;;  %9612 = vmatpush1.bf16.msra.mxu0 %v17521_v58  ;;  %9591 = vmatmul.mubr.bf16.vlgmr.msra.gmra.mxu1 %v20153_v20  ;;  %v8724_v29 = vmax.f32 %v8692_v8, %v8708_v24  ;;  %v8720_v56 = vmax.f32 %v8688_v36, %v8704_v9  ;;  %v17545_v35 = vld [vmem:[#allocation3 + $0xc68] ss:$16 sps:$4 sm:$0xff]   ;;  %v17553_v36 = vld [vmem:[#allocation3 + $0xc4c] ss:$16 sps:$4 sm:$0xff]  }
0x1015   : > { %v8725_v11 = vmax.f32 %v8693_v40, %v8709_v22  ;;  %v8711_v61 = vmul.f32 0.2, %v8695_v46  ;;  %9665 = vmatpush1.bf16.msra.mxu1 %v17524_v5  ;;  %9613 = vmatprep.subr.bf16.mxu0 %v17529_v17  ;;  %v8722_v12 = vmax.f32 %v8690_v38, %v8706_v14  ;;  %v17548_v62 = vld [vmem:[#allocation3 + $0xe68] ss:$16 sps:$4 sm:$0xff]   ;;  %v17556_v4 = vld [vmem:[#allocation3 + $0xe4c] ss:$16 sps:$4 sm:$0xff]  }
0x1016   : > { %v8726_v52 = vmax.f32 %v8694_v55, %v8710_v54  ;;  %9666 = vmatprep.subr.bf16.mxu1 %v17532_v3  ;;  %v20162_v42 = vpack.c.bf16 %v8724_v29, %v8720_v56  ;;  %v17551_v50 = vld [vmem:[#allocation3 + $0xc48] ss:$16 sps:$4 sm:$0xff]   ;;  %v17559_v2 = vld [vmem:[#allocation3 + $0xc2c] ss:$16 sps:$4 sm:$0xff]  }
0x1017   : > { %v20157_v37 = vpack.c.bf16 %v8725_v11, %v8721_v47  ;;  %v8727_v26 = vmax.f32 %v8695_v46, %v8711_v61  ;;  %v17554_v49 = vld [vmem:[#allocation3 + $0xe48] ss:$16 sps:$4 sm:$0xff]   ;;  %v17562_v10 = vld [vmem:[#allocation3 + $0xe2c] ss:$16 sps:$4 sm:$0xff]  }
0x1018   : > { %9614 = vmatpush1.bf16.msra.mxu0 %v17527_v0  ;;  %v20164_v23 = vpack.c.bf16 %v8726_v52, %v8722_v12  ;;  %v17557_v16 = vld [vmem:[#allocation3 + $0xc28] ss:$16 sps:$4 sm:$0xff]   ;;  %v17565_v57 = vld [vmem:[#allocation3 + $0xc0c] ss:$16 sps:$4 sm:$0xff]  }
0x1019   : > { %9547 = vmatprep.mubr.bf16.mxu0 %v20157_v37  ;;  %v20160_v34 = vpack.c.bf16 %v8727_v26, %v8723_v41  ;;  %9667 = vmatpush1.bf16.msra.mxu1 %v17530_v59  ;;  %v17560_v33 = vld [vmem:[#allocation3 + $0xe28] ss:$16 sps:$4 sm:$0xff]   ;;  %v17568_v44 = vld [vmem:[#allocation3 + $0xe0c] ss:$16 sps:$4 sm:$0xff]  }
0x101a   : > { %9615 = vmatprep.subr.bf16.mxu0 %v17535_v13  ;;  %9668 = vmatprep.subr.bf16.mxu1 %v17538_v19  ;;  %v17563_v8 = vld [vmem:[#allocation3 + $0xc08] ss:$16 sps:$4 sm:$0xff]   ;;  %v17571_v40 = vld [vmem:[#allocation3 + $0xdec] ss:$16 sps:$4 sm:$0xff]  }
0x101b   : > { %9600 = vmatprep.mubr.bf16.mxu1 %v20160_v34  ;;  %9548 = vmatmul.mubr.bf16.gmra.mxu0 %v20162_v42  ;;  %v17566_v28 = vld [vmem:[#allocation3 + $0xe08] ss:$16 sps:$4 sm:$0xff]   ;;  %v17574_v25 = vld [vmem:[#allocation3 + $0xfec] ss:$16 sps:$4 sm:$0xff]  }
0x101c   : > { %9616 = vmatpush1.bf16.msra.mxu0 %v17533_v27  ;;  %9601 = vmatmul.mubr.bf16.gmra.mxu1 %v20164_v23  ;;  %v17569_v38 = vld [vmem:[#allocation3 + $0xde8] ss:$16 sps:$4 sm:$0xff]   ;;  %v17580_v58 = vld [vmem:[#allocation3 + $0xfcc] ss:$16 sps:$4 sm:$0xff]  }
0x101d   : > { %9643 = vmatprep.mubr.bf16.mxu0 %v8729_v1  ;;  %9669 = vmatpush1.bf16.msra.mxu1 %v17536_v15  ;;  %v17572_v6 = vld [vmem:[#allocation3 + $0xfe8] ss:$16 sps:$4 sm:$0xff]   ;;  %v17577_v1 = vld [vmem:[#allocation3 + $0xdcc] ss:$16 sps:$4 sm:$0xff]  }
0x101e   : > { %9696 = vmatprep.mubr.bf16.mxu1 %v8731_v60  ;;  %9617 = vmatprep.subr.bf16.mxu0 %v17541_v51  ;;  %v17575_v5 = vld [vmem:[#allocation3 + $0xdc8] ss:$16 sps:$4 sm:$0xff]   ;;  %v17583_v55 = vld [vmem:[#allocation3 + $0xdac] ss:$16 sps:$4 sm:$0xff]  }
0x101f   : > { %9670 = vmatprep.subr.bf16.mxu1 %v17544_v32  ;;  %v17578_v24 = vld [vmem:[#allocation3 + $0xfc8] ss:$16 sps:$4 sm:$0xff]   ;;  %v17586_v22 = vld [vmem:[#allocation3 + $0xfac] ss:$16 sps:$4 sm:$0xff]  }
0x1020   : > { %9618 = vmatpush1.bf16.msra.mxu0 %v17539_v30  ;;  %v17581_v60 = vld [vmem:[#allocation3 + $0xda8] ss:$16 sps:$4 sm:$0xff]   ;;  %v17589_v39 = vld [vmem:[#allocation3 + $0xd8c] ss:$16 sps:$4 sm:$0xff]  }
0x1021   : > { %9671 = vmatpush1.bf16.msra.mxu1 %v17542_v7  ;;  %9619 = vmatprep.subr.bf16.mxu0 %v17547_v48  ;;  %v17584_v17 = vld [vmem:[#allocation3 + $0xfa8] ss:$16 sps:$4 sm:$0xff]   ;;  %v17592_v46 = vld [vmem:[#allocation3 + $0xf8c] ss:$16 sps:$4 sm:$0xff]  }
0x1022   : > { %9672 = vmatprep.subr.bf16.mxu1 %v17550_v53  ;;  %v17587_v3 = vld [vmem:[#allocation3 + $0xd88] ss:$16 sps:$4 sm:$0xff]   ;;  %v17595_v47 = vld [vmem:[#allocation3 + $0xd6c] ss:$16 sps:$4 sm:$0xff]  }
0x1023   : > { %v17590_v9 = vld [vmem:[#allocation3 + $0xf88] ss:$16 sps:$4 sm:$0xff]   ;;  %v17598_v54 = vld [vmem:[#allocation3 + $0xf6c] ss:$16 sps:$4 sm:$0xff]  }
0x1024   : > { %9620 = vmatpush1.bf16.msra.mxu0 %v17545_v35  ;;  %v17593_v11 = vld [vmem:[#allocation3 + $0xd68] ss:$16 sps:$4 sm:$0xff]   ;;  %v17601_v61 = vld [vmem:[#allocation3 + $0xd4c] ss:$16 sps:$4 sm:$0xff]  }
0x1025   : > { %9673 = vmatpush1.bf16.msra.mxu1 %v17548_v62  ;;  %9621 = vmatprep.subr.bf16.mxu0 %v17553_v36  ;;  %v17596_v14 = vld [vmem:[#allocation3 + $0xf68] ss:$16 sps:$4 sm:$0xff]   ;;  %v17604_v0 = vld [vmem:[#allocation3 + $0xf4c] ss:$16 sps:$4 sm:$0xff]  }
0x1026   : > { %9674 = vmatprep.subr.bf16.mxu1 %v17556_v4  ;;  %v17599_v29 = vld [vmem:[#allocation3 + $0xd48] ss:$16 sps:$4 sm:$0xff]   ;;  %v17607_v13 = vld [vmem:[#allocation3 + $0xd2c] ss:$16 sps:$4 sm:$0xff]  }
0x1027   : > { %v17602_v59 = vld [vmem:[#allocation3 + $0xf48] ss:$16 sps:$4 sm:$0xff]   ;;  %v17610_v41 = vld [vmem:[#allocation3 + $0xf2c] ss:$16 sps:$4 sm:$0xff]  }
0x1028   : > { %9622 = vmatpush1.bf16.msra.mxu0 %v17551_v50  ;;  %v17605_v52 = vld [vmem:[#allocation3 + $0xd28] ss:$16 sps:$4 sm:$0xff]   ;;  %v17613_v19 = vld [vmem:[#allocation3 + $0xd0c] ss:$16 sps:$4 sm:$0xff]  }
0x1029   : > { %9675 = vmatpush1.bf16.msra.mxu1 %v17554_v49  ;;  %9623 = vmatprep.subr.bf16.mxu0 %v17559_v2  ;;  %v17608_v26 = vld [vmem:[#allocation3 + $0xf28] ss:$16 sps:$4 sm:$0xff]   ;;  %v17616_v56 = vld [vmem:[#allocation3 + $0xf0c] ss:$16 sps:$4 sm:$0xff]  }
0x102a   : > { %9676 = vmatprep.subr.bf16.mxu1 %v17562_v10  ;;  %v17611_v12 = vld [vmem:[#allocation3 + $0xd08] ss:$16 sps:$4 sm:$0xff]  }
0x102b   : > { %v17614_v27 = vld [vmem:[#allocation3 + $0xf08] ss:$16 sps:$4 sm:$0xff]  }
0x102c   : > { %9624 = vmatpush1.bf16.msra.mxu0 %v17557_v16 }
0x102d   : > { %9677 = vmatpush1.bf16.msra.mxu1 %v17560_v33  ;;  %9625 = vmatprep.subr.bf16.mxu0 %v17565_v57 }
0x102e   : > { %9678 = vmatprep.subr.bf16.mxu1 %v17568_v44 }
0x1030   : > { %9626 = vmatpush1.bf16.msra.mxu0 %v17563_v8 }
0x1031   : > { %9679 = vmatpush1.bf16.msra.mxu1 %v17566_v28  ;;  %9627 = vmatprep.subr.bf16.mxu0 %v17571_v40 }
0x1032   : > { %9680 = vmatprep.subr.bf16.mxu1 %v17574_v25 }
0x1034   : > { %9628 = vmatpush2.bf16.msra.mxu0 %v17569_v38 }
0x1035   : > { %9681 = vmatpush2.bf16.msra.mxu1 %v17572_v6  ;;  %9629 = vmatprep.subr.bf16.mxu0 %v17577_v1 }
0x1036   : > { %9682 = vmatprep.subr.bf16.mxu1 %v17580_v58 }
0x1038   : > { %9630 = vmatpush2.bf16.msra.mxu0 %v17575_v5 }
0x1039   : > { %9683 = vmatpush2.bf16.msra.mxu1 %v17578_v24  ;;  %9631 = vmatprep.subr.bf16.mxu0 %v17583_v55 }
0x103a   : > { %9684 = vmatprep.subr.bf16.mxu1 %v17586_v22 }
0x103c   : > { %9632 = vmatpush2.bf16.msra.mxu0 %v17581_v60 }
0x103d   : > { %9685 = vmatpush2.bf16.msra.mxu1 %v17584_v17  ;;  %9633 = vmatprep.subr.bf16.mxu0 %v17589_v39 }
0x103e   : > { %9686 = vmatprep.subr.bf16.mxu1 %v17592_v46  ;;  %v17617_v46 = vld [vmem:[%s21120_s3 + $0x190] sm:$0xff]  }
0x1040   : > { %9634 = vmatpush2.bf16.msra.mxu0 %v17587_v3 }
0x1041   : > { %9687 = vmatpush2.bf16.msra.mxu1 %v17590_v9  ;;  %9635 = vmatprep.subr.bf16.mxu0 %v17595_v47 }
0x1042   : > { %9688 = vmatprep.subr.bf16.mxu1 %v17598_v54 }
0x1044   : > { %9636 = vmatpush2.bf16.msra.mxu0 %v17593_v11 }
0x1045   : > { %9689 = vmatpush2.bf16.msra.mxu1 %v17596_v14  ;;  %9637 = vmatprep.subr.bf16.mxu0 %v17601_v61 }
0x1046   : > { %9690 = vmatprep.subr.bf16.mxu1 %v17604_v0 }
0x1048   : > { %9638 = vmatpush2.bf16.msra.mxu0 %v17599_v29 }
0x1049   : > { %9691 = vmatpush2.bf16.msra.mxu1 %v17602_v59  ;;  %9639 = vmatprep.subr.bf16.mxu0 %v17607_v13 }
0x104a   : > { %9692 = vmatprep.subr.bf16.mxu1 %v17610_v41 }
0x104c   : > { %9640 = vmatpush2.bf16.msra.mxu0 %v17605_v52 }
0x104d   : > { %9693 = vmatpush2.bf16.msra.mxu1 %v17608_v26  ;;  %9641 = vmatprep.subr.bf16.mxu0 %v17613_v19  ;;  %v17618_v19 = vld [vmem:[%s21120_s3 + $0x198] sm:$0xff]  }
0x104e   : > { %9694 = vmatprep.subr.bf16.mxu1 %v17616_v56 }
0x1050   : > { %9642 = vmatpush2.bf16.msra.mxu0 %v17611_v12 }
0x1051   : > { %9695 = vmatpush2.bf16.msra.mxu1 %v17614_v27 }
0x1053   : > { %9644 = vmatmul.mubr.bf16.vlgmr.msra.gmra.mxu0 %v20151_v18 }
0x1054   : > { %9653 = vmatprep.mubr.bf16.mxu0 %v20157_v37  ;;  %9697 = vmatmul.mubr.bf16.vlgmr.msra.gmra.mxu1 %v20153_v20 }
0x1055   : > { %9706 = vmatprep.mubr.bf16.mxu1 %v20160_v34 }
0x105b   : > { %9654 = vmatmul.mubr.bf16.gmra.mxu0 %v20162_v42 }
0x105c   : > { %9707 = vmatmul.mubr.bf16.gmra.mxu1 %v20164_v23  ;;  %9913 = vmatprep.mubr.bf16.mxu0 %v21155_v31 }
0x105d   : > { %9966 = vmatprep.mubr.bf16.mxu1 %v21155_v31 }
0x10d3   : > { %v9539_v15 = vpop.f32.mrf.mxu0 }
0x10d4   : > { %v9592_v51 = vpop.f32.mrf.mxu1 }
0x10d5   : > { %v9541_v32 = vpop.f32.mrf.mxu0  ;;  %v9593_v7 = vadd.f32 %v9592_v51, %v9539_v15 }
0x10d6   : > { %v9594_v30 = vpop.f32.mrf.mxu1 }
0x10d7   : > { %v9543_v18 = vpop.f32.mrf.mxu0  ;;  %v9595_v37 = vadd.f32 %v9594_v30, %v9541_v32  ;;  %v9717_v34 = vmul.f32 0.33333334, %v9593_v7 }
0x10d8   : > { %v9596_v48 = vpop.f32.mrf.mxu1 }
0x10d9   : > { %v9597_v53 = vadd.f32 %v9596_v48, %v9543_v18  ;;  %v9545_v20 = vpop.f32.mrf.mxu0  ;;  %v9718_v4 = vmul.f32 0.33333334, %v9595_v37 }
0x10da   : > { %v9598_v35 = vpop.f32.mrf.mxu1 }
0x10db   : > { %v9721_v62 = vmul.f32 0.33333334, %v9597_v53  ;;  %v9599_v42 = vadd.f32 %v9598_v35, %v9545_v20  ;;  %v9549_v36 = vpop.f32.mrf.mxu0 }
0x10dc   : > { %v9602_v23 = vpop.f32.mrf.mxu1 }
0x10dd   : > { %v20177_v50 = vpack.i.bf16 %v9721_v62, %v9717_v34  ;;  %v9722_v49 = vmul.f32 0.33333334, %v9599_v42  ;;  %v9551_v2 = vpop.f32.mrf.mxu0  ;;  %v9603_v33 = vadd.f32 %v9602_v23, %v9549_v36  ;;  %v9857_v39 = vpack.c.bf16 %v9721_v62, %v9717_v34 }
0x10de   : > { %v9604_v10 = vpop.f32.mrf.mxu1 }
0x10df   : > { %v20179_v16 = vpack.i.bf16 %v9722_v49, %v9718_v4  ;;  %16476 = vrot.lane.b32.xlu1 %v20177_v50, %s18083_s20  ;;  %v9553_v57 = vpop.f32.mrf.mxu0  ;;  %v9605_v8 = vadd.f32 %v9604_v10, %v9551_v2  ;;  %v9725_v38 = vmul.f32 0.33333334, %v9603_v33  ;;  %v9858_v17 = vpack.c.bf16 %v9722_v49, %v9718_v4 }
0x10e0   : > { %v9606_v44 = vpop.f32.mrf.mxu1 }
0x10e1   : > { %v9607_v28 = vadd.f32 %v9606_v44, %v9553_v57  ;;  %16481 = vrot.lane.b32.xlu0 %v20179_v16, %s18083_s20  ;;  %v9555_v40 = vpop.f32.mrf.mxu0  ;;  %v9726_v58 = vmul.f32 0.33333334, %v9605_v8  ;;  %v15360_v8 = vld [vmem:[%s21121_s4 + $0x110] sm:$0xff] }
0x10e2   : > { %v9608_v25 = vpop.f32.mrf.mxu1 }
0x10e3   : > { %v9729_v6 = vmul.f32 0.33333334, %v9607_v28  ;;  %v9609_v1 = vadd.f32 %v9608_v25, %v9555_v40  ;;  %v15359_v28 = vld [vmem:[%s21121_s4 + $0x108] sm:$0xff] }
0x10e5   : > { %v20185_v5 = vpack.i.bf16 %v9729_v6, %v9725_v38  ;;  %v9730_v24 = vmul.f32 0.33333334, %v9609_v1  ;;  %v9861_v60 = vpack.c.bf16 %v9729_v6, %v9725_v38 }
0x10e7   : > { %v20187_v55 = vpack.i.bf16 %v9730_v24, %v9726_v58  ;;  %16486 = vrot.lane.b32.xlu1 %v20185_v5, %s18083_s20  ;;  %v9862_v22 = vpack.c.bf16 %v9730_v24, %v9726_v58 }
0x10e9   : > { %16491 = vrot.lane.b32.xlu0 %v20187_v55, %s18083_s20  ;;  %9893 = vmatprep.subr.bf16.mxu0 %v9862_v22 }
0x10ea   : > { %9894 = vmatpush1.bf16.msra.mxu0 %v9861_v60 }
0x10eb   : > { %9895 = vmatprep.subr.bf16.mxu0 %v9858_v17 }
0x10ee   : > { %9896 = vmatpush1.bf16.msra.mxu0 %v9857_v39 }
0x10f1   : > { %15364 = vmatmul.mubr.msk.bf16.vlgmr.msra.gmra.mxu0 %vm1055_vm12, %v17617_v46 }
0x10f2   : > { %9923 = vmatprep.mubr.bf16.mxu0 %v21155_v31 }
0x10f9   : > { %15365 = vmatmul.mubr.msk.bf16.gmra.mxu0 %vm1055_vm12, %v17618_v19 }
0x10fa   : > { %10035 = vmatprep.mubr.bf16.mxu0 %v21155_v31 }
0x1113   : > { %v9645_v3 = vpop.f32.mrf.mxu0 }
0x1114   : > { %v9698_v9 = vpop.f32.mrf.mxu1 }
0x1115   : > { %v9647_v47 = vpop.f32.mrf.mxu0  ;;  %v9699_v30 = vadd.f32 %v9698_v9, %v9645_v3 }
0x1116   : > { %v9700_v54 = vpop.f32.mrf.mxu1 }
0x1117   : > { %v9649_v11 = vpop.f32.mrf.mxu0  ;;  %v9701_v18 = vadd.f32 %v9700_v54, %v9647_v47  ;;  %v9719_v36 = vmul.f32 0.33333334, %v9699_v30 }
0x1118   : > { %v9702_v14 = vpop.f32.mrf.mxu1 }
0x1119   : > { %v9651_v61 = vpop.f32.mrf.mxu0  ;;  %v9703_v56 = vadd.f32 %v9702_v14, %v9649_v11  ;;  %v9720_v23 = vmul.f32 0.33333334, %v9701_v18 }
0x111a   : > { %v9704_v0 = vpop.f32.mrf.mxu1 }
0x111b   : > { %v9655_v29 = vpop.f32.mrf.mxu0  ;;  %v9705_v27 = vadd.f32 %v9704_v0, %v9651_v61  ;;  %v9723_v20 = vmul.f32 0.33333334, %v9703_v56 }
0x111c   : > { %v9708_v59 = vpop.f32.mrf.mxu1 }
0x111d   : > { %v9657_v13 = vpop.f32.mrf.mxu0  ;;  %v9709_v52 = vadd.f32 %v9708_v59, %v9655_v29  ;;  %v9724_v35 = vmul.f32 0.33333334, %v9705_v27  ;;  %v16500_v10 = vpack.i.bf16 %v9723_v20, %v9719_v36  ;;  %v9859_v44 = vpack.c.bf16 %v9723_v20, %v9719_v36 }
0x111e   : > { %v9710_v41 = vpop.f32.mrf.mxu1 }
0x111f   : > { %v9659_v26 = vpop.f32.mrf.mxu0  ;;  %v9711_v15 = vadd.f32 %v9710_v41, %v9657_v13  ;;  %v9727_v48 = vmul.f32 0.33333334, %v9709_v52  ;;  %v9860_v33 = vpack.c.bf16 %v9724_v35, %v9720_v23  ;;  %v16510_v57 = vpack.i.bf16 %v9724_v35, %v9720_v23 }
0x1120   : > { %v9712_v12 = vpop.f32.mrf.mxu1 }
0x1121   : > { %v9713_v51 = vadd.f32 %v9712_v12, %v9659_v26  ;;  %v9661_v32 = vpop.f32.mrf.mxu0  ;;  %v9728_v34 = vmul.f32 0.33333334, %v9711_v15 }
0x1122   : > { %v9714_v7 = vpop.f32.mrf.mxu1 }
0x1123   : > { %v9731_v37 = vmul.f32 0.33333334, %v9713_v51  ;;  %v9715_v53 = vadd.f32 %v9714_v7, %v9661_v32 }
0x1125   : > { %v16495_v62 = vpack.i.bf16 %v9731_v37, %v9727_v48  ;;  %v9732_v42 = vmul.f32 0.33333334, %v9715_v53  ;;  %v9863_v2 = vpack.c.bf16 %v9731_v37, %v9727_v48 }
0x1127   : > { %v16505_v4 = vpack.i.bf16 %v9732_v42, %v9728_v34  ;;  %16496 = vrot.lane.b32.xlu1 %v16495_v62, %s18083_s20  ;;  %v9864_v49 = vpack.c.bf16 %v9732_v42, %v9728_v34 }
0x1129   : > { %9946 = vmatprep.subr.bf16.mxu1 %v9864_v49  ;;  %16506 = vrot.lane.b32.xlu0 %v16505_v4, %s18083_s20 }
0x112a   : > { %9947 = vmatpush1.bf16.msra.mxu1 %v9863_v2 }
0x112b   : > { %16501 = vrot.lane.b32.xlu1 %v16500_v10, %s18083_s20  ;;  %9948 = vmatprep.subr.bf16.mxu1 %v9860_v33 }
0x112d   : > { %16511 = vrot.lane.b32.xlu0 %v16510_v57, %s18083_s20 }
0x112e   : > { %9949 = vmatpush1.bf16.msra.mxu1 %v9859_v44 }
0x112f   : > { %16516 = vrot.lane.b32.xlu1 %v20185_v5, %s18084_s21 }
0x1131   : > { %16521 = vrot.lane.b32.xlu0 %v20187_v55, %s18084_s21  ;;  %15366 = vmatmul.mubr.msk.bf16.vlgmr.msra.gmra.mxu1 %vm1055_vm12, %v17617_v46 }
0x1132   : > { %9976 = vmatprep.mubr.bf16.mxu1 %v21155_v31 }
0x1133   : > { %16526 = vrot.lane.b32.xlu1 %v16495_v62, %s18084_s21 }
0x1135   : > { %16536 = vrot.lane.b32.xlu0 %v20179_v16, %s18084_s21  ;;  %v15361_v16 = vld [vmem:[%s21121_s4 + $0x118] sm:$0xff] }
0x1137   : > { %16531 = vrot.lane.b32.xlu1 %v20177_v50, %s18084_s21  ;;  %v15358_v50 = vld [vmem:[%s21121_s4 + $0x100] sm:$0xff] }
0x1139   : > { %16546 = vrot.lane.b32.xlu0 %v16505_v4, %s18084_s21  ;;  %15367 = vmatmul.mubr.msk.bf16.gmra.mxu1 %vm1055_vm12, %v17618_v19 }
0x113a   : > { %10088 = vmatprep.mubr.bf16.mxu1 %v21155_v31 }
0x113b   : > { %16541 = vrot.lane.b32.xlu1 %v16500_v10, %s18084_s21  ;;  %v17619_v10 = vld [vmem:[%s21120_s3 + $0x180] sm:$0xff]  }
0x113d   : > { %16551 = vrot.lane.b32.xlu0 %v16510_v57, %s18084_s21 }
0x113f   : > { %10267 = vperm.xlu1 %15834, %v15360_v8  }
0x1141   : > { %10272 = vperm.xlu0 %15833, %v15361_v16  }
0x1143   : > { %10257 = vperm.xlu1 %15834, %v15358_v50  }
0x1145   : > { %10262 = vperm.xlu0 %15833, %v15359_v28  }
0x1151   : > { %v16477_v40 = vpop.permute.xlu1 %16476 }
0x1152   : > { %v16479_v47 = vunpack.i.h.bf16 %v16477_v40  ;;  %v16478_v54 = vunpack.i.l.bf16 %v16477_v40 }
0x1153   : > { %v16482_v25 = vpop.permute.xlu0 %16481 }
0x1154   : > { %v16484_v17 = vunpack.i.h.bf16 %v16482_v25  ;;  %v16483_v39 = vunpack.i.l.bf16 %v16482_v25 }
0x1156   : > { %v9793_v41 = vsel %vm389_vm2, %v16478_v54, %v16483_v39  ;;  %v9794_v52 = vsel %vm389_vm2, %v16479_v47, %v16484_v17 }
0x1157   : > { %v9850_v18 = vpack.c.bf16 %v9794_v52, %v9793_v41 }
0x1159   : > { %v16487_v38 = vpop.permute.xlu1 %16486 }
0x115a   : > { %v16489_v1 = vunpack.i.h.bf16 %v16487_v38  ;;  %v16488_v58 = vunpack.i.l.bf16 %v16487_v38 }
0x115b   : > { %v16492_v6 = vpop.permute.xlu0 %16491 }
0x115c   : > { %v16494_v5 = vunpack.i.h.bf16 %v16492_v6  ;;  %v16493_v24 = vunpack.i.l.bf16 %v16492_v6 }
0x115e   : > { %v9795_v55 = vsel %vm389_vm2, %v16488_v58, %v16493_v24  ;;  %v9796_v22 = vsel %vm389_vm2, %v16489_v1, %v16494_v5 }
0x115f   : > { %v9854_v60 = vpack.c.bf16 %v9796_v22, %v9795_v55 }
0x1161   : > { %10015 = vmatprep.subr.bf16.mxu0 %v9854_v60 }
0x1199   : > { %v16497_v46 = vpop.permute.xlu1 %16496 }
0x119a   : > { %v16499_v3 = vunpack.i.h.bf16 %v16497_v46  ;;  %v16498_v9 = vunpack.i.l.bf16 %v16497_v46  ;;  %v17620_v46 = vld [vmem:[%s21120_s3 + $0x188] sm:$0xff]  }
0x119b   : > { %v16507_v11 = vpop.permute.xlu0 %16506 }
0x119c   : > { %v9791_v14 = vsel %vm389_vm2, %v16493_v24, %v16498_v9  ;;  %v9792_v61 = vsel %vm389_vm2, %v16494_v5, %v16499_v3  ;;  %v16509_v0 = vunpack.i.h.bf16 %v16507_v11  ;;  %v16508_v29 = vunpack.i.l.bf16 %v16507_v11 }
0x119d   : > { %v9855_v59 = vpack.c.bf16 %v9792_v61, %v9791_v14  ;;  %v16502_v13 = vpop.permute.xlu1 %16501 }
0x119e   : > { %v9800_v26 = vsel %vm389_vm2, %v16509_v0, %v16489_v1  ;;  %v9799_v19 = vsel %vm389_vm2, %v16508_v29, %v16488_v58  ;;  %v16504_v56 = vunpack.i.h.bf16 %v16502_v13  ;;  %v16503_v27 = vunpack.i.l.bf16 %v16502_v13 }
0x119f   : > { %v9853_v12 = vpack.c.bf16 %v9800_v26, %v9799_v19  ;;  %v16512_v15 = vpop.permute.xlu0 %16511  ;;  %v9787_v51 = vsel %vm389_vm2, %v16498_v9, %v16508_v29  ;;  %v9788_v32 = vsel %vm389_vm2, %v16499_v3, %v16509_v0 }
0x11a0   : > { %v16514_v30 = vunpack.i.h.bf16 %v16512_v15  ;;  %v16513_v7 = vunpack.i.l.bf16 %v16512_v15  ;;  %v9856_v37 = vpack.c.bf16 %v9788_v32, %v9787_v51  ;;  %v9790_v53 = vsel %vm389_vm2, %v16484_v17, %v16504_v56 }
0x11a1   : > { %v16517_v48 = vpop.permute.xlu1 %16516  ;;  %10016 = vmatpush1.bf16.msra.mxu0 %v9853_v12  ;;  %v9789_v34 = vsel %vm389_vm2, %v16483_v39, %v16503_v27 }
0x11a2   : > { %v9798_v20 = vsel %vm389_vm2, %v16514_v30, %v16479_v47  ;;  %v9797_v35 = vsel %vm389_vm2, %v16513_v7, %v16478_v54  ;;  %10017 = vmatprep.subr.bf16.mxu0 %v9850_v18  ;;  %10068 = vmatprep.subr.bf16.mxu1 %v9856_v37  ;;  %v9785_v36 = vsel %vm389_vm2, %v16503_v27, %v16513_v7  ;;  %v16519_v33 = vunpack.i.h.bf16 %v16517_v48  ;;  %v17621_v37 = vld [vmem:[%s21120_s3 + $0x1a0] sm:$0xff]  }
0x11a3   : > { %v9849_v62 = vpack.c.bf16 %v9798_v20, %v9797_v35  ;;  %v16522_v42 = vpop.permute.xlu0 %16521  ;;  %v9786_v23 = vsel %vm389_vm2, %v16504_v56, %v16514_v30  ;;  %10069 = vmatpush1.bf16.msra.mxu1 %v9855_v59  ;;  %v16518_v57 = vunpack.i.l.bf16 %v16517_v48  ;;  %v9851_v8 = vpack.c.bf16 %v9790_v53, %v9789_v34  ;;  %v17622_v53 = vld [vmem:[%s21120_s3 + $0x1a8] sm:$0xff]  }
0x11a4   : > { %v16524_v4 = vunpack.i.h.bf16 %v16522_v42  ;;  %v16523_v49 = vunpack.i.l.bf16 %v16522_v42  ;;  %v9852_v2 = vpack.c.bf16 %v9786_v23, %v9785_v36 }
0x11a5   : > { %v16527_v44 = vpop.permute.xlu1 %16526  ;;  %10018 = vmatpush1.bf16.msra.mxu0 %v9849_v62 }
0x11a6   : > { %v16529_v16 = vunpack.i.h.bf16 %v16527_v44  ;;  %v16528_v50 = vunpack.i.l.bf16 %v16527_v44  ;;  %10070 = vmatprep.subr.bf16.mxu1 %v9852_v2  ;;  %v9844_v28 = vsel %vm402_vm3, %v16519_v33, %v16524_v4  ;;  %v9843_v40 = vsel %vm402_vm3, %v16518_v57, %v16523_v49 }
0x11a7   : > { %v16537_v25 = vpop.permute.xlu0 %16536  ;;  %10071 = vmatpush1.bf16.msra.mxu1 %v9851_v8  ;;  %v10113_v5 = vpack.c.bf16 %v9844_v28, %v9843_v40 }
0x11a8   : > { %15370 = vmatmul.mubr.msk.bf16.vlgmr.msra.gmra.mxu0 %vm1055_vm12, %v17619_v10  ;;  %v9839_v38 = vsel %vm402_vm3, %v16523_v49, %v16528_v50  ;;  %v9840_v6 = vsel %vm402_vm3, %v16524_v4, %v16529_v16  ;;  %v16538_v55 = vunpack.i.l.bf16 %v16537_v25  ;;  %v16539_v3 = vunpack.i.h.bf16 %v16537_v25 }
0x11a9   : > { %v16532_v1 = vpop.permute.xlu1 %16531  ;;  %v10114_v58 = vpack.c.bf16 %v9840_v6, %v9839_v38  ;;  %10045 = vmatprep.mubr.bf16.mxu0 %v21155_v31 }
0x11aa   : > { %v16533_v24 = vunpack.i.l.bf16 %v16532_v1  ;;  %v16534_v22 = vunpack.i.h.bf16 %v16532_v1  ;;  %15372 = vmatmul.mubr.msk.bf16.vlgmr.msra.gmra.mxu1 %vm1055_vm12, %v17619_v10 }
0x11ab   : > { %v16547_v60 = vpop.permute.xlu0 %16546  ;;  %10145 = vmatprep.subr.bf16.mxu0 %v10114_v58  ;;  %10098 = vmatprep.mubr.bf16.mxu1 %v21155_v31 }
0x11ac   : > { %v16549_v17 = vunpack.i.h.bf16 %v16547_v60  ;;  %v16548_v39 = vunpack.i.l.bf16 %v16547_v60  ;;  %10146 = vmatpush1.bf16.msra.mxu0 %v10113_v5  ;;  %v9841_v9 = vsel %vm402_vm3, %v16533_v24, %v16538_v55  ;;  %v9842_v0 = vsel %vm402_vm3, %v16534_v22, %v16539_v3 }
0x11ad   : > { %v16542_v47 = vpop.permute.xlu1 %16541  ;;  %v10109_v30 = vpack.c.bf16 %v9842_v0, %v9841_v9 }
0x11ae   : > { %v9836_v54 = vsel %vm402_vm3, %v16529_v16, %v16549_v17  ;;  %v9835_v11 = vsel %vm402_vm3, %v16528_v50, %v16548_v39  ;;  %v16544_v14 = vunpack.i.h.bf16 %v16542_v47  ;;  %v16543_v61 = vunpack.i.l.bf16 %v16542_v47 }
0x11af   : > { %v10115_v29 = vpack.c.bf16 %v9836_v54, %v9835_v11  ;;  %v16552_v59 = vpop.permute.xlu0 %16551  ;;  %v9847_v13 = vsel %vm402_vm3, %v16548_v39, %v16518_v57  ;;  %v9848_v41 = vsel %vm402_vm3, %v16549_v17, %v16519_v33 }
0x11b0   : > { %v16554_v52 = vunpack.i.h.bf16 %v16552_v59  ;;  %v16553_v26 = vunpack.i.l.bf16 %v16552_v59  ;;  %15371 = vmatmul.mubr.msk.bf16.gmra.mxu0 %vm1055_vm12, %v17620_v46  ;;  %v10116_v19 = vpack.c.bf16 %v9848_v41, %v9847_v13  ;;  %v9837_v56 = vsel %vm402_vm3, %v16538_v55, %v16543_v61 }
0x11b1   : > { %v9838_v12 = vsel %vm402_vm3, %v16539_v3, %v16544_v14  ;;  %10165 = vmatprep.mubr.bf16.mxu0 %v21155_v31  ;;  %v9915_v20 = vpop.f32.mrf.mxu0 }
0x11b2   : > { %v9834_v27 = vsel %vm402_vm3, %v16544_v14, %v16554_v52  ;;  %v9833_v15 = vsel %vm402_vm3, %v16543_v61, %v16553_v26  ;;  %10198 = vmatprep.subr.bf16.mxu1 %v10116_v19  ;;  %v10110_v51 = vpack.c.bf16 %v9838_v12, %v9837_v56  ;;  %v9845_v32 = vsel %vm402_vm3, %v16553_v26, %v16533_v24 }
0x11b3   : > { %15373 = vmatmul.mubr.msk.bf16.gmra.mxu1 %vm1055_vm12, %v17620_v46  ;;  %v9846_v7 = vsel %vm402_vm3, %v16554_v52, %v16534_v22  ;;  %v10111_v18 = vpack.c.bf16 %v9834_v27, %v9833_v15  ;;  %v9917_v34 = vpop.f32.mrf.mxu0 }
0x11b4   : > { %10199 = vmatpush1.bf16.msra.mxu1 %v10115_v29  ;;  %10147 = vmatprep.subr.bf16.mxu0 %v10110_v51  ;;  %v10112_v48 = vpack.c.bf16 %v9846_v7, %v9845_v32 }
0x11b5   : > { %10148 = vmatpush1.bf16.msra.mxu0 %v10109_v30  ;;  %10218 = vmatprep.mubr.bf16.mxu1 %v21155_v31  ;;  %v9919_v42 = vpop.f32.mrf.mxu0 }
0x11b6   : > { %10200 = vmatprep.subr.bf16.mxu1 %v10112_v48 }
0x11b7   : > { %v9921_v23 = vpop.f32.mrf.mxu0 }
0x11b8   : > { %10201 = vmatpush1.bf16.msra.mxu1 %v10111_v18  ;;  %15376 = vmatmul.mubr.msk.bf16.vlgmr.msra.gmra.mxu0 %vm1055_vm12, %v17621_v37 }
0x11b9   : > { %10175 = vmatprep.mubr.bf16.mxu0 %v21155_v31  ;;  %v9925_v49 = vpop.f32.mrf.mxu0 }
0x11ba   : > { %v20335_v60 = vpop.permute.xlu1 %10267 }
0x11bb   : > { %15378 = vmatmul.mubr.msk.bf16.vlgmr.msra.gmra.mxu1 %vm1055_vm12, %v17621_v37  ;;  %v9927_v10 = vpop.f32.mrf.mxu0 }
0x11bc   : > { %10228 = vmatprep.mubr.bf16.mxu1 %v21155_v31  ;;  %v20337_v9 = vpop.permute.xlu0 %10272 }
0x11bd   : > { %v9929_v57 = vpop.f32.mrf.mxu0 }
0x11be   : > { %v10258_v0 = vpop.permute.xlu1 %10257 }
0x11bf   : > { %v20331_v8 = vpop.f32.mrf.mxu0 }
0x11c0   : > { %15377 = vmatmul.mubr.msk.bf16.gmra.mxu0 %vm1055_vm12, %v17622_v53  ;;  %v10263_v12 = vpop.permute.xlu0 %10262 }
0x11c1   : > { %10519 = vmatprep.mubr.bf16.mxu0 %v21155_v31 }
0x11c3   : > { %15379 = vmatmul.mubr.msk.bf16.gmra.mxu1 %vm1055_vm12, %v17622_v53 }
0x11c4   : > { %10572 = vmatprep.mubr.bf16.mxu1 %v21155_v31 }
0x11f1   : > { %v9968_v35 = vpop.f32.mrf.mxu1 }
0x11f3   : > { %v9970_v62 = vpop.f32.mrf.mxu1 }
0x11f5   : > { %v9972_v36 = vpop.f32.mrf.mxu1 }
0x11f7   : > { %v9974_v4 = vpop.f32.mrf.mxu1 }
0x11f9   : > { %v9978_v2 = vpop.f32.mrf.mxu1 }
0x11fb   : > { %v20327_v33 = vpop.f32.mrf.mxu1 }
0x11fd   : > { %v20329_v44 = vpop.f32.mrf.mxu1 }
0x11ff   : > { %v20333_v50 = vpop.f32.mrf.mxu1 }
0x1268   : > { %v10037_v16 = vpop.f32.mrf.mxu0 }
0x1269   : > { %v10038_v46 = vadd.f32 %v10037_v16, %v9915_v20 }
0x126a   : > { %v10039_v28 = vpop.f32.mrf.mxu0  ;;  %v10090_v40 = vpop.f32.mrf.mxu1 }
0x126b   : > { %v10040_v54 = vadd.f32 %v10039_v28, %v9917_v34  ;;  %v10091_v37 = vadd.f32 %v10090_v40, %v9968_v35 }
0x126c   : > { %v10041_v25 = vpop.f32.mrf.mxu0  ;;  %v10092_v38 = vpop.f32.mrf.mxu1 }
0x126d   : > { %v10042_v29 = vadd.f32 %v10041_v25, %v9919_v42  ;;  %v10093_v53 = vadd.f32 %v10092_v38, %v9970_v62 }
0x126e   : > { %v10043_v6 = vpop.f32.mrf.mxu0  ;;  %v10094_v1 = vpop.f32.mrf.mxu1 }
0x126f   : > { %v10044_v26 = vadd.f32 %v10043_v6, %v9921_v23  ;;  %v10095_v7 = vadd.f32 %v10094_v1, %v9972_v36 }
0x1270   : > { %v10047_v58 = vpop.f32.mrf.mxu0  ;;  %v10096_v5 = vpop.f32.mrf.mxu1 }
0x1271   : > { %v10048_v20 = vadd.f32 %v10047_v58, %v9925_v49  ;;  %v10097_v23 = vadd.f32 %v10096_v5, %v9974_v4 }
0x1272   : > { %v10049_v24 = vpop.f32.mrf.mxu0 }
0x1273   : > { %v10100_v55 = vpop.f32.mrf.mxu1 }
0x1274   : > { %v10051_v22 = vpop.f32.mrf.mxu0 }
0x1275   : > { %v10102_v17 = vpop.f32.mrf.mxu1 }
0x1276   : > { %v10053_v39 = vpop.f32.mrf.mxu0  ;;  %v10103_v35 = vadd.f32 %v10102_v17, %v20327_v33 }
0x1277   : > { %v10104_v3 = vpop.f32.mrf.mxu1  ;;  %v10054_v4 = vadd.f32 %v10053_v39, %v20331_v8 }
0x1278   : > { %v10167_v47 = vpop.f32.mrf.mxu0  ;;  %v10105_v62 = vadd.f32 %v10104_v3, %v20329_v44 }
0x1279   : > { %v10106_v11 = vpop.f32.mrf.mxu1  ;;  %v10239_v14 = vadd.f32 %v10167_v47, %v10038_v46  ;;  %v10101_v46 = vadd.f32 %v10100_v55, %v9978_v2  ;;  %v10050_v47 = vadd.f32 %v10049_v24, %v9927_v10 }
0x127a   : > { %v10169_v61 = vpop.f32.mrf.mxu0  ;;  %v10107_v5 = vadd.f32 %v10106_v11, %v20333_v50 }
0x127b   : > { %v10220_v59 = vpop.f32.mrf.mxu1  ;;  %v10240_v13 = vadd.f32 %v10169_v61, %v10040_v54  ;;  %v10275_v41 = vadd.f32 %v10258_v0, %v10239_v14  ;;  %v10052_v14 = vadd.f32 %v10051_v22, %v9929_v57 }
0x127c   : > { %v10171_v52 = vpop.f32.mrf.mxu0  ;;  %v10241_v54 = vadd.f32 %v10220_v59, %v10091_v37 }
0x127d   : > { %v10222_v19 = vpop.f32.mrf.mxu1  ;;  %v10243_v56 = vadd.f32 %v10171_v52, %v10042_v29  ;;  %v10276_v27 = vadd.f32 %v10258_v0, %v10240_v13  ;;  %v10291_v18 = vmul.f32 0.2, %v10275_v41 }
0x127e   : > { %v10173_v15 = vpop.f32.mrf.mxu0  ;;  %v10242_v29 = vadd.f32 %v10222_v19, %v10093_v53  ;;  %v20352_v24 = vadd.f32 %v10258_v0, %v10241_v54 }
0x127f   : > { %v10279_v51 = vadd.f32 %v10263_v12, %v10243_v56  ;;  %v10224_v32 = vpop.f32.mrf.mxu1  ;;  %v10244_v30 = vadd.f32 %v10173_v15, %v10044_v26  ;;  %v10292_v16 = vmul.f32 0.2, %v10276_v27  ;;  %v20341_v61 = vmax.f32 %v10275_v41, %v10291_v18 }
0x1280   : > { %v10177_v48 = vpop.f32.mrf.mxu0  ;;  %v10245_v25 = vadd.f32 %v10224_v32, %v10095_v7  ;;  %v10278_v8 = vadd.f32 %v10258_v0, %v10242_v29 }
0x1281   : > { %v10280_v34 = vadd.f32 %v10263_v12, %v10244_v30  ;;  %v10226_v42 = vpop.f32.mrf.mxu1  ;;  %v10295_v28 = vmul.f32 0.2, %v10279_v51  ;;  %v10247_v36 = vadd.f32 %v10177_v48, %v10048_v20  ;;  %v20347_v2 = vmax.f32 %v10276_v27, %v10292_v16 }
0x1282   : > { %v10179_v6 = vpop.f32.mrf.mxu0  ;;  %v10281_v58 = vadd.f32 %v10263_v12, %v10245_v25  ;;  %v10246_v55 = vadd.f32 %v10226_v42, %v10097_v23  ;;  %v10323_v44 = vsel %vm335_vm5, %v20341_v61, 0.0 }
0x1283   : > { %v10230_v1 = vpop.f32.mrf.mxu1  ;;  %v10296_v13 = vmul.f32 0.2, %v10280_v34  ;;  %v10283_v49 = vadd.f32 %v20335_v60, %v10247_v36  ;;  %v20349_v10 = vmax.f32 %v10279_v51, %v10295_v28  ;;  %v10248_v33 = vadd.f32 %v10179_v6, %v10050_v47 }
0x1284   : > { %v10181_v38 = vpop.f32.mrf.mxu0  ;;  %v10249_v57 = vadd.f32 %v10230_v1, %v10101_v46  ;;  %v10324_v26 = vsel %vm336_vm6, %v20347_v2, 0.0  ;;  %v10297_v0 = vmul.f32 0.2, %v10281_v58  ;;  %v10282_v27 = vadd.f32 %v10263_v12, %v10246_v55 }
0x1285   : > { %v10232_v40 = vpop.f32.mrf.mxu1  ;;  %v20357_v17 = vmax.f32 %v10280_v34, %v10296_v13  ;;  %v10299_v39 = vmul.f32 0.2, %v10283_v49  ;;  %v10284_v59 = vadd.f32 %v20335_v60, %v10248_v33  ;;  %v10251_v52 = vadd.f32 %v10181_v38, %v10052_v14 }
0x1286   : > { %v10285_v3 = vadd.f32 %v20335_v60, %v10249_v57  ;;  %v10250_v41 = vadd.f32 %v10232_v40, %v10103_v35  ;;  %v10183_v50 = vpop.f32.mrf.mxu0  ;;  %v10327_v19 = vsel %vm335_vm5, %v20349_v10, 0.0  ;;  %v10298_v16 = vmul.f32 0.2, %v10282_v27 }
0x1287   : > { %v10234_v22 = vpop.f32.mrf.mxu1  ;;  %v10300_v15 = vmul.f32 0.2, %v10284_v59  ;;  %v10287_v32 = vadd.f32 %v20337_v9, %v10251_v52  ;;  %v10328_v30 = vsel %vm336_vm6, %v20357_v17, 0.0  ;;  %v10252_v18 = vadd.f32 %v10183_v50, %v10054_v4 }
0x1288   : > { %v10253_v56 = vadd.f32 %v10234_v22, %v10105_v62  ;;  %v10286_v51 = vadd.f32 %v20335_v60, %v10250_v41  ;;  %v10315_v37 = vmax.f32 %v10283_v49, %v10299_v39  ;;  %v10301_v53 = vmul.f32 0.2, %v10285_v3 }
0x1289   : > { %v10236_v11 = vpop.f32.mrf.mxu1  ;;  %v10303_v20 = vmul.f32 0.2, %v10287_v32  ;;  %v20374_v34 = vpack.i.bf16 %v10327_v19, %v10323_v44  ;;  %v10288_v23 = vadd.f32 %v20337_v9, %v10252_v18  ;;  %v10316_v28 = vmax.f32 %v10284_v59, %v10300_v15  ;;  %v15392_v18 = vld [vmem:[%s21121_s4 + $0x120] sm:$0xff] }
0x128a   : > { %v10289_v7 = vadd.f32 %v20337_v9, %v10253_v56  ;;  %v10254_v48 = vadd.f32 %v10236_v11, %v10107_v5  ;;  %v10302_v42 = vmul.f32 0.2, %v10286_v51  ;;  %v20380_v6 = vpack.i.bf16 %v10328_v30, %v10324_v26 }
0x128b   : > { %v10319_v25 = vmax.f32 %v10287_v32, %v10303_v20  ;;  %16556 = vrot.lane.b32.xlu1 %v20374_v34, %s18083_s20  ;;  %v10304_v47 = vmul.f32 0.2, %v10288_v23  ;;  %v10293_v36 = vmul.f32 0.2, %v20352_v24  ;;  %v10294_v1 = vmul.f32 0.2, %v10278_v8 }
0x128c   : > { %v10305_v12 = vmul.f32 0.2, %v10289_v7  ;;  %v10290_v60 = vadd.f32 %v20337_v9, %v10254_v48  ;;  %v10331_v14 = vsel %vm335_vm5, %v10315_v37, 0.0  ;;  %16561 = vrot.lane.b32.xlu0 %v20380_v6, %s18083_s20  ;;  %v10317_v29 = vmax.f32 %v10285_v3, %v10301_v53  ;;  %v17623_v32 = vld [vmem:[%s21120_s3 + $0x1c0] sm:$0xff]   ;;  %v15393_v48 = vld [vmem:[%s21121_s4 + $0x128] sm:$0xff]  ;;  %v15395_v53 = vld [vmem:[%s21121_s4 + $0x138] sm:$0xff] }
0x128d   : > { %v10335_v9 = vsel %vm335_vm5, %v10319_v25, 0.0  ;;  %v10318_v13 = vmax.f32 %v10286_v51, %v10302_v42  ;;  %v10320_v35 = vmax.f32 %v10288_v23, %v10304_v47  ;;  %v10313_v49 = vmax.f32 %v10281_v58, %v10297_v0  ;;  %vm20857_vm5 = vmpackc.low %vm334_vm1, %vm334_vm1 }
0x128e   : > { %v10321_v46 = vmax.f32 %v10289_v7, %v10305_v12  ;;  %v10306_v54 = vmul.f32 0.2, %v10290_v60  ;;  %v10314_v40 = vmax.f32 %v10282_v27, %v10298_v16  ;;  %v10332_v38 = vsel %vm336_vm6, %v10316_v28, 0.0  ;;  %v17624_v7 = vld [vmem:[%s21120_s3 + $0x1c8] sm:$0xff]  }
0x128f   : > { %v16565_v57 = vpack.i.bf16 %v10335_v9, %v10331_v14  ;;  %v10336_v33 = vsel %vm336_vm6, %v10320_v35, 0.0  ;;  %v15399_v22 = vpack.c.bf16 %v10320_v35, %v10316_v28  ;;  %v10309_v39 = vmax.f32 %v20352_v24, %v10293_v36  ;;  %vm20868_vm6 = vmpackc.low %vm331_vm14, %vm331_vm14 }
0x1290   : > { %v10322_v62 = vmax.f32 %v10290_v60, %v10306_v54  ;;  %v10337_v55 = vsel %vm337_vm7, %v10321_v46, 0.0  ;;  %v10310_v3 = vmax.f32 %v10278_v8, %v10294_v1  ;;  %v15402_v59 = vpack.c.bf16 %v10319_v25, %v10315_v37  ;;  %v15394_v37 = vld [vmem:[%s21121_s4 + $0x130] sm:$0xff] }
0x1291   : > { %16566 = vrot.lane.b32.xlu1 %v16565_v57, %s18083_s20  ;;  %v16580_v41 = vpack.i.bf16 %v10336_v33, %v10332_v38  ;;  %v15405_v50 = vpack.c.bf16 %v20357_v17, %v20347_v2  ;;  %v10333_v11 = vsel %vm337_vm7, %v10317_v29, 0.0  ;;  %v15416_v26 = vpack.c.bf16 %v10321_v46, %v10317_v29  ;;  %15400 = vmatprep.subr.msk.bf16.mxu0 %vm20393_vm9, %v15399_v22 }
0x1292   : > { %v15413_v58 = vpack.c.bf16 %v10322_v62, %v10318_v13  ;;  %v10338_v24 = vsel %vm338_vm8, %v10322_v62, 0.0  ;;  %v15419_v8 = vpack.c.bf16 %v10314_v40, %v10310_v3  ;;  %15403 = vmatpush1.bf16.msk.msra.mxu0 %vm20413_vm11, %v15402_v59  ;;  %v16570_v2 = vpack.i.bf16 %v10337_v55, %v10333_v11 }
0x1293   : > { %16581 = vrot.lane.b32.xlu0 %v16580_v41, %s18083_s20  ;;  %v10329_v17 = vsel %vm337_vm7, %v10313_v49, 0.0  ;;  %v10334_v19 = vsel %vm338_vm8, %v10318_v13, 0.0  ;;  %15406 = vmatprep.subr.msk.bf16.mxu0 %vm20393_vm9, %v15405_v50  ;;  %v15408_v0 = vpack.c.bf16 %v20349_v10, %v20341_v61  ;;  %v10325_v27 = vsel %vm337_vm7, %v10309_v39, 0.0  ;;  %vm20877_vm7 = vmpackc.low %vm333_vm0, %vm333_vm0 }
0x1294   : > { %15414 = vmatprep.subr.msk.bf16.mxu1 %vm20402_vm10, %v15413_v58  ;;  %v16585_v56 = vpack.i.bf16 %v10338_v24, %v10334_v19  ;;  %v15422_v15 = vpack.c.bf16 %v10313_v49, %v10309_v39  ;;  %v10330_v51 = vsel %vm338_vm8, %v10314_v40, 0.0  ;;  %v16575_v61 = vpack.i.bf16 %v10329_v17, %v10325_v27 }
0x1295   : > { %15417 = vmatpush1.bf16.msk.msra.mxu1 %vm20422_vm13, %v15416_v26  ;;  %16571 = vrot.lane.b32.xlu1 %v16570_v2, %s18083_s20  ;;  %v10326_v10 = vsel %vm338_vm8, %v10310_v3, 0.0 }
0x1296   : > { %15420 = vmatprep.subr.msk.bf16.mxu1 %vm20402_vm10, %v15419_v8  ;;  %15409 = vmatpush1.bf16.msk.msra.mxu0 %vm20413_vm11, %v15408_v0  ;;  %v16590_v30 = vpack.i.bf16 %v10330_v51, %v10326_v10 }
0x1297   : > { %16586 = vrot.lane.b32.xlu0 %v16585_v56, %s18083_s20 }
0x1299   : > { %15423 = vmatpush1.bf16.msk.msra.mxu1 %vm20422_vm13, %v15422_v15  ;;  %16576 = vrot.lane.b32.xlu1 %v16575_v61, %s18083_s20 }
0x129a   : > { %15410 = vmatmul.mubr.msk.bf16.vlgmr.msra.gmra.mxu0 %vm1055_vm12, %v17623_v32 }
0x129b   : > { %16591 = vrot.lane.b32.xlu0 %v16590_v30, %s18083_s20  ;;  %10529 = vmatprep.mubr.bf16.mxu0 %v21155_v31 }
0x129c   : > { %15424 = vmatmul.mubr.msk.bf16.vlgmr.msra.gmra.mxu1 %vm1055_vm12, %v17623_v32 }
0x129d   : > { %10582 = vmatprep.mubr.bf16.mxu1 %v21155_v31  ;;  %16596 = vrot.lane.b32.xlu1 %v16565_v57, %s18084_s21 }
0x129f   : > { %16601 = vrot.lane.b32.xlu0 %v16580_v41, %s18084_s21 }
0x12a1   : > { %16606 = vrot.lane.b32.xlu1 %v16570_v2, %s18084_s21 }
0x12a2   : > { %15411 = vmatmul.mubr.msk.bf16.gmra.mxu0 %vm1055_vm12, %v17624_v7 }
0x12a3   : > { %16616 = vrot.lane.b32.xlu0 %v20380_v6, %s18084_s21  ;;  %10641 = vmatprep.mubr.bf16.mxu0 %v21155_v31 }
0x12a4   : > { %15425 = vmatmul.mubr.msk.bf16.gmra.mxu1 %vm1055_vm12, %v17624_v7 }
0x12a5   : > { %10694 = vmatprep.mubr.bf16.mxu1 %v21155_v31  ;;  %16611 = vrot.lane.b32.xlu1 %v20374_v34, %s18084_s21 }
0x12a7   : > { %16626 = vrot.lane.b32.xlu0 %v16585_v56, %s18084_s21 }
0x12a9   : > { %16621 = vrot.lane.b32.xlu1 %v16575_v61, %s18084_s21  ;;  %v17625_v61 = vld [vmem:[%s21120_s3 + $0x1b0] sm:$0xff]  }
0x12ab   : > { %16631 = vrot.lane.b32.xlu0 %v16590_v30, %s18084_s21 }
0x12ad   : > { %10863 = vperm.xlu1 %15834, %v15392_v18  }
0x12af   : > { %10868 = vperm.xlu0 %15833, %v15393_v48  }
0x12b1   : > { %10873 = vperm.xlu1 %15834, %v15394_v37  }
0x12b3   : > { %10878 = vperm.xlu0 %15833, %v15395_v53  }
0x12fd   : > { %v16557_v20 = vpop.permute.xlu1 %16556 }
0x12fe   : > { %v16562_v34 = vpop.permute.xlu0 %16561  ;;  %v16559_v14 = vunpack.i.h.bf16 %v16557_v20  ;;  %v16558_v9 = vunpack.i.l.bf16 %v16557_v20 }
0x12ff   : > { %v16564_v25 = vunpack.i.h.bf16 %v16562_v34  ;;  %v16563_v6 = vunpack.i.l.bf16 %v16562_v34 }
0x1301   : > { %v10399_v40 = vsel %vm389_vm2, %v16558_v9, %v16563_v6  ;;  %v10400_v38 = vsel %vm389_vm2, %v16559_v14, %v16564_v25 }
0x1302   : > { %v10456_v52 = vpack.c.bf16 %v10400_v38, %v10399_v40 }
0x1303   : > { %v16567_v42 = vpop.permute.xlu1 %16566 }
0x1304   : > { %v16569_v23 = vunpack.i.h.bf16 %v16567_v42  ;;  %v16568_v60 = vunpack.i.l.bf16 %v16567_v42 }
0x1305   : > { %v16582_v12 = vpop.permute.xlu0 %16581 }
0x1306   : > { %v16584_v16 = vunpack.i.h.bf16 %v16582_v12  ;;  %v16583_v28 = vunpack.i.l.bf16 %v16582_v12 }
0x1307   : > { %v16572_v46 = vpop.permute.xlu1 %16571 }
0x1308   : > { %v16574_v47 = vunpack.i.h.bf16 %v16572_v46  ;;  %v16573_v54 = vunpack.i.l.bf16 %v16572_v46  ;;  %v10401_v36 = vsel %vm389_vm2, %v16568_v60, %v16583_v28  ;;  %v10402_v1 = vsel %vm389_vm2, %v16569_v23, %v16584_v16 }
0x1309   : > { %v16587_v29 = vpop.permute.xlu0 %16586  ;;  %v10460_v13 = vpack.c.bf16 %v10402_v1, %v10401_v36  ;;  %v17626_v36 = vld [vmem:[%s21120_s3 + $0x1b8] sm:$0xff]  }
0x130a   : > { %v16589_v35 = vunpack.i.h.bf16 %v16587_v29  ;;  %v16588_v62 = vunpack.i.l.bf16 %v16587_v29  ;;  %v10398_v4 = vsel %vm389_vm2, %v16584_v16, %v16574_v47  ;;  %v10397_v57 = vsel %vm389_vm2, %v16583_v28, %v16573_v54 }
0x130b   : > { %v16577_v49 = vpop.permute.xlu1 %16576  ;;  %10621 = vmatprep.subr.bf16.mxu0 %v10460_v13  ;;  %v10461_v26 = vpack.c.bf16 %v10398_v4, %v10397_v57 }
0x130c   : > { %v10405_v5 = vsel %vm389_vm2, %v16588_v62, %v16568_v60  ;;  %v10406_v55 = vsel %vm389_vm2, %v16589_v35, %v16569_v23  ;;  %v16579_v33 = vunpack.i.h.bf16 %v16577_v49  ;;  %v16578_v58 = vunpack.i.l.bf16 %v16577_v49 }
0x130d   : > { %v10459_v22 = vpack.c.bf16 %v10406_v55, %v10405_v5  ;;  %v16592_v44 = vpop.permute.xlu0 %16591  ;;  %v10393_v39 = vsel %vm389_vm2, %v16573_v54, %v16588_v62  ;;  %v10394_v3 = vsel %vm389_vm2, %v16574_v47, %v16589_v35 }
0x130e   : > { %v16594_v59 = vunpack.i.h.bf16 %v16592_v44  ;;  %v16593_v41 = vunpack.i.l.bf16 %v16592_v44  ;;  %v10462_v11 = vpack.c.bf16 %v10394_v3, %v10393_v39  ;;  %v10396_v24 = vsel %vm389_vm2, %v16564_v25, %v16579_v33 }
0x130f   : > { %v16597_v50 = vpop.permute.xlu1 %16596  ;;  %10622 = vmatpush1.bf16.msra.mxu0 %v10459_v22  ;;  %v10395_v17 = vsel %vm389_vm2, %v16563_v6, %v16578_v58 }
0x1310   : > { %v10403_v8 = vsel %vm389_vm2, %v16593_v41, %v16558_v9  ;;  %v10404_v2 = vsel %vm389_vm2, %v16594_v59, %v16559_v14  ;;  %10623 = vmatprep.subr.bf16.mxu0 %v10456_v52  ;;  %10674 = vmatprep.subr.bf16.mxu1 %v10462_v11  ;;  %v10391_v56 = vsel %vm389_vm2, %v16578_v58, %v16593_v41  ;;  %v16599_v10 = vunpack.i.h.bf16 %v16597_v50  ;;  %v17631_v41 = vld [vmem:[#allocation3 + $0x10e4] ss:$16 sps:$4 sm:$0xff]  }
0x1311   : > { %v10455_v19 = vpack.c.bf16 %v10404_v2, %v10403_v8  ;;  %v16602_v0 = vpop.permute.xlu0 %16601  ;;  %v10392_v27 = vsel %vm389_vm2, %v16579_v33, %v16594_v59  ;;  %10675 = vmatpush1.bf16.msra.mxu1 %v10461_v26  ;;  %v16598_v30 = vunpack.i.l.bf16 %v16597_v50  ;;  %v10457_v18 = vpack.c.bf16 %v10396_v24, %v10395_v17  ;;  %v17627_v24 = vld [vmem:[%s21120_s3 + $0x1d0] sm:$0xff]  }
0x1312   : > { %v16604_v15 = vunpack.i.h.bf16 %v16602_v0  ;;  %v16603_v51 = vunpack.i.l.bf16 %v16602_v0  ;;  %v10458_v32 = vpack.c.bf16 %v10392_v27, %v10391_v56  ;;  %v17629_v8 = vld [vmem:[#allocation3 + $0x10e0] ss:$16 sps:$4 sm:$0xff]   ;;  %v17634_v2 = vld [vmem:[#allocation3 + $0x12e4] ss:$16 sps:$4 sm:$0xff]  }
0x1313   : > { %v16607_v7 = vpop.permute.xlu1 %16606  ;;  %10624 = vmatpush1.bf16.msra.mxu0 %v10455_v19  ;;  %v17637_v17 = vld [vmem:[#allocation3 + $0x10c4] ss:$16 sps:$4 sm:$0xff]   ;;  %v17632_v19 = vld [vmem:[#allocation3 + $0x12e0] ss:$16 sps:$4 sm:$0xff]  }
0x1314   : > { %v16609_v48 = vunpack.i.h.bf16 %v16607_v7  ;;  %v16608_v37 = vunpack.i.l.bf16 %v16607_v7  ;;  %10676 = vmatprep.subr.bf16.mxu1 %v10458_v32  ;;  %v10449_v53 = vsel %vm402_vm3, %v16598_v30, %v16603_v51  ;;  %v10450_v20 = vsel %vm402_vm3, %v16599_v10, %v16604_v15  ;;  %v17635_v0 = vld [vmem:[#allocation3 + $0x10c0] ss:$16 sps:$4 sm:$0xff]   ;;  %v17640_v56 = vld [vmem:[#allocation3 + $0x12c4] ss:$16 sps:$4 sm:$0xff]  }
0x1315   : > { %v16617_v34 = vpop.permute.xlu0 %16616  ;;  %10677 = vmatpush1.bf16.msra.mxu1 %v10457_v18  ;;  %v10719_v16 = vpack.c.bf16 %v10450_v20, %v10449_v53  ;;  %v17643_v27 = vld [vmem:[#allocation3 + $0x10a4] ss:$16 sps:$4 sm:$0xff]   ;;  %v17641_v32 = vld [vmem:[#allocation3 + $0x10a0] ss:$16 sps:$4 sm:$0xff]  }
0x1316   : > { %15428 = vmatmul.mubr.msk.bf16.vlgmr.msra.gmra.mxu0 %vm1055_vm12, %v17625_v61  ;;  %v10445_v42 = vsel %vm402_vm3, %v16603_v51, %v16608_v37  ;;  %v10446_v12 = vsel %vm402_vm3, %v16604_v15, %v16609_v48  ;;  %v16619_v25 = vunpack.i.h.bf16 %v16617_v34  ;;  %v16618_v1 = vunpack.i.l.bf16 %v16617_v34  ;;  %v17628_v15 = vld [vmem:[%s21120_s3 + $0x1d8] sm:$0xff]   ;;  %v17638_v51 = vld [vmem:[#allocation3 + $0x12c0] ss:$16 sps:$4 sm:$0xff]  }
0x1317   : > { %v16612_v23 = vpop.permute.xlu1 %16611  ;;  %v10720_v60 = vpack.c.bf16 %v10446_v12, %v10445_v42  ;;  %10651 = vmatprep.mubr.bf16.mxu0 %v21155_v31  ;;  %v17647_v7 = vld [vmem:[#allocation3 + $0x1080] ss:$16 sps:$4 sm:$0xff]   ;;  %v17652_v18 = vld [vmem:[#allocation3 + $0x1284] ss:$16 sps:$4 sm:$0xff]  }
0x1318   : > { %v16614_v28 = vunpack.i.h.bf16 %v16612_v23  ;;  %v16613_v6 = vunpack.i.l.bf16 %v16612_v23  ;;  %15430 = vmatmul.mubr.msk.bf16.vlgmr.msra.gmra.mxu1 %vm1055_vm12, %v17625_v61  ;;  %v17646_v61 = vld [vmem:[#allocation3 + $0x12a4] ss:$16 sps:$4 sm:$0xff]   ;;  %v17653_v53 = vld [vmem:[#allocation3 + $0x1060] ss:$16 sps:$4 sm:$0xff]  }
0x1319   : > { %v16627_v46 = vpop.permute.xlu0 %16626  ;;  %10751 = vmatprep.subr.bf16.mxu0 %v10720_v60  ;;  %10704 = vmatprep.mubr.bf16.mxu1 %v21155_v31  ;;  %v17658_v20 = vld [vmem:[#allocation3 + $0x1264] ss:$16 sps:$4 sm:$0xff]   ;;  %v17656_v42 = vld [vmem:[#allocation3 + $0x1260] ss:$16 sps:$4 sm:$0xff]  }
0x131a   : > { %v16629_v47 = vunpack.i.h.bf16 %v16627_v46  ;;  %v16628_v54 = vunpack.i.l.bf16 %v16627_v46  ;;  %10752 = vmatpush1.bf16.msra.mxu0 %v10719_v16  ;;  %v10448_v14 = vsel %vm402_vm3, %v16614_v28, %v16619_v25  ;;  %v10447_v4 = vsel %vm402_vm3, %v16613_v6, %v16618_v1  ;;  %v17661_v34 = vld [vmem:[#allocation3 + $0x1044] ss:$16 sps:$4 sm:$0xff]   ;;  %v17659_v12 = vld [vmem:[#allocation3 + $0x1040] ss:$16 sps:$4 sm:$0xff]  }
0x131b   : > { %v16622_v9 = vpop.permute.xlu1 %16621  ;;  %v10715_v52 = vpack.c.bf16 %v10448_v14, %v10447_v4  ;;  %v17664_v23 = vld [vmem:[#allocation3 + $0x1244] ss:$16 sps:$4 sm:$0xff]   ;;  %v17662_v16 = vld [vmem:[#allocation3 + $0x1240] ss:$16 sps:$4 sm:$0xff]  }
0x131c   : > { %v10441_v29 = vsel %vm402_vm3, %v16608_v37, %v16628_v54  ;;  %v10442_v13 = vsel %vm402_vm3, %v16609_v48, %v16629_v47  ;;  %v16624_v35 = vunpack.i.h.bf16 %v16622_v9  ;;  %v16623_v62 = vunpack.i.l.bf16 %v16622_v9  ;;  %v17655_v48 = vld [vmem:[#allocation3 + $0x1064] ss:$16 sps:$4 sm:$0xff]   ;;  %v17650_v37 = vld [vmem:[#allocation3 + $0x1280] ss:$16 sps:$4 sm:$0xff]  }
0x131d   : > { %v10721_v49 = vpack.c.bf16 %v10442_v13, %v10441_v29  ;;  %v16632_v40 = vpop.permute.xlu0 %16631  ;;  %v10453_v38 = vsel %vm402_vm3, %v16628_v54, %v16598_v30  ;;  %v10454_v57 = vsel %vm402_vm3, %v16629_v47, %v16599_v10  ;;  %v17649_v10 = vld [vmem:[#allocation3 + $0x1084] ss:$16 sps:$4 sm:$0xff]   ;;  %v17644_v30 = vld [vmem:[#allocation3 + $0x12a0] ss:$16 sps:$4 sm:$0xff]  }
0x131e   : > { %v16634_v5 = vunpack.i.h.bf16 %v16632_v40  ;;  %v16633_v55 = vunpack.i.l.bf16 %v16632_v40  ;;  %15429 = vmatmul.mubr.msk.bf16.gmra.mxu0 %vm1055_vm12, %v17626_v36  ;;  %v10722_v33 = vpack.c.bf16 %v10454_v57, %v10453_v38  ;;  %v10443_v22 = vsel %vm402_vm3, %v16618_v1, %v16623_v62  ;;  %v17667_v60 = vld [vmem:[#allocation3 + $0x1024] ss:$16 sps:$4 sm:$0xff]   ;;  %v17668_v46 = vld [vmem:[#allocation3 + $0x1220] ss:$16 sps:$4 sm:$0xff]  }
0x131f   : > { %v10444_v58 = vsel %vm402_vm3, %v16619_v25, %v16624_v35  ;;  %10771 = vmatprep.mubr.bf16.mxu0 %v21155_v31  ;;  %v17670_v25 = vld [vmem:[#allocation3 + $0x1224] ss:$16 sps:$4 sm:$0xff]   ;;  %v17671_v47 = vld [vmem:[#allocation3 + $0x1000] ss:$16 sps:$4 sm:$0xff]  }
0x1320   : > { %v10439_v44 = vsel %vm402_vm3, %v16623_v62, %v16633_v55  ;;  %v10440_v39 = vsel %vm402_vm3, %v16624_v35, %v16634_v5  ;;  %10804 = vmatprep.subr.bf16.mxu1 %v10722_v33  ;;  %v10716_v3 = vpack.c.bf16 %v10444_v58, %v10443_v22  ;;  %v10451_v59 = vsel %vm402_vm3, %v16633_v55, %v16613_v6  ;;  %v17673_v6 = vld [vmem:[#allocation3 + $0x1004] ss:$16 sps:$4 sm:$0xff]   ;;  %v17677_v1 = vld [vmem:[#allocation3 + $0x11e0] ss:$16 sps:$4 sm:$0xff]  }
0x1321   : > { %15431 = vmatmul.mubr.msk.bf16.gmra.mxu1 %vm1055_vm12, %v17626_v36  ;;  %v10452_v50 = vsel %vm402_vm3, %v16634_v5, %v16614_v28  ;;  %v10717_v11 = vpack.c.bf16 %v10440_v39, %v10439_v44  ;;  %v17665_v28 = vld [vmem:[#allocation3 + $0x1020] ss:$16 sps:$4 sm:$0xff]   ;;  %v17676_v54 = vld [vmem:[#allocation3 + $0x1204] ss:$16 sps:$4 sm:$0xff]  }
0x1322   : > { %10805 = vmatpush1.bf16.msra.mxu1 %v10721_v49  ;;  %10753 = vmatprep.subr.bf16.mxu0 %v10716_v3  ;;  %v10718_v26 = vpack.c.bf16 %v10452_v50, %v10451_v59  ;;  %v17674_v36 = vld [vmem:[#allocation3 + $0x1200] ss:$16 sps:$4 sm:$0xff]   ;;  %v17679_v14 = vld [vmem:[#allocation3 + $0x11e4] ss:$16 sps:$4 sm:$0xff]  }
0x1323   : > { %10754 = vmatpush1.bf16.msra.mxu0 %v10715_v52  ;;  %10824 = vmatprep.mubr.bf16.mxu1 %v21155_v31  ;;  %v17680_v9 = vld [vmem:[#allocation3 + $0x13e0] ss:$16 sps:$4 sm:$0xff]   ;;  %v17682_v29 = vld [vmem:[#allocation3 + $0x13e4] ss:$16 sps:$4 sm:$0xff]  }
0x1324   : > { %10806 = vmatprep.subr.bf16.mxu1 %v10718_v26  ;;  %11706 = vmatprep.subr.bf16.mxu0 %v17631_v41  ;;  %v17683_v13 = vld [vmem:[#allocation3 + $0x11c0] ss:$16 sps:$4 sm:$0xff]   ;;  %v17685_v35 = vld [vmem:[#allocation3 + $0x11c4] ss:$16 sps:$4 sm:$0xff]  }
0x1325   : > { %v17686_v62 = vld [vmem:[#allocation3 + $0x13c0] ss:$16 sps:$4 sm:$0xff]   ;;  %v17688_v4 = vld [vmem:[#allocation3 + $0x13c4] ss:$16 sps:$4 sm:$0xff]  }
0x1326   : > { %10807 = vmatpush1.bf16.msra.mxu1 %v10717_v11  ;;  %15434 = vmatmul.mubr.msk.bf16.vlgmr.msra.gmra.mxu0 %vm1055_vm12, %v17627_v24  ;;  %v17689_v49 = vld [vmem:[#allocation3 + $0x11a0] ss:$16 sps:$4 sm:$0xff]   ;;  %v17691_v40 = vld [vmem:[#allocation3 + $0x11a4] ss:$16 sps:$4 sm:$0xff]  }
0x1327   : > { %10781 = vmatprep.mubr.bf16.mxu0 %v21155_v31  ;;  %11707 = vmatpush1.bf16.msra.mxu0 %v17629_v8  ;;  %v17692_v38 = vld [vmem:[#allocation3 + $0x13a0] ss:$16 sps:$4 sm:$0xff]   ;;  %v17694_v57 = vld [vmem:[#allocation3 + $0x13a4] ss:$16 sps:$4 sm:$0xff]  }
0x1328   : > { %11759 = vmatprep.subr.bf16.mxu1 %v17634_v2  ;;  %11708 = vmatprep.subr.bf16.mxu0 %v17637_v17  ;;  %v17695_v5 = vld [vmem:[#allocation3 + $0x1180] ss:$16 sps:$4 sm:$0xff]   ;;  %v17697_v55 = vld [vmem:[#allocation3 + $0x1184] ss:$16 sps:$4 sm:$0xff]  }
0x1329   : > { %15436 = vmatmul.mubr.msk.bf16.vlgmr.msra.gmra.mxu1 %vm1055_vm12, %v17627_v24  ;;  %v17698_v33 = vld [vmem:[#allocation3 + $0x1380] ss:$16 sps:$4 sm:$0xff]   ;;  %v17700_v22 = vld [vmem:[#allocation3 + $0x1384] ss:$16 sps:$4 sm:$0xff]  }
0x132a   : > { %10834 = vmatprep.mubr.bf16.mxu1 %v21155_v31  ;;  %11760 = vmatpush1.bf16.msra.mxu1 %v17632_v19  ;;  %v17701_v58 = vld [vmem:[#allocation3 + $0x1160] ss:$16 sps:$4 sm:$0xff]   ;;  %v17703_v44 = vld [vmem:[#allocation3 + $0x1164] ss:$16 sps:$4 sm:$0xff]  }
0x132b   : > { %11709 = vmatpush1.bf16.msra.mxu0 %v17635_v0  ;;  %11761 = vmatprep.subr.bf16.mxu1 %v17640_v56  ;;  %v17704_v39 = vld [vmem:[#allocation3 + $0x1360] ss:$16 sps:$4 sm:$0xff]   ;;  %v17706_v3 = vld [vmem:[#allocation3 + $0x1364] ss:$16 sps:$4 sm:$0xff]   ;;  %v17727_v56 = vld [vmem:[#allocation3 + $0x10ec] ss:$16 sps:$4 sm:$0xff]  }
0x132c   : > { %11710 = vmatprep.subr.bf16.mxu0 %v17643_v27  ;;  %v17709_v59 = vld [vmem:[#allocation3 + $0x1144] ss:$16 sps:$4 sm:$0xff]   ;;  %v17707_v41 = vld [vmem:[#allocation3 + $0x1140] ss:$16 sps:$4 sm:$0xff]   ;;  %v17730_v27 = vld [vmem:[#allocation3 + $0x12ec] ss:$16 sps:$4 sm:$0xff]  }
0x132d   : > { %v17712_v52 = vld [vmem:[#allocation3 + $0x1344] ss:$16 sps:$4 sm:$0xff]   ;;  %v17710_v50 = vld [vmem:[#allocation3 + $0x1340] ss:$16 sps:$4 sm:$0xff]  }
0x132e   : > { %15435 = vmatmul.mubr.msk.bf16.gmra.mxu0 %vm1055_vm12, %v17628_v15  ;;  %11762 = vmatpush1.bf16.msra.mxu1 %v17638_v51  ;;  %v17713_v11 = vld [vmem:[#allocation3 + $0x1120] ss:$16 sps:$4 sm:$0xff]   ;;  %v17715_v26 = vld [vmem:[#allocation3 + $0x1124] ss:$16 sps:$4 sm:$0xff]  }
0x132f   : > { %11711 = vmatpush1.bf16.msra.mxu0 %v17641_v32  ;;  %11763 = vmatprep.subr.bf16.mxu1 %v17646_v61  ;;  %v17716_v24 = vld [vmem:[#allocation3 + $0x1320] ss:$16 sps:$4 sm:$0xff]   ;;  %v17718_v8 = vld [vmem:[#allocation3 + $0x1324] ss:$16 sps:$4 sm:$0xff]  }
0x1330   : > { %11712 = vmatprep.subr.bf16.mxu0 %v17649_v10  ;;  %v17721_v2 = vld [vmem:[#allocation3 + $0x1104] ss:$16 sps:$4 sm:$0xff]   ;;  %v17719_v17 = vld [vmem:[#allocation3 + $0x1100] ss:$16 sps:$4 sm:$0xff]  }
0x1331   : > { %15437 = vmatmul.mubr.msk.bf16.gmra.mxu1 %vm1055_vm12, %v17628_v15  ;;  %v17724_v19 = vld [vmem:[#allocation3 + $0x1304] ss:$16 sps:$4 sm:$0xff]   ;;  %v17722_v0 = vld [vmem:[#allocation3 + $0x1300] ss:$16 sps:$4 sm:$0xff]  }
0x1332   : > { %11764 = vmatpush1.bf16.msra.mxu1 %v17644_v30 }
0x1333   : > { %11713 = vmatpush1.bf16.msra.mxu0 %v17647_v7  ;;  %11765 = vmatprep.subr.bf16.mxu1 %v17652_v18 }
0x1334   : > { %11714 = vmatprep.subr.bf16.mxu0 %v17655_v48 }
0x1336   : > { %11766 = vmatpush1.bf16.msra.mxu1 %v17650_v37 }
0x1337   : > { %11715 = vmatpush1.bf16.msra.mxu0 %v17653_v53  ;;  %11767 = vmatprep.subr.bf16.mxu1 %v17658_v20 }
0x1338   : > { %11716 = vmatprep.subr.bf16.mxu0 %v17661_v34 }
0x133a   : > { %11768 = vmatpush1.bf16.msra.mxu1 %v17656_v42 }
0x133b   : > { %11717 = vmatpush1.bf16.msra.mxu0 %v17659_v12  ;;  %11769 = vmatprep.subr.bf16.mxu1 %v17664_v23 }
0x133c   : > { %11718 = vmatprep.subr.bf16.mxu0 %v17667_v60 }
0x133e   : > { %11770 = vmatpush1.bf16.msra.mxu1 %v17662_v16 }
0x133f   : > { %11719 = vmatpush1.bf16.msra.mxu0 %v17665_v28  ;;  %11771 = vmatprep.subr.bf16.mxu1 %v17670_v25 }
0x1340   : > { %11720 = vmatprep.subr.bf16.mxu0 %v17673_v6 }
0x1342   : > { %11772 = vmatpush1.bf16.msra.mxu1 %v17668_v46 }
0x1343   : > { %11721 = vmatpush1.bf16.msra.mxu0 %v17671_v47  ;;  %11773 = vmatprep.subr.bf16.mxu1 %v17676_v54 }
0x1344   : > { %11722 = vmatprep.subr.bf16.mxu0 %v17679_v14 }
0x1346   : > { %11774 = vmatpush1.bf16.msra.mxu1 %v17674_v36 }
0x1347   : > { %11723 = vmatpush2.bf16.msra.mxu0 %v17677_v1  ;;  %11775 = vmatprep.subr.bf16.mxu1 %v17682_v29 }
0x1348   : > { %11724 = vmatprep.subr.bf16.mxu0 %v17685_v35 }
0x134a   : > { %11776 = vmatpush2.bf16.msra.mxu1 %v17680_v9 }
0x134b   : > { %11725 = vmatpush2.bf16.msra.mxu0 %v17683_v13  ;;  %11777 = vmatprep.subr.bf16.mxu1 %v17688_v4 }
0x134c   : > { %11726 = vmatprep.subr.bf16.mxu0 %v17691_v40 }
0x134e   : > { %11778 = vmatpush2.bf16.msra.mxu1 %v17686_v62 }
0x134f   : > { %11727 = vmatpush2.bf16.msra.mxu0 %v17689_v49  ;;  %11779 = vmatprep.subr.bf16.mxu1 %v17694_v57 }
0x1350   : > { %11728 = vmatprep.subr.bf16.mxu0 %v17697_v55 }
0x1352   : > { %11780 = vmatpush2.bf16.msra.mxu1 %v17692_v38 }
0x1353   : > { %11729 = vmatpush2.bf16.msra.mxu0 %v17695_v5  ;;  %11781 = vmatprep.subr.bf16.mxu1 %v17700_v22 }
0x1354   : > { %11730 = vmatprep.subr.bf16.mxu0 %v17703_v44 }
0x1356   : > { %11782 = vmatpush2.bf16.msra.mxu1 %v17698_v33 }
0x1357   : > { %11731 = vmatpush2.bf16.msra.mxu0 %v17701_v58  ;;  %11783 = vmatprep.subr.bf16.mxu1 %v17706_v3  ;;  %v10864_v58 = vpop.permute.xlu1 %10863 }
0x1358   : > { %11732 = vmatprep.subr.bf16.mxu0 %v17709_v59 }
0x135a   : > { %11784 = vmatpush2.bf16.msra.mxu1 %v17704_v39  ;;  %v10521_v15 = vpop.f32.mrf.mxu0 }
0x135b   : > { %11733 = vmatpush2.bf16.msra.mxu0 %v17707_v41  ;;  %11785 = vmatprep.subr.bf16.mxu1 %v17712_v52 }
0x135c   : > { %11734 = vmatprep.subr.bf16.mxu0 %v17715_v26  ;;  %v10574_v51 = vpop.f32.mrf.mxu1  ;;  %v10523_v32 = vpop.f32.mrf.mxu0 }
0x135e   : > { %11786 = vmatpush2.bf16.msra.mxu1 %v17710_v50  ;;  %v10576_v61 = vpop.f32.mrf.mxu1  ;;  %v10525_v10 = vpop.f32.mrf.mxu0 }
0x135f   : > { %11735 = vmatpush2.bf16.msra.mxu0 %v17713_v11  ;;  %11787 = vmatprep.subr.bf16.mxu1 %v17718_v8 }
0x1360   : > { %11736 = vmatprep.subr.bf16.mxu0 %v17721_v2  ;;  %v10578_v30 = vpop.f32.mrf.mxu1  ;;  %v10527_v7 = vpop.f32.mrf.mxu0 }
0x1362   : > { %11788 = vmatpush2.bf16.msra.mxu1 %v17716_v24  ;;  %v10580_v18 = vpop.f32.mrf.mxu1  ;;  %v10531_v48 = vpop.f32.mrf.mxu0 }
0x1363   : > { %11737 = vmatpush2.bf16.msra.mxu0 %v17719_v17  ;;  %11789 = vmatprep.subr.bf16.mxu1 %v17724_v19  ;;  %v10869_v24 = vpop.permute.xlu0 %10868 }
0x1364   : > { %11812 = vmatprep.subr.bf16.mxu0 %v17727_v56  ;;  %v10584_v37 = vpop.f32.mrf.mxu1  ;;  %v10533_v53 = vpop.f32.mrf.mxu0 }
0x1366   : > { %11790 = vmatpush2.bf16.msra.mxu1 %v17722_v0  ;;  %v10586_v20 = vpop.f32.mrf.mxu1  ;;  %v10535_v34 = vpop.f32.mrf.mxu0 }
0x1367   : > { %11865 = vmatprep.subr.bf16.mxu1 %v17730_v27 }
0x1368   : > { %v10588_v42 = vpop.f32.mrf.mxu1  ;;  %v10537_v12 = vpop.f32.mrf.mxu0 }
0x136a   : > { %v20591_v60 = vpop.f32.mrf.mxu1 }
0x13d6   : > { %v10643_v23 = vpop.f32.mrf.mxu0 }
0x13d7   : > { %v10644_v35 = vadd.f32 %v10643_v23, %v10521_v15 }
0x13d8   : > { %v10645_v16 = vpop.f32.mrf.mxu0  ;;  %v10696_v28 = vpop.f32.mrf.mxu1 }
0x13d9   : > { %v10646_v49 = vadd.f32 %v10645_v16, %v10523_v32  ;;  %v10697_v57 = vadd.f32 %v10696_v28, %v10574_v51 }
0x13da   : > { %v10647_v25 = vpop.f32.mrf.mxu0  ;;  %v10698_v6 = vpop.f32.mrf.mxu1 }
0x13db   : > { %v10648_v55 = vadd.f32 %v10647_v25, %v10525_v10  ;;  %v10699_v44 = vadd.f32 %v10698_v6, %v10576_v61 }
0x13dc   : > { %v10649_v46 = vpop.f32.mrf.mxu0  ;;  %v10700_v47 = vpop.f32.mrf.mxu1 }
0x13dd   : > { %v10650_v39 = vadd.f32 %v10649_v46, %v10527_v7  ;;  %v10701_v41 = vadd.f32 %v10700_v47, %v10578_v30 }
0x13de   : > { %v10653_v54 = vpop.f32.mrf.mxu0  ;;  %v10702_v36 = vpop.f32.mrf.mxu1 }
0x13df   : > { %v10703_v8 = vadd.f32 %v10702_v36, %v10580_v18  ;;  %v10654_v2 = vadd.f32 %v10653_v54, %v10531_v48 }
0x13e0   : > { %v10655_v1 = vpop.f32.mrf.mxu0 }
0x13e1   : > { %v10706_v14 = vpop.f32.mrf.mxu1  ;;  %v10656_v17 = vadd.f32 %v10655_v1, %v10533_v53 }
0x13e2   : > { %v10657_v9 = vpop.f32.mrf.mxu0  ;;  %v10707_v56 = vadd.f32 %v10706_v14, %v10584_v37  ;;  %v10874_v14 = vpop.permute.xlu1 %10873 }
0x13e3   : > { %v10708_v29 = vpop.f32.mrf.mxu1  ;;  %v10658_v10 = vadd.f32 %v10657_v9, %v10535_v34 }
0x13e4   : > { %v10659_v13 = vpop.f32.mrf.mxu0  ;;  %v10709_v61 = vadd.f32 %v10708_v29, %v10586_v20 }
0x13e5   : > { %v10710_v62 = vpop.f32.mrf.mxu1  ;;  %v10660_v6 = vadd.f32 %v10659_v13, %v10537_v12 }
0x13e6   : > { %v10773_v4 = vpop.f32.mrf.mxu0  ;;  %v10711_v25 = vadd.f32 %v10710_v62, %v10588_v42 }
0x13e7   : > { %v10712_v40 = vpop.f32.mrf.mxu1  ;;  %v10845_v38 = vadd.f32 %v10773_v4, %v10644_v35 }
0x13e8   : > { %v10775_v5 = vpop.f32.mrf.mxu0  ;;  %v10713_v9 = vadd.f32 %v10712_v40, %v20591_v60 }
0x13e9   : > { %v10826_v33 = vpop.f32.mrf.mxu1  ;;  %v10846_v22 = vadd.f32 %v10775_v5, %v10646_v49  ;;  %v20593_v52 = vadd.f32 %v10864_v58, %v10845_v38 }
0x13ea   : > { %v10847_v3 = vadd.f32 %v10826_v33, %v10697_v57  ;;  %v10777_v59 = vpop.f32.mrf.mxu0 }
0x13eb   : > { %v20595_v50 = vadd.f32 %v10864_v58, %v10846_v22  ;;  %v10828_v11 = vpop.f32.mrf.mxu1  ;;  %v10849_v26 = vadd.f32 %v10777_v59, %v10648_v55  ;;  %v10897_v16 = vmul.f32 0.2, %v20593_v52 }
0x13ec   : > { %v10848_v19 = vadd.f32 %v10828_v11, %v10699_v44  ;;  %v10779_v0 = vpop.f32.mrf.mxu0  ;;  %v20597_v27 = vadd.f32 %v10864_v58, %v10847_v3  ;;  %v10879_v3 = vpop.permute.xlu0 %10878 }
0x13ed   : > { %v10885_v15 = vadd.f32 %v10869_v24, %v10849_v26  ;;  %v10830_v51 = vpop.f32.mrf.mxu1  ;;  %v10850_v32 = vadd.f32 %v10779_v0, %v10650_v39  ;;  %v10898_v28 = vmul.f32 0.2, %v20595_v50  ;;  %v10913_v38 = vmax.f32 %v20593_v52, %v10897_v16 }
0x13ee   : > { %v10884_v30 = vadd.f32 %v10864_v58, %v10848_v19  ;;  %v10851_v7 = vadd.f32 %v10830_v51, %v10701_v41  ;;  %v10783_v23 = vpop.f32.mrf.mxu0  ;;  %v10899_v54 = vmul.f32 0.2, %v20597_v27 }
0x13ef   : > { %v10901_v18 = vmul.f32 0.2, %v10885_v15  ;;  %v10886_v48 = vadd.f32 %v10869_v24, %v10850_v32  ;;  %v10832_v53 = vpop.f32.mrf.mxu1  ;;  %v10853_v20 = vadd.f32 %v10783_v23, %v10654_v2  ;;  %v10914_v42 = vmax.f32 %v20595_v50, %v10898_v28  ;;  %v17736_v28 = vld [vmem:[#allocation3 + $0x12cc] ss:$16 sps:$4 sm:$0xff]  }
0x13f0   : > { %v10887_v37 = vadd.f32 %v10869_v24, %v10851_v7  ;;  %v10852_v46 = vadd.f32 %v10832_v53, %v10703_v8  ;;  %v10785_v47 = vpop.f32.mrf.mxu0  ;;  %v10900_v29 = vmul.f32 0.2, %v10884_v30  ;;  %v10915_v58 = vmax.f32 %v20597_v27, %v10899_v54  ;;  %v17725_v27 = vld [vmem:[#allocation3 + $0x10e8] ss:$16 sps:$4 sm:$0xff]  }
0x13f1   : > { %v10902_v36 = vmul.f32 0.2, %v10886_v48  ;;  %v10836_v34 = vpop.f32.mrf.mxu1  ;;  %v10854_v1 = vadd.f32 %v10785_v47, %v10656_v17  ;;  %v10917_v12 = vmax.f32 %v10885_v15, %v10901_v18  ;;  %v10889_v44 = vadd.f32 %v10874_v14, %v10853_v20  ;;  %v17728_v15 = vld [vmem:[#allocation3 + $0x12e8] ss:$16 sps:$4 sm:$0xff]   ;;  %v17739_v20 = vld [vmem:[#allocation3 + $0x10ac] ss:$16 sps:$4 sm:$0xff]  }
0x13f2   : > { %v10903_v35 = vmul.f32 0.2, %v10887_v37  ;;  %v10888_v4 = vadd.f32 %v10869_v24, %v10852_v46  ;;  %v10787_v49 = vpop.f32.mrf.mxu0  ;;  %v10855_v55 = vadd.f32 %v10836_v34, %v10707_v56  ;;  %v10916_v59 = vmax.f32 %v10884_v30, %v10900_v29  ;;  %v17733_v30 = vld [vmem:[#allocation3 + $0x10cc] ss:$16 sps:$4 sm:$0xff]   ;;  %v17731_v46 = vld [vmem:[#allocation3 + $0x10c8] ss:$16 sps:$4 sm:$0xff]  }
0x13f3   : > { %v10890_v13 = vadd.f32 %v10874_v14, %v10854_v1  ;;  %v10838_v62 = vpop.f32.mrf.mxu1  ;;  %v10918_v57 = vmax.f32 %v10886_v48, %v10902_v36  ;;  %v10857_v60 = vadd.f32 %v10787_v49, %v10658_v10  ;;  %v20606_v17 = vpack.c.bf16 %v10917_v12, %v10913_v38  ;;  %v17734_v54 = vld [vmem:[#allocation3 + $0x12c8] ss:$16 sps:$4 sm:$0xff]  }
0x13f4   : > { %v10904_v5 = vmul.f32 0.2, %v10888_v4  ;;  %v10856_v33 = vadd.f32 %v10838_v62, %v10709_v61  ;;  %v10789_v22 = vpop.f32.mrf.mxu0  ;;  %v10919_v41 = vmax.f32 %v10887_v37, %v10903_v35  ;;  %v10891_v19 = vadd.f32 %v10874_v14, %v10855_v55  ;;  %v17748_v62 = vld [vmem:[#allocation3 + $0x128c] ss:$16 sps:$4 sm:$0xff]  }
0x13f5   : > { %v10840_v40 = vpop.f32.mrf.mxu1  ;;  %v10858_v39 = vadd.f32 %v10789_v22, %v10660_v6  ;;  %v10906_v50 = vmul.f32 0.2, %v10890_v13  ;;  %v10893_v26 = vadd.f32 %v10879_v3, %v10857_v60  ;;  %v10930_v56 = vpack.c.bf16 %v10918_v57, %v10914_v42  ;;  %v17740_v42 = vld [vmem:[#allocation3 + $0x12a8] ss:$16 sps:$4 sm:$0xff]   ;;  %v17751_v55 = vld [vmem:[#allocation3 + $0x106c] ss:$16 sps:$4 sm:$0xff]  }
0x13f6   : > { %v10920_v52 = vmax.f32 %v10888_v4, %v10904_v5  ;;  %v10892_v11 = vadd.f32 %v10874_v14, %v10856_v33  ;;  %v10859_v24 = vadd.f32 %v10840_v40, %v10711_v25  ;;  %v20608_v7 = vpack.c.bf16 %v10919_v41, %v10915_v58  ;;  %v17737_v4 = vld [vmem:[#allocation3 + $0x10a8] ss:$16 sps:$4 sm:$0xff]   ;;  %v17754_v33 = vld [vmem:[#allocation3 + $0x126c] ss:$16 sps:$4 sm:$0xff]  }
0x13f7   : > { %v10894_v8 = vadd.f32 %v10879_v3, %v10858_v39  ;;  %v10842_v2 = vpop.f32.mrf.mxu1  ;;  %v10909_v51 = vmul.f32 0.2, %v10893_v26  ;;  %11738 = vmatprep.mubr.bf16.mxu0 %v10930_v56  ;;  %v10905_v18 = vmul.f32 0.2, %v10889_v44  ;;  %v10922_v48 = vmax.f32 %v10890_v13, %v10906_v50  ;;  %v17745_v13 = vld [vmem:[#allocation3 + $0x108c] ss:$16 sps:$4 sm:$0xff]  }
0x13f8   : > { %v10860_v0 = vadd.f32 %v10842_v2, %v10713_v9  ;;  %v10895_v32 = vadd.f32 %v10879_v3, %v10859_v24  ;;  %v10932_v10 = vpack.c.bf16 %v10920_v52, %v10916_v59  ;;  %v10908_v23 = vmul.f32 0.2, %v10892_v11  ;;  %11739 = vmatmul.mubr.bf16.vlgmr.msra.gmra.mxu0 %v20606_v17  ;;  %v17742_v9 = vld [vmem:[#allocation3 + $0x12ac] ss:$16 sps:$4 sm:$0xff]   ;;  %v17743_v57 = vld [vmem:[#allocation3 + $0x1088] ss:$16 sps:$4 sm:$0xff]  }
0x13f9   : > { %v10910_v61 = vmul.f32 0.2, %v10894_v8  ;;  %v10907_v6 = vmul.f32 0.2, %v10891_v19  ;;  %11813 = vmatpush1.bf16.msra.mxu0 %v17725_v27  ;;  %v10925_v47 = vmax.f32 %v10893_v26, %v10909_v51  ;;  %v10921_v29 = vmax.f32 %v10889_v44, %v10905_v18  ;;  %v17746_v5 = vld [vmem:[#allocation3 + $0x1288] ss:$16 sps:$4 sm:$0xff]  }
0x13fa   : > { %v10896_v16 = vadd.f32 %v10879_v3, %v10860_v0  ;;  %v10911_v53 = vmul.f32 0.2, %v10895_v32  ;;  %11791 = vmatprep.mubr.bf16.mxu1 %v10932_v10  ;;  %11814 = vmatprep.subr.bf16.mxu0 %v17733_v30  ;;  %v10924_v34 = vmax.f32 %v10892_v11, %v10908_v23  ;;  %v17749_v22 = vld [vmem:[#allocation3 + $0x1068] ss:$16 sps:$4 sm:$0xff]   ;;  %v17757_v44 = vld [vmem:[#allocation3 + $0x104c] ss:$16 sps:$4 sm:$0xff]  }
0x13fb   : > { %v10926_v25 = vmax.f32 %v10894_v8, %v10910_v61  ;;  %11792 = vmatmul.mubr.bf16.vlgmr.msra.gmra.mxu1 %v20608_v7  ;;  %v10923_v35 = vmax.f32 %v10891_v19, %v10907_v6  ;;  %v20617_v38 = vpack.c.bf16 %v10925_v47, %v10921_v29  ;;  %v17752_v58 = vld [vmem:[#allocation3 + $0x1268] ss:$16 sps:$4 sm:$0xff]   ;;  %v17760_v60 = vld [vmem:[#allocation3 + $0x124c] ss:$16 sps:$4 sm:$0xff]  }
0x13fc   : > { %v10912_v37 = vmul.f32 0.2, %v10896_v16  ;;  %11866 = vmatpush1.bf16.msra.mxu1 %v17728_v15  ;;  %v10927_v1 = vmax.f32 %v10895_v32, %v10911_v53  ;;  %v17755_v40 = vld [vmem:[#allocation3 + $0x1048] ss:$16 sps:$4 sm:$0xff]   ;;  %v17763_v3 = vld [vmem:[#allocation3 + $0x102c] ss:$16 sps:$4 sm:$0xff]  }
0x13fd   : > { %v20612_v36 = vpack.c.bf16 %v10926_v25, %v10922_v48  ;;  %11867 = vmatprep.subr.bf16.mxu1 %v17736_v28  ;;  %11815 = vmatpush1.bf16.msra.mxu0 %v17731_v46  ;;  %v17758_v39 = vld [vmem:[#allocation3 + $0x1248] ss:$16 sps:$4 sm:$0xff]   ;;  %v17766_v59 = vld [vmem:[#allocation3 + $0x122c] ss:$16 sps:$4 sm:$0xff]  }
0x13fe   : > { %v10928_v14 = vmax.f32 %v10896_v16, %v10912_v37  ;;  %11816 = vmatprep.subr.bf16.mxu0 %v17739_v20  ;;  %v20619_v12 = vpack.c.bf16 %v10927_v1, %v10923_v35  ;;  %v17761_v41 = vld [vmem:[#allocation3 + $0x1028] ss:$16 sps:$4 sm:$0xff]   ;;  %v17769_v11 = vld [vmem:[#allocation3 + $0x100c] ss:$16 sps:$4 sm:$0xff]  }
0x13ff   : > { %11748 = vmatprep.mubr.bf16.mxu0 %v20612_v36  ;;  %v17764_v52 = vld [vmem:[#allocation3 + $0x1228] ss:$16 sps:$4 sm:$0xff]   ;;  %v17772_v50 = vld [vmem:[#allocation3 + $0x120c] ss:$16 sps:$4 sm:$0xff]  }
0x1400   : > { %v20615_v49 = vpack.c.bf16 %v10928_v14, %v10924_v34  ;;  %11868 = vmatpush1.bf16.msra.mxu1 %v17734_v54  ;;  %11749 = vmatmul.mubr.bf16.gmra.mxu0 %v20617_v38  ;;  %v17767_v26 = vld [vmem:[#allocation3 + $0x1008] ss:$16 sps:$4 sm:$0xff]   ;;  %v17775_v8 = vld [vmem:[#allocation3 + $0x11ec] ss:$16 sps:$4 sm:$0xff]  }
0x1401   : > { %11869 = vmatprep.subr.bf16.mxu1 %v17742_v9  ;;  %11817 = vmatpush1.bf16.msra.mxu0 %v17737_v4  ;;  %v17770_v24 = vld [vmem:[#allocation3 + $0x1208] ss:$16 sps:$4 sm:$0xff]   ;;  %v17778_v2 = vld [vmem:[#allocation3 + $0x13ec] ss:$16 sps:$4 sm:$0xff]  }
0x1402   : > { %11801 = vmatprep.mubr.bf16.mxu1 %v20615_v49  ;;  %11844 = vmatprep.mubr.bf16.mxu0 %v10930_v56  ;;  %v17773_v19 = vld [vmem:[#allocation3 + $0x11e8] ss:$16 sps:$4 sm:$0xff]   ;;  %v17781_v56 = vld [vmem:[#allocation3 + $0x11cc] ss:$16 sps:$4 sm:$0xff]  }
0x1403   : > { %11802 = vmatmul.mubr.bf16.gmra.mxu1 %v20619_v12  ;;  %11818 = vmatprep.subr.bf16.mxu0 %v17745_v13  ;;  %v17776_v0 = vld [vmem:[#allocation3 + $0x13e8] ss:$16 sps:$4 sm:$0xff]   ;;  %v17784_v27 = vld [vmem:[#allocation3 + $0x13cc] ss:$16 sps:$4 sm:$0xff]  }
0x1404   : > { %11870 = vmatpush1.bf16.msra.mxu1 %v17740_v42  ;;  %11897 = vmatprep.mubr.bf16.mxu1 %v10932_v10  ;;  %v17779_v15 = vld [vmem:[#allocation3 + $0x11c8] ss:$16 sps:$4 sm:$0xff]   ;;  %v17787_v32 = vld [vmem:[#allocation3 + $0x11ac] ss:$16 sps:$4 sm:$0xff]  }
0x1405   : > { %11871 = vmatprep.subr.bf16.mxu1 %v17748_v62  ;;  %11819 = vmatpush1.bf16.msra.mxu0 %v17743_v57  ;;  %v17782_v51 = vld [vmem:[#allocation3 + $0x13c8] ss:$16 sps:$4 sm:$0xff]   ;;  %v17790_v61 = vld [vmem:[#allocation3 + $0x13ac] ss:$16 sps:$4 sm:$0xff]  }
0x1406   : > { %11820 = vmatprep.subr.bf16.mxu0 %v17751_v55  ;;  %v17785_v10 = vld [vmem:[#allocation3 + $0x11a8] ss:$16 sps:$4 sm:$0xff]   ;;  %v17793_v23 = vld [vmem:[#allocation3 + $0x118c] ss:$16 sps:$4 sm:$0xff]  }
0x1407   : > { %v17788_v30 = vld [vmem:[#allocation3 + $0x13a8] ss:$16 sps:$4 sm:$0xff]   ;;  %v17796_v16 = vld [vmem:[#allocation3 + $0x138c] ss:$16 sps:$4 sm:$0xff]  }
0x1408   : > { %11872 = vmatpush1.bf16.msra.mxu1 %v17746_v5  ;;  %v17791_v28 = vld [vmem:[#allocation3 + $0x1188] ss:$16 sps:$4 sm:$0xff]   ;;  %v17799_v48 = vld [vmem:[#allocation3 + $0x116c] ss:$16 sps:$4 sm:$0xff]  }
0x1409   : > { %11873 = vmatprep.subr.bf16.mxu1 %v17754_v33  ;;  %11821 = vmatpush1.bf16.msra.mxu0 %v17749_v22  ;;  %v17794_v18 = vld [vmem:[#allocation3 + $0x1388] ss:$16 sps:$4 sm:$0xff]   ;;  %v17802_v53 = vld [vmem:[#allocation3 + $0x136c] ss:$16 sps:$4 sm:$0xff]  }
0x140a   : > { %11822 = vmatprep.subr.bf16.mxu0 %v17757_v44  ;;  %v17797_v25 = vld [vmem:[#allocation3 + $0x1168] ss:$16 sps:$4 sm:$0xff]   ;;  %v17805_v37 = vld [vmem:[#allocation3 + $0x114c] ss:$16 sps:$4 sm:$0xff]  }
0x140b   : > { %v17800_v6 = vld [vmem:[#allocation3 + $0x1368] ss:$16 sps:$4 sm:$0xff]   ;;  %v17808_v46 = vld [vmem:[#allocation3 + $0x134c] ss:$16 sps:$4 sm:$0xff]  }
0x140c   : > { %11874 = vmatpush1.bf16.msra.mxu1 %v17752_v58  ;;  %v17803_v47 = vld [vmem:[#allocation3 + $0x1148] ss:$16 sps:$4 sm:$0xff]   ;;  %v17811_v20 = vld [vmem:[#allocation3 + $0x112c] ss:$16 sps:$4 sm:$0xff]  }
0x140d   : > { %11875 = vmatprep.subr.bf16.mxu1 %v17760_v60  ;;  %11823 = vmatpush1.bf16.msra.mxu0 %v17755_v40  ;;  %v17806_v54 = vld [vmem:[#allocation3 + $0x1348] ss:$16 sps:$4 sm:$0xff]   ;;  %v17814_v34 = vld [vmem:[#allocation3 + $0x132c] ss:$16 sps:$4 sm:$0xff]  }
0x140e   : > { %11824 = vmatprep.subr.bf16.mxu0 %v17763_v3  ;;  %v17809_v1 = vld [vmem:[#allocation3 + $0x1128] ss:$16 sps:$4 sm:$0xff]   ;;  %v17817_v9 = vld [vmem:[#allocation3 + $0x110c] ss:$16 sps:$4 sm:$0xff]  }
0x140f   : > { %v17812_v14 = vld [vmem:[#allocation3 + $0x1328] ss:$16 sps:$4 sm:$0xff]   ;;  %v17820_v29 = vld [vmem:[#allocation3 + $0x130c] ss:$16 sps:$4 sm:$0xff]  }
0x1410   : > { %11876 = vmatpush1.bf16.msra.mxu1 %v17758_v39  ;;  %v17815_v35 = vld [vmem:[#allocation3 + $0x1108] ss:$16 sps:$4 sm:$0xff]  }
0x1411   : > { %11877 = vmatprep.subr.bf16.mxu1 %v17766_v59  ;;  %11825 = vmatpush1.bf16.msra.mxu0 %v17761_v41  ;;  %v17818_v4 = vld [vmem:[#allocation3 + $0x1308] ss:$16 sps:$4 sm:$0xff]  }
0x1412   : > { %11826 = vmatprep.subr.bf16.mxu0 %v17769_v11 }
0x1414   : > { %11878 = vmatpush1.bf16.msra.mxu1 %v17764_v52 }
0x1415   : > { %11879 = vmatprep.subr.bf16.mxu1 %v17772_v50  ;;  %11827 = vmatpush1.bf16.msra.mxu0 %v17767_v26 }
0x1416   : > { %11828 = vmatprep.subr.bf16.mxu0 %v17775_v8 }
0x1418   : > { %11880 = vmatpush1.bf16.msra.mxu1 %v17770_v24 }
0x1419   : > { %11881 = vmatprep.subr.bf16.mxu1 %v17778_v2  ;;  %11829 = vmatpush2.bf16.msra.mxu0 %v17773_v19 }
0x141a   : > { %11830 = vmatprep.subr.bf16.mxu0 %v17781_v56 }
0x141c   : > { %11882 = vmatpush2.bf16.msra.mxu1 %v17776_v0 }
0x141d   : > { %11883 = vmatprep.subr.bf16.mxu1 %v17784_v27  ;;  %11831 = vmatpush2.bf16.msra.mxu0 %v17779_v15 }
0x141e   : > { %11832 = vmatprep.subr.bf16.mxu0 %v17787_v32 }
0x1420   : > { %11884 = vmatpush2.bf16.msra.mxu1 %v17782_v51 }
0x1421   : > { %11885 = vmatprep.subr.bf16.mxu1 %v17790_v61  ;;  %11833 = vmatpush2.bf16.msra.mxu0 %v17785_v10 }
0x1422   : > { %11834 = vmatprep.subr.bf16.mxu0 %v17793_v23 }
0x1424   : > { %11886 = vmatpush2.bf16.msra.mxu1 %v17788_v30 }
0x1425   : > { %11887 = vmatprep.subr.bf16.mxu1 %v17796_v16  ;;  %11835 = vmatpush2.bf16.msra.mxu0 %v17791_v28  ;;  %v17821_v16 = vld [vmem:[%s21120_s3 + $0x1f0] sm:$0xff]  }
0x1426   : > { %11836 = vmatprep.subr.bf16.mxu0 %v17799_v48 }
0x1428   : > { %11888 = vmatpush2.bf16.msra.mxu1 %v17794_v18 }
0x1429   : > { %11889 = vmatprep.subr.bf16.mxu1 %v17802_v53  ;;  %11837 = vmatpush2.bf16.msra.mxu0 %v17797_v25 }
0x142a   : > { %11838 = vmatprep.subr.bf16.mxu0 %v17805_v37 }
0x142c   : > { %11890 = vmatpush2.bf16.msra.mxu1 %v17800_v6 }
0x142d   : > { %11891 = vmatprep.subr.bf16.mxu1 %v17808_v46  ;;  %11839 = vmatpush2.bf16.msra.mxu0 %v17803_v47 }
0x142e   : > { %11840 = vmatprep.subr.bf16.mxu0 %v17811_v20 }
0x1430   : > { %11892 = vmatpush2.bf16.msra.mxu1 %v17806_v54 }
0x1431   : > { %11893 = vmatprep.subr.bf16.mxu1 %v17814_v34  ;;  %11841 = vmatpush2.bf16.msra.mxu0 %v17809_v1 }
0x1432   : > { %11842 = vmatprep.subr.bf16.mxu0 %v17817_v9  ;;  %v17822_v9 = vld [vmem:[%s21120_s3 + $0x1f8] sm:$0xff]  }
0x1434   : > { %11894 = vmatpush2.bf16.msra.mxu1 %v17812_v14 }
0x1435   : > { %11895 = vmatprep.subr.bf16.mxu1 %v17820_v29  ;;  %11843 = vmatpush2.bf16.msra.mxu0 %v17815_v35 }
0x1438   : > { %11896 = vmatpush2.bf16.msra.mxu1 %v17818_v4  ;;  %11845 = vmatmul.mubr.bf16.vlgmr.msra.gmra.mxu0 %v20606_v17 }
0x1439   : > { %11854 = vmatprep.mubr.bf16.mxu0 %v20612_v36 }
0x143b   : > { %11898 = vmatmul.mubr.bf16.vlgmr.msra.gmra.mxu1 %v20608_v7 }
0x143c   : > { %11907 = vmatprep.mubr.bf16.mxu1 %v20615_v49 }
0x1440   : > { %11855 = vmatmul.mubr.bf16.gmra.mxu0 %v20617_v38 }
0x1441   : > { %12114 = vmatprep.mubr.bf16.mxu0 %v21155_v31 }
0x1443   : > { %11908 = vmatmul.mubr.bf16.gmra.mxu1 %v20619_v12 }
0x1444   : > { %12167 = vmatprep.mubr.bf16.mxu1 %v21155_v31 }
0x14b8   : > { %v11740_v42 = vpop.f32.mrf.mxu0 }
0x14ba   : > { %v11742_v62 = vpop.f32.mrf.mxu0 }
0x14bb   : > { %v11793_v13 = vpop.f32.mrf.mxu1 }
0x14bc   : > { %v11794_v5 = vadd.f32 %v11793_v13, %v11740_v42  ;;  %v11744_v17 = vpop.f32.mrf.mxu0 }
0x14bd   : > { %v11795_v57 = vpop.f32.mrf.mxu1 }
0x14be   : > { %v11796_v36 = vadd.f32 %v11795_v57, %v11742_v62  ;;  %v11746_v7 = vpop.f32.mrf.mxu0  ;;  %v11918_v49 = vmul.f32 0.33333334, %v11794_v5 }
0x14bf   : > { %v11797_v55 = vpop.f32.mrf.mxu1 }
0x14c0   : > { %v11798_v33 = vadd.f32 %v11797_v55, %v11744_v17  ;;  %v11750_v44 = vpop.f32.mrf.mxu0  ;;  %v11919_v60 = vmul.f32 0.33333334, %v11796_v36 }
0x14c1   : > { %v11799_v22 = vpop.f32.mrf.mxu1 }
0x14c2   : > { %v11922_v58 = vmul.f32 0.33333334, %v11798_v33  ;;  %v11800_v38 = vadd.f32 %v11799_v22, %v11746_v7  ;;  %v11752_v3 = vpop.f32.mrf.mxu0 }
0x14c3   : > { %v11803_v12 = vpop.f32.mrf.mxu1 }
0x14c4   : > { %v20632_v40 = vpack.i.bf16 %v11922_v58, %v11918_v49  ;;  %v11923_v39 = vmul.f32 0.33333334, %v11800_v38  ;;  %v11804_v52 = vadd.f32 %v11803_v12, %v11750_v44  ;;  %v11754_v11 = vpop.f32.mrf.mxu0  ;;  %v12058_v23 = vpack.c.bf16 %v11922_v58, %v11918_v49 }
0x14c5   : > { %v11805_v59 = vpop.f32.mrf.mxu1 }
0x14c6   : > { %v20634_v41 = vpack.i.bf16 %v11923_v39, %v11919_v60  ;;  %16636 = vrot.lane.b32.xlu1 %v20632_v40, %s18083_s20  ;;  %v11806_v26 = vadd.f32 %v11805_v59, %v11752_v3  ;;  %v11756_v8 = vpop.f32.mrf.mxu0  ;;  %v11926_v19 = vmul.f32 0.33333334, %v11804_v52  ;;  %v12059_v30 = vpack.c.bf16 %v11923_v39, %v11919_v60 }
0x14c7   : > { %v11807_v50 = vpop.f32.mrf.mxu1 }
0x14c8   : > { %v11808_v24 = vadd.f32 %v11807_v50, %v11754_v11  ;;  %16641 = vrot.lane.b32.xlu0 %v20634_v41, %s18083_s20  ;;  %v11927_v27 = vmul.f32 0.33333334, %v11806_v26  ;;  %v15580_v26 = vld [vmem:[%s21121_s4 + $0x150] sm:$0xff] }
0x14c9   : > { %v11809_v2 = vpop.f32.mrf.mxu1 }
0x14ca   : > { %v11930_v0 = vmul.f32 0.33333334, %v11808_v24  ;;  %v11810_v56 = vadd.f32 %v11809_v2, %v11756_v8  ;;  %v15579_v24 = vld [vmem:[%s21121_s4 + $0x148] sm:$0xff] }
0x14cc   : > { %v20640_v15 = vpack.i.bf16 %v11930_v0, %v11926_v19  ;;  %v11931_v51 = vmul.f32 0.33333334, %v11810_v56  ;;  %v12062_v10 = vpack.c.bf16 %v11930_v0, %v11926_v19 }
0x14ce   : > { %v20642_v32 = vpack.i.bf16 %v11931_v51, %v11927_v27  ;;  %16646 = vrot.lane.b32.xlu1 %v20640_v15, %s18083_s20  ;;  %v12063_v61 = vpack.c.bf16 %v11931_v51, %v11927_v27 }
0x14d0   : > { %16651 = vrot.lane.b32.xlu0 %v20642_v32, %s18083_s20  ;;  %12094 = vmatprep.subr.bf16.mxu0 %v12063_v61 }
0x14d1   : > { %12095 = vmatpush1.bf16.msra.mxu0 %v12062_v10 }
0x14d2   : > { %12096 = vmatprep.subr.bf16.mxu0 %v12059_v30 }
0x14d5   : > { %12097 = vmatpush1.bf16.msra.mxu0 %v12058_v23 }
0x14d8   : > { %15584 = vmatmul.mubr.msk.bf16.vlgmr.msra.gmra.mxu0 %vm1055_vm12, %v17821_v16 }
0x14d9   : > { %12124 = vmatprep.mubr.bf16.mxu0 %v21155_v31 }
0x14e0   : > { %15585 = vmatmul.mubr.msk.bf16.gmra.mxu0 %vm1055_vm12, %v17822_v9 }
0x14e1   : > { %12236 = vmatprep.mubr.bf16.mxu0 %v21155_v31 }
0x14f8   : > { %v11846_v28 = vpop.f32.mrf.mxu0 }
0x14fa   : > { %v11848_v48 = vpop.f32.mrf.mxu0 }
0x14fb   : > { %v11899_v18 = vpop.f32.mrf.mxu1 }
0x14fc   : > { %v11850_v25 = vpop.f32.mrf.mxu0  ;;  %v11900_v57 = vadd.f32 %v11899_v18, %v11846_v28 }
0x14fd   : > { %v11901_v53 = vpop.f32.mrf.mxu1 }
0x14fe   : > { %v11852_v37 = vpop.f32.mrf.mxu0  ;;  %v11902_v17 = vadd.f32 %v11901_v53, %v11848_v48  ;;  %v11920_v44 = vmul.f32 0.33333334, %v11900_v57 }
0x14ff   : > { %v11903_v6 = vpop.f32.mrf.mxu1 }
0x1500   : > { %v11856_v47 = vpop.f32.mrf.mxu0  ;;  %v11904_v29 = vadd.f32 %v11903_v6, %v11850_v25  ;;  %v11921_v12 = vmul.f32 0.33333334, %v11902_v17 }
0x1501   : > { %v11905_v46 = vpop.f32.mrf.mxu1 }
0x1502   : > { %v11858_v20 = vpop.f32.mrf.mxu0  ;;  %v11906_v4 = vadd.f32 %v11905_v46, %v11852_v37  ;;  %v11924_v7 = vmul.f32 0.33333334, %v11904_v29 }
0x1503   : > { %v11909_v54 = vpop.f32.mrf.mxu1 }
0x1504   : > { %v11910_v1 = vadd.f32 %v11909_v54, %v11856_v47  ;;  %v11860_v14 = vpop.f32.mrf.mxu0  ;;  %v11925_v22 = vmul.f32 0.33333334, %v11906_v4  ;;  %v16660_v59 = vpack.i.bf16 %v11924_v7, %v11920_v44  ;;  %v12060_v50 = vpack.c.bf16 %v11924_v7, %v11920_v44 }
0x1505   : > { %v11911_v34 = vpop.f32.mrf.mxu1 }
0x1506   : > { %v11912_v42 = vadd.f32 %v11911_v34, %v11858_v20  ;;  %v11862_v62 = vpop.f32.mrf.mxu0  ;;  %v11928_v55 = vmul.f32 0.33333334, %v11910_v1  ;;  %v12061_v52 = vpack.c.bf16 %v11925_v22, %v11921_v12  ;;  %v16670_v11 = vpack.i.bf16 %v11925_v22, %v11921_v12 }
0x1507   : > { %v11913_v35 = vpop.f32.mrf.mxu1 }
0x1508   : > { %v11914_v13 = vadd.f32 %v11913_v35, %v11860_v14  ;;  %v11929_v49 = vmul.f32 0.33333334, %v11912_v42 }
0x1509   : > { %v11915_v5 = vpop.f32.mrf.mxu1 }
0x150a   : > { %v11932_v36 = vmul.f32 0.33333334, %v11914_v13  ;;  %v11916_v33 = vadd.f32 %v11915_v5, %v11862_v62 }
0x150c   : > { %v16655_v58 = vpack.i.bf16 %v11932_v36, %v11928_v55  ;;  %v11933_v38 = vmul.f32 0.33333334, %v11916_v33  ;;  %v12064_v3 = vpack.c.bf16 %v11932_v36, %v11928_v55 }
0x150e   : > { %v16665_v60 = vpack.i.bf16 %v11933_v38, %v11929_v49  ;;  %16656 = vrot.lane.b32.xlu1 %v16655_v58, %s18083_s20  ;;  %v12065_v39 = vpack.c.bf16 %v11933_v38, %v11929_v49 }
0x1510   : > { %12147 = vmatprep.subr.bf16.mxu1 %v12065_v39  ;;  %16666 = vrot.lane.b32.xlu0 %v16665_v60, %s18083_s20 }
0x1511   : > { %12148 = vmatpush1.bf16.msra.mxu1 %v12064_v3 }
0x1512   : > { %16661 = vrot.lane.b32.xlu1 %v16660_v59, %s18083_s20  ;;  %12149 = vmatprep.subr.bf16.mxu1 %v12061_v52 }
0x1514   : > { %16671 = vrot.lane.b32.xlu0 %v16670_v11, %s18083_s20 }
0x1515   : > { %12150 = vmatpush1.bf16.msra.mxu1 %v12060_v50 }
0x1516   : > { %16676 = vrot.lane.b32.xlu1 %v20640_v15, %s18084_s21 }
0x1518   : > { %16681 = vrot.lane.b32.xlu0 %v20642_v32, %s18084_s21  ;;  %15586 = vmatmul.mubr.msk.bf16.vlgmr.msra.gmra.mxu1 %vm1055_vm12, %v17821_v16 }
0x1519   : > { %12177 = vmatprep.mubr.bf16.mxu1 %v21155_v31 }
0x151a   : > { %16686 = vrot.lane.b32.xlu1 %v16655_v58, %s18084_s21 }
0x151c   : > { %16696 = vrot.lane.b32.xlu0 %v20634_v41, %s18084_s21  ;;  %v15581_v41 = vld [vmem:[%s21121_s4 + $0x158] sm:$0xff] }
0x151e   : > { %16691 = vrot.lane.b32.xlu1 %v20632_v40, %s18084_s21  ;;  %v15578_v40 = vld [vmem:[%s21121_s4 + $0x140] sm:$0xff] }
0x1520   : > { %16706 = vrot.lane.b32.xlu0 %v16665_v60, %s18084_s21  ;;  %15587 = vmatmul.mubr.msk.bf16.gmra.mxu1 %vm1055_vm12, %v17822_v9 }
0x1521   : > { %12289 = vmatprep.mubr.bf16.mxu1 %v21155_v31 }
0x1522   : > { %16701 = vrot.lane.b32.xlu1 %v16660_v59, %s18084_s21  ;;  %v17823_v59 = vld [vmem:[%s21120_s3 + $0x1e0] sm:$0xff]  }
0x1524   : > { %16711 = vrot.lane.b32.xlu0 %v16670_v11, %s18084_s21 }
0x1526   : > { %12468 = vperm.xlu1 %15834, %v15580_v26  }
0x1528   : > { %12473 = vperm.xlu0 %15833, %v15581_v41  }
0x152a   : > { %12458 = vperm.xlu1 %15834, %v15578_v40  }
0x152c   : > { %12463 = vperm.xlu0 %15833, %v15579_v24  }
0x1538   : > { %v16637_v8 = vpop.permute.xlu1 %16636 }
0x1539   : > { %v16639_v19 = vunpack.i.h.bf16 %v16637_v8  ;;  %v16638_v0 = vunpack.i.l.bf16 %v16637_v8 }
0x153a   : > { %v16642_v2 = vpop.permute.xlu0 %16641 }
0x153b   : > { %v16644_v56 = vunpack.i.h.bf16 %v16642_v2  ;;  %v16643_v27 = vunpack.i.l.bf16 %v16642_v2 }
0x153d   : > { %v11994_v15 = vsel %vm389_vm2, %v16638_v0, %v16643_v27  ;;  %v11995_v51 = vsel %vm389_vm2, %v16639_v19, %v16644_v56 }
0x153e   : > { %v12051_v32 = vpack.c.bf16 %v11995_v51, %v11994_v15 }
0x1540   : > { %v16647_v61 = vpop.permute.xlu1 %16646 }
0x1541   : > { %v16649_v30 = vunpack.i.h.bf16 %v16647_v61  ;;  %v16648_v23 = vunpack.i.l.bf16 %v16647_v61 }
0x1542   : > { %v16652_v10 = vpop.permute.xlu0 %16651 }
0x1543   : > { %v16654_v16 = vunpack.i.h.bf16 %v16652_v10  ;;  %v16653_v28 = vunpack.i.l.bf16 %v16652_v10 }
0x1545   : > { %v11996_v18 = vsel %vm389_vm2, %v16648_v23, %v16653_v28  ;;  %v11997_v48 = vsel %vm389_vm2, %v16649_v30, %v16654_v16 }
0x1546   : > { %v12055_v53 = vpack.c.bf16 %v11997_v48, %v11996_v18 }
0x1548   : > { %12216 = vmatprep.subr.bf16.mxu0 %v12055_v53 }
0x1580   : > { %v16657_v25 = vpop.permute.xlu1 %16656 }
0x1581   : > { %v16659_v6 = vunpack.i.h.bf16 %v16657_v25  ;;  %v16658_v37 = vunpack.i.l.bf16 %v16657_v25 }
0x1582   : > { %v16667_v46 = vpop.permute.xlu0 %16666 }
0x1583   : > { %v11992_v47 = vsel %vm389_vm2, %v16653_v28, %v16658_v37  ;;  %v11993_v54 = vsel %vm389_vm2, %v16654_v16, %v16659_v6  ;;  %v16669_v20 = vunpack.i.h.bf16 %v16667_v46  ;;  %v16668_v34 = vunpack.i.l.bf16 %v16667_v46  ;;  %v17824_v16 = vld [vmem:[%s21120_s3 + $0x1e8] sm:$0xff]  }
0x1584   : > { %v12056_v1 = vpack.c.bf16 %v11993_v54, %v11992_v47  ;;  %v16662_v14 = vpop.permute.xlu1 %16661 }
0x1585   : > { %v12001_v9 = vsel %vm389_vm2, %v16669_v20, %v16649_v30  ;;  %v12000_v29 = vsel %vm389_vm2, %v16668_v34, %v16648_v23  ;;  %v16664_v35 = vunpack.i.h.bf16 %v16662_v14  ;;  %v16663_v42 = vunpack.i.l.bf16 %v16662_v14 }
0x1586   : > { %v12054_v4 = vpack.c.bf16 %v12001_v9, %v12000_v29  ;;  %v16672_v13 = vpop.permute.xlu0 %16671  ;;  %v11988_v62 = vsel %vm389_vm2, %v16658_v37, %v16668_v34  ;;  %v11989_v57 = vsel %vm389_vm2, %v16659_v6, %v16669_v20 }
0x1587   : > { %v16674_v5 = vunpack.i.h.bf16 %v16672_v13  ;;  %v16673_v17 = vunpack.i.l.bf16 %v16672_v13  ;;  %v12057_v36 = vpack.c.bf16 %v11989_v57, %v11988_v62  ;;  %v11991_v33 = vsel %vm389_vm2, %v16644_v56, %v16664_v35 }
0x1588   : > { %v16677_v55 = vpop.permute.xlu1 %16676  ;;  %12217 = vmatpush1.bf16.msra.mxu0 %v12054_v4  ;;  %v11990_v49 = vsel %vm389_vm2, %v16643_v27, %v16663_v42 }
0x1589   : > { %v11999_v7 = vsel %vm389_vm2, %v16674_v5, %v16639_v19  ;;  %v11998_v22 = vsel %vm389_vm2, %v16673_v17, %v16638_v0  ;;  %12218 = vmatprep.subr.bf16.mxu0 %v12051_v32  ;;  %12269 = vmatprep.subr.bf16.mxu1 %v12057_v36  ;;  %v11986_v44 = vsel %vm389_vm2, %v16663_v42, %v16673_v17  ;;  %v16679_v52 = vunpack.i.h.bf16 %v16677_v55  ;;  %v17825_v36 = vld [vmem:[%s21120_s3 + $0x200] sm:$0xff]  }
0x158a   : > { %v12050_v58 = vpack.c.bf16 %v11999_v7, %v11998_v22  ;;  %v16682_v38 = vpop.permute.xlu0 %16681  ;;  %v11987_v12 = vsel %vm389_vm2, %v16664_v35, %v16674_v5  ;;  %12270 = vmatpush1.bf16.msra.mxu1 %v12056_v1  ;;  %v16678_v11 = vunpack.i.l.bf16 %v16677_v55  ;;  %v12052_v26 = vpack.c.bf16 %v11991_v33, %v11990_v49  ;;  %v17826_v33 = vld [vmem:[%s21120_s3 + $0x208] sm:$0xff]  }
0x158b   : > { %v16684_v60 = vunpack.i.h.bf16 %v16682_v38  ;;  %v16683_v39 = vunpack.i.l.bf16 %v16682_v38  ;;  %v12053_v3 = vpack.c.bf16 %v11987_v12, %v11986_v44 }
0x158c   : > { %v16687_v50 = vpop.permute.xlu1 %16686  ;;  %12219 = vmatpush1.bf16.msra.mxu0 %v12050_v58 }
0x158d   : > { %v16689_v41 = vunpack.i.h.bf16 %v16687_v50  ;;  %v16688_v40 = vunpack.i.l.bf16 %v16687_v50  ;;  %12271 = vmatprep.subr.bf16.mxu1 %v12053_v3  ;;  %v12045_v24 = vsel %vm402_vm3, %v16679_v52, %v16684_v60  ;;  %v12044_v8 = vsel %vm402_vm3, %v16678_v11, %v16683_v39 }
0x158e   : > { %v16697_v2 = vpop.permute.xlu0 %16696  ;;  %12272 = vmatpush1.bf16.msra.mxu1 %v12052_v26  ;;  %v12314_v15 = vpack.c.bf16 %v12045_v24, %v12044_v8 }
0x158f   : > { %15590 = vmatmul.mubr.msk.bf16.vlgmr.msra.gmra.mxu0 %vm1055_vm12, %v17823_v59  ;;  %v12040_v19 = vsel %vm402_vm3, %v16683_v39, %v16688_v40  ;;  %v12041_v0 = vsel %vm402_vm3, %v16684_v60, %v16689_v41  ;;  %v16698_v32 = vunpack.i.l.bf16 %v16697_v2  ;;  %v16699_v28 = vunpack.i.h.bf16 %v16697_v2 }
0x1590   : > { %v16692_v56 = vpop.permute.xlu1 %16691  ;;  %v12315_v27 = vpack.c.bf16 %v12041_v0, %v12040_v19  ;;  %12246 = vmatprep.mubr.bf16.mxu0 %v21155_v31 }
0x1591   : > { %v16693_v51 = vunpack.i.l.bf16 %v16692_v56  ;;  %v16694_v61 = vunpack.i.h.bf16 %v16692_v56  ;;  %15592 = vmatmul.mubr.msk.bf16.vlgmr.msra.gmra.mxu1 %vm1055_vm12, %v17823_v59 }
0x1592   : > { %v16707_v10 = vpop.permute.xlu0 %16706  ;;  %12346 = vmatprep.subr.bf16.mxu0 %v12315_v27  ;;  %12299 = vmatprep.mubr.bf16.mxu1 %v21155_v31 }
0x1593   : > { %v16709_v30 = vunpack.i.h.bf16 %v16707_v10  ;;  %v16708_v23 = vunpack.i.l.bf16 %v16707_v10  ;;  %12347 = vmatpush1.bf16.msra.mxu0 %v12314_v15  ;;  %v12042_v18 = vsel %vm402_vm3, %v16693_v51, %v16698_v32  ;;  %v12043_v46 = vsel %vm402_vm3, %v16694_v61, %v16699_v28 }
0x1594   : > { %v16702_v48 = vpop.permute.xlu1 %16701  ;;  %v12310_v57 = vpack.c.bf16 %v12043_v46, %v12042_v18 }
0x1595   : > { %v12037_v53 = vsel %vm402_vm3, %v16689_v41, %v16709_v30  ;;  %v12036_v25 = vsel %vm402_vm3, %v16688_v40, %v16708_v23  ;;  %v16704_v6 = vunpack.i.h.bf16 %v16702_v48  ;;  %v16703_v37 = vunpack.i.l.bf16 %v16702_v48 }
0x1596   : > { %v12316_v47 = vpack.c.bf16 %v12037_v53, %v12036_v25  ;;  %v16712_v54 = vpop.permute.xlu0 %16711  ;;  %v12048_v20 = vsel %vm402_vm3, %v16708_v23, %v16678_v11  ;;  %v12049_v34 = vsel %vm402_vm3, %v16709_v30, %v16679_v52 }
0x1597   : > { %v16714_v1 = vunpack.i.h.bf16 %v16712_v54  ;;  %v16713_v14 = vunpack.i.l.bf16 %v16712_v54  ;;  %15591 = vmatmul.mubr.msk.bf16.gmra.mxu0 %vm1055_vm12, %v17824_v16  ;;  %v12317_v9 = vpack.c.bf16 %v12049_v34, %v12048_v20  ;;  %v12038_v29 = vsel %vm402_vm3, %v16698_v32, %v16703_v37 }
0x1598   : > { %v12039_v35 = vsel %vm402_vm3, %v16699_v28, %v16704_v6  ;;  %12366 = vmatprep.mubr.bf16.mxu0 %v21155_v31  ;;  %v12116_v7 = vpop.f32.mrf.mxu0 }
0x1599   : > { %v12035_v4 = vsel %vm402_vm3, %v16704_v6, %v16714_v1  ;;  %v12034_v42 = vsel %vm402_vm3, %v16703_v37, %v16713_v14  ;;  %12399 = vmatprep.subr.bf16.mxu1 %v12317_v9  ;;  %v12311_v13 = vpack.c.bf16 %v12039_v35, %v12038_v29  ;;  %v12046_v62 = vsel %vm402_vm3, %v16713_v14, %v16693_v51 }
0x159a   : > { %15593 = vmatmul.mubr.msk.bf16.gmra.mxu1 %vm1055_vm12, %v17824_v16  ;;  %v12047_v5 = vsel %vm402_vm3, %v16714_v1, %v16694_v61  ;;  %v12312_v17 = vpack.c.bf16 %v12035_v4, %v12034_v42  ;;  %v12118_v49 = vpop.f32.mrf.mxu0 }
0x159b   : > { %12400 = vmatpush1.bf16.msra.mxu1 %v12316_v47  ;;  %12348 = vmatprep.subr.bf16.mxu0 %v12311_v13  ;;  %v12313_v55 = vpack.c.bf16 %v12047_v5, %v12046_v62 }
0x159c   : > { %12349 = vmatpush1.bf16.msra.mxu0 %v12310_v57  ;;  %12419 = vmatprep.mubr.bf16.mxu1 %v21155_v31  ;;  %v12120_v38 = vpop.f32.mrf.mxu0 }
0x159d   : > { %12401 = vmatprep.subr.bf16.mxu1 %v12313_v55 }
0x159e   : > { %v12122_v12 = vpop.f32.mrf.mxu0 }
0x159f   : > { %12402 = vmatpush1.bf16.msra.mxu1 %v12312_v17  ;;  %15596 = vmatmul.mubr.msk.bf16.vlgmr.msra.gmra.mxu0 %vm1055_vm12, %v17825_v36 }
0x15a0   : > { %12376 = vmatprep.mubr.bf16.mxu0 %v21155_v31  ;;  %v12126_v39 = vpop.f32.mrf.mxu0 }
0x15a1   : > { %v20790_v10 = vpop.permute.xlu1 %12468 }
0x15a2   : > { %15598 = vmatmul.mubr.msk.bf16.vlgmr.msra.gmra.mxu1 %vm1055_vm12, %v17825_v36  ;;  %v12128_v59 = vpop.f32.mrf.mxu0 }
0x15a3   : > { %12429 = vmatprep.mubr.bf16.mxu1 %v21155_v31  ;;  %v20792_v18 = vpop.permute.xlu0 %12473 }
0x15a4   : > { %v12130_v11 = vpop.f32.mrf.mxu0 }
0x15a5   : > { %v12459_v46 = vpop.permute.xlu1 %12458 }
0x15a6   : > { %v20786_v26 = vpop.f32.mrf.mxu0 }
0x15a7   : > { %15597 = vmatmul.mubr.msk.bf16.gmra.mxu0 %vm1055_vm12, %v17826_v33  ;;  %v12464_v35 = vpop.permute.xlu0 %12463 }
0x15a8   : > { %12720 = vmatprep.mubr.bf16.mxu0 %v21155_v31 }
0x15aa   : > { %15599 = vmatmul.mubr.msk.bf16.gmra.mxu1 %vm1055_vm12, %v17826_v33 }
0x15ab   : > { %12773 = vmatprep.mubr.bf16.mxu1 %v21155_v31 }
0x15d8   : > { %v12169_v22 = vpop.f32.mrf.mxu1 }
0x15da   : > { %v12171_v58 = vpop.f32.mrf.mxu1 }
0x15dc   : > { %v12173_v44 = vpop.f32.mrf.mxu1 }
0x15de   : > { %v12175_v60 = vpop.f32.mrf.mxu1 }
0x15e0   : > { %v12179_v3 = vpop.f32.mrf.mxu1 }
0x15e2   : > { %v20782_v52 = vpop.f32.mrf.mxu1 }
0x15e4   : > { %v20784_v50 = vpop.f32.mrf.mxu1 }
0x15e6   : > { %v20788_v40 = vpop.f32.mrf.mxu1 }
0x164f   : > { %v12238_v41 = vpop.f32.mrf.mxu0 }
0x1650   : > { %v12239_v16 = vadd.f32 %v12238_v41, %v12116_v7 }
0x1651   : > { %v12240_v24 = vpop.f32.mrf.mxu0  ;;  %v12291_v8 = vpop.f32.mrf.mxu1 }
0x1652   : > { %v12241_v53 = vadd.f32 %v12240_v24, %v12118_v49  ;;  %v12292_v36 = vadd.f32 %v12291_v8, %v12169_v22 }
0x1653   : > { %v12242_v2 = vpop.f32.mrf.mxu0  ;;  %v12293_v19 = vpop.f32.mrf.mxu1 }
0x1654   : > { %v12243_v47 = vadd.f32 %v12242_v2, %v12120_v38  ;;  %v12294_v33 = vadd.f32 %v12293_v19, %v12171_v58 }
0x1655   : > { %v12244_v0 = vpop.f32.mrf.mxu0  ;;  %v12295_v56 = vpop.f32.mrf.mxu1 }
0x1656   : > { %v12245_v14 = vadd.f32 %v12244_v0, %v12122_v12  ;;  %v12296_v5 = vadd.f32 %v12295_v56, %v12173_v44 }
0x1657   : > { %v12248_v27 = vpop.f32.mrf.mxu0  ;;  %v12297_v15 = vpop.f32.mrf.mxu1 }
0x1658   : > { %v12249_v7 = vadd.f32 %v12248_v27, %v12126_v39  ;;  %v12298_v12 = vadd.f32 %v12297_v15, %v12175_v60 }
0x1659   : > { %v12250_v51 = vpop.f32.mrf.mxu0 }
0x165a   : > { %v12301_v32 = vpop.f32.mrf.mxu1 }
0x165b   : > { %v12252_v61 = vpop.f32.mrf.mxu0 }
0x165c   : > { %v12303_v30 = vpop.f32.mrf.mxu1 }
0x165d   : > { %v12254_v23 = vpop.f32.mrf.mxu0  ;;  %v12304_v22 = vadd.f32 %v12303_v30, %v20782_v52 }
0x165e   : > { %v12305_v28 = vpop.f32.mrf.mxu1  ;;  %v12255_v60 = vadd.f32 %v12254_v23, %v20786_v26 }
0x165f   : > { %v12368_v48 = vpop.f32.mrf.mxu0  ;;  %v12306_v58 = vadd.f32 %v12305_v28, %v20784_v50 }
0x1660   : > { %v12307_v25 = vpop.f32.mrf.mxu1  ;;  %v12440_v6 = vadd.f32 %v12368_v48, %v12239_v16  ;;  %v12302_v16 = vadd.f32 %v12301_v32, %v12179_v3  ;;  %v12251_v48 = vadd.f32 %v12250_v51, %v12128_v59 }
0x1661   : > { %v12370_v37 = vpop.f32.mrf.mxu0  ;;  %v12308_v15 = vadd.f32 %v12307_v25, %v20788_v40 }
0x1662   : > { %v12421_v54 = vpop.f32.mrf.mxu1  ;;  %v12441_v20 = vadd.f32 %v12370_v37, %v12241_v53  ;;  %v12476_v34 = vadd.f32 %v12459_v46, %v12440_v6  ;;  %v12253_v6 = vadd.f32 %v12252_v61, %v12130_v11 }
0x1663   : > { %v12372_v1 = vpop.f32.mrf.mxu0  ;;  %v12442_v53 = vadd.f32 %v12421_v54, %v12292_v36 }
0x1664   : > { %v12423_v9 = vpop.f32.mrf.mxu1  ;;  %v12444_v29 = vadd.f32 %v12372_v1, %v12243_v47  ;;  %v12477_v4 = vadd.f32 %v12459_v46, %v12441_v20  ;;  %v12492_v17 = vmul.f32 0.2, %v12476_v34 }
0x1665   : > { %v12374_v42 = vpop.f32.mrf.mxu0  ;;  %v12443_v47 = vadd.f32 %v12423_v9, %v12294_v33  ;;  %v20807_v51 = vadd.f32 %v12459_v46, %v12442_v53 }
0x1666   : > { %v12480_v13 = vadd.f32 %v12464_v35, %v12444_v29  ;;  %v12425_v62 = vpop.f32.mrf.mxu1  ;;  %v12445_v57 = vadd.f32 %v12374_v42, %v12245_v14  ;;  %v12493_v41 = vmul.f32 0.2, %v12477_v4  ;;  %v20796_v37 = vmax.f32 %v12476_v34, %v12492_v17 }
0x1667   : > { %v12378_v55 = vpop.f32.mrf.mxu0  ;;  %v12446_v2 = vadd.f32 %v12425_v62, %v12296_v5  ;;  %v12479_v26 = vadd.f32 %v12459_v46, %v12443_v47 }
0x1668   : > { %v12481_v49 = vadd.f32 %v12464_v35, %v12445_v57  ;;  %v12427_v38 = vpop.f32.mrf.mxu1  ;;  %v12496_v24 = vmul.f32 0.2, %v12480_v13  ;;  %v12448_v44 = vadd.f32 %v12378_v55, %v12249_v7  ;;  %v20802_v3 = vmax.f32 %v12477_v4, %v12493_v41 }
0x1669   : > { %v12380_v0 = vpop.f32.mrf.mxu0  ;;  %v12482_v27 = vadd.f32 %v12464_v35, %v12446_v2  ;;  %v12447_v32 = vadd.f32 %v12427_v38, %v12298_v12  ;;  %v12524_v50 = vsel %vm331_vm14, %v20796_v37, 0.0 }
0x166a   : > { %v12431_v56 = vpop.f32.mrf.mxu1  ;;  %v12497_v20 = vmul.f32 0.2, %v12481_v49  ;;  %v12484_v39 = vadd.f32 %v20790_v10, %v12448_v44  ;;  %v20804_v59 = vmax.f32 %v12480_v13, %v12496_v24  ;;  %v12449_v52 = vadd.f32 %v12380_v0, %v12251_v48 }
0x166b   : > { %v12382_v19 = vpop.f32.mrf.mxu0  ;;  %v12450_v11 = vadd.f32 %v12431_v56, %v12302_v16  ;;  %v12525_v14 = vsel %vm332_vm15, %v20802_v3, 0.0  ;;  %v12498_v46 = vmul.f32 0.2, %v12482_v27  ;;  %v12483_v4 = vadd.f32 %v12464_v35, %v12447_v32 }
0x166c   : > { %v12433_v8 = vpop.f32.mrf.mxu1  ;;  %v20812_v30 = vmax.f32 %v12481_v49, %v12497_v20  ;;  %v12500_v23 = vmul.f32 0.2, %v12484_v39  ;;  %v12485_v54 = vadd.f32 %v20790_v10, %v12449_v52  ;;  %v12452_v1 = vadd.f32 %v12382_v19, %v12253_v6 }
0x166d   : > { %v12486_v28 = vadd.f32 %v20790_v10, %v12450_v11  ;;  %v12451_v34 = vadd.f32 %v12433_v8, %v12304_v22  ;;  %v12384_v40 = vpop.f32.mrf.mxu0  ;;  %v12528_v9 = vsel %vm331_vm14, %v20804_v59, 0.0  ;;  %v12499_v41 = vmul.f32 0.2, %v12483_v4 }
0x166e   : > { %v12435_v61 = vpop.f32.mrf.mxu1  ;;  %v12501_v42 = vmul.f32 0.2, %v12485_v54  ;;  %v12488_v62 = vadd.f32 %v20792_v18, %v12452_v1  ;;  %v12529_v57 = vsel %vm332_vm15, %v20812_v30, 0.0  ;;  %v12453_v17 = vadd.f32 %v12384_v40, %v12255_v60 }
0x166f   : > { %v12454_v29 = vadd.f32 %v12435_v61, %v12306_v58  ;;  %v12487_v13 = vadd.f32 %v20790_v10, %v12451_v34  ;;  %v12516_v36 = vmax.f32 %v12484_v39, %v12500_v23  ;;  %v12502_v33 = vmul.f32 0.2, %v12486_v28 }
0x1670   : > { %v12437_v25 = vpop.f32.mrf.mxu1  ;;  %v12504_v7 = vmul.f32 0.2, %v12488_v62  ;;  %v20829_v49 = vpack.i.bf16 %v12528_v9, %v12524_v50  ;;  %v12489_v12 = vadd.f32 %v20792_v18, %v12453_v17  ;;  %v12517_v24 = vmax.f32 %v12485_v54, %v12501_v42  ;;  %v15615_v17 = vld [vmem:[%s21121_s4 + $0x178] sm:$0xff] }
0x1671   : > { %v12490_v5 = vadd.f32 %v20792_v18, %v12454_v29  ;;  %v12455_v55 = vadd.f32 %v12437_v25, %v12308_v15  ;;  %v12503_v38 = vmul.f32 0.2, %v12487_v13  ;;  %v20835_v0 = vpack.i.bf16 %v12529_v57, %v12525_v14  ;;  %v15613_v57 = vld [vmem:[%s21121_s4 + $0x168] sm:$0xff] }
0x1672   : > { %v12520_v2 = vmax.f32 %v12488_v62, %v12504_v7  ;;  %16716 = vrot.lane.b32.xlu1 %v20829_v49, %s18083_s20  ;;  %v12505_v48 = vmul.f32 0.2, %v12489_v12  ;;  %v12494_v44 = vmul.f32 0.2, %v20807_v51  ;;  %v12495_v56 = vmul.f32 0.2, %v12479_v26 }
0x1673   : > { %v12506_v35 = vmul.f32 0.2, %v12490_v5  ;;  %v12491_v10 = vadd.f32 %v20792_v18, %v12455_v55  ;;  %v12532_v6 = vsel %vm331_vm14, %v12516_v36, 0.0  ;;  %16721 = vrot.lane.b32.xlu0 %v20835_v0, %s18083_s20  ;;  %v12518_v47 = vmax.f32 %v12486_v28, %v12502_v33  ;;  %v15612_v62 = vld [vmem:[%s21121_s4 + $0x160] sm:$0xff] }
0x1674   : > { %v12536_v18 = vsel %vm331_vm14, %v12520_v2, 0.0  ;;  %v12519_v20 = vmax.f32 %v12487_v13, %v12503_v38  ;;  %v12521_v22 = vmax.f32 %v12489_v12, %v12505_v48  ;;  %v12514_v39 = vmax.f32 %v12482_v27, %v12498_v46  ;;  %v17827_v13 = vld [vmem:[%s21120_s3 + $0x220] sm:$0xff]  }
0x1675   : > { %v12522_v16 = vmax.f32 %v12490_v5, %v12506_v35  ;;  %v12507_v53 = vmul.f32 0.2, %v12491_v10  ;;  %v12515_v8 = vmax.f32 %v12483_v4, %v12499_v41  ;;  %v12533_v19 = vsel %vm332_vm15, %v12517_v24, 0.0  ;;  %v15614_v5 = vld [vmem:[%s21121_s4 + $0x170] sm:$0xff] }
0x1676   : > { %v16725_v11 = vpack.i.bf16 %v12536_v18, %v12532_v6  ;;  %v12537_v52 = vsel %vm332_vm15, %v12521_v22, 0.0  ;;  %v15619_v61 = vpack.c.bf16 %v12521_v22, %v12517_v24  ;;  %v12510_v23 = vmax.f32 %v20807_v51, %v12494_v44 }
0x1677   : > { %v12523_v58 = vmax.f32 %v12491_v10, %v12507_v53  ;;  %v12538_v32 = vsel %vm333_vm0, %v12522_v16, 0.0  ;;  %v12511_v28 = vmax.f32 %v12479_v26, %v12495_v56  ;;  %v15622_v54 = vpack.c.bf16 %v12520_v2, %v12516_v36 }
0x1678   : > { %16726 = vrot.lane.b32.xlu1 %v16725_v11, %s18083_s20  ;;  %v16740_v34 = vpack.i.bf16 %v12537_v52, %v12533_v19  ;;  %v15625_v1 = vpack.c.bf16 %v20812_v30, %v20802_v3  ;;  %v12534_v40 = vsel %vm333_vm0, %v12518_v47, 0.0  ;;  %v15636_v25 = vpack.c.bf16 %v12522_v16, %v12518_v47  ;;  %15620 = vmatprep.subr.msk.bf16.mxu0 %vm20848_vm4, %v15619_v61 }
0x1679   : > { %v15633_v27 = vpack.c.bf16 %v12523_v58, %v12519_v20  ;;  %v12539_v51 = vsel %vm334_vm1, %v12523_v58, 0.0  ;;  %v15639_v26 = vpack.c.bf16 %v12515_v8, %v12511_v28  ;;  %15623 = vmatpush1.bf16.msk.msra.mxu0 %vm20868_vm6, %v15622_v54  ;;  %v16730_v3 = vpack.i.bf16 %v12538_v32, %v12534_v40 }
0x167a   : > { %16741 = vrot.lane.b32.xlu0 %v16740_v34, %s18083_s20  ;;  %v12530_v30 = vsel %vm333_vm0, %v12514_v39, 0.0  ;;  %v12535_v14 = vsel %vm334_vm1, %v12519_v20, 0.0  ;;  %15626 = vmatprep.subr.msk.bf16.mxu0 %vm20848_vm4, %v15625_v1  ;;  %v15628_v9 = vpack.c.bf16 %v20804_v59, %v20796_v37  ;;  %v12526_v29 = vsel %vm333_vm0, %v12510_v23, 0.0 }
0x167b   : > { %15634 = vmatprep.subr.msk.bf16.mxu1 %vm20857_vm5, %v15633_v27  ;;  %v16745_v46 = vpack.i.bf16 %v12539_v51, %v12535_v14  ;;  %v15642_v4 = vpack.c.bf16 %v12514_v39, %v12510_v23  ;;  %v12531_v42 = vsel %vm334_vm1, %v12515_v8, 0.0  ;;  %v16735_v37 = vpack.i.bf16 %v12530_v30, %v12526_v29 }
0x167c   : > { %15637 = vmatpush1.bf16.msk.msra.mxu1 %vm20877_vm7, %v15636_v25  ;;  %16731 = vrot.lane.b32.xlu1 %v16730_v3, %s18083_s20  ;;  %v12527_v59 = vsel %vm334_vm1, %v12511_v28, 0.0 }
0x167d   : > { %15640 = vmatprep.subr.msk.bf16.mxu1 %vm20857_vm5, %v15639_v26  ;;  %15629 = vmatpush1.bf16.msk.msra.mxu0 %vm20868_vm6, %v15628_v9  ;;  %v16750_v45 = vpack.i.bf16 %v12531_v42, %v12527_v59 }
0x167e   : > { %16746 = vrot.lane.b32.xlu0 %v16745_v46, %s18083_s20 }
0x1680   : > { %15643 = vmatpush1.bf16.msk.msra.mxu1 %vm20877_vm7, %v15642_v4  ;;  %16736 = vrot.lane.b32.xlu1 %v16735_v37, %s18083_s20  ;;  %v17829_v4 = vld [vmem:[%s21120_s3 + $0x210] sm:$0xff]  }
0x1681   : > { %15630 = vmatmul.mubr.msk.bf16.vlgmr.msra.gmra.mxu0 %vm1055_vm12, %v17827_v13 }
0x1682   : > { %16751 = vrot.lane.b32.xlu0 %v16750_v45, %s18083_s20  ;;  %12730 = vmatprep.mubr.bf16.mxu0 %v21155_v31 }
0x1683   : > { %15644 = vmatmul.mubr.msk.bf16.vlgmr.msra.gmra.mxu1 %vm1055_vm12, %v17827_v13 }
0x1684   : > { %12783 = vmatprep.mubr.bf16.mxu1 %v21155_v31  ;;  %16756 = vrot.lane.b32.xlu1 %v16725_v11, %s18084_s21 }
0x1686   : > { %16761 = vrot.lane.b32.xlu0 %v16740_v34, %s18084_s21 }
0x1688   : > { %16766 = vrot.lane.b32.xlu1 %v16730_v3, %s18084_s21 }
0x1689   : > { %15631 = vmatmul.mubr.msk.bf16.gmra.mxu0 %vm1055_vm12, %v17828_v43 }
0x168a   : > { %16776 = vrot.lane.b32.xlu0 %v20835_v0, %s18084_s21  ;;  %12842 = vmatprep.mubr.bf16.mxu0 %v21155_v31 }
0x168b   : > { %15645 = vmatmul.mubr.msk.bf16.gmra.mxu1 %vm1055_vm12, %v17828_v43 }
0x168c   : > { %12895 = vmatprep.mubr.bf16.mxu1 %v21155_v31  ;;  %16771 = vrot.lane.b32.xlu1 %v20829_v49, %s18084_s21 }
0x168e   : > { %16786 = vrot.lane.b32.xlu0 %v16745_v46, %s18084_s21 }
0x1690   : > { %16781 = vrot.lane.b32.xlu1 %v16735_v37, %s18084_s21 }
0x1692   : > { %16791 = vrot.lane.b32.xlu0 %v16750_v45, %s18084_s21 }
0x1694   : > { %13064 = vperm.xlu1 %15834, %v15612_v62  }
0x1696   : > { %13069 = vperm.xlu0 %15833, %v15613_v57  }
0x1698   : > { %13074 = vperm.xlu1 %15834, %v15614_v5  }
0x169a   : > { %13079 = vperm.xlu0 %15833, %v15615_v17  }
0x16e4   : > { %v16717_v55 = vpop.permute.xlu1 %16716 }
0x16e5   : > { %v16722_v36 = vpop.permute.xlu0 %16721  ;;  %v16719_v53 = vunpack.i.h.bf16 %v16717_v55  ;;  %v16718_v44 = vunpack.i.l.bf16 %v16717_v55 }
0x16e6   : > { %v16724_v10 = vunpack.i.h.bf16 %v16722_v36  ;;  %v16723_v41 = vunpack.i.l.bf16 %v16722_v36 }
0x16e8   : > { %v12600_v58 = vsel %vm389_vm2, %v16718_v44, %v16723_v41  ;;  %v12601_v60 = vsel %vm389_vm2, %v16719_v53, %v16724_v10 }
0x16e9   : > { %v12657_v28 = vpack.c.bf16 %v12601_v60, %v12600_v58 }
0x16ea   : > { %v16727_v33 = vpop.permute.xlu1 %16726 }
0x16eb   : > { %v16729_v49 = vunpack.i.h.bf16 %v16727_v33  ;;  %v16728_v38 = vunpack.i.l.bf16 %v16727_v33 }
0x16ec   : > { %v16742_v7 = vpop.permute.xlu0 %16741 }
0x16ed   : > { %v16744_v35 = vunpack.i.h.bf16 %v16742_v7  ;;  %v16743_v12 = vunpack.i.l.bf16 %v16742_v7 }
0x16ee   : > { %v16732_v24 = vpop.permute.xlu1 %16731 }
0x16ef   : > { %v16734_v2 = vunpack.i.h.bf16 %v16732_v24  ;;  %v16733_v0 = vunpack.i.l.bf16 %v16732_v24  ;;  %v12602_v16 = vsel %vm389_vm2, %v16728_v38, %v16743_v12  ;;  %v12603_v48 = vsel %vm389_vm2, %v16729_v49, %v16744_v35  ;;  %v17830_v24 = vld [vmem:[%s21120_s3 + $0x218] sm:$0xff]  }
0x16f0   : > { %v16747_v56 = vpop.permute.xlu0 %16746  ;;  %v12661_v6 = vpack.c.bf16 %v12603_v48, %v12602_v16 }
0x16f1   : > { %v16749_v18 = vunpack.i.h.bf16 %v16747_v56  ;;  %v16748_v47 = vunpack.i.l.bf16 %v16747_v56  ;;  %v12599_v20 = vsel %vm389_vm2, %v16744_v35, %v16734_v2  ;;  %v12598_v39 = vsel %vm389_vm2, %v16743_v12, %v16733_v0 }
0x16f2   : > { %v16737_v22 = vpop.permute.xlu1 %16736  ;;  %12822 = vmatprep.subr.bf16.mxu0 %v12661_v6  ;;  %v12662_v63 = vpack.c.bf16 %v12599_v20, %v12598_v39 }
0x16f3   : > { %v12606_v8 = vsel %vm389_vm2, %v16748_v47, %v16728_v38  ;;  %v12607_v19 = vsel %vm389_vm2, %v16749_v18, %v16729_v49  ;;  %v16739_v11 = vunpack.i.h.bf16 %v16737_v22  ;;  %v16738_v32 = vunpack.i.l.bf16 %v16737_v22 }
0x16f4   : > { %v12660_v15 = vpack.c.bf16 %v12607_v19, %v12606_v8  ;;  %v16752_v52 = vpop.permute.xlu0 %16751  ;;  %v12594_v61 = vsel %vm389_vm2, %v16733_v0, %v16748_v47  ;;  %v12595_v27 = vsel %vm389_vm2, %v16734_v2, %v16749_v18 }
0x16f5   : > { %v16754_v50 = vunpack.i.h.bf16 %v16752_v52  ;;  %v16753_v23 = vunpack.i.l.bf16 %v16752_v52  ;;  %v12663_v34 = vpack.c.bf16 %v12595_v27, %v12594_v61  ;;  %v12597_v1 = vsel %vm389_vm2, %v16724_v10, %v16739_v11  ;;  %v17835_v61 = vld [vmem:[#allocation3 + $0x14e4] ss:$16 sps:$4 sm:$0xff]  }
0x16f6   : > { %v16757_v54 = vpop.permute.xlu1 %16756  ;;  %12823 = vmatpush1.bf16.msra.mxu0 %v12660_v15  ;;  %v12596_v51 = vsel %vm389_vm2, %v16723_v41, %v16738_v32 }
0x16f7   : > { %v12604_v40 = vsel %vm389_vm2, %v16753_v23, %v16718_v44  ;;  %v12605_v25 = vsel %vm389_vm2, %v16754_v50, %v16719_v53  ;;  %12824 = vmatprep.subr.bf16.mxu0 %v12657_v28  ;;  %12875 = vmatprep.subr.bf16.mxu1 %v12663_v34  ;;  %v12592_v30 = vsel %vm389_vm2, %v16738_v32, %v16753_v23  ;;  %v16759_v42 = vunpack.i.h.bf16 %v16757_v54  ;;  %v17833_v34 = vld [vmem:[#allocation3 + $0x14e0] ss:$16 sps:$4 sm:$0xff]  }
0x16f8   : > { %v12656_v26 = vpack.c.bf16 %v12605_v25, %v12604_v40  ;;  %v16762_v3 = vpop.permute.xlu0 %16761  ;;  %v12593_v14 = vsel %vm389_vm2, %v16739_v11, %v16754_v50  ;;  %12876 = vmatpush1.bf16.msra.mxu1 %v12662_v63  ;;  %v16758_v13 = vunpack.i.l.bf16 %v16757_v54  ;;  %v12658_v59 = vpack.c.bf16 %v12597_v1, %v12596_v51  ;;  %v17831_v54 = vld [vmem:[%s21120_s3 + $0x230] sm:$0xff]  }
0x16f9   : > { %v16764_v9 = vunpack.i.h.bf16 %v16762_v3  ;;  %v16763_v46 = vunpack.i.l.bf16 %v16762_v3  ;;  %v12659_v29 = vpack.c.bf16 %v12593_v14, %v12592_v30  ;;  %v17838_v63 = vld [vmem:[#allocation3 + $0x16e4] ss:$16 sps:$4 sm:$0xff]   ;;  %v17839_v40 = vld [vmem:[#allocation3 + $0x14c0] ss:$16 sps:$4 sm:$0xff]   ;;  %vm14288_vm2 = vcmask 1040384  }
0x16fa   : > { %v16767_v37 = vpop.permute.xlu1 %16766  ;;  %12825 = vmatpush1.bf16.msra.mxu0 %v12656_v26  ;;  %v17841_v1 = vld [vmem:[#allocation3 + $0x14c4] ss:$16 sps:$4 sm:$0xff]   ;;  %v17842_v3 = vld [vmem:[#allocation3 + $0x16c0] ss:$16 sps:$4 sm:$0xff]  }
0x16fb   : > { %v16769_v45 = vunpack.i.h.bf16 %v16767_v37  ;;  %v16768_v43 = vunpack.i.l.bf16 %v16767_v37  ;;  %12877 = vmatprep.subr.bf16.mxu1 %v12659_v29  ;;  %v12650_v62 = vsel %vm402_vm3, %v16758_v13, %v16763_v46  ;;  %v12651_v57 = vsel %vm402_vm3, %v16759_v42, %v16764_v9  ;;  %v17844_v25 = vld [vmem:[#allocation3 + $0x16c4] ss:$16 sps:$4 sm:$0xff]   ;;  %v17845_v30 = vld [vmem:[#allocation3 + $0x14a0] ss:$16 sps:$4 sm:$0xff]  }
0x16fc   : > { %v16777_v5 = vpop.permute.xlu0 %16776  ;;  %12878 = vmatpush1.bf16.msra.mxu1 %v12658_v59  ;;  %v12920_v7 = vpack.c.bf16 %v12651_v57, %v12650_v62  ;;  %v17847_v51 = vld [vmem:[#allocation3 + $0x14a4] ss:$16 sps:$4 sm:$0xff]   ;;  %v17851_v29 = vld [vmem:[#allocation3 + $0x1480] ss:$16 sps:$4 sm:$0xff]  }
0x16fd   : > { %15648 = vmatmul.mubr.msk.bf16.vlgmr.msra.gmra.mxu0 %vm1055_vm12, %v17829_v4  ;;  %v12646_v17 = vsel %vm402_vm3, %v16763_v46, %v16768_v43  ;;  %v12647_v55 = vsel %vm402_vm3, %v16764_v9, %v16769_v45  ;;  %v16779_v38 = vunpack.i.h.bf16 %v16777_v5  ;;  %v16778_v2 = vunpack.i.l.bf16 %v16777_v5  ;;  %v17832_v26 = vld [vmem:[%s21120_s3 + $0x238] sm:$0xff]   ;;  %v17848_v46 = vld [vmem:[#allocation3 + $0x16a0] ss:$16 sps:$4 sm:$0xff]  }
0x16fe   : > { %v16772_v36 = vpop.permute.xlu1 %16771  ;;  %v12921_v33 = vpack.c.bf16 %v12647_v55, %v12646_v17  ;;  %12852 = vmatprep.mubr.bf16.mxu0 %v21155_v31  ;;  %v17850_v14 = vld [vmem:[#allocation3 + $0x16a4] ss:$16 sps:$4 sm:$0xff]   ;;  %v17866_v5 = vld [vmem:[#allocation3 + $0x1640] ss:$16 sps:$4 sm:$0xff]  }
0x16ff   : > { %v16774_v49 = vunpack.i.h.bf16 %v16772_v36  ;;  %v16773_v35 = vunpack.i.l.bf16 %v16772_v36  ;;  %15650 = vmatmul.mubr.msk.bf16.vlgmr.msra.gmra.mxu1 %vm1055_vm12, %v17829_v4  ;;  %v17853_v9 = vld [vmem:[#allocation3 + $0x1484] ss:$16 sps:$4 sm:$0xff]   ;;  %v17869_v17 = vld [vmem:[#allocation3 + $0x1420] ss:$16 sps:$4 sm:$0xff]  }
0x1700   : > { %v16787_v12 = vpop.permute.xlu0 %16786  ;;  %12952 = vmatprep.subr.bf16.mxu0 %v12921_v33  ;;  %12905 = vmatprep.mubr.bf16.mxu1 %v21155_v31  ;;  %v17856_v4 = vld [vmem:[#allocation3 + $0x1684] ss:$16 sps:$4 sm:$0xff]   ;;  %v17872_v33 = vld [vmem:[#allocation3 + $0x1620] ss:$16 sps:$4 sm:$0xff]  }
0x1701   : > { %v16789_v10 = vunpack.i.h.bf16 %v16787_v12  ;;  %v16788_v41 = vunpack.i.l.bf16 %v16787_v12  ;;  %12953 = vmatpush1.bf16.msra.mxu0 %v12920_v7  ;;  %v12649_v0 = vsel %vm402_vm3, %v16774_v49, %v16779_v38  ;;  %v12648_v6 = vsel %vm402_vm3, %v16773_v35, %v16778_v2  ;;  %v17862_v37 = vld [vmem:[#allocation3 + $0x1664] ss:$16 sps:$4 sm:$0xff]   ;;  %v17875_v7 = vld [vmem:[#allocation3 + $0x1400] ss:$16 sps:$4 sm:$0xff]  }
0x1702   : > { %v16782_v16 = vpop.permute.xlu1 %16781  ;;  %v12916_v27 = vpack.c.bf16 %v12649_v0, %v12648_v6  ;;  %v17865_v59 = vld [vmem:[#allocation3 + $0x1444] ss:$16 sps:$4 sm:$0xff]   ;;  %v17890_v0 = vld [vmem:[#allocation3 + $0x17c0] ss:$16 sps:$4 sm:$0xff]  }
0x1703   : > { %v12642_v48 = vsel %vm402_vm3, %v16768_v43, %v16788_v41  ;;  %v12643_v53 = vsel %vm402_vm3, %v16769_v45, %v16789_v10  ;;  %v16784_v44 = vunpack.i.h.bf16 %v16782_v16  ;;  %v16783_v56 = vunpack.i.l.bf16 %v16782_v16  ;;  %v17860_v45 = vld [vmem:[#allocation3 + $0x1660] ss:$16 sps:$4 sm:$0xff]   ;;  %v17868_v62 = vld [vmem:[#allocation3 + $0x1644] ss:$16 sps:$4 sm:$0xff]  }
0x1704   : > { %v12922_v18 = vpack.c.bf16 %v12643_v53, %v12642_v48  ;;  %v16792_v47 = vpop.permute.xlu0 %16791  ;;  %v12654_v20 = vsel %vm402_vm3, %v16788_v41, %v16758_v13  ;;  %v12655_v22 = vsel %vm402_vm3, %v16789_v10, %v16759_v42  ;;  %v17859_v42 = vld [vmem:[#allocation3 + $0x1464] ss:$16 sps:$4 sm:$0xff]   ;;  %v17857_v13 = vld [vmem:[#allocation3 + $0x1460] ss:$16 sps:$4 sm:$0xff]  }
0x1705   : > { %v16794_v58 = vunpack.i.h.bf16 %v16792_v47  ;;  %v16793_v60 = vunpack.i.l.bf16 %v16792_v47  ;;  %15649 = vmatmul.mubr.msk.bf16.gmra.mxu0 %vm1055_vm12, %v17830_v24  ;;  %v12923_v39 = vpack.c.bf16 %v12655_v22, %v12654_v20  ;;  %v12644_v8 = vsel %vm402_vm3, %v16778_v2, %v16783_v56  ;;  %v17863_v43 = vld [vmem:[#allocation3 + $0x1440] ss:$16 sps:$4 sm:$0xff]   ;;  %v17871_v57 = vld [vmem:[#allocation3 + $0x1424] ss:$16 sps:$4 sm:$0xff]  }
0x1706   : > { %v12645_v19 = vsel %vm402_vm3, %v16779_v38, %v16784_v44  ;;  %12972 = vmatprep.mubr.bf16.mxu0 %v21155_v31  ;;  %v17874_v55 = vld [vmem:[#allocation3 + $0x1624] ss:$16 sps:$4 sm:$0xff]   ;;  %v17878_v38 = vld [vmem:[#allocation3 + $0x1600] ss:$16 sps:$4 sm:$0xff]  }
0x1707   : > { %v12640_v11 = vsel %vm402_vm3, %v16783_v56, %v16793_v60  ;;  %v12641_v15 = vsel %vm402_vm3, %v16784_v44, %v16794_v58  ;;  %13005 = vmatprep.subr.bf16.mxu1 %v12923_v39  ;;  %v12917_v32 = vpack.c.bf16 %v12645_v19, %v12644_v8  ;;  %v12652_v52 = vsel %vm402_vm3, %v16793_v60, %v16773_v35  ;;  %v17877_v36 = vld [vmem:[#allocation3 + $0x1404] ss:$16 sps:$4 sm:$0xff]   ;;  %v17881_v35 = vld [vmem:[#allocation3 + $0x15e0] ss:$16 sps:$4 sm:$0xff]  }
0x1708   : > { %15651 = vmatmul.mubr.msk.bf16.gmra.mxu1 %vm1055_vm12, %v17830_v24  ;;  %v12653_v50 = vsel %vm402_vm3, %v16794_v58, %v16774_v49  ;;  %v12918_v23 = vpack.c.bf16 %v12641_v15, %v12640_v11  ;;  %v17880_v49 = vld [vmem:[#allocation3 + $0x1604] ss:$16 sps:$4 sm:$0xff]   ;;  %v17884_v10 = vld [vmem:[#allocation3 + $0x17e0] ss:$16 sps:$4 sm:$0xff]   ;;  %vm14290_vm3 = vcmask 1041408  }
0x1709   : > { %13006 = vmatpush1.bf16.msra.mxu1 %v12922_v18  ;;  %12954 = vmatprep.subr.bf16.mxu0 %v12917_v32  ;;  %v12919_v28 = vpack.c.bf16 %v12653_v50, %v12652_v52  ;;  %v17883_v12 = vld [vmem:[#allocation3 + $0x15e4] ss:$16 sps:$4 sm:$0xff]   ;;  %v17887_v24 = vld [vmem:[#allocation3 + $0x15c0] ss:$16 sps:$4 sm:$0xff]  }
0x170a   : > { %12955 = vmatpush1.bf16.msra.mxu0 %v12916_v27  ;;  %13025 = vmatprep.mubr.bf16.mxu1 %v21155_v31  ;;  %v17886_v41 = vld [vmem:[#allocation3 + $0x17e4] ss:$16 sps:$4 sm:$0xff]   ;;  %v17893_v48 = vld [vmem:[#allocation3 + $0x15a0] ss:$16 sps:$4 sm:$0xff]  }
0x170b   : > { %13007 = vmatprep.subr.bf16.mxu1 %v12919_v28  ;;  %13907 = vmatprep.subr.bf16.mxu0 %v17835_v61  ;;  %v17889_v2 = vld [vmem:[#allocation3 + $0x15c4] ss:$16 sps:$4 sm:$0xff]   ;;  %v17896_v44 = vld [vmem:[#allocation3 + $0x17a0] ss:$16 sps:$4 sm:$0xff]  }
0x170c   : > { %v17892_v16 = vld [vmem:[#allocation3 + $0x17c4] ss:$16 sps:$4 sm:$0xff]   ;;  %v17899_v6 = vld [vmem:[#allocation3 + $0x1580] ss:$16 sps:$4 sm:$0xff]  }
0x170d   : > { %13008 = vmatpush1.bf16.msra.mxu1 %v12918_v23  ;;  %15654 = vmatmul.mubr.msk.bf16.vlgmr.msra.gmra.mxu0 %vm1055_vm12, %v17831_v54  ;;  %v17895_v53 = vld [vmem:[#allocation3 + $0x15a4] ss:$16 sps:$4 sm:$0xff]   ;;  %v17902_v47 = vld [vmem:[#allocation3 + $0x1780] ss:$16 sps:$4 sm:$0xff]  }
0x170e   : > { %12982 = vmatprep.mubr.bf16.mxu0 %v21155_v31  ;;  %13908 = vmatpush1.bf16.msra.mxu0 %v17833_v34  ;;  %v17898_v56 = vld [vmem:[#allocation3 + $0x17a4] ss:$16 sps:$4 sm:$0xff]   ;;  %v17905_v22 = vld [vmem:[#allocation3 + $0x1560] ss:$16 sps:$4 sm:$0xff]   ;;  %v17931_v34 = vld [vmem:[#allocation3 + $0x14ec] ss:$16 sps:$4 sm:$0xff]  }
0x170f   : > { %13960 = vmatprep.subr.bf16.mxu1 %v17838_v63  ;;  %13909 = vmatprep.subr.bf16.mxu0 %v17841_v1  ;;  %v17901_v18 = vld [vmem:[#allocation3 + $0x1584] ss:$16 sps:$4 sm:$0xff]   ;;  %v17908_v60 = vld [vmem:[#allocation3 + $0x1760] ss:$16 sps:$4 sm:$0xff]   ;;  %v17934_v63 = vld [vmem:[#allocation3 + $0x16ec] ss:$16 sps:$4 sm:$0xff]  }
0x1710   : > { %15656 = vmatmul.mubr.msk.bf16.vlgmr.msra.gmra.mxu1 %vm1055_vm12, %v17831_v54  ;;  %v17904_v20 = vld [vmem:[#allocation3 + $0x1784] ss:$16 sps:$4 sm:$0xff]   ;;  %v17911_v19 = vld [vmem:[#allocation3 + $0x1540] ss:$16 sps:$4 sm:$0xff]  }
0x1711   : > { %13035 = vmatprep.mubr.bf16.mxu1 %v21155_v31  ;;  %13961 = vmatpush1.bf16.msra.mxu1 %v17836_v21  ;;  %v17854_v31 = vld [vmem:[#allocation3 + $0x1680] ss:$16 sps:$4 sm:$0xff]   ;;  %v17907_v58 = vld [vmem:[#allocation3 + $0x1564] ss:$16 sps:$4 sm:$0xff]  }
0x1712   : > { %13910 = vmatpush1.bf16.msra.mxu0 %v17839_v40  ;;  %13962 = vmatprep.subr.bf16.mxu1 %v17844_v25  ;;  %v17910_v39 = vld [vmem:[#allocation3 + $0x1764] ss:$16 sps:$4 sm:$0xff]   ;;  %v17914_v15 = vld [vmem:[#allocation3 + $0x1740] ss:$16 sps:$4 sm:$0xff]  }
0x1713   : > { %13911 = vmatprep.subr.bf16.mxu0 %v17847_v51  ;;  %v17913_v8 = vld [vmem:[#allocation3 + $0x1544] ss:$16 sps:$4 sm:$0xff]   ;;  %v17917_v32 = vld [vmem:[#allocation3 + $0x1520] ss:$16 sps:$4 sm:$0xff]  }
0x1714   : > { %v17916_v11 = vld [vmem:[#allocation3 + $0x1744] ss:$16 sps:$4 sm:$0xff]   ;;  %v17920_v61 = vld [vmem:[#allocation3 + $0x1720] ss:$16 sps:$4 sm:$0xff]  }
0x1715   : > { %15655 = vmatmul.mubr.msk.bf16.gmra.mxu0 %vm1055_vm12, %v17832_v26  ;;  %13963 = vmatpush1.bf16.msra.mxu1 %v17842_v3  ;;  %v17919_v52 = vld [vmem:[#allocation3 + $0x1524] ss:$16 sps:$4 sm:$0xff]   ;;  %v17923_v23 = vld [vmem:[#allocation3 + $0x1500] ss:$16 sps:$4 sm:$0xff]  }
0x1716   : > { %13912 = vmatpush1.bf16.msra.mxu0 %v17845_v30  ;;  %13964 = vmatprep.subr.bf16.mxu1 %v17850_v14  ;;  %v17922_v27 = vld [vmem:[#allocation3 + $0x1724] ss:$16 sps:$4 sm:$0xff]   ;;  %v17926_v54 = vld [vmem:[#allocation3 + $0x1700] ss:$16 sps:$4 sm:$0xff]  }
0x1717   : > { %13913 = vmatprep.subr.bf16.mxu0 %v17853_v9  ;;  %v17925_v50 = vld [vmem:[#allocation3 + $0x1504] ss:$16 sps:$4 sm:$0xff]  }
0x1718   : > { %15657 = vmatmul.mubr.msk.bf16.gmra.mxu1 %vm1055_vm12, %v17832_v26  ;;  %v17928_v28 = vld [vmem:[#allocation3 + $0x1704] ss:$16 sps:$4 sm:$0xff]   ;;  %vm14292_vm12 = vcmask 1042432  }
0x1719   : > { %13965 = vmatpush1.bf16.msra.mxu1 %v17848_v46 }
0x171a   : > { %13914 = vmatpush1.bf16.msra.mxu0 %v17851_v29  ;;  %13966 = vmatprep.subr.bf16.mxu1 %v17856_v4 }
0x171b   : > { %13915 = vmatprep.subr.bf16.mxu0 %v17859_v42 }
0x171d   : > { %13967 = vmatpush1.bf16.msra.mxu1 %v17854_v31 }
0x171e   : > { %13916 = vmatpush1.bf16.msra.mxu0 %v17857_v13  ;;  %13968 = vmatprep.subr.bf16.mxu1 %v17862_v37 }
0x171f   : > { %13917 = vmatprep.subr.bf16.mxu0 %v17865_v59 }
0x1721   : > { %13969 = vmatpush1.bf16.msra.mxu1 %v17860_v45 }
0x1722   : > { %13918 = vmatpush1.bf16.msra.mxu0 %v17863_v43  ;;  %13970 = vmatprep.subr.bf16.mxu1 %v17868_v62 }
0x1723   : > { %13919 = vmatprep.subr.bf16.mxu0 %v17871_v57 }
0x1725   : > { %13971 = vmatpush1.bf16.msra.mxu1 %v17866_v5 }
0x1726   : > { %13920 = vmatpush1.bf16.msra.mxu0 %v17869_v17  ;;  %13972 = vmatprep.subr.bf16.mxu1 %v17874_v55 }
0x1727   : > { %13921 = vmatprep.subr.bf16.mxu0 %v17877_v36 }
0x1729   : > { %13973 = vmatpush1.bf16.msra.mxu1 %v17872_v33 }
0x172a   : > { %13922 = vmatpush1.bf16.msra.mxu0 %v17875_v7  ;;  %13974 = vmatprep.subr.bf16.mxu1 %v17880_v49 }
0x172b   : > { %13923 = vmatprep.subr.bf16.mxu0 %v17883_v12 }
0x172d   : > { %13975 = vmatpush1.bf16.msra.mxu1 %v17878_v38 }
0x172e   : > { %13924 = vmatpush2.bf16.msra.mxu0 %v17881_v35  ;;  %13976 = vmatprep.subr.bf16.mxu1 %v17886_v41 }
0x172f   : > { %13925 = vmatprep.subr.bf16.mxu0 %v17889_v2 }
0x1731   : > { %13977 = vmatpush2.bf16.msra.mxu1 %v17884_v10 }
0x1732   : > { %13926 = vmatpush2.bf16.msra.mxu0 %v17887_v24  ;;  %13978 = vmatprep.subr.bf16.mxu1 %v17892_v16 }
0x1733   : > { %13927 = vmatprep.subr.bf16.mxu0 %v17895_v53 }
0x1735   : > { %13979 = vmatpush2.bf16.msra.mxu1 %v17890_v0 }
0x1736   : > { %13928 = vmatpush2.bf16.msra.mxu0 %v17893_v48  ;;  %13980 = vmatprep.subr.bf16.mxu1 %v17898_v56  ;;  %v13065_v56 = vpop.permute.xlu1 %13064 }
0x1737   : > { %13929 = vmatprep.subr.bf16.mxu0 %v17901_v18 }
0x1739   : > { %13981 = vmatpush2.bf16.msra.mxu1 %v17896_v44 }
0x173a   : > { %13930 = vmatpush2.bf16.msra.mxu0 %v17899_v6  ;;  %13982 = vmatprep.subr.bf16.mxu1 %v17904_v20 }
0x173b   : > { %13931 = vmatprep.subr.bf16.mxu0 %v17907_v58 }
0x173d   : > { %13983 = vmatpush2.bf16.msra.mxu1 %v17902_v47 }
0x173e   : > { %13932 = vmatpush2.bf16.msra.mxu0 %v17905_v22  ;;  %13984 = vmatprep.subr.bf16.mxu1 %v17910_v39 }
0x173f   : > { %13933 = vmatprep.subr.bf16.mxu0 %v17913_v8 }
0x1741   : > { %13985 = vmatpush2.bf16.msra.mxu1 %v17908_v60  ;;  %v12722_v1 = vpop.f32.mrf.mxu0 }
0x1742   : > { %13934 = vmatpush2.bf16.msra.mxu0 %v17911_v19  ;;  %13986 = vmatprep.subr.bf16.mxu1 %v17916_v11  ;;  %v13070_v19 = vpop.permute.xlu0 %13069 }
0x1743   : > { %13935 = vmatprep.subr.bf16.mxu0 %v17919_v52  ;;  %v12775_v21 = vpop.f32.mrf.mxu1  ;;  %v12724_v40 = vpop.f32.mrf.mxu0 }
0x1745   : > { %13987 = vmatpush2.bf16.msra.mxu1 %v17914_v15  ;;  %v12777_v25 = vpop.f32.mrf.mxu1  ;;  %v12726_v51 = vpop.f32.mrf.mxu0 }
0x1746   : > { %13936 = vmatpush2.bf16.msra.mxu0 %v17917_v32  ;;  %13988 = vmatprep.subr.bf16.mxu1 %v17922_v27 }
0x1747   : > { %13937 = vmatprep.subr.bf16.mxu0 %v17925_v50  ;;  %v12779_v26 = vpop.f32.mrf.mxu1  ;;  %v12728_v3 = vpop.f32.mrf.mxu0 }
0x1749   : > { %13989 = vmatpush2.bf16.msra.mxu1 %v17920_v61  ;;  %v12781_v30 = vpop.f32.mrf.mxu1  ;;  %v12732_v14 = vpop.f32.mrf.mxu0 }
0x174a   : > { %13938 = vmatpush2.bf16.msra.mxu0 %v17923_v23  ;;  %13990 = vmatprep.subr.bf16.mxu1 %v17928_v28 }
0x174b   : > { %14013 = vmatprep.subr.bf16.mxu0 %v17931_v34  ;;  %v12785_v9 = vpop.f32.mrf.mxu1  ;;  %v12734_v46 = vpop.f32.mrf.mxu0 }
0x174d   : > { %13991 = vmatpush2.bf16.msra.mxu1 %v17926_v54  ;;  %v12787_v29 = vpop.f32.mrf.mxu1  ;;  %v12736_v4 = vpop.f32.mrf.mxu0 }
0x174e   : > { %14066 = vmatprep.subr.bf16.mxu1 %v17934_v63 }
0x174f   : > { %v12789_v42 = vpop.f32.mrf.mxu1  ;;  %v12738_v31 = vpop.f32.mrf.mxu0 }
0x1751   : > { %v21046_v37 = vpop.f32.mrf.mxu1 }
0x17bd   : > { %v12844_v13 = vpop.f32.mrf.mxu0 }
0x17be   : > { %v12845_v35 = vadd.f32 %v12844_v13, %v12722_v1 }
0x17bf   : > { %v12846_v59 = vpop.f32.mrf.mxu0  ;;  %v12897_v45 = vpop.f32.mrf.mxu1 }
0x17c0   : > { %v12847_v41 = vadd.f32 %v12846_v59, %v12724_v40  ;;  %v12898_v0 = vadd.f32 %v12897_v45, %v12775_v21 }
0x17c1   : > { %v12848_v43 = vpop.f32.mrf.mxu0  ;;  %v12899_v62 = vpop.f32.mrf.mxu1 }
0x17c2   : > { %v12849_v48 = vadd.f32 %v12848_v43, %v12726_v51  ;;  %v12900_v6 = vadd.f32 %v12899_v62, %v12777_v25 }
0x17c3   : > { %v12850_v57 = vpop.f32.mrf.mxu0  ;;  %v12901_v5 = vpop.f32.mrf.mxu1 }
0x17c4   : > { %v12851_v18 = vadd.f32 %v12850_v57, %v12728_v3  ;;  %v12902_v22 = vadd.f32 %v12901_v5, %v12779_v26  ;;  %v13075_v57 = vpop.permute.xlu1 %13074 }
0x17c5   : > { %v12854_v17 = vpop.f32.mrf.mxu0  ;;  %v12903_v55 = vpop.f32.mrf.mxu1 }
0x17c6   : > { %v12904_v11 = vadd.f32 %v12903_v55, %v12781_v30  ;;  %v12855_v15 = vadd.f32 %v12854_v17, %v12732_v14 }
0x17c7   : > { %v12856_v36 = vpop.f32.mrf.mxu0 }
0x17c8   : > { %v12907_v33 = vpop.f32.mrf.mxu1  ;;  %v12857_v32 = vadd.f32 %v12856_v36, %v12734_v46 }
0x17c9   : > { %v12858_v7 = vpop.f32.mrf.mxu0  ;;  %v12908_v27 = vadd.f32 %v12907_v33, %v12785_v9 }
0x17ca   : > { %v12909_v49 = vpop.f32.mrf.mxu1  ;;  %v12859_v63 = vadd.f32 %v12858_v7, %v12736_v4 }
0x17cb   : > { %v12860_v38 = vpop.f32.mrf.mxu0  ;;  %v12910_v34 = vadd.f32 %v12909_v49, %v12787_v29 }
0x17cc   : > { %v12911_v12 = vpop.f32.mrf.mxu1  ;;  %v12861_v46 = vadd.f32 %v12860_v38, %v12738_v31 }
0x17cd   : > { %v12974_v10 = vpop.f32.mrf.mxu0  ;;  %v12912_v14 = vadd.f32 %v12911_v12, %v12789_v42 }
0x17ce   : > { %v12913_v24 = vpop.f32.mrf.mxu1  ;;  %v13046_v2 = vadd.f32 %v12974_v10, %v12845_v35 }
0x17cf   : > { %v12976_v16 = vpop.f32.mrf.mxu0  ;;  %v12914_v5 = vadd.f32 %v12913_v24, %v21046_v37 }
0x17d0   : > { %v13027_v53 = vpop.f32.mrf.mxu1  ;;  %v13047_v44 = vadd.f32 %v12976_v16, %v12847_v41  ;;  %v21048_v58 = vadd.f32 %v13065_v56, %v13046_v2 }
0x17d1   : > { %v13048_v47 = vadd.f32 %v13027_v53, %v12898_v0  ;;  %v12978_v20 = vpop.f32.mrf.mxu0  ;;  %v13080_v53 = vpop.permute.xlu0 %13079 }
0x17d2   : > { %v21050_v60 = vadd.f32 %v13065_v56, %v13047_v44  ;;  %v13029_v39 = vpop.f32.mrf.mxu1  ;;  %v13050_v8 = vadd.f32 %v12978_v20, %v12849_v48  ;;  %v13098_v25 = vmul.f32 0.2, %v21048_v58 }
0x17d3   : > { %v13049_v52 = vadd.f32 %v13029_v39, %v12900_v6  ;;  %v12980_v61 = vpop.f32.mrf.mxu0  ;;  %v21052_v50 = vadd.f32 %v13065_v56, %v13048_v47 }
0x17d4   : > { %v13086_v23 = vadd.f32 %v13070_v19, %v13050_v8  ;;  %v13031_v28 = vpop.f32.mrf.mxu1  ;;  %v13051_v54 = vadd.f32 %v12980_v61, %v12851_v18  ;;  %v13099_v51 = vmul.f32 0.2, %v21050_v60  ;;  %v13114_v7 = vmax.f32 %v21048_v58, %v13098_v25 }
0x17d5   : > { %v13085_v1 = vadd.f32 %v13065_v56, %v13049_v52  ;;  %v13052_v21 = vadd.f32 %v13031_v28, %v12902_v22  ;;  %v12984_v40 = vpop.f32.mrf.mxu0  ;;  %v13100_v45 = vmul.f32 0.2, %v21052_v50 }
0x17d6   : > { %v13102_v26 = vmul.f32 0.2, %v13086_v23  ;;  %v13087_v3 = vadd.f32 %v13070_v19, %v13051_v54  ;;  %v13033_v30 = vpop.f32.mrf.mxu1  ;;  %v13054_v29 = vadd.f32 %v12984_v40, %v12855_v15  ;;  %v13115_v42 = vmax.f32 %v21050_v60, %v13099_v51  ;;  %v17929_v15 = vld [vmem:[#allocation3 + $0x14e8] ss:$16 sps:$4 sm:$0xff]  }
0x17d7   : > { %v13088_v9 = vadd.f32 %v13070_v19, %v13052_v21  ;;  %v13053_v13 = vadd.f32 %v13033_v30, %v12904_v11  ;;  %v12986_v59 = vpop.f32.mrf.mxu0  ;;  %v13101_v17 = vmul.f32 0.2, %v13085_v1  ;;  %v13116_v0 = vmax.f32 %v21052_v50, %v13100_v45 }
0x17d8   : > { %v13103_v43 = vmul.f32 0.2, %v13087_v3  ;;  %v13037_v4 = vpop.f32.mrf.mxu1  ;;  %v13055_v62 = vadd.f32 %v12986_v59, %v12857_v32  ;;  %v13118_v31 = vmax.f32 %v13086_v23, %v13102_v26  ;;  %v13090_v16 = vadd.f32 %v13075_v57, %v13054_v29  ;;  %v17932_v32 = vld [vmem:[#allocation3 + $0x16e8] ss:$16 sps:$4 sm:$0xff]   ;;  %v17937_v23 = vld [vmem:[#allocation3 + $0x14cc] ss:$16 sps:$4 sm:$0xff]  }
0x17d9   : > { %v13104_v55 = vmul.f32 0.2, %v13088_v9  ;;  %v13089_v36 = vadd.f32 %v13070_v19, %v13053_v13  ;;  %v12988_v33 = vpop.f32.mrf.mxu0  ;;  %v13056_v10 = vadd.f32 %v13037_v4, %v12908_v27  ;;  %v13117_v44 = vmax.f32 %v13085_v1, %v13101_v17  ;;  %v17944_v17 = vld [vmem:[#allocation3 + $0x16a8] ss:$16 sps:$4 sm:$0xff]  }
0x17da   : > { %v13091_v49 = vadd.f32 %v13075_v57, %v13055_v62  ;;  %v13039_v38 = vpop.f32.mrf.mxu1  ;;  %v13119_v35 = vmax.f32 %v13087_v3, %v13103_v43  ;;  %v13058_v37 = vadd.f32 %v12988_v33, %v12859_v63  ;;  %v21061_v39 = vpack.c.bf16 %v13118_v31, %v13114_v7  ;;  %v17940_v63 = vld [vmem:[#allocation3 + $0x16cc] ss:$16 sps:$4 sm:$0xff]   ;;  %v17935_v3 = vld [vmem:[#allocation3 + $0x14c8] ss:$16 sps:$4 sm:$0xff]  }
0x17db   : > { %v13105_v12 = vmul.f32 0.2, %v13089_v36  ;;  %v13057_v41 = vadd.f32 %v13039_v38, %v12910_v34  ;;  %v12990_v2 = vpop.f32.mrf.mxu0  ;;  %v13120_v56 = vmax.f32 %v13088_v9, %v13104_v55  ;;  %v13092_v8 = vadd.f32 %v13075_v57, %v13056_v10  ;;  %v17943_v9 = vld [vmem:[#allocation3 + $0x14ac] ss:$16 sps:$4 sm:$0xff]   ;;  %v17941_v62 = vld [vmem:[#allocation3 + $0x14a8] ss:$16 sps:$4 sm:$0xff]  }
0x17dc   : > { %v13041_v24 = vpop.f32.mrf.mxu1  ;;  %v13059_v48 = vadd.f32 %v12990_v2, %v12861_v46  ;;  %v13107_v47 = vmul.f32 0.2, %v13091_v49  ;;  %v13094_v20 = vadd.f32 %v13080_v53, %v13058_v37  ;;  %v13131_v11 = vpack.c.bf16 %v13119_v35, %v13115_v42  ;;  %v17946_v43 = vld [vmem:[#allocation3 + $0x16ac] ss:$16 sps:$4 sm:$0xff]   ;;  %v17947_v7 = vld [vmem:[#allocation3 + $0x1488] ss:$16 sps:$4 sm:$0xff]  }
0x17dd   : > { %v13121_v6 = vmax.f32 %v13089_v36, %v13105_v12  ;;  %v13093_v18 = vadd.f32 %v13075_v57, %v13057_v41  ;;  %v13060_v22 = vadd.f32 %v13041_v24, %v12912_v14  ;;  %v21063_v28 = vpack.c.bf16 %v13120_v56, %v13116_v0  ;;  %v17938_v14 = vld [vmem:[#allocation3 + $0x16c8] ss:$16 sps:$4 sm:$0xff]   ;;  %v17949_v36 = vld [vmem:[#allocation3 + $0x148c] ss:$16 sps:$4 sm:$0xff]  }
0x17de   : > { %v13095_v58 = vadd.f32 %v13080_v53, %v13059_v48  ;;  %v13043_v60 = vpop.f32.mrf.mxu1  ;;  %v13110_v52 = vmul.f32 0.2, %v13094_v20  ;;  %13939 = vmatprep.mubr.bf16.mxu0 %v13131_v11  ;;  %v13106_v1 = vmul.f32 0.2, %v13090_v16  ;;  %v13123_v21 = vmax.f32 %v13091_v49, %v13107_v47  ;;  %v17952_v33 = vld [vmem:[#allocation3 + $0x168c] ss:$16 sps:$4 sm:$0xff]  }
0x17df   : > { %v13061_v19 = vadd.f32 %v13043_v60, %v12914_v5  ;;  %v13096_v61 = vadd.f32 %v13080_v53, %v13060_v22  ;;  %v13133_v50 = vpack.c.bf16 %v13121_v6, %v13117_v44  ;;  %v13109_v54 = vmul.f32 0.2, %v13093_v18  ;;  %13940 = vmatmul.mubr.bf16.vlgmr.msra.gmra.mxu0 %v21061_v39  ;;  %v17950_v42 = vld [vmem:[#allocation3 + $0x1688] ss:$16 sps:$4 sm:$0xff]   ;;  %v17955_v31 = vld [vmem:[#allocation3 + $0x146c] ss:$16 sps:$4 sm:$0xff]  }
0x17e0   : > { %v13111_v27 = vmul.f32 0.2, %v13095_v58  ;;  %v13108_v51 = vmul.f32 0.2, %v13092_v8  ;;  %14014 = vmatpush1.bf16.msra.mxu0 %v17929_v15  ;;  %v13126_v30 = vmax.f32 %v13094_v20, %v13110_v52  ;;  %v13122_v29 = vmax.f32 %v13090_v16, %v13106_v1  ;;  %v17958_v49 = vld [vmem:[#allocation3 + $0x166c] ss:$16 sps:$4 sm:$0xff]  }
0x17e1   : > { %v13097_v34 = vadd.f32 %v13080_v53, %v13061_v19  ;;  %v13112_v40 = vmul.f32 0.2, %v13096_v61  ;;  %13992 = vmatprep.mubr.bf16.mxu1 %v13133_v50  ;;  %14015 = vmatprep.subr.bf16.mxu0 %v17937_v23  ;;  %v13125_v13 = vmax.f32 %v13093_v18, %v13109_v54  ;;  %v17953_v38 = vld [vmem:[#allocation3 + $0x1468] ss:$16 sps:$4 sm:$0xff]   ;;  %v17961_v12 = vld [vmem:[#allocation3 + $0x144c] ss:$16 sps:$4 sm:$0xff]  }
0x17e2   : > { %v13127_v25 = vmax.f32 %v13095_v58, %v13111_v27  ;;  %13993 = vmatmul.mubr.bf16.vlgmr.msra.gmra.mxu1 %v21063_v28  ;;  %v13124_v4 = vmax.f32 %v13092_v8, %v13108_v51  ;;  %v21072_v5 = vpack.c.bf16 %v13126_v30, %v13122_v29  ;;  %v17956_v35 = vld [vmem:[#allocation3 + $0x1668] ss:$16 sps:$4 sm:$0xff]   ;;  %v17964_v10 = vld [vmem:[#allocation3 + $0x164c] ss:$16 sps:$4 sm:$0xff]  }
0x17e3   : > { %v13113_v26 = vmul.f32 0.2, %v13097_v34  ;;  %14067 = vmatpush1.bf16.msra.mxu1 %v17932_v32  ;;  %v13128_v59 = vmax.f32 %v13096_v61, %v13112_v40  ;;  %v17959_v41 = vld [vmem:[#allocation3 + $0x1448] ss:$16 sps:$4 sm:$0xff]   ;;  %v17967_v0 = vld [vmem:[#allocation3 + $0x142c] ss:$16 sps:$4 sm:$0xff]  }
0x17e4   : > { %v21067_v46 = vpack.c.bf16 %v13127_v25, %v13123_v21  ;;  %14068 = vmatprep.subr.bf16.mxu1 %v17940_v63  ;;  %14016 = vmatpush1.bf16.msra.mxu0 %v17935_v3  ;;  %v17962_v2 = vld [vmem:[#allocation3 + $0x1648] ss:$16 sps:$4 sm:$0xff]   ;;  %v17970_v16 = vld [vmem:[#allocation3 + $0x162c] ss:$16 sps:$4 sm:$0xff]  }
0x17e5   : > { %v13129_v45 = vmax.f32 %v13097_v34, %v13113_v26  ;;  %14017 = vmatprep.subr.bf16.mxu0 %v17943_v9  ;;  %v21074_v55 = vpack.c.bf16 %v13128_v59, %v13124_v4  ;;  %v17965_v37 = vld [vmem:[#allocation3 + $0x1428] ss:$16 sps:$4 sm:$0xff]   ;;  %v17973_v48 = vld [vmem:[#allocation3 + $0x140c] ss:$16 sps:$4 sm:$0xff]  }
0x17e6   : > { %13949 = vmatprep.mubr.bf16.mxu0 %v21067_v46  ;;  %v17968_v24 = vld [vmem:[#allocation3 + $0x1628] ss:$16 sps:$4 sm:$0xff]   ;;  %v17976_v53 = vld [vmem:[#allocation3 + $0x160c] ss:$16 sps:$4 sm:$0xff]  }
0x17e7   : > { %v21070_v57 = vpack.c.bf16 %v13129_v45, %v13125_v13  ;;  %14069 = vmatpush1.bf16.msra.mxu1 %v17938_v14  ;;  %13950 = vmatmul.mubr.bf16.gmra.mxu0 %v21072_v5  ;;  %v17971_v44 = vld [vmem:[#allocation3 + $0x1408] ss:$16 sps:$4 sm:$0xff]   ;;  %v17979_v6 = vld [vmem:[#allocation3 + $0x15ec] ss:$16 sps:$4 sm:$0xff]  }
0x17e8   : > { %14070 = vmatprep.subr.bf16.mxu1 %v17946_v43  ;;  %14018 = vmatpush1.bf16.msra.mxu0 %v17941_v62  ;;  %v17974_v56 = vld [vmem:[#allocation3 + $0x1608] ss:$16 sps:$4 sm:$0xff]   ;;  %v17982_v18 = vld [vmem:[#allocation3 + $0x17ec] ss:$16 sps:$4 sm:$0xff]  }
0x17e9   : > { %14002 = vmatprep.mubr.bf16.mxu1 %v21070_v57  ;;  %14045 = vmatprep.mubr.bf16.mxu0 %v13131_v11  ;;  %v17977_v47 = vld [vmem:[#allocation3 + $0x15e8] ss:$16 sps:$4 sm:$0xff]   ;;  %v17985_v22 = vld [vmem:[#allocation3 + $0x15cc] ss:$16 sps:$4 sm:$0xff]  }
0x17ea   : > { %14003 = vmatmul.mubr.bf16.gmra.mxu1 %v21074_v55  ;;  %14019 = vmatprep.subr.bf16.mxu0 %v17949_v36  ;;  %v17980_v20 = vld [vmem:[#allocation3 + $0x17e8] ss:$16 sps:$4 sm:$0xff]   ;;  %v17988_v58 = vld [vmem:[#allocation3 + $0x17cc] ss:$16 sps:$4 sm:$0xff]  }
0x17eb   : > { %14071 = vmatpush1.bf16.msra.mxu1 %v17944_v17  ;;  %14098 = vmatprep.mubr.bf16.mxu1 %v13133_v50  ;;  %v17983_v60 = vld [vmem:[#allocation3 + $0x15c8] ss:$16 sps:$4 sm:$0xff]   ;;  %v17991_v19 = vld [vmem:[#allocation3 + $0x15ac] ss:$16 sps:$4 sm:$0xff]  }
0x17ec   : > { %14072 = vmatprep.subr.bf16.mxu1 %v17952_v33  ;;  %14020 = vmatpush1.bf16.msra.mxu0 %v17947_v7  ;;  %v17986_v8 = vld [vmem:[#allocation3 + $0x17c8] ss:$16 sps:$4 sm:$0xff]   ;;  %v17994_v11 = vld [vmem:[#allocation3 + $0x17ac] ss:$16 sps:$4 sm:$0xff]  }
0x17ed   : > { %14021 = vmatprep.subr.bf16.mxu0 %v17955_v31  ;;  %v17989_v15 = vld [vmem:[#allocation3 + $0x15a8] ss:$16 sps:$4 sm:$0xff]   ;;  %v17997_v52 = vld [vmem:[#allocation3 + $0x158c] ss:$16 sps:$4 sm:$0xff]  }
0x17ee   : > { %v17992_v32 = vld [vmem:[#allocation3 + $0x17a8] ss:$16 sps:$4 sm:$0xff]   ;;  %v18000_v61 = vld [vmem:[#allocation3 + $0x178c] ss:$16 sps:$4 sm:$0xff]  }
0x17ef   : > { %14073 = vmatpush1.bf16.msra.mxu1 %v17950_v42  ;;  %v17995_v27 = vld [vmem:[#allocation3 + $0x1588] ss:$16 sps:$4 sm:$0xff]   ;;  %v18003_v23 = vld [vmem:[#allocation3 + $0x156c] ss:$16 sps:$4 sm:$0xff]  }
0x17f0   : > { %14074 = vmatprep.subr.bf16.mxu1 %v17958_v49  ;;  %14022 = vmatpush1.bf16.msra.mxu0 %v17953_v38  ;;  %v17998_v50 = vld [vmem:[#allocation3 + $0x1788] ss:$16 sps:$4 sm:$0xff]   ;;  %v18006_v54 = vld [vmem:[#allocation3 + $0x176c] ss:$16 sps:$4 sm:$0xff]  }
0x17f1   : > { %14023 = vmatprep.subr.bf16.mxu0 %v17961_v12  ;;  %v18001_v34 = vld [vmem:[#allocation3 + $0x1568] ss:$16 sps:$4 sm:$0xff]   ;;  %v18009_v1 = vld [vmem:[#allocation3 + $0x154c] ss:$16 sps:$4 sm:$0xff]  }
0x17f2   : > { %v18004_v63 = vld [vmem:[#allocation3 + $0x1768] ss:$16 sps:$4 sm:$0xff]   ;;  %v18012_v21 = vld [vmem:[#allocation3 + $0x174c] ss:$16 sps:$4 sm:$0xff]  }
0x17f3   : > { %14075 = vmatpush1.bf16.msra.mxu1 %v17956_v35  ;;  %v18007_v40 = vld [vmem:[#allocation3 + $0x1548] ss:$16 sps:$4 sm:$0xff]   ;;  %v18015_v51 = vld [vmem:[#allocation3 + $0x152c] ss:$16 sps:$4 sm:$0xff]  }
0x17f4   : > { %14076 = vmatprep.subr.bf16.mxu1 %v17964_v10  ;;  %14024 = vmatpush1.bf16.msra.mxu0 %v17959_v41  ;;  %v18010_v25 = vld [vmem:[#allocation3 + $0x1748] ss:$16 sps:$4 sm:$0xff]   ;;  %v18018_v26 = vld [vmem:[#allocation3 + $0x172c] ss:$16 sps:$4 sm:$0xff]  }
0x17f5   : > { %14025 = vmatprep.subr.bf16.mxu0 %v17967_v0  ;;  %v18013_v3 = vld [vmem:[#allocation3 + $0x1528] ss:$16 sps:$4 sm:$0xff]   ;;  %v18021_v14 = vld [vmem:[#allocation3 + $0x150c] ss:$16 sps:$4 sm:$0xff]  }
0x17f6   : > { %v18016_v30 = vld [vmem:[#allocation3 + $0x1728] ss:$16 sps:$4 sm:$0xff]   ;;  %v18024_v9 = vld [vmem:[#allocation3 + $0x170c] ss:$16 sps:$4 sm:$0xff]  }
0x17f7   : > { %14077 = vmatpush1.bf16.msra.mxu1 %v17962_v2  ;;  %v18019_v13 = vld [vmem:[#allocation3 + $0x1508] ss:$16 sps:$4 sm:$0xff]   ;;  %v21088_v62 = vld [vmem:[%s21122_s5] sm:$0xff] }
0x17f8   : > { %14078 = vmatprep.subr.bf16.mxu1 %v17970_v16  ;;  %14026 = vmatpush1.bf16.msra.mxu0 %v17965_v37  ;;  %v18022_v59 = vld [vmem:[#allocation3 + $0x1708] ss:$16 sps:$4 sm:$0xff]  }
0x17f9   : > { %14027 = vmatprep.subr.bf16.mxu0 %v17973_v48  ;;  %v21095_v35 = vld [vmem:[%s21122_s5 + $0x8] sm:$0xff] }
0x17fb   : > { %14079 = vmatpush1.bf16.msra.mxu1 %v17968_v24 }
0x17fc   : > { %14080 = vmatprep.subr.bf16.mxu1 %v17976_v53  ;;  %14028 = vmatpush1.bf16.msra.mxu0 %v17971_v44  ;;  %v14137_v44 = vld [vmem:[%s21122_s5 + $0x10] sm:$0xff] }
0x17fd   : > { %14029 = vmatprep.subr.bf16.mxu0 %v17979_v6 }
0x17ff   : > { %14081 = vmatpush1.bf16.msra.mxu1 %v17974_v56 }
0x1800   : > { %14082 = vmatprep.subr.bf16.mxu1 %v17982_v18  ;;  %14030 = vmatpush2.bf16.msra.mxu0 %v17977_v47 }
0x1801   : > { %14031 = vmatprep.subr.bf16.mxu0 %v17985_v22 }
0x1803   : > { %14083 = vmatpush2.bf16.msra.mxu1 %v17980_v20 }
0x1804   : > { %14084 = vmatprep.subr.bf16.mxu1 %v17988_v58  ;;  %14032 = vmatpush2.bf16.msra.mxu0 %v17983_v60 }
0x1805   : > { %14033 = vmatprep.subr.bf16.mxu0 %v17991_v19  ;;  %v14138_v19 = vld [vmem:[%s21122_s5 + $0x18] sm:$0xff] }
0x1807   : > { %14085 = vmatpush2.bf16.msra.mxu1 %v17986_v8 }
0x1808   : > { %14086 = vmatprep.subr.bf16.mxu1 %v17994_v11  ;;  %14034 = vmatpush2.bf16.msra.mxu0 %v17989_v15 }
0x1809   : > { %14035 = vmatprep.subr.bf16.mxu0 %v17997_v52 }
0x180b   : > { %14087 = vmatpush2.bf16.msra.mxu1 %v17992_v32 }
0x180c   : > { %14088 = vmatprep.subr.bf16.mxu1 %v18000_v61  ;;  %14036 = vmatpush2.bf16.msra.mxu0 %v17995_v27 }
0x180d   : > { %14037 = vmatprep.subr.bf16.mxu0 %v18003_v23 }
0x180f   : > { %14089 = vmatpush2.bf16.msra.mxu1 %v17998_v50 }
0x1810   : > { %14090 = vmatprep.subr.bf16.mxu1 %v18006_v54  ;;  %14038 = vmatpush2.bf16.msra.mxu0 %v18001_v34 }
0x1811   : > { %14039 = vmatprep.subr.bf16.mxu0 %v18009_v1 }
0x1813   : > { %14091 = vmatpush2.bf16.msra.mxu1 %v18004_v63 }
0x1814   : > { %14092 = vmatprep.subr.bf16.mxu1 %v18012_v21  ;;  %14040 = vmatpush2.bf16.msra.mxu0 %v18007_v40 }
0x1815   : > { %14041 = vmatprep.subr.bf16.mxu0 %v18015_v51 }
0x1817   : > { %14093 = vmatpush2.bf16.msra.mxu1 %v18010_v25 }
0x1818   : > { %14094 = vmatprep.subr.bf16.mxu1 %v18018_v26  ;;  %14042 = vmatpush2.bf16.msra.mxu0 %v18013_v3 }
0x1819   : > { %14043 = vmatprep.subr.bf16.mxu0 %v18021_v14 }
0x181b   : > { %14095 = vmatpush2.bf16.msra.mxu1 %v18016_v30 }
0x181c   : > { %14096 = vmatprep.subr.bf16.mxu1 %v18024_v9  ;;  %14044 = vmatpush2.bf16.msra.mxu0 %v18019_v13 }
0x181f   : > { %14097 = vmatpush2.bf16.msra.mxu1 %v18022_v59  ;;  %14046 = vmatmul.mubr.bf16.vlgmr.msra.gmra.mxu0 %v21061_v39 }
0x1820   : > { %14055 = vmatprep.mubr.bf16.mxu0 %v21067_v46 }
0x1822   : > { %14099 = vmatmul.mubr.bf16.vlgmr.msra.gmra.mxu1 %v21063_v28 }
0x1823   : > { %14108 = vmatprep.mubr.bf16.mxu1 %v21070_v57 }
0x1827   : > { %14056 = vmatmul.mubr.bf16.gmra.mxu0 %v21072_v5 }
0x182a   : > { %14109 = vmatmul.mubr.bf16.gmra.mxu1 %v21074_v55 }
0x189f   : > { %v13941_v45 = vpop.f32.mrf.mxu0 }
0x18a1   : > { %v13943_v4 = vpop.f32.mrf.mxu0 }
0x18a2   : > { %v13994_v43 = vpop.f32.mrf.mxu1 }
0x18a3   : > { %v13995_v29 = vadd.f32 %v13994_v43, %v13941_v45  ;;  %v13945_v36 = vpop.f32.mrf.mxu0 }
0x18a4   : > { %v13996_v39 = vpop.f32.mrf.mxu1 }
0x18a5   : > { %v14119_v17 = vmul.f32 0.33333334, %v13995_v29  ;;  %v13997_v46 = vadd.f32 %v13996_v39, %v13943_v4  ;;  %v13947_v7 = vpop.f32.mrf.mxu0 }
0x18a6   : > { %v13998_v28 = vpop.f32.mrf.mxu1 }
0x18a7   : > { %v14140_v57 = vmul.f32 %v21088_v62, %v14119_v17  ;;  %v14120_v33 = vmul.f32 0.33333334, %v13997_v46  ;;  %v13999_v5 = vadd.f32 %v13998_v28, %v13945_v36  ;;  %v13951_v38 = vpop.f32.mrf.mxu0 }
0x18a8   : > { %v14000_v55 = vpop.f32.mrf.mxu1 }
0x18a9   : > { %v14177_v42 = vmul.f32 %v21088_v62, %v14120_v33  ;;  %v14123_v31 = vmul.f32 0.33333334, %v13999_v5  ;;  %v14001_v49 = vadd.f32 %v14000_v55, %v13947_v7  ;;  %14144 = vadd.xlane.f32.xlu1 %v14140_v57  ;;  %v13953_v2 = vpop.f32.mrf.mxu0 }
0x18aa   : > { %v14004_v12 = vpop.f32.mrf.mxu1 }
0x18ab   : > { %v14124_v10 = vmul.f32 0.33333334, %v14001_v49  ;;  %v14005_v41 = vadd.f32 %v14004_v12, %v13951_v38  ;;  %14181 = vadd.xlane.f32.xlu0 %v14177_v42  ;;  %v14141_v16 = vmul.f32 %v21095_v35, %v14123_v31  ;;  %v13955_v53 = vpop.f32.mrf.mxu0 }
0x18ac   : > { %v14006_v0 = vpop.f32.mrf.mxu1 }
0x18ad   : > { %v14178_v37 = vmul.f32 %v21095_v35, %v14124_v10  ;;  %v14127_v24 = vmul.f32 0.33333334, %v14005_v41  ;;  %v14007_v48 = vadd.f32 %v14006_v0, %v13953_v2  ;;  %v13957_v47 = vpop.f32.mrf.mxu0 }
0x18ae   : > { %v14008_v56 = vpop.f32.mrf.mxu1 }
0x18af   : > { %v14128_v6 = vmul.f32 0.33333334, %v14007_v48  ;;  %v14009_v18 = vadd.f32 %v14008_v56, %v13955_v53  ;;  %14146 = vadd.xlane.f32.xlu0 %v14141_v16  ;;  %14183 = vadd.xlane.f32.xlu1 %v14178_v37  ;;  %v14142_v22 = vmul.f32 %v14137_v44, %v14127_v24 }
0x18b0   : > { %v14010_v20 = vpop.f32.mrf.mxu1 }
0x18b1   : > { %v14179_v58 = vmul.f32 %v14137_v44, %v14128_v6  ;;  %v14131_v60 = vmul.f32 0.33333334, %v14009_v18  ;;  %v14011_v8 = vadd.f32 %v14010_v20, %v13957_v47 }
0x18b3   : > { %v14132_v11 = vmul.f32 0.33333334, %v14011_v8  ;;  %14148 = vadd.xlane.f32.xlu0 %v14142_v22  ;;  %14185 = vadd.xlane.f32.xlu1 %v14179_v58  ;;  %v14143_v15 = vmul.f32 %v14138_v19, %v14131_v60 }
0x18b5   : > { %v14180_v32 = vmul.f32 %v14138_v19, %v14132_v11 }
0x18b7   : > { %14150 = vadd.xlane.f32.xlu1 %v14143_v15  ;;  %14187 = vadd.xlane.f32.xlu0 %v14180_v32 }
0x18df   : > { %v14047_v52 = vpop.f32.mrf.mxu0 }
0x18e1   : > { %v14049_v50 = vpop.f32.mrf.mxu0 }
0x18e2   : > { %v14100_v61 = vpop.f32.mrf.mxu1 }
0x18e3   : > { %v14101_v27 = vadd.f32 %v14100_v61, %v14047_v52  ;;  %v14051_v63 = vpop.f32.mrf.mxu0  ;;  %v14139_v52 = vld [vmem:[#allocation2] sm:$0x1] }
0x18e4   : > { %v14102_v23 = vpop.f32.mrf.mxu1 }
0x18e5   : > { %v14121_v54 = vmul.f32 0.33333334, %v14101_v27  ;;  %v14103_v34 = vadd.f32 %v14102_v23, %v14049_v50  ;;  %v14053_v51 = vpop.f32.mrf.mxu0 }
0x18e6   : > { %v14104_v1 = vpop.f32.mrf.mxu1 }
0x18e7   : > { %v14214_v21 = vmul.f32 %v21088_v62, %v14121_v54  ;;  %v14122_v40 = vmul.f32 0.33333334, %v14103_v34  ;;  %v14105_v25 = vadd.f32 %v14104_v1, %v14051_v63  ;;  %v14057_v14 = vpop.f32.mrf.mxu0 }
0x18e8   : > { %v14106_v26 = vpop.f32.mrf.mxu1 }
0x18e9   : > { %v14125_v3 = vmul.f32 0.33333334, %v14105_v25  ;;  %v14107_v30 = vadd.f32 %v14106_v26, %v14053_v51  ;;  %14218 = vadd.xlane.f32.xlu0 %v14214_v21  ;;  %v14251_v13 = vmul.f32 %v21088_v62, %v14122_v40  ;;  %v14059_v29 = vpop.f32.mrf.mxu0 }
0x18ea   : > { %v14110_v9 = vpop.f32.mrf.mxu1 }
0x18eb   : > { %v14215_v59 = vmul.f32 %v21095_v35, %v14125_v3  ;;  %v14126_v45 = vmul.f32 0.33333334, %v14107_v30  ;;  %v14111_v43 = vadd.f32 %v14110_v9, %v14057_v14  ;;  %v14061_v46 = vpop.f32.mrf.mxu0 }
0x18ec   : > { %v14112_v4 = vpop.f32.mrf.mxu1 }
0x18ed   : > { %v14129_v39 = vmul.f32 0.33333334, %v14111_v43  ;;  %v14113_v17 = vadd.f32 %v14112_v4, %v14059_v29  ;;  %14220 = vadd.xlane.f32.xlu1 %v14215_v59  ;;  %14255 = vadd.xlane.f32.xlu0 %v14251_v13  ;;  %v14252_v28 = vmul.f32 %v21095_v35, %v14126_v45  ;;  %v14063_v7 = vpop.f32.mrf.mxu0 }
0x18ee   : > { %v14114_v36 = vpop.f32.mrf.mxu1 }
0x18ef   : > { %v14216_v57 = vmul.f32 %v14137_v44, %v14129_v39  ;;  %v14130_v33 = vmul.f32 0.33333334, %v14113_v17  ;;  %v14115_v5 = vadd.f32 %v14114_v36, %v14061_v46 }
0x18f0   : > { %v14116_v55 = vpop.f32.mrf.mxu1 }
0x18f1   : > { %v14133_v62 = vmul.f32 0.33333334, %v14115_v5  ;;  %v14117_v42 = vadd.f32 %v14116_v55, %v14063_v7  ;;  %14257 = vadd.xlane.f32.xlu1 %v14252_v28  ;;  %14222 = vadd.xlane.f32.xlu0 %v14216_v57  ;;  %v14253_v31 = vmul.f32 %v14137_v44, %v14130_v33 }
0x18f3   : > { %v14217_v49 = vmul.f32 %v14138_v19, %v14133_v62  ;;  %v14134_v38 = vmul.f32 0.33333334, %v14117_v42 }
0x18f5   : > { %14259 = vadd.xlane.f32.xlu1 %v14253_v31  ;;  %14224 = vadd.xlane.f32.xlu0 %v14217_v49  ;;  %v14254_v12 = vmul.f32 %v14138_v19, %v14134_v38 }
0x18f9   : > { %14261 = vadd.xlane.f32.xlu1 %v14254_v12 }
0x1932   : > { %v14145_v10 = vpop.xlane.xlu1 %14144 }
0x1934   : > { %v14182_v41 = vpop.xlane.xlu0 %14181 }
0x1938   : > { %v14147_v2 = vpop.xlane.xlu0 %14146  ;;  %v14184_v35 = vpop.xlane.xlu1 %14183 }
0x1939   : > { %v14152_v37 = vadd.f32 %v14147_v2, %v14145_v10  ;;  %v14189_v24 = vadd.f32 %v14184_v35, %v14182_v41 }
0x193c   : > { %v14149_v0 = vpop.xlane.xlu0 %14148  ;;  %v14186_v16 = vpop.xlane.xlu1 %14185 }
0x193d   : > { %v14153_v48 = vadd.f32 %v14152_v37, %v14149_v0  ;;  %v14190_v53 = vadd.f32 %v14189_v24, %v14186_v16 }
0x1940   : > { %v14151_v56 = vpop.xlane.xlu1 %14150  ;;  %v14188_v6 = vpop.xlane.xlu0 %14187 }
0x1941   : > { %v14154_v18 = vadd.f32 %v14153_v48, %v14151_v56  ;;  %v14191_v44 = vadd.f32 %v14190_v53, %v14188_v6 }
0x1943   : > { %v14155_v47 = vrot.slane %v14154_v18, 4  ;;  %v14192_v20 = vrot.slane %v14191_v44, 4 }
0x1945   : > { %v14156_v22 = vadd.f32 %v14155_v47, %v14154_v18  ;;  %v14193_v58 = vadd.f32 %v14192_v20, %v14191_v44  ;;  %v21199_v44 = vlaneseq }
0x1947   : > { %v14157_v60 = vrot.slane %v14156_v22, 2  ;;  %v14194_v8 = vrot.slane %v14193_v58, 2  ;;  %v14174_v47 = vshrl.u32 %v21199_v44, 7 }
0x1949   : > { %v14158_v19 = vadd.f32 %v14157_v60, %v14156_v22  ;;  %v14195_v11 = vadd.f32 %v14194_v8, %v14193_v58  ;;  %v14175_v22 = vsub.s32 0, %v14174_v47 }
0x194b   : > { %v14159_v15 = vrot.slane %v14158_v19, 1  ;;  %v14196_v32 = vrot.slane %v14195_v11, 1 }
0x194d   : > { %v14160_v61 = vadd.f32 %v14159_v15, %v14158_v19  ;;  %v14197_v27 = vadd.f32 %v14196_v32, %v14195_v11 }
0x194f   : > { %v14161_v50 = vadd.f32 %v14160_v61, %v14139_v52  ;;  %v14198_v23 = vadd.f32 %v14197_v27, %v14139_v52 }
0x1951   : > { %v14162_v54 = vsub.f32 0.0, %v14161_v50  ;;  %v14199_v34 = vsub.f32 0.0, %v14198_v23 }
0x1953   : > { %v14163_v63 = vmul.f32 1.442695, %v14162_v54  ;;  %v14200_v1 = vmul.f32 1.442695, %v14199_v34 }
0x1955   : > { %18025 = vpow2.f32 %v14163_v63 }
0x1956   : > { %18027 = vpow2.f32 %v14200_v1 }
0x1962   : > { %v18026_v21 = vpop.eup %18025 }
0x1963   : > { %v18028_v40 = vpop.eup %18027  ;;  %v14165_v25 = vadd.f32 1.0, %v18026_v21 }
0x1964   : > { %v14202_v51 = vadd.f32 1.0, %v18028_v40 }
0x1965   : > { %18029 = vrcp.f32 %v14165_v25 }
0x1966   : > { %18031 = vrcp.f32 %v14202_v51 }
0x1972   : > { %v18030_v26 = vpop.eup %18029  ;;  %v14219_v3 = vpop.xlane.xlu0 %14218 }
0x1973   : > { %v18032_v30 = vpop.eup %18031  ;;  %14170 = vperm.xlu0 %15833, %v18030_v26  }
0x1974   : > { %14207 = vperm.xlu1 %15834, %v18032_v30  }
0x1976   : > { %v14221_v14 = vpop.xlane.xlu1 %14220  ;;  %v14256_v9 = vpop.xlane.xlu0 %14255 }
0x1977   : > { %v14226_v45 = vadd.f32 %v14221_v14, %v14219_v3 }
0x197a   : > { %v14258_v13 = vpop.xlane.xlu1 %14257  ;;  %v14223_v59 = vpop.xlane.xlu0 %14222 }
0x197b   : > { %v14227_v43 = vadd.f32 %v14226_v45, %v14223_v59  ;;  %v14263_v39 = vadd.f32 %v14258_v13, %v14256_v9 }
0x197e   : > { %v14260_v29 = vpop.xlane.xlu1 %14259  ;;  %v14225_v4 = vpop.xlane.xlu0 %14224 }
0x197f   : > { %v14228_v17 = vadd.f32 %v14227_v43, %v14225_v4  ;;  %v14264_v46 = vadd.f32 %v14263_v39, %v14260_v29 }
0x1981   : > { %v14229_v36 = vrot.slane %v14228_v17, 4 }
0x1982   : > { %v14262_v28 = vpop.xlane.xlu1 %14261 }
0x1983   : > { %v14230_v57 = vadd.f32 %v14229_v36, %v14228_v17  ;;  %v14265_v33 = vadd.f32 %v14264_v46, %v14262_v28 }
0x1985   : > { %v14231_v5 = vrot.slane %v14230_v57, 2  ;;  %v14266_v7 = vrot.slane %v14265_v33, 4 }
0x1987   : > { %v14232_v55 = vadd.f32 %v14231_v5, %v14230_v57  ;;  %v14267_v62 = vadd.f32 %v14266_v7, %v14265_v33 }
0x1989   : > { %v14233_v42 = vrot.slane %v14232_v55, 1  ;;  %v14268_v31 = vrot.slane %v14267_v62, 2 }
0x198b   : > { %v14234_v49 = vadd.f32 %v14233_v42, %v14232_v55  ;;  %v14269_v38 = vadd.f32 %v14268_v31, %v14267_v62 }
0x198d   : > { %v14235_v12 = vadd.f32 %v14234_v49, %v14139_v52  ;;  %v14270_v10 = vrot.slane %v14269_v38, 1 }
0x198f   : > { %v14236_v41 = vsub.f32 0.0, %v14235_v12  ;;  %v14271_v2 = vadd.f32 %v14270_v10, %v14269_v38 }
0x1991   : > { %v14237_v35 = vmul.f32 1.442695, %v14236_v41  ;;  %v14272_v0 = vadd.f32 %v14271_v2, %v14139_v52 }
0x1993   : > { %18033 = vpow2.f32 %v14237_v35  ;;  %v14273_v16 = vsub.f32 0.0, %v14272_v0 }
0x1995   : > { %v14274_v37 = vmul.f32 1.442695, %v14273_v16 }
0x1997   : > { %18035 = vpow2.f32 %v14274_v37 }
0x19a0   : > { %v18034_v24 = vpop.eup %18033 }
0x19a1   : > { %v14239_v48 = vadd.f32 1.0, %v18034_v24 }
0x19a3   : > { %18037 = vrcp.f32 %v14239_v48 }
0x19a4   : > { %v18036_v53 = vpop.eup %18035 }
0x19a5   : > { %v14276_v56 = vadd.f32 1.0, %v18036_v53 }
0x19a7   : > { %18039 = vrcp.f32 %v14276_v56 }
0x19b0   : > { %v18038_v6 = vpop.eup %18037 }
0x19b1   : > { %14244 = vperm.xlu1 %15834, %v18038_v6  }
0x19b4   : > { %v18040_v18 = vpop.eup %18039 }
0x19b5   : > { %14281 = vperm.xlu0 %15833, %v18040_v18  }
0x19ee   : > { %v14171_v58 = vpop.permute.xlu0 %14170 }
0x19ef   : > { %v14208_v20 = vpop.permute.xlu1 %14207  ;;  %v14176_v19 = vrot.slane %v14171_v58, %v14175_v22 }
0x19f0   : > { %v14213_v8 = vrot.slane %v14208_v20, %v14175_v22 }
0x19f2   : > { %v14289_v32 = vsel %vm14288_vm2, %v14176_v19, %v14213_v8 }
0x1a2c   : > { %v14245_v60 = vpop.permute.xlu1 %14244 }
0x1a2d   : > { %v14250_v11 = vrot.slane %v14245_v60, %v14175_v22 }
0x1a2f   : > { %v14291_v61 = vsel %vm14290_vm3, %v14289_v32, %v14250_v11 }
0x1a30   : > { %v14282_v15 = vpop.permute.xlu0 %14281 }
0x1a31   : > { %v14287_v52 = vrot.slane %v14282_v15, %v14175_v22 }
0x1a33   : > { %v14293_v27 = vsel %vm14292_vm12, %v14291_v61, %v14287_v52 }
0x1a34   : > { %14294 = vst [vmem:[%s320_s24] sm:$0xf] %v14293_v27 }
0x1a35 PF: > { %s21_s29 = sadd.s32 1, %s18077_s29  }
0x1a36   : > { %p18_p1 = scmp.ge.s32.totalorder %s21_s29, 4  }
0x1a38   :  { %20 = sbr.rel (!%p18_p1) target bundleno = 4 (0x4), region = 140 }
0x1a3d   :  { %14314 = vsyncpa [#allocation4], 1 }
0x1a3e   :  { %14316 = vsyncpa [#allocation4 + $0x1], 1 }

</bundles_post_ra>
